<compile_context>
chip_gen: v7x
topology: tpu7x:2x2x1
jax: 0.10.0
libtpu: 0.0.40
codegen_flags: <defaults>
</compile_context>

<pallas_src>
import functools

import jax
import jax.numpy as jnp
from jax import lax
from jax.experimental import pallas as pl
from jax.experimental.pallas import tpu as pltpu


# ----------------------------------------------------------------------------
# Grouped matmul kernel: grid = (group, row_tile).
#   y[g, tile] = act( x[g or 0, tile] @ w[g] + b )
# Optionally also emits per-tile partial (sum, sum_sq) over rows so BatchNorm
# batch statistics need no extra HBM pass over the activation.  Main output is
# stored in `out_dtype` (bf16 between layers); stats stay f32.
# ----------------------------------------------------------------------------
def _gmm_kernel(x_ref, w_ref, b_ref, *out_refs, act, with_stats):
    y = jnp.dot(x_ref[0], w_ref[0], preferred_element_type=jnp.float32)
    y = y + b_ref[...]
    if with_stats:
        # Stats are taken on the raw (pre-activation) values; padded rows
        # contribute exactly the bias, which is corrected outside.  The
        # with_stats layers therefore must run with act=None (invariant kept).
        s1 = jnp.sum(y, axis=0, keepdims=True)
        s2 = jnp.sum(y * y, axis=0, keepdims=True)
        out_refs[1][0, 0] = jnp.concatenate([s1, s2], axis=0)
    if act is not None:
        y = act(y)
    out_refs[0][0] = y.astype(out_refs[0].dtype)


def pallas_grouped_matmul(patches, weights, bias, *, act=None, with_stats=False,
                          out_dtype=jnp.bfloat16, tm=1024):
    """patches: (Pp, M, K) with Pp in {1, P} (Pp==1 -> shared across groups),
    weights: (P, K, Co), bias: (1, Co) f32.  Returns (y, stats, (M, Mp))."""
    Pp, M, K = patches.shape
    P, K2, Co = weights.shape
    assert K2 == K and Pp in (1, P)
    assert not (with_stats and act is not None)

    if M <= tm:
        tm_eff, Mp, xp = M, M, patches
    else:
        tm_eff = tm
        Mp = pl.cdiv(M, tm) * tm
        xp = jnp.pad(patches, ((0, 0), (0, Mp - M), (0, 0))) if Mp != M else patches
    nt = Mp // tm_eff

    x_map = (lambda p, i: (0, i, 0)) if Pp == 1 else (lambda p, i: (p, i, 0))
    in_specs = [
        pl.BlockSpec((1, tm_eff, K), x_map),
        pl.BlockSpec((1, K, Co), lambda p, i: (p, 0, 0)),
        pl.BlockSpec((1, Co), lambda p, i: (0, 0)),
    ]
    out_shape = [jax.ShapeDtypeStruct((P, Mp, Co), out_dtype)]
    out_specs = [pl.BlockSpec((1, tm_eff, Co), lambda p, i: (p, i, 0))]
    if with_stats:
        out_shape.append(jax.ShapeDtypeStruct((P, nt, 2, Co), jnp.float32))
        out_specs.append(pl.BlockSpec((1, 1, 2, Co), lambda p, i: (p, i, 0, 0)))

    res = pl.pallas_call(
        functools.partial(_gmm_kernel, act=act, with_stats=with_stats),
        out_shape=out_shape,
        grid_spec=pltpu.PrefetchScalarGridSpec(
            num_scalar_prefetch=0,
            grid=(P, nt),
            in_specs=in_specs,
            out_specs=out_specs,
        ),
        compiler_params=pltpu.CompilerParams(
            dimension_semantics=("parallel", "parallel")),
    )(xp, weights, bias)
    y = res[0]
    stats = res[1] if with_stats else None
    return y, stats, (M, Mp)


# ----------------------------------------------------------------------------
# LSTM recurrence: input projection precomputed; one (B,Hg)@(Hg,4*Hg) dot per
# step, `Tt` steps per grid invocation (unrolled), gates/h/c kept at the full
# padded width Hg (lane-dense; padded weight columns are zero so padded lanes
# stay exactly zero and are sliced off outside).
# ----------------------------------------------------------------------------
def _lstm_rec_kernel(xp_ref, whh_ref, y_ref, h_sc, c_sc, *, Tt, Hg):
    @pl.when(pl.program_id(1) == 0)
    def _():
        h_sc[...] = jnp.zeros_like(h_sc)
        c_sc[...] = jnp.zeros_like(c_sc)

    def step(tt, carry):
        z = xp_ref[tt] + jnp.dot(h_sc[...], whh_ref[...],
                                 preferred_element_type=jnp.float32)
        i = jax.nn.sigmoid(z[:, 0 * Hg:1 * Hg])
        f = jax.nn.sigmoid(z[:, 1 * Hg:2 * Hg])
        g = jnp.tanh(z[:, 2 * Hg:3 * Hg])
        o = jax.nn.sigmoid(z[:, 3 * Hg:4 * Hg])
        c = f * c_sc[...] + i * g
        h = o * jnp.tanh(c)
        c_sc[...] = c
        h_sc[...] = h
        y_ref[tt] = h
        return carry

    lax.fori_loop(0, Tt, step, 0, unroll=True)


def pallas_lstm_recurrence(xproj, whh, *, time_chunk=8):
    """xproj: (T, B, 4*Hg) f32 (x@W_ih + b_ih + b_hh); whh: (Hg, 4*Hg) f32."""
    T, B, H4 = xproj.shape
    Hg = H4 // 4
    Tt = min(time_chunk, T)
    Tp = pl.cdiv(T, Tt) * Tt
    if Tp != T:
        xproj = jnp.pad(xproj, ((0, Tp - T), (0, 0), (0, 0)))
    # Split batch across the two v7x TensorCores only when both halves stay
    # sublane-aligned (>=8 rows each); otherwise run a single recurrence.
    nb = 2 if (B % 16 == 0) else 1
    Bc = B // nb
    y = pl.pallas_call(
        functools.partial(_lstm_rec_kernel, Tt=Tt, Hg=Hg),
        out_shape=jax.ShapeDtypeStruct((Tp, B, Hg), jnp.float32),
        grid_spec=pltpu.PrefetchScalarGridSpec(
            num_scalar_prefetch=0,
            grid=(nb, Tp // Tt),
            in_specs=[
                pl.BlockSpec((Tt, Bc, H4), lambda b, t: (t, b, 0)),
                pl.BlockSpec((Hg, H4), lambda b, t: (0, 0)),
            ],
            out_specs=pl.BlockSpec((Tt, Bc, Hg), lambda b, t: (t, b, 0)),
            scratch_shapes=[pltpu.VMEM((Bc, Hg), jnp.float32),
                            pltpu.VMEM((Bc, Hg), jnp.float32)],
        ),
        compiler_params=pltpu.CompilerParams(
            dimension_semantics=("parallel", "arbitrary")),
    )(xproj, whh)
    return y[:T]


# ----------------------------------------------------------------------------
# Parameters: raw PyTorch-layout init + one-time re-layout for the kernels.
# ----------------------------------------------------------------------------
_CNN_COUT = [256, 128, 64, 32, None]           # None -> out_dim (final layer)
_CNN_HAS_BN = [True, True, True, True, False]


def _round128(c):
    return ((c + 127) // 128) * 128


def init_raw_params(key, in_dim, out_dim, hidden_dim):
    p = {}
    keys = list(jax.random.split(key, 64))
    nk = iter(range(64))
    s = 1.0 / float(hidden_dim) ** 0.5
    p["wih"] = jax.random.uniform(keys[next(nk)], (4, in_dim, hidden_dim), jnp.float32, -s, s)
    p["whh"] = jax.random.uniform(keys[next(nk)], (4, hidden_dim, hidden_dim), jnp.float32, -s, s)
    p["b_ih"] = jax.random.uniform(keys[next(nk)], (4, hidden_dim), jnp.float32, -s, s)
    p["b_hh"] = jax.random.uniform(keys[next(nk)], (4, hidden_dim), jnp.float32, -s, s)

    cin = hidden_dim
    for li, (cout, has_bn) in enumerate(zip(_CNN_COUT, _CNN_HAS_BN)):
        cout = out_dim if cout is None else cout
        sc = 1.0 / float(cin * 16) ** 0.5
        p[f"convW{li}"] = jax.random.uniform(keys[next(nk)], (cin, cout, 4, 4), jnp.float32, -sc, sc)
        p[f"convb{li}"] = jax.random.uniform(keys[next(nk)], (cout,), jnp.float32, -sc, sc)
        if has_bn:
            p[f"bn_g{li}"] = jnp.ones((cout,), jnp.float32)
            p[f"bn_b{li}"] = jnp.zeros((cout,), jnp.float32)
        cin = cout
    return p


def prepare_params(raw, in_dim, out_dim, hidden_dim):
    """One-time weight re-layout (hoisted out of the forward pass).
    Returns an array-only pytree (all static config is recovered from shapes)."""
    H = hidden_dim
    Hg = _round128(H)
    wih = jnp.zeros((in_dim, 4 * Hg), jnp.float32)
    whh = jnp.zeros((Hg, 4 * Hg), jnp.float32)
    b = jnp.zeros((1, 4 * Hg), jnp.float32)
    for g in range(4):
        wih = wih.at[:, g * Hg:g * Hg + H].set(raw["wih"][g])
        whh = whh.at[:H, g * Hg:g * Hg + H].set(raw["whh"][g])
        b = b.at[0, g * Hg:g * Hg + H].set(raw["b_ih"][g] + raw["b_hh"][g])
    prep = {"wih": wih, "whh": whh, "b_lstm": b}

    convs = []
    cin = hidden_dim
    for li, (cout, has_bn) in enumerate(zip(_CNN_COUT, _CNN_HAS_BN)):
        cout = out_dim if cout is None else cout
        cop = _round128(cout)
        W = raw[f"convW{li}"]                                   # (cin, cout, 4, 4)
        if li == 0:
            # 1x1 input / stride 1 / pad 0: one wide matmul -> (N, 16*cop).
            # K is padded to Hg (zero rows) so LSTM features feed in lane-dense.
            Wm = jnp.zeros((Hg, 4, 4, cop), jnp.float32)
            Wm = Wm.at[:cin, :, :, :cout].set(W.transpose(0, 2, 3, 1))
            Wm = Wm.reshape(1, Hg, 16 * cop)
            bch = jnp.zeros((cop,), jnp.float32).at[:cout].set(raw[f"convb{li}"])
            brow = jnp.tile(bch, 16)[None, :]
        else:
            # Sub-pixel (output-parity) decomposition of the stride-2 / k=4 / p=1
            # ConvTranspose2d into four stride-1 2x2 convolutions.  K = 4*cin with
            # the REAL input channel count (no lane padding on the contraction dim).
            subs = []
            for py in (0, 1):
                ky_idx = jnp.array([3, 1]) if py == 0 else jnp.array([2, 0])
                for px in (0, 1):
                    kx_idx = jnp.array([3, 1]) if px == 0 else jnp.array([2, 0])
                    Wp = W[:, :, ky_idx, :][:, :, :, kx_idx]    # (cin, cout, dy, dx)
                    Wp = Wp.transpose(2, 3, 0, 1)               # (dy, dx, cin, cout)
                    Wf = jnp.zeros((2, 2, cin, cop), jnp.float32)
                    Wf = Wf.at[:, :, :, :cout].set(Wp)
                    subs.append(Wf.reshape(4 * cin, cop))
            Wm = jnp.stack(subs, axis=0)                        # (4, 4*cin, cop)
            brow = jnp.zeros((1, cop), jnp.float32).at[0, :cout].set(raw[f"convb{li}"])
        lay = {"W": Wm.astype(jnp.bfloat16), "b": brow}
        if has_bn:
            lay["gamma"] = raw[f"bn_g{li}"]
            lay["beta"] = raw[f"bn_b{li}"]
        convs.append(lay)
        cin = cout
    prep["convs"] = convs
    return prep


def _bn_affine(tot, bias_vec, gamma, beta, n_true, n_pad, eps=1e-5):
    """Train-mode BN (batch stats, biased variance) from fused partial sums.
    Zero-padded rows of the matmul contribute exactly the bias -> corrected."""
    s1 = tot[0] - n_pad * bias_vec
    s2 = tot[1] - n_pad * (bias_vec * bias_vec)
    mean = s1 / n_true
    var = jnp.maximum(s2 / n_true - mean * mean, 0.0)
    scale = gamma * lax.rsqrt(var + eps)
    shift = beta - mean * scale
    return scale, shift


def _leaky(x):
    return jnp.where(x >= 0, x, 0.2 * x)


# ----------------------------------------------------------------------------
# Decoder forward (dataset_type == 'video').
# ----------------------------------------------------------------------------
def decoder_forward(x, prep, out_dim):
    """x: (B, T, in_dim) -> (B, T, out_dim, 64, 64)."""
    B, T, D = x.shape
    Hg = prep["whh"].shape[0]
    N = B * T

    # ---- LSTM ------------------------------------------------------------
    # Transpose the SMALL input to (T, B, D) first so the (much larger)
    # projection is produced directly in recurrence order.
    xt = x.transpose(1, 0, 2).reshape(1, T * B, D)
    yp, _, (M0, _) = pallas_grouped_matmul(
        xt, prep["wih"][None], prep["b_lstm"], out_dtype=jnp.float32)
    xproj = yp[0, :M0].reshape(T, B, 4 * Hg)
    h = pallas_lstm_recurrence(xproj, prep["whh"])            # (T, B, Hg), pad lanes 0
    feat = h.transpose(1, 0, 2).reshape(N, Hg)                # (N, Hg), b-major

    # ---- Layer 0: ConvTranspose(hidden, 256, k=4, s=1, p=0) on 1x1 input --
    # Single wide matmul: (N, Hg) @ (Hg, 16*256) -> all 16 spatial positions.
    lay = prep["convs"][0]
    cop = lay["b"].shape[1] // 16
    cout = lay["gamma"].shape[0]
    y, stats, (M, Mp) = pallas_grouped_matmul(
        feat.astype(jnp.bfloat16)[None], lay["W"], lay["b"], with_stats=True)
    tot = stats.sum(axis=(0, 1)).reshape(2, 16, cop).sum(axis=1)[:, :cout]
    scale, shift = _bn_affine(tot, lay["b"][0, :cout], lay["gamma"], lay["beta"],
                              n_true=16 * M, n_pad=16 * (Mp - M))
    y0 = y[0, :M].reshape(N, 4, 4, cop)[..., :cout]
    a = _leaky(y0.astype(jnp.float32) * scale + shift).astype(jnp.bfloat16)
    Hs = Ws = 4
    out = None

    # ---- Layers 1..4: stride-2 ConvTranspose2d via parity decomposition ---
    # TODO(synk): the spatial zero-pad + 2x2 tap extraction (im2col) and the
    # parity-interleave transpose remain XLA layout glue (bf16, real-channel
    # width); fully fusing them into the matmul kernel (DMA one padded NHWC
    # tile per grid step, taps from shifted VMEM slices) is the next step.
    for lay in prep["convs"][1:]:
        Cin = a.shape[-1]
        has_bn = "gamma" in lay
        cop = lay["b"].shape[1]
        cout = lay["gamma"].shape[0] if has_bn else out_dim

        ap = jnp.pad(a, ((0, 0), (1, 1), (1, 1), (0, 0)))     # bf16, activated
        pats = []
        for py in (0, 1):
            for px in (0, 1):
                p = jnp.stack(
                    [ap[:, py + dy:py + dy + Hs, px + dx:px + dx + Ws, :]
                     for dy in (0, 1) for dx in (0, 1)], axis=3)   # (N,Hs,Ws,4,Cin)
                pats.append(p.reshape(N * Hs * Ws, 4 * Cin))
        pats = jnp.stack(pats, axis=0)                        # (4, M, 4*Cin) bf16

        act = None if has_bn else jax.nn.sigmoid
        out_dtype = jnp.bfloat16 if has_bn else jnp.float32
        y, stats, (M, Mp) = pallas_grouped_matmul(
            pats, lay["W"], lay["b"], act=act, with_stats=has_bn,
            out_dtype=out_dtype)
        y = y[:, :M, :cout]                                   # (4, M, cout)

        if has_bn:
            tot = stats.sum(axis=(0, 1))[:, :cout]
            scale, shift = _bn_affine(tot, lay["b"][0, :cout], lay["gamma"],
                                      lay["beta"], n_true=4 * M,
                                      n_pad=4 * (Mp - M))
            ya = _leaky(y.astype(jnp.float32) * scale + shift).astype(jnp.bfloat16)
            a = (ya.reshape(2, 2, N, Hs, Ws, cout)
                   .transpose(2, 3, 0, 4, 1, 5)
                   .reshape(N, 2 * Hs, 2 * Ws, cout))          # NHWC, interleaved
        else:
            out = (y.reshape(2, 2, N, Hs, Ws, cout)
                     .transpose(2, 5, 3, 0, 4, 1)
                     .reshape(N, cout, 2 * Hs, 2 * Ws))        # NCHW final
        Hs, Ws = 2 * Hs, 2 * Ws

    return out.reshape(B, T, out_dim, Hs, Ws)


if __name__ == "__main__":
    B, T = 2, 2
    in_dim, out_dim, hidden_dim = 8, 3, 16     # dataset_type == 'video'

    key = jax.random.PRNGKey(0)
    kx, kp = jax.random.split(key)
    x = jax.random.normal(kx, (B, T, in_dim), jnp.float32)

    raw = init_raw_params(kp, in_dim, out_dim, hidden_dim)
    prep = prepare_params(raw, in_dim, out_dim, hidden_dim)   # one-time re-layout

    fwd = jax.jit(functools.partial(decoder_forward, out_dim=out_dim))
    out = jax.block_until_ready(fwd(x, prep))

    assert out.shape == (B, T, out_dim, 64, 64), out.shape
    assert bool(jnp.all(jnp.isfinite(out)))
    print("KERNEL_OK")
</pallas_src>

<mosaic_0001>
module attributes {stable_mosaic.version = 11 : i64} {
  func.func @_gmm_kernel(%arg0: i32, %arg1: i32, %arg2: memref<1x4x8xf32, #tpu.memory_space<vmem>>, %arg3: memref<1x8x512xf32, #tpu.memory_space<vmem>>, %arg4: memref<1x512xf32, #tpu.memory_space<vmem>>, %arg5: memref<1x4x512xf32, #tpu.memory_space<vmem>>) attributes {dimension_semantics = [#tpu.dimension_semantics<parallel>, #tpu.dimension_semantics<parallel>], iteration_bounds = array<i64: 1, 1>, scalar_prefetch = 0 : i64, scratch_operands = 0 : i64, tpu.core_type = #tpu.core_type<tc>, window_params = [{transform_indices = @transform_0, window_bounds = array<i64: 1, 4, 8>}, {transform_indices = @transform_1, window_bounds = array<i64: 1, 8, 512>}, {pipeline_mode = #tpu.pipeline_mode<synchronous>, transform_indices = @transform_2, window_bounds = array<i64: 1, 512>}, {transform_indices = @transform_3, window_bounds = array<i64: 1, 4, 512>}]} {
    %c0 = arith.constant 0 : index
    %c0_0 = arith.constant 0 : index
    %c0_1 = arith.constant 0 : index
    %0 = vector.load %arg2[%c0, %c0_0, %c0_1] : memref<1x4x8xf32, #tpu.memory_space<vmem>>, vector<1x4x8xf32>
    %1 = vector.shape_cast %0 : vector<1x4x8xf32> to vector<4x8xf32>
    %c0_2 = arith.constant 0 : index
    %c0_3 = arith.constant 0 : index
    %c0_4 = arith.constant 0 : index
    %2 = vector.load %arg3[%c0_2, %c0_3, %c0_4] : memref<1x8x512xf32, #tpu.memory_space<vmem>>, vector<1x8x512xf32>
    %3 = vector.shape_cast %2 : vector<1x8x512xf32> to vector<8x512xf32>
    %cst = arith.constant dense<0.000000e+00> : vector<4x512xf32>
    %4 = tpu.matmul %1, %3, %cst {dimension_numbers = #tpu.dot_dimension_numbers<[1], [0], [0], [1], [0, 0, 1, 1], [], []>} : vector<4x8xf32>, vector<8x512xf32>, vector<4x512xf32> -> vector<4x512xf32>
    %c0_5 = arith.constant 0 : index
    %c0_6 = arith.constant 0 : index
    %5 = vector.load %arg4[%c0_5, %c0_6] : memref<1x512xf32, #tpu.memory_space<vmem>>, vector<1x512xf32>
    %6 = vector.broadcast %5 : vector<1x512xf32> to vector<4x512xf32>
    %7 = arith.addf %4, %6 : vector<4x512xf32>
    %c0_7 = arith.constant 0 : index
    %c0_8 = arith.constant 0 : index
    %c0_9 = arith.constant 0 : index
    %8 = vector.load %arg5[%c0_7, %c0_8, %c0_9] : memref<1x4x512xf32, #tpu.memory_space<vmem>>, vector<1x4x512xf32>
    %9 = vector.shape_cast %8 : vector<1x4x512xf32> to vector<4x512xf32>
    %10 = vector.shape_cast %7 : vector<4x512xf32> to vector<1x4x512xf32>
    tpu.vector_store %arg5[%c0_7, %c0_8, %c0_9], %10 {strides = array<i32>} : memref<1x4x512xf32, #tpu.memory_space<vmem>>, vector<1x4x512xf32>,
    return
  }
  func.func @transform_0(%arg0: i32, %arg1: i32) -> (i32, i32, i32) {
    %c0_i32 = arith.constant 0 : i32
    %c0_i32_0 = arith.constant 0 : i32
    %c0_i32_1 = arith.constant 0 : i32
    return %c0_i32, %arg1, %c0_i32_0 : i32, i32, i32
  }
  func.func @transform_1(%arg0: i32, %arg1: i32) -> (i32, i32, i32) {
    %c0_i32 = arith.constant 0 : i32
    %c0_i32_0 = arith.constant 0 : i32
    %c0_i32_1 = arith.constant 0 : i32
    return %arg0, %c0_i32, %c0_i32_0 : i32, i32, i32
  }
  func.func @transform_2(%arg0: i32, %arg1: i32) -> (i32, i32) {
    %c0_i32 = arith.constant 0 : i32
    %c0_i32_0 = arith.constant 0 : i32
    %c0_i32_1 = arith.constant 0 : i32
    return %c0_i32, %c0_i32_0 : i32, i32
  }
  func.func @transform_3(%arg0: i32, %arg1: i32) -> (i32, i32, i32) {
    %c0_i32 = arith.constant 0 : i32
    %c0_i32_0 = arith.constant 0 : i32
    return %arg0, %arg1, %c0_i32 : i32, i32, i32
  }
}

module attributes {stable_mosaic.version = 11 : i64} {
  func.func @_lstm_rec_kernel(%arg0: i32, %arg1: i32, %arg2: memref<2x2x512xf32, #tpu.memory_space<vmem>>, %arg3: memref<128x512xf32, #tpu.memory_space<vmem>>, %arg4: memref<2x2x128xf32, #tpu.memory_space<vmem>>, %arg5: memref<2x128xf32, #tpu.memory_space<vmem>>, %arg6: memref<2x128xf32, #tpu.memory_space<vmem>>) attributes {dimension_semantics = [#tpu.dimension_semantics<parallel>, #tpu.dimension_semantics<arbitrary>], iteration_bounds = array<i64: 1, 1>, scalar_prefetch = 0 : i64, scratch_operands = 2 : i64, tpu.core_type = #tpu.core_type<tc>, window_params = [{transform_indices = @transform_0, window_bounds = array<i64: 2, 2, 512>}, {pipeline_mode = #tpu.pipeline_mode<synchronous>, transform_indices = @transform_1, window_bounds = array<i64: 128, 512>}, {transform_indices = @transform_2, window_bounds = array<i64: 2, 2, 128>}]} {
    %c0_i32 = arith.constant 0 : i32
    %0 = arith.cmpi eq, %arg1, %c0_i32 : i32
    %1 = arith.extui %0 : i1 to i32
    %c0_i32_0 = arith.constant 0 : i32
    %2 = arith.cmpi ne, %1, %c0_i32_0 : i32
    scf.if %2 {
      %cst_36 = arith.constant 0.000000e+00 : f32
      %81 = vector.broadcast %cst_36 : f32 to vector<2x128xf32>
      %c0_37 = arith.constant 0 : index
      %c0_38 = arith.constant 0 : index
      %82 = vector.load %arg5[%c0_37, %c0_38] : memref<2x128xf32, #tpu.memory_space<vmem>>, vector<2x128xf32>
      tpu.vector_store %arg5[%c0_37, %c0_38], %81 {strides = array<i32>} : memref<2x128xf32, #tpu.memory_space<vmem>>, vector<2x128xf32>,
      %cst_39 = arith.constant 0.000000e+00 : f32
      %83 = vector.broadcast %cst_39 : f32 to vector<2x128xf32>
      %c0_40 = arith.constant 0 : index
      %c0_41 = arith.constant 0 : index
      %84 = vector.load %arg6[%c0_40, %c0_41] : memref<2x128xf32, #tpu.memory_space<vmem>>, vector<2x128xf32>
      tpu.vector_store %arg6[%c0_40, %c0_41], %83 {strides = array<i32>} : memref<2x128xf32, #tpu.memory_space<vmem>>, vector<2x128xf32>,
    } else {
    }
    %c0_i32_1 = arith.constant 0 : i32
    %3 = arith.index_cast %c0_i32_1 : i32 to index
    %c0 = arith.constant 0 : index
    %c0_2 = arith.constant 0 : index
    %4 = vector.load %arg2[%3, %c0, %c0_2] : memref<2x2x512xf32, #tpu.memory_space<vmem>>, vector<1x2x512xf32>
    %5 = vector.shape_cast %4 : vector<1x2x512xf32> to vector<2x512xf32>
    %c0_3 = arith.constant 0 : index
    %c0_4 = arith.constant 0 : index
    %6 = vector.load %arg5[%c0_3, %c0_4] : memref<2x128xf32, #tpu.memory_space<vmem>>, vector<2x128xf32>
    %c0_5 = arith.constant 0 : index
    %c0_6 = arith.constant 0 : index
    %7 = vector.load %arg3[%c0_5, %c0_6] : memref<128x512xf32, #tpu.memory_space<vmem>>, vector<128x512xf32>
    %cst = arith.constant dense<0.000000e+00> : vector<2x512xf32>
    %8 = tpu.matmul %6, %7, %cst {dimension_numbers = #tpu.dot_dimension_numbers<[1], [0], [0], [1], [0, 0, 1, 1], [], []>} : vector<2x128xf32>, vector<128x512xf32>, vector<2x512xf32> -> vector<2x512xf32>
    %9 = arith.addf %5, %8 : vector<2x512xf32>
    %10 = vector.extract_strided_slice %9 {offsets = [0, 0], sizes = [2, 128], strides = [1, 1]} : vector<2x512xf32> to vector<2x128xf32>
    %11 = arith.negf %10 : vector<2x128xf32>
    %12 = math.exp %11 : vector<2x128xf32>
    %cst_7 = arith.constant 1.000000e+00 : f32
    %13 = vector.broadcast %cst_7 : f32 to vector<2x128xf32>
    %14 = arith.addf %13, %12 : vector<2x128xf32>
    %15 = arith.divf %13, %14 : vector<2x128xf32>
    %16 = vector.extract_strided_slice %9 {offsets = [0, 128], sizes = [2, 128], strides = [1, 1]} : vector<2x512xf32> to vector<2x128xf32>
    %17 = arith.negf %16 : vector<2x128xf32>
    %18 = math.exp %17 : vector<2x128xf32>
    %cst_8 = arith.constant 1.000000e+00 : f32
    %19 = vector.broadcast %cst_8 : f32 to vector<2x128xf32>
    %20 = arith.addf %19, %18 : vector<2x128xf32>
    %21 = arith.divf %19, %20 : vector<2x128xf32>
    %22 = vector.extract_strided_slice %9 {offsets = [0, 256], sizes = [2, 128], strides = [1, 1]} : vector<2x512xf32> to vector<2x128xf32>
    %23 = math.tanh %22 : vector<2x128xf32>
    %24 = vector.extract_strided_slice %9 {offsets = [0, 384], sizes = [2, 128], strides = [1, 1]} : vector<2x512xf32> to vector<2x128xf32>
    %25 = arith.negf %24 : vector<2x128xf32>
    %26 = math.exp %25 : vector<2x128xf32>
    %cst_9 = arith.constant 1.000000e+00 : f32
    %27 = vector.broadcast %cst_9 : f32 to vector<2x128xf32>
    %28 = arith.addf %27, %26 : vector<2x128xf32>
    %29 = arith.divf %27, %28 : vector<2x128xf32>
    %c0_10 = arith.constant 0 : index
    %c0_11 = arith.constant 0 : index
    %30 = vector.load %arg6[%c0_10, %c0_11] : memref<2x128xf32, #tpu.memory_space<vmem>>, vector<2x128xf32>
    %31 = arith.mulf %21, %30 : vector<2x128xf32>
    %32 = arith.mulf %15, %23 : vector<2x128xf32>
    %33 = arith.addf %31, %32 : vector<2x128xf32>
    %34 = math.tanh %33 : vector<2x128xf32>
    %35 = arith.mulf %29, %34 : vector<2x128xf32>
    %c0_12 = arith.constant 0 : index
    %c0_13 = arith.constant 0 : index
    %36 = vector.load %arg6[%c0_12, %c0_13] : memref<2x128xf32, #tpu.memory_space<vmem>>, vector<2x128xf32>
    tpu.vector_store %arg6[%c0_12, %c0_13], %33 {strides = array<i32>} : memref<2x128xf32, #tpu.memory_space<vmem>>, vector<2x128xf32>,
    %c0_14 = arith.constant 0 : index
    %c0_15 = arith.constant 0 : index
    %37 = vector.load %arg5[%c0_14, %c0_15] : memref<2x128xf32, #tpu.memory_space<vmem>>, vector<2x128xf32>
    tpu.vector_store %arg5[%c0_14, %c0_15], %35 {strides = array<i32>} : memref<2x128xf32, #tpu.memory_space<vmem>>, vector<2x128xf32>,
    %38 = arith.index_cast %c0_i32_1 : i32 to index
    %c0_16 = arith.constant 0 : index
    %c0_17 = arith.constant 0 : index
    %39 = vector.load %arg4[%38, %c0_16, %c0_17] : memref<2x2x128xf32, #tpu.memory_space<vmem>>, vector<1x2x128xf32>
    %40 = vector.shape_cast %39 : vector<1x2x128xf32> to vector<2x128xf32>
    %41 = vector.shape_cast %35 : vector<2x128xf32> to vector<1x2x128xf32>
    tpu.vector_store %arg4[%38, %c0_16, %c0_17], %41 {strides = array<i32>} : memref<2x2x128xf32, #tpu.memory_space<vmem>>, vector<1x2x128xf32>,
    %c1_i32 = arith.constant 1 : i32
    %42 = arith.index_cast %c1_i32 : i32 to index
    %c0_18 = arith.constant 0 : index
    %c0_19 = arith.constant 0 : index
    %43 = vector.load %arg2[%42, %c0_18, %c0_19] : memref<2x2x512xf32, #tpu.memory_space<vmem>>, vector<1x2x512xf32>
    %44 = vector.shape_cast %43 : vector<1x2x512xf32> to vector<2x512xf32>
    %c0_20 = arith.constant 0 : index
    %c0_21 = arith.constant 0 : index
    %45 = vector.load %arg5[%c0_20, %c0_21] : memref<2x128xf32, #tpu.memory_space<vmem>>, vector<2x128xf32>
    %c0_22 = arith.constant 0 : index
    %c0_23 = arith.constant 0 : index
    %46 = vector.load %arg3[%c0_22, %c0_23] : memref<128x512xf32, #tpu.memory_space<vmem>>, vector<128x512xf32>
    %cst_24 = arith.constant dense<0.000000e+00> : vector<2x512xf32>
    %47 = tpu.matmul %45, %46, %cst_24 {dimension_numbers = #tpu.dot_dimension_numbers<[1], [0], [0], [1], [0, 0, 1, 1], [], []>} : vector<2x128xf32>, vector<128x512xf32>, vector<2x512xf32> -> vector<2x512xf32>
    %48 = arith.addf %44, %47 : vector<2x512xf32>
    %49 = vector.extract_strided_slice %48 {offsets = [0, 0], sizes = [2, 128], strides = [1, 1]} : vector<2x512xf32> to vector<2x128xf32>
    %50 = arith.negf %49 : vector<2x128xf32>
    %51 = math.exp %50 : vector<2x128xf32>
    %cst_25 = arith.constant 1.000000e+00 : f32
    %52 = vector.broadcast %cst_25 : f32 to vector<2x128xf32>
    %53 = arith.addf %52, %51 : vector<2x128xf32>
    %54 = arith.divf %52, %53 : vector<2x128xf32>
    %55 = vector.extract_strided_slice %48 {offsets = [0, 128], sizes = [2, 128], strides = [1, 1]} : vector<2x512xf32> to vector<2x128xf32>
    %56 = arith.negf %55 : vector<2x128xf32>
    %57 = math.exp %56 : vector<2x128xf32>
    %cst_26 = arith.constant 1.000000e+00 : f32
    %58 = vector.broadcast %cst_26 : f32 to vector<2x128xf32>
    %59 = arith.addf %58, %57 : vector<2x128xf32>
    %60 = arith.divf %58, %59 : vector<2x128xf32>
    %61 = vector.extract_strided_slice %48 {offsets = [0, 256], sizes = [2, 128], strides = [1, 1]} : vector<2x512xf32> to vector<2x128xf32>
    %62 = math.tanh %61 : vector<2x128xf32>
    %63 = vector.extract_strided_slice %48 {offsets = [0, 384], sizes = [2, 128], strides = [1, 1]} : vector<2x512xf32> to vector<2x128xf32>
    %64 = arith.negf %63 : vector<2x128xf32>
    %65 = math.exp %64 : vector<2x128xf32>
    %cst_27 = arith.constant 1.000000e+00 : f32
    %66 = vector.broadcast %cst_27 : f32 to vector<2x128xf32>
    %67 = arith.addf %66, %65 : vector<2x128xf32>
    %68 = arith.divf %66, %67 : vector<2x128xf32>
    %c0_28 = arith.constant 0 : index
    %c0_29 = arith.constant 0 : index
    %69 = vector.load %arg6[%c0_28, %c0_29] : memref<2x128xf32, #tpu.memory_space<vmem>>, vector<2x128xf32>
    %70 = arith.mulf %60, %69 : vector<2x128xf32>
    %71 = arith.mulf %54, %62 : vector<2x128xf32>
    %72 = arith.addf %70, %71 : vector<2x128xf32>
    %73 = math.tanh %72 : vector<2x128xf32>
    %74 = arith.mulf %68, %73 : vector<2x128xf32>
    %c0_30 = arith.constant 0 : index
    %c0_31 = arith.constant 0 : index
    %75 = vector.load %arg6[%c0_30, %c0_31] : memref<2x128xf32, #tpu.memory_space<vmem>>, vector<2x128xf32>
    tpu.vector_store %arg6[%c0_30, %c0_31], %72 {strides = array<i32>} : memref<2x128xf32, #tpu.memory_space<vmem>>, vector<2x128xf32>,
    %c0_32 = arith.constant 0 : index
    %c0_33 = arith.constant 0 : index
    %76 = vector.load %arg5[%c0_32, %c0_33] : memref<2x128xf32, #tpu.memory_space<vmem>>, vector<2x128xf32>
    tpu.vector_store %arg5[%c0_32, %c0_33], %74 {strides = array<i32>} : memref<2x128xf32, #tpu.memory_space<vmem>>, vector<2x128xf32>,
    %77 = arith.index_cast %c1_i32 : i32 to index
    %c0_34 = arith.constant 0 : index
    %c0_35 = arith.constant 0 : index
    %78 = vector.load %arg4[%77, %c0_34, %c0_35] : memref<2x2x128xf32, #tpu.memory_space<vmem>>, vector<1x2x128xf32>
    %79 = vector.shape_cast %78 : vector<1x2x128xf32> to vector<2x128xf32>
    %80 = vector.shape_cast %74 : vector<2x128xf32> to vector<1x2x128xf32>
    tpu.vector_store %arg4[%77, %c0_34, %c0_35], %80 {strides = array<i32>} : memref<2x2x128xf32, #tpu.memory_space<vmem>>, vector<1x2x128xf32>,
    %c2_i32 = arith.constant 2 : i32
    return
  }
  func.func @transform_0(%arg0: i32, %arg1: i32) -> (i32, i32, i32) {
    %c0_i32 = arith.constant 0 : i32
    %c0_i32_0 = arith.constant 0 : i32
    return %arg1, %arg0, %c0_i32 : i32, i32, i32
  }
  func.func @transform_1(%arg0: i32, %arg1: i32) -> (i32, i32) {
    %c0_i32 = arith.constant 0 : i32
    %c0_i32_0 = arith.constant 0 : i32
    %c0_i32_1 = arith.constant 0 : i32
    return %c0_i32, %c0_i32_0 : i32, i32
  }
  func.func @transform_2(%arg0: i32, %arg1: i32) -> (i32, i32, i32) {
    %c0_i32 = arith.constant 0 : i32
    %c0_i32_0 = arith.constant 0 : i32
    return %arg1, %arg0, %c0_i32 : i32, i32, i32
  }
}

module attributes {stable_mosaic.version = 11 : i64} {
  func.func @_gmm_kernel(%arg0: i32, %arg1: i32, %arg2: memref<1x4x128xbf16, #tpu.memory_space<vmem>>, %arg3: memref<1x128x4096xbf16, #tpu.memory_space<vmem>>, %arg4: memref<1x4096xf32, #tpu.memory_space<vmem>>, %arg5: memref<1x4x4096xbf16, #tpu.memory_space<vmem>>, %arg6: memref<1x1x2x4096xf32, #tpu.memory_space<vmem>>) attributes {dimension_semantics = [#tpu.dimension_semantics<parallel>, #tpu.dimension_semantics<parallel>], iteration_bounds = array<i64: 1, 1>, scalar_prefetch = 0 : i64, scratch_operands = 0 : i64, tpu.core_type = #tpu.core_type<tc>, window_params = [{transform_indices = @transform_0, window_bounds = array<i64: 1, 4, 128>}, {transform_indices = @transform_1, window_bounds = array<i64: 1, 128, 4096>}, {pipeline_mode = #tpu.pipeline_mode<synchronous>, transform_indices = @transform_2, window_bounds = array<i64: 1, 4096>}, {transform_indices = @transform_3, window_bounds = array<i64: 1, 4, 4096>}, {transform_indices = @transform_4, window_bounds = array<i64: 1, 1, 2, 4096>}]} {
    %c0 = arith.constant 0 : index
    %c0_0 = arith.constant 0 : index
    %c0_1 = arith.constant 0 : index
    %0 = vector.load %arg2[%c0, %c0_0, %c0_1] : memref<1x4x128xbf16, #tpu.memory_space<vmem>>, vector<1x4x128xbf16>
    %1 = vector.shape_cast %0 : vector<1x4x128xbf16> to vector<4x128xbf16>
    %c0_2 = arith.constant 0 : index
    %c0_3 = arith.constant 0 : index
    %c0_4 = arith.constant 0 : index
    %2 = vector.load %arg3[%c0_2, %c0_3, %c0_4] : memref<1x128x4096xbf16, #tpu.memory_space<vmem>>, vector<1x128x4096xbf16>
    %3 = vector.shape_cast %2 : vector<1x128x4096xbf16> to vector<128x4096xbf16>
    %cst = arith.constant dense<0.000000e+00> : vector<4x4096xf32>
    %4 = tpu.matmul %1, %3, %cst {dimension_numbers = #tpu.dot_dimension_numbers<[1], [0], [0], [1], [0, 0, 1, 1], [], []>} : vector<4x128xbf16>, vector<128x4096xbf16>, vector<4x4096xf32> -> vector<4x4096xf32>
    %c0_5 = arith.constant 0 : index
    %c0_6 = arith.constant 0 : index
    %5 = vector.load %arg4[%c0_5, %c0_6] : memref<1x4096xf32, #tpu.memory_space<vmem>>, vector<1x4096xf32>
    %6 = vector.broadcast %5 : vector<1x4096xf32> to vector<4x4096xf32>
    %7 = arith.addf %4, %6 : vector<4x4096xf32>
    %cst_7 = arith.constant dense<0.000000e+00> : vector<4096xf32>
    %8 = vector.multi_reduction <add>, %7, %cst_7 [0] : vector<4x4096xf32> to vector<4096xf32>
    %9 = vector.shape_cast %8 : vector<4096xf32> to vector<1x4096xf32>
    %10 = arith.mulf %7, %7 : vector<4x4096xf32>
    %cst_8 = arith.constant dense<0.000000e+00> : vector<4096xf32>
    %11 = vector.multi_reduction <add>, %10, %cst_8 [0] : vector<4x4096xf32> to vector<4096xf32>
    %12 = vector.shape_cast %11 : vector<4096xf32> to vector<1x4096xf32>
    %13 = tpu.concatenate %9, %12 in 0 : vector<1x4096xf32>, vector<1x4096xf32> -> vector<2x4096xf32>
    %c0_9 = arith.constant 0 : index
    %c0_10 = arith.constant 0 : index
    %c0_11 = arith.constant 0 : index
    %c0_12 = arith.constant 0 : index
    %14 = vector.load %arg6[%c0_9, %c0_10, %c0_11, %c0_12] : memref<1x1x2x4096xf32, #tpu.memory_space<vmem>>, vector<1x1x2x4096xf32>
    %15 = vector.shape_cast %14 : vector<1x1x2x4096xf32> to vector<2x4096xf32>
    %16 = vector.shape_cast %13 : vector<2x4096xf32> to vector<1x1x2x4096xf32>
    tpu.vector_store %arg6[%c0_9, %c0_10, %c0_11, %c0_12], %16 {strides = array<i32>} : memref<1x1x2x4096xf32, #tpu.memory_space<vmem>>, vector<1x1x2x4096xf32>,
    %17 = arith.truncf %7 : vector<4x4096xf32> to vector<4x4096xbf16>
    %c0_13 = arith.constant 0 : index
    %c0_14 = arith.constant 0 : index
    %c0_15 = arith.constant 0 : index
    %18 = vector.load %arg5[%c0_13, %c0_14, %c0_15] : memref<1x4x4096xbf16, #tpu.memory_space<vmem>>, vector<1x4x4096xbf16>
    %19 = vector.shape_cast %18 : vector<1x4x4096xbf16> to vector<4x4096xbf16>
    %20 = vector.shape_cast %17 : vector<4x4096xbf16> to vector<1x4x4096xbf16>
    tpu.vector_store %arg5[%c0_13, %c0_14, %c0_15], %20 {strides = array<i32>} : memref<1x4x4096xbf16, #tpu.memory_space<vmem>>, vector<1x4x4096xbf16>,
    return
  }
  func.func @transform_0(%arg0: i32, %arg1: i32) -> (i32, i32, i32) {
    %c0_i32 = arith.constant 0 : i32
    %c0_i32_0 = arith.constant 0 : i32
    %c0_i32_1 = arith.constant 0 : i32
    return %c0_i32, %arg1, %c0_i32_0 : i32, i32, i32
  }
  func.func @transform_1(%arg0: i32, %arg1: i32) -> (i32, i32, i32) {
    %c0_i32 = arith.constant 0 : i32
    %c0_i32_0 = arith.constant 0 : i32
    %c0_i32_1 = arith.constant 0 : i32
    return %arg0, %c0_i32, %c0_i32_0 : i32, i32, i32
  }
  func.func @transform_2(%arg0: i32, %arg1: i32) -> (i32, i32) {
    %c0_i32 = arith.constant 0 : i32
    %c0_i32_0 = arith.constant 0 : i32
    %c0_i32_1 = arith.constant 0 : i32
    return %c0_i32, %c0_i32_0 : i32, i32
  }
  func.func @transform_3(%arg0: i32, %arg1: i32) -> (i32, i32, i32) {
    %c0_i32 = arith.constant 0 : i32
    %c0_i32_0 = arith.constant 0 : i32
    return %arg0, %arg1, %c0_i32 : i32, i32, i32
  }
  func.func @transform_4(%arg0: i32, %arg1: i32) -> (i32, i32, i32, i32) {
    %c0_i32 = arith.constant 0 : i32
    %c0_i32_0 = arith.constant 0 : i32
    %c0_i32_1 = arith.constant 0 : i32
    return %arg0, %arg1, %c0_i32, %c0_i32_0 : i32, i32, i32, i32
  }
}

module attributes {stable_mosaic.version = 11 : i64} {
  func.func @_gmm_kernel(%arg0: i32, %arg1: i32, %arg2: memref<1x64x1024xbf16, #tpu.memory_space<vmem>>, %arg3: memref<1x1024x128xbf16, #tpu.memory_space<vmem>>, %arg4: memref<1x128xf32, #tpu.memory_space<vmem>>, %arg5: memref<1x64x128xbf16, #tpu.memory_space<vmem>>, %arg6: memref<1x1x2x128xf32, #tpu.memory_space<vmem>>) attributes {dimension_semantics = [#tpu.dimension_semantics<parallel>, #tpu.dimension_semantics<parallel>], iteration_bounds = array<i64: 4, 1>, scalar_prefetch = 0 : i64, scratch_operands = 0 : i64, tpu.core_type = #tpu.core_type<tc>, window_params = [{transform_indices = @transform_0, window_bounds = array<i64: 1, 64, 1024>}, {transform_indices = @transform_1, window_bounds = array<i64: 1, 1024, 128>}, {pipeline_mode = #tpu.pipeline_mode<synchronous>, transform_indices = @transform_2, window_bounds = array<i64: 1, 128>}, {transform_indices = @transform_3, window_bounds = array<i64: 1, 64, 128>}, {transform_indices = @transform_4, window_bounds = array<i64: 1, 1, 2, 128>}]} {
    %c0 = arith.constant 0 : index
    %c0_0 = arith.constant 0 : index
    %c0_1 = arith.constant 0 : index
    %0 = vector.load %arg2[%c0, %c0_0, %c0_1] : memref<1x64x1024xbf16, #tpu.memory_space<vmem>>, vector<1x64x1024xbf16>
    %1 = vector.shape_cast %0 : vector<1x64x1024xbf16> to vector<64x1024xbf16>
    %c0_2 = arith.constant 0 : index
    %c0_3 = arith.constant 0 : index
    %c0_4 = arith.constant 0 : index
    %2 = vector.load %arg3[%c0_2, %c0_3, %c0_4] : memref<1x1024x128xbf16, #tpu.memory_space<vmem>>, vector<1x1024x128xbf16>
    %3 = vector.shape_cast %2 : vector<1x1024x128xbf16> to vector<1024x128xbf16>
    %cst = arith.constant dense<0.000000e+00> : vector<64x128xf32>
    %4 = tpu.matmul %1, %3, %cst {dimension_numbers = #tpu.dot_dimension_numbers<[1], [0], [0], [1], [0, 0, 1, 1], [], []>} : vector<64x1024xbf16>, vector<1024x128xbf16>, vector<64x128xf32> -> vector<64x128xf32>
    %c0_5 = arith.constant 0 : index
    %c0_6 = arith.constant 0 : index
    %5 = vector.load %arg4[%c0_5, %c0_6] : memref<1x128xf32, #tpu.memory_space<vmem>>, vector<1x128xf32>
    %6 = vector.broadcast %5 : vector<1x128xf32> to vector<64x128xf32>
    %7 = arith.addf %4, %6 : vector<64x128xf32>
    %cst_7 = arith.constant dense<0.000000e+00> : vector<128xf32>
    %8 = vector.multi_reduction <add>, %7, %cst_7 [0] : vector<64x128xf32> to vector<128xf32>
    %9 = vector.shape_cast %8 : vector<128xf32> to vector<1x128xf32>
    %10 = arith.mulf %7, %7 : vector<64x128xf32>
    %cst_8 = arith.constant dense<0.000000e+00> : vector<128xf32>
    %11 = vector.multi_reduction <add>, %10, %cst_8 [0] : vector<64x128xf32> to vector<128xf32>
    %12 = vector.shape_cast %11 : vector<128xf32> to vector<1x128xf32>
    %13 = tpu.concatenate %9, %12 in 0 : vector<1x128xf32>, vector<1x128xf32> -> vector<2x128xf32>
    %c0_9 = arith.constant 0 : index
    %c0_10 = arith.constant 0 : index
    %c0_11 = arith.constant 0 : index
    %c0_12 = arith.constant 0 : index
    %14 = vector.load %arg6[%c0_9, %c0_10, %c0_11, %c0_12] : memref<1x1x2x128xf32, #tpu.memory_space<vmem>>, vector<1x1x2x128xf32>
    %15 = vector.shape_cast %14 : vector<1x1x2x128xf32> to vector<2x128xf32>
    %16 = vector.shape_cast %13 : vector<2x128xf32> to vector<1x1x2x128xf32>
    tpu.vector_store %arg6[%c0_9, %c0_10, %c0_11, %c0_12], %16 {strides = array<i32>} : memref<1x1x2x128xf32, #tpu.memory_space<vmem>>, vector<1x1x2x128xf32>,
    %17 = arith.truncf %7 : vector<64x128xf32> to vector<64x128xbf16>
    %c0_13 = arith.constant 0 : index
    %c0_14 = arith.constant 0 : index
    %c0_15 = arith.constant 0 : index
    %18 = vector.load %arg5[%c0_13, %c0_14, %c0_15] : memref<1x64x128xbf16, #tpu.memory_space<vmem>>, vector<1x64x128xbf16>
    %19 = vector.shape_cast %18 : vector<1x64x128xbf16> to vector<64x128xbf16>
    %20 = vector.shape_cast %17 : vector<64x128xbf16> to vector<1x64x128xbf16>
    tpu.vector_store %arg5[%c0_13, %c0_14, %c0_15], %20 {strides = array<i32>} : memref<1x64x128xbf16, #tpu.memory_space<vmem>>, vector<1x64x128xbf16>,
    return
  }
  func.func @transform_0(%arg0: i32, %arg1: i32) -> (i32, i32, i32) {
    %c0_i32 = arith.constant 0 : i32
    %c0_i32_0 = arith.constant 0 : i32
    return %arg0, %arg1, %c0_i32 : i32, i32, i32
  }
  func.func @transform_1(%arg0: i32, %arg1: i32) -> (i32, i32, i32) {
    %c0_i32 = arith.constant 0 : i32
    %c0_i32_0 = arith.constant 0 : i32
    %c0_i32_1 = arith.constant 0 : i32
    return %arg0, %c0_i32, %c0_i32_0 : i32, i32, i32
  }
  func.func @transform_2(%arg0: i32, %arg1: i32) -> (i32, i32) {
    %c0_i32 = arith.constant 0 : i32
    %c0_i32_0 = arith.constant 0 : i32
    %c0_i32_1 = arith.constant 0 : i32
    return %c0_i32, %c0_i32_0 : i32, i32
  }
  func.func @transform_3(%arg0: i32, %arg1: i32) -> (i32, i32, i32) {
    %c0_i32 = arith.constant 0 : i32
    %c0_i32_0 = arith.constant 0 : i32
    return %arg0, %arg1, %c0_i32 : i32, i32, i32
  }
  func.func @transform_4(%arg0: i32, %arg1: i32) -> (i32, i32, i32, i32) {
    %c0_i32 = arith.constant 0 : i32
    %c0_i32_0 = arith.constant 0 : i32
    %c0_i32_1 = arith.constant 0 : i32
    return %arg0, %arg1, %c0_i32, %c0_i32_0 : i32, i32, i32, i32
  }
}

module attributes {stable_mosaic.version = 11 : i64} {
  func.func @_gmm_kernel(%arg0: i32, %arg1: i32, %arg2: memref<1x256x512xbf16, #tpu.memory_space<vmem>>, %arg3: memref<1x512x128xbf16, #tpu.memory_space<vmem>>, %arg4: memref<1x128xf32, #tpu.memory_space<vmem>>, %arg5: memref<1x256x128xbf16, #tpu.memory_space<vmem>>, %arg6: memref<1x1x2x128xf32, #tpu.memory_space<vmem>>) attributes {dimension_semantics = [#tpu.dimension_semantics<parallel>, #tpu.dimension_semantics<parallel>], iteration_bounds = array<i64: 4, 1>, scalar_prefetch = 0 : i64, scratch_operands = 0 : i64, tpu.core_type = #tpu.core_type<tc>, window_params = [{transform_indices = @transform_0, window_bounds = array<i64: 1, 256, 512>}, {transform_indices = @transform_1, window_bounds = array<i64: 1, 512, 128>}, {pipeline_mode = #tpu.pipeline_mode<synchronous>, transform_indices = @transform_2, window_bounds = array<i64: 1, 128>}, {transform_indices = @transform_3, window_bounds = array<i64: 1, 256, 128>}, {transform_indices = @transform_4, window_bounds = array<i64: 1, 1, 2, 128>}]} {
    %c0 = arith.constant 0 : index
    %c0_0 = arith.constant 0 : index
    %c0_1 = arith.constant 0 : index
    %0 = vector.load %arg2[%c0, %c0_0, %c0_1] : memref<1x256x512xbf16, #tpu.memory_space<vmem>>, vector<1x256x512xbf16>
    %1 = vector.shape_cast %0 : vector<1x256x512xbf16> to vector<256x512xbf16>
    %c0_2 = arith.constant 0 : index
    %c0_3 = arith.constant 0 : index
    %c0_4 = arith.constant 0 : index
    %2 = vector.load %arg3[%c0_2, %c0_3, %c0_4] : memref<1x512x128xbf16, #tpu.memory_space<vmem>>, vector<1x512x128xbf16>
    %3 = vector.shape_cast %2 : vector<1x512x128xbf16> to vector<512x128xbf16>
    %cst = arith.constant dense<0.000000e+00> : vector<256x128xf32>
    %4 = tpu.matmul %1, %3, %cst {dimension_numbers = #tpu.dot_dimension_numbers<[1], [0], [0], [1], [0, 0, 1, 1], [], []>} : vector<256x512xbf16>, vector<512x128xbf16>, vector<256x128xf32> -> vector<256x128xf32>
    %c0_5 = arith.constant 0 : index
    %c0_6 = arith.constant 0 : index
    %5 = vector.load %arg4[%c0_5, %c0_6] : memref<1x128xf32, #tpu.memory_space<vmem>>, vector<1x128xf32>
    %6 = vector.broadcast %5 : vector<1x128xf32> to vector<256x128xf32>
    %7 = arith.addf %4, %6 : vector<256x128xf32>
    %cst_7 = arith.constant dense<0.000000e+00> : vector<128xf32>
    %8 = vector.multi_reduction <add>, %7, %cst_7 [0] : vector<256x128xf32> to vector<128xf32>
    %9 = vector.shape_cast %8 : vector<128xf32> to vector<1x128xf32>
    %10 = arith.mulf %7, %7 : vector<256x128xf32>
    %cst_8 = arith.constant dense<0.000000e+00> : vector<128xf32>
    %11 = vector.multi_reduction <add>, %10, %cst_8 [0] : vector<256x128xf32> to vector<128xf32>
    %12 = vector.shape_cast %11 : vector<128xf32> to vector<1x128xf32>
    %13 = tpu.concatenate %9, %12 in 0 : vector<1x128xf32>, vector<1x128xf32> -> vector<2x128xf32>
    %c0_9 = arith.constant 0 : index
    %c0_10 = arith.constant 0 : index
    %c0_11 = arith.constant 0 : index
    %c0_12 = arith.constant 0 : index
    %14 = vector.load %arg6[%c0_9, %c0_10, %c0_11, %c0_12] : memref<1x1x2x128xf32, #tpu.memory_space<vmem>>, vector<1x1x2x128xf32>
    %15 = vector.shape_cast %14 : vector<1x1x2x128xf32> to vector<2x128xf32>
    %16 = vector.shape_cast %13 : vector<2x128xf32> to vector<1x1x2x128xf32>
    tpu.vector_store %arg6[%c0_9, %c0_10, %c0_11, %c0_12], %16 {strides = array<i32>} : memref<1x1x2x128xf32, #tpu.memory_space<vmem>>, vector<1x1x2x128xf32>,
    %17 = arith.truncf %7 : vector<256x128xf32> to vector<256x128xbf16>
    %c0_13 = arith.constant 0 : index
    %c0_14 = arith.constant 0 : index
    %c0_15 = arith.constant 0 : index
    %18 = vector.load %arg5[%c0_13, %c0_14, %c0_15] : memref<1x256x128xbf16, #tpu.memory_space<vmem>>, vector<1x256x128xbf16>
    %19 = vector.shape_cast %18 : vector<1x256x128xbf16> to vector<256x128xbf16>
    %20 = vector.shape_cast %17 : vector<256x128xbf16> to vector<1x256x128xbf16>
    tpu.vector_store %arg5[%c0_13, %c0_14, %c0_15], %20 {strides = array<i32>} : memref<1x256x128xbf16, #tpu.memory_space<vmem>>, vector<1x256x128xbf16>,
    return
  }
  func.func @transform_0(%arg0: i32, %arg1: i32) -> (i32, i32, i32) {
    %c0_i32 = arith.constant 0 : i32
    %c0_i32_0 = arith.constant 0 : i32
    return %arg0, %arg1, %c0_i32 : i32, i32, i32
  }
  func.func @transform_1(%arg0: i32, %arg1: i32) -> (i32, i32, i32) {
    %c0_i32 = arith.constant 0 : i32
    %c0_i32_0 = arith.constant 0 : i32
    %c0_i32_1 = arith.constant 0 : i32
    return %arg0, %c0_i32, %c0_i32_0 : i32, i32, i32
  }
  func.func @transform_2(%arg0: i32, %arg1: i32) -> (i32, i32) {
    %c0_i32 = arith.constant 0 : i32
    %c0_i32_0 = arith.constant 0 : i32
    %c0_i32_1 = arith.constant 0 : i32
    return %c0_i32, %c0_i32_0 : i32, i32
  }
  func.func @transform_3(%arg0: i32, %arg1: i32) -> (i32, i32, i32) {
    %c0_i32 = arith.constant 0 : i32
    %c0_i32_0 = arith.constant 0 : i32
    return %arg0, %arg1, %c0_i32 : i32, i32, i32
  }
  func.func @transform_4(%arg0: i32, %arg1: i32) -> (i32, i32, i32, i32) {
    %c0_i32 = arith.constant 0 : i32
    %c0_i32_0 = arith.constant 0 : i32
    %c0_i32_1 = arith.constant 0 : i32
    return %arg0, %arg1, %c0_i32, %c0_i32_0 : i32, i32, i32, i32
  }
}

module attributes {stable_mosaic.version = 11 : i64} {
  func.func @_gmm_kernel(%arg0: i32, %arg1: i32, %arg2: memref<1x1024x256xbf16, #tpu.memory_space<vmem>>, %arg3: memref<1x256x128xbf16, #tpu.memory_space<vmem>>, %arg4: memref<1x128xf32, #tpu.memory_space<vmem>>, %arg5: memref<1x1024x128xbf16, #tpu.memory_space<vmem>>, %arg6: memref<1x1x2x128xf32, #tpu.memory_space<vmem>>) attributes {dimension_semantics = [#tpu.dimension_semantics<parallel>, #tpu.dimension_semantics<parallel>], iteration_bounds = array<i64: 4, 1>, scalar_prefetch = 0 : i64, scratch_operands = 0 : i64, tpu.core_type = #tpu.core_type<tc>, window_params = [{transform_indices = @transform_0, window_bounds = array<i64: 1, 1024, 256>}, {transform_indices = @transform_1, window_bounds = array<i64: 1, 256, 128>}, {pipeline_mode = #tpu.pipeline_mode<synchronous>, transform_indices = @transform_2, window_bounds = array<i64: 1, 128>}, {transform_indices = @transform_3, window_bounds = array<i64: 1, 1024, 128>}, {transform_indices = @transform_4, window_bounds = array<i64: 1, 1, 2, 128>}]} {
    %c0 = arith.constant 0 : index
    %c0_0 = arith.constant 0 : index
    %c0_1 = arith.constant 0 : index
    %0 = vector.load %arg2[%c0, %c0_0, %c0_1] : memref<1x1024x256xbf16, #tpu.memory_space<vmem>>, vector<1x1024x256xbf16>
    %1 = vector.shape_cast %0 : vector<1x1024x256xbf16> to vector<1024x256xbf16>
    %c0_2 = arith.constant 0 : index
    %c0_3 = arith.constant 0 : index
    %c0_4 = arith.constant 0 : index
    %2 = vector.load %arg3[%c0_2, %c0_3, %c0_4] : memref<1x256x128xbf16, #tpu.memory_space<vmem>>, vector<1x256x128xbf16>
    %3 = vector.shape_cast %2 : vector<1x256x128xbf16> to vector<256x128xbf16>
    %cst = arith.constant dense<0.000000e+00> : vector<1024x128xf32>
    %4 = tpu.matmul %1, %3, %cst {dimension_numbers = #tpu.dot_dimension_numbers<[1], [0], [0], [1], [0, 0, 1, 1], [], []>} : vector<1024x256xbf16>, vector<256x128xbf16>, vector<1024x128xf32> -> vector<1024x128xf32>
    %c0_5 = arith.constant 0 : index
    %c0_6 = arith.constant 0 : index
    %5 = vector.load %arg4[%c0_5, %c0_6] : memref<1x128xf32, #tpu.memory_space<vmem>>, vector<1x128xf32>
    %6 = vector.broadcast %5 : vector<1x128xf32> to vector<1024x128xf32>
    %7 = arith.addf %4, %6 : vector<1024x128xf32>
    %cst_7 = arith.constant dense<0.000000e+00> : vector<128xf32>
    %8 = vector.multi_reduction <add>, %7, %cst_7 [0] : vector<1024x128xf32> to vector<128xf32>
    %9 = vector.shape_cast %8 : vector<128xf32> to vector<1x128xf32>
    %10 = arith.mulf %7, %7 : vector<1024x128xf32>
    %cst_8 = arith.constant dense<0.000000e+00> : vector<128xf32>
    %11 = vector.multi_reduction <add>, %10, %cst_8 [0] : vector<1024x128xf32> to vector<128xf32>
    %12 = vector.shape_cast %11 : vector<128xf32> to vector<1x128xf32>
    %13 = tpu.concatenate %9, %12 in 0 : vector<1x128xf32>, vector<1x128xf32> -> vector<2x128xf32>
    %c0_9 = arith.constant 0 : index
    %c0_10 = arith.constant 0 : index
    %c0_11 = arith.constant 0 : index
    %c0_12 = arith.constant 0 : index
    %14 = vector.load %arg6[%c0_9, %c0_10, %c0_11, %c0_12] : memref<1x1x2x128xf32, #tpu.memory_space<vmem>>, vector<1x1x2x128xf32>
    %15 = vector.shape_cast %14 : vector<1x1x2x128xf32> to vector<2x128xf32>
    %16 = vector.shape_cast %13 : vector<2x128xf32> to vector<1x1x2x128xf32>
    tpu.vector_store %arg6[%c0_9, %c0_10, %c0_11, %c0_12], %16 {strides = array<i32>} : memref<1x1x2x128xf32, #tpu.memory_space<vmem>>, vector<1x1x2x128xf32>,
    %17 = arith.truncf %7 : vector<1024x128xf32> to vector<1024x128xbf16>
    %c0_13 = arith.constant 0 : index
    %c0_14 = arith.constant 0 : index
    %c0_15 = arith.constant 0 : index
    %18 = vector.load %arg5[%c0_13, %c0_14, %c0_15] : memref<1x1024x128xbf16, #tpu.memory_space<vmem>>, vector<1x1024x128xbf16>
    %19 = vector.shape_cast %18 : vector<1x1024x128xbf16> to vector<1024x128xbf16>
    %20 = vector.shape_cast %17 : vector<1024x128xbf16> to vector<1x1024x128xbf16>
    tpu.vector_store %arg5[%c0_13, %c0_14, %c0_15], %20 {strides = array<i32>} : memref<1x1024x128xbf16, #tpu.memory_space<vmem>>, vector<1x1024x128xbf16>,
    return
  }
  func.func @transform_0(%arg0: i32, %arg1: i32) -> (i32, i32, i32) {
    %c0_i32 = arith.constant 0 : i32
    %c0_i32_0 = arith.constant 0 : i32
    return %arg0, %arg1, %c0_i32 : i32, i32, i32
  }
  func.func @transform_1(%arg0: i32, %arg1: i32) -> (i32, i32, i32) {
    %c0_i32 = arith.constant 0 : i32
    %c0_i32_0 = arith.constant 0 : i32
    %c0_i32_1 = arith.constant 0 : i32
    return %arg0, %c0_i32, %c0_i32_0 : i32, i32, i32
  }
  func.func @transform_2(%arg0: i32, %arg1: i32) -> (i32, i32) {
    %c0_i32 = arith.constant 0 : i32
    %c0_i32_0 = arith.constant 0 : i32
    %c0_i32_1 = arith.constant 0 : i32
    return %c0_i32, %c0_i32_0 : i32, i32
  }
  func.func @transform_3(%arg0: i32, %arg1: i32) -> (i32, i32, i32) {
    %c0_i32 = arith.constant 0 : i32
    %c0_i32_0 = arith.constant 0 : i32
    return %arg0, %arg1, %c0_i32 : i32, i32, i32
  }
  func.func @transform_4(%arg0: i32, %arg1: i32) -> (i32, i32, i32, i32) {
    %c0_i32 = arith.constant 0 : i32
    %c0_i32_0 = arith.constant 0 : i32
    %c0_i32_1 = arith.constant 0 : i32
    return %arg0, %arg1, %c0_i32, %c0_i32_0 : i32, i32, i32, i32
  }
}

module attributes {stable_mosaic.version = 11 : i64} {
  func.func @_gmm_kernel(%arg0: i32, %arg1: i32, %arg2: memref<1x1024x128xbf16, #tpu.memory_space<vmem>>, %arg3: memref<1x128x128xbf16, #tpu.memory_space<vmem>>, %arg4: memref<1x128xf32, #tpu.memory_space<vmem>>, %arg5: memref<1x1024x128xf32, #tpu.memory_space<vmem>>) attributes {dimension_semantics = [#tpu.dimension_semantics<parallel>, #tpu.dimension_semantics<parallel>], iteration_bounds = array<i64: 4, 4>, scalar_prefetch = 0 : i64, scratch_operands = 0 : i64, tpu.core_type = #tpu.core_type<tc>, window_params = [{transform_indices = @transform_0, window_bounds = array<i64: 1, 1024, 128>}, {transform_indices = @transform_1, window_bounds = array<i64: 1, 128, 128>}, {pipeline_mode = #tpu.pipeline_mode<synchronous>, transform_indices = @transform_2, window_bounds = array<i64: 1, 128>}, {transform_indices = @transform_3, window_bounds = array<i64: 1, 1024, 128>}]} {
    %c0 = arith.constant 0 : index
    %c0_0 = arith.constant 0 : index
    %c0_1 = arith.constant 0 : index
    %0 = vector.load %arg2[%c0, %c0_0, %c0_1] : memref<1x1024x128xbf16, #tpu.memory_space<vmem>>, vector<1x1024x128xbf16>
    %1 = vector.shape_cast %0 : vector<1x1024x128xbf16> to vector<1024x128xbf16>
    %c0_2 = arith.constant 0 : index
    %c0_3 = arith.constant 0 : index
    %c0_4 = arith.constant 0 : index
    %2 = vector.load %arg3[%c0_2, %c0_3, %c0_4] : memref<1x128x128xbf16, #tpu.memory_space<vmem>>, vector<1x128x128xbf16>
    %3 = vector.shape_cast %2 : vector<1x128x128xbf16> to vector<128x128xbf16>
    %cst = arith.constant dense<0.000000e+00> : vector<1024x128xf32>
    %4 = tpu.matmul %1, %3, %cst {dimension_numbers = #tpu.dot_dimension_numbers<[1], [0], [0], [1], [0, 0, 1, 1], [], []>} : vector<1024x128xbf16>, vector<128x128xbf16>, vector<1024x128xf32> -> vector<1024x128xf32>
    %c0_5 = arith.constant 0 : index
    %c0_6 = arith.constant 0 : index
    %5 = vector.load %arg4[%c0_5, %c0_6] : memref<1x128xf32, #tpu.memory_space<vmem>>, vector<1x128xf32>
    %6 = vector.broadcast %5 : vector<1x128xf32> to vector<1024x128xf32>
    %7 = arith.addf %4, %6 : vector<1024x128xf32>
    %8 = arith.negf %7 : vector<1024x128xf32>
    %9 = math.exp %8 : vector<1024x128xf32>
    %cst_7 = arith.constant 1.000000e+00 : f32
    %10 = vector.broadcast %cst_7 : f32 to vector<1024x128xf32>
    %11 = arith.addf %10, %9 : vector<1024x128xf32>
    %12 = arith.divf %10, %11 : vector<1024x128xf32>
    %c0_8 = arith.constant 0 : index
    %c0_9 = arith.constant 0 : index
    %c0_10 = arith.constant 0 : index
    %13 = vector.load %arg5[%c0_8, %c0_9, %c0_10] : memref<1x1024x128xf32, #tpu.memory_space<vmem>>, vector<1x1024x128xf32>
    %14 = vector.shape_cast %13 : vector<1x1024x128xf32> to vector<1024x128xf32>
    %15 = vector.shape_cast %12 : vector<1024x128xf32> to vector<1x1024x128xf32>
    tpu.vector_store %arg5[%c0_8, %c0_9, %c0_10], %15 {strides = array<i32>} : memref<1x1024x128xf32, #tpu.memory_space<vmem>>, vector<1x1024x128xf32>,
    return
  }
  func.func @transform_0(%arg0: i32, %arg1: i32) -> (i32, i32, i32) {
    %c0_i32 = arith.constant 0 : i32
    %c0_i32_0 = arith.constant 0 : i32
    return %arg0, %arg1, %c0_i32 : i32, i32, i32
  }
  func.func @transform_1(%arg0: i32, %arg1: i32) -> (i32, i32, i32) {
    %c0_i32 = arith.constant 0 : i32
    %c0_i32_0 = arith.constant 0 : i32
    %c0_i32_1 = arith.constant 0 : i32
    return %arg0, %c0_i32, %c0_i32_0 : i32, i32, i32
  }
  func.func @transform_2(%arg0: i32, %arg1: i32) -> (i32, i32) {
    %c0_i32 = arith.constant 0 : i32
    %c0_i32_0 = arith.constant 0 : i32
    %c0_i32_1 = arith.constant 0 : i32
    return %c0_i32, %c0_i32_0 : i32, i32
  }
  func.func @transform_3(%arg0: i32, %arg1: i32) -> (i32, i32, i32) {
    %c0_i32 = arith.constant 0 : i32
    %c0_i32_0 = arith.constant 0 : i32
    return %arg0, %arg1, %c0_i32 : i32, i32, i32
  }
}

</mosaic_0001>

<bundles_post_ra>
// kernel: squeeze.14
= control target key start
LH: loop header
LB: loop body
LE: loop exit
PB: predicated region body
PF: predicated region fallthrough
CT: control target
= control target key end

     0   :  { %s153_s0 = inlined_call_operand.vmem [shape: f32[1,4,512], index: 0, kind: input, shape index: {}]   ;;  %s154_s1 = inlined_call_operand.vmem [shape: f32[2,2,512], index: 1, kind: output, shape index: {}]  }
   0x1   :  { %v97_v0 = vld [vmem:[%s153_s0 + $0xc] sm:$0xf]  ;;  %v98_v1 = vld [vmem:[%s153_s0 + $0x8] sm:$0xf]  ;;  %v99_v2 = vld [vmem:[%s153_s0 + $0x4] sm:$0xf] }
   0x2   :  { %8 = vst [vmem:[#allocation1 + $0x18] sm:$0xf] %v97_v0  ;;  %13 = vst [vmem:[#allocation1 + $0x10] sm:$0xf] %v98_v1  ;;  %v18_v3 = vld [vmem:[%s153_s0] sm:$0xf] }
   0x3   :  { %17 = vst [vmem:[#allocation1 + $0x8] sm:$0xf] %v99_v2  ;;  %19 = vst [vmem:[#allocation1] sm:$0xf] %v18_v3 }
   0x9   :  { %v31_v5 = vld [vmem:[#allocation1 + $0x10] sm:$0xf]   ;;  %v37_v6 = vld [vmem:[#allocation1 + $0x18] sm:$0xf]  }
   0xa   :  { %v25_v4 = vld [vmem:[#allocation1 + $0x8] sm:$0xf]   ;;  %v20_v7 = vld [vmem:[#allocation1] sm:$0xf]   ;;  %33 = vst [vmem:[#allocation0 + $0x10] sm:$0x3] %v31_v5  }
   0xb   :  { %27 = vst [vmem:[#allocation0 + $0x8] sm:$0x3] %v25_v4   ;;  %29 = vst [vmem:[#allocation0 + $0x26] sm:$0xc] %v25_v4  }
   0xc   :  { %35 = vst [vmem:[#allocation0 + $0x2e] sm:$0xc] %v31_v5   ;;  %39 = vst [vmem:[#allocation0 + $0x18] sm:$0x3] %v37_v6  }
   0xd   :  { %41 = vst [vmem:[#allocation0 + $0x36] sm:$0xc] %v37_v6   ;;  %21 = vst [vmem:[#allocation0] sm:$0x3] %v20_v7  }
   0xe   :  { %23 = vst [vmem:[#allocation0 + $0x1e] sm:$0xc] %v20_v7  }
  0x11   :  { %v54_v9 = vld [vmem:[#allocation0 + $0x10] sm:$0x3] }
  0x12   :  { %v49_v8 = vld [vmem:[#allocation0 + $0x8] sm:$0x3]  ;;  %101 = vst [vmem:[%s154_s1 + $0x4] sm:$0x3] %v54_v9 }
  0x13   :  { %v60_v10 = vld [vmem:[#allocation0 + $0x18] sm:$0x3]  ;;  %100 = vst [vmem:[%s154_s1 + $0x2] sm:$0x3] %v49_v8  ;;  %v72_v13 = vld [vmem:[#allocation0 + $0x28] sm:$0x3] }
  0x14   :  { %v45_v11 = vld [vmem:[#allocation0] sm:$0x3]  ;;  %102 = vst [vmem:[%s154_s1 + $0x6] sm:$0x3] %v60_v10  ;;  %104 = vst [vmem:[%s154_s1 + $0xa] sm:$0x3] %v72_v13 }
  0x15   :  { %v66_v12 = vld [vmem:[#allocation0 + $0x20] sm:$0x3]  ;;  %47 = vst [vmem:[%s154_s1] sm:$0x3] %v45_v11  ;;  %v78_v14 = vld [vmem:[#allocation0 + $0x30] sm:$0x3] }
  0x16   :  { %103 = vst [vmem:[%s154_s1 + $0x8] sm:$0x3] %v66_v12  ;;  %v84_v15 = vld [vmem:[#allocation0 + $0x38] sm:$0x3]  ;;  %105 = vst [vmem:[%s154_s1 + $0xc] sm:$0x3] %v78_v14 }
  0x17   :  { %106 = vst [vmem:[%s154_s1 + $0xe] sm:$0x3] %v84_v15 }

// kernel: decoder_forward.7
= control target key start
LH: loop header
LB: loop body
LE: loop exit
PB: predicated region body
PF: predicated region fallthrough
CT: control target
= control target key end

     0   :  { %8 = vsyncpa [#allocation3], 0  ;;  %s336_s0 = inlined_call_operand.vmem [shape: f32[1,4,8], index: 0, kind: input, shape index: {}]   ;;  %s337_s1 = inlined_call_operand.hbm [shape: f32[1,8,512], index: 1, kind: input, shape index: {}]   ;;  %s338_s2 = inlined_call_operand.hbm [shape: f32[1,512], index: 2, kind: input, shape index: {}]   ;;  %s339_s3 = inlined_call_operand.vmem [shape: f32[1,4,512], index: 3, kind: output, shape index: {}]  }
   0x1   :  { %9 = vsyncpa [#allocation5], 0  ;;  %s280_s12 = smov [#allocation2]   ;;  %s281_s14 = smov [#allocation4]  }
   0x2   :  { %s18_s13 = sshll.u32 %s280_s12, 4  ;;  %s28_s15 = sshll.u32 %s281_s14, 4  ;;  %s19_s13 = int_to_ptr.vmem [resolvable:$true] %s18_s13  ;;  %s29_s15 = int_to_ptr.vmem [resolvable:$true] %s28_s15 }
   0x3   :  { %s232_s18 = scalar_lea.hbm %s337_s1, 512 }
   0x4   :  { %p233_p0 = scmp.ne.s32.totalorder %s337_s1, %s232_s18  ;;  %p236_p1 = scmp.lt.u32.totalorder %s232_s18, %s337_s1 }
   0x6   :  { %p238_p2 = pnand %p236_p1, %p233_p0 }
   0x8   :  { %241 = shalt.err (!%p238_p2)
}
   0x9   :  { %s242_s23 = scalar_lea.vmem %s19_s13, 512  ;;  %p247_p4 = scmp.lt.s32.totalorder %s19_s13, %s19_s13 }
   0xa   :  { %p243_p3 = scmp.ne.s32.totalorder %s19_s13, %s242_s23  ;;  %p248_p5 = scmp.lt.s32.totalorder %s242_s23, %s242_s23 }
   0xc   :  { %p249_p6 = por %p248_p5, %p247_p4 }
   0xe   :  { %p250_p7 = pnand %p249_p6, %p243_p3 }
  0x10   :  { %253 = shalt.err (!%p250_p7)
}
  0x11   :  { %21 = dma.hbm_to_vmem [thread:$0]  %s337_s1, 512, %s19_s13, [#allocation3]  }
  0x12   :  { %s254_s28 = scalar_lea.hbm %s338_s2, 64 }
  0x13   :  { %p255_p8 = scmp.ne.s32.totalorder %s338_s2, %s254_s28  ;;  %p258_p9 = scmp.lt.u32.totalorder %s254_s28, %s338_s2 }
  0x15   :  { %p260_p10 = pnand %p258_p9, %p255_p8 }
  0x17   :  { %263 = shalt.err (!%p260_p10)
}
  0x18   :  { %s264_s6 = scalar_lea.vmem %s29_s15, 64  ;;  %p269_p12 = scmp.lt.s32.totalorder %s29_s15, %s29_s15 }
  0x19   :  { %p265_p11 = scmp.ne.s32.totalorder %s29_s15, %s264_s6  ;;  %p270_p13 = scmp.lt.s32.totalorder %s264_s6, %s264_s6 }
  0x1b   :  { %p271_p0 = por %p270_p13, %p269_p12 }
  0x1d   :  { %p272_p1 = pnand %p271_p0, %p265_p11 }
  0x1f   :  { %275 = shalt.err (!%p272_p1)
}
  0x20   :  { %31 = dma.hbm_to_vmem [thread:$0]  %s338_s2, 64, %s29_s15, [#allocation5]  }
  0x21   :  { %276 = dma.done.wait [#allocation3], 512  }
  0x22   :  { %277 = vsyncadd [#allocation3], 4294966784 }
  0x23   :  { %278 = dma.done.wait [#allocation5], 64  }
  0x24   :  { %279 = vsyncadd [#allocation5], 4294967232  ;;  %v282_v0 = vmov 0.0   ;;  %v40_v1 = vld [vmem:[#allocation2 + $0x8] sm:$0xff]  ;;  %v42_v2 = vld [vmem:[#allocation2 + $0x18] sm:$0xff]  ;;  %vm65_vm0 = vcmask 64512   ;;  %v45_v6 = vlaneseq }
  0x25   :  { %133 = vmatprep.mubr.f32.mxu0 %v282_v0  ;;  %204 = vmatprep.mubr.f32.mxu1 %v282_v0  ;;  %v39_v3 = vld [vmem:[#allocation2] sm:$0xff]  ;;  %v41_v4 = vld [vmem:[#allocation2 + $0x10] sm:$0xff] }
  0x26   :  { %69 = vmatprep.subr.mxu0 %v40_v1  ;;  %140 = vmatprep.subr.mxu1 %v42_v2  ;;  %v38_v5 = vld [vmem:[%s336_s0] sm:$0xf]  ;;  %v46_v7 = vshrl.u32 %v45_v6, 7 }
  0x27   :  { %70 = vmatpush1.msra.mxu0 %v39_v3  ;;  %141 = vmatpush1.msra.mxu1 %v41_v4  ;;  %v43_v10 = vld [vmem:[#allocation4] sm:$0xf] }
  0x28   :  { %227 = vmatmul.mubr.msk.f32.vlgmr.msra.gmra.mrb[0].mxu0 %vm65_vm0, %v38_v5  ;;  %228 = vmatmul.mubr.msk.f32.vlgmr.msra.gmra.mrb[0].mxu1 %vm65_vm0, %v38_v5  ;;  %v47_v8 = vsub.s32 0, %v46_v7  ;;  %v55_v9 = vsub.s32 2, %v46_v7  ;;  %v51_v11 = vsub.s32 1, %v46_v7  ;;  %v59_v12 = vsub.s32 3, %v46_v7 }
  0x2a   :  { %v48_v13 = vrot.slane %v43_v10, %v47_v8  ;;  %v56_v14 = vrot.slane %v43_v10, %v55_v9  ;;  %v52_v15 = vrot.slane %v43_v10, %v51_v11  ;;  %v60_v16 = vrot.slane %v43_v10, %v59_v12 }
  0xfb   :  { %v135_v17 = vpop.f32.mrb[0].mxu0  ;;  %v206_v18 = vpop.f32.mrb[0].mxu1 }
  0xfc   :  { %v136_v19 = vadd.f32 %v135_v17, %v48_v13  ;;  %v207_v20 = vadd.f32 %v206_v18, %v56_v14  ;;  %v137_v21 = vpop.f32.mrb[1].mxu0  ;;  %v208_v22 = vpop.f32.mrb[1].mxu1 }
  0xfd   :  { %v138_v23 = vadd.f32 %v137_v21, %v52_v15  ;;  %v209_v24 = vadd.f32 %v208_v22, %v60_v16 }
  0xff   :  { %v215_v25 = vcombine.low %v136_v19, %v138_v23  ;;  %v216_v26 = vcombine.low %v207_v20, %v209_v24 }
 0x101   :  { %219 = vst [vmem:[%s339_s3] sm:$0xff] %v215_v25  ;;  %220 = vst [vmem:[%s339_s3 + $0x8] sm:$0xff] %v216_v26 }
 0x102   :  { %225 = vsyncpa [#allocation3], 1 }
 0x103   :  { %226 = vsyncpa [#allocation5], 1 }

// kernel: decoder_forward.8
= control target key start
LH: loop header
LB: loop body
LE: loop exit
PB: predicated region body
PF: predicated region fallthrough
CT: control target
= control target key end

     0   :  { %7 = vsyncpa [#allocation5], 0  ;;  %s767_s9 = smov [#allocation4]   ;;  %s905_s0 = inlined_call_operand.vmem [shape: f32[2,2,512], index: 0, kind: input, shape index: {}]   ;;  %s906_s1 = inlined_call_operand.hbm [shape: f32[128,512], index: 1, kind: input, shape index: {}]   ;;  %s907_s2 = inlined_call_operand.vmem [shape: f32[2,2,128], index: 2, kind: output, shape index: {}]  }
   0x1   :  { %s15_s10 = sshll.u32 %s767_s9, 4  ;;  %s743_s13 = scalar_lea.hbm %s906_s1, 8192  ;;  %s16_s10 = int_to_ptr.vmem [resolvable:$true] %s15_s10 }
   0x2   :  { %p744_p0 = scmp.ne.s32.totalorder %s906_s1, %s743_s13  ;;  %p747_p1 = scmp.lt.u32.totalorder %s743_s13, %s906_s1 }
   0x4   :  { %p749_p2 = pnand %p747_p1, %p744_p0 }
   0x6   :  { %752 = shalt.err (!%p749_p2)
}
   0x7   :  { %s753_s18 = scalar_lea.vmem %s16_s10, 8192  ;;  %p758_p4 = scmp.lt.s32.totalorder %s16_s10, %s16_s10 }
   0x8   :  { %p754_p3 = scmp.ne.s32.totalorder %s16_s10, %s753_s18  ;;  %p759_p5 = scmp.lt.s32.totalorder %s753_s18, %s753_s18 }
   0xa   :  { %p760_p6 = por %p759_p5, %p758_p4 }
   0xc   :  { %p761_p7 = pnand %p760_p6, %p754_p3 }
   0xe   :  { %764 = shalt.err (!%p761_p7)
}
   0xf   :  { %s768_s19 = smov 512   ;;  %s769_s20 = smov 32  }
  0x10   :  { %21 = dma.hbm_to_vmem [thread:$0]  %s906_s1, 8192, %s16_s10, [#allocation5], %s768_s19, %s768_s19, %s769_s20  }
  0x11   :  { %765 = dma.done.wait [#allocation5], 8192  }
  0x12   :  { %766 = vsyncadd [#allocation5], 4294959104  ;;  %v770_v0 = vmov 0.0   ;;  %v34_v1 = vld [vmem:[#allocation4 + $0x8] sm:$0xff]  ;;  %v36_v3 = vld [vmem:[#allocation4 + $0x18] sm:$0xff] }
  0x13   :  { %29 = vst [vmem:[#allocation2] sm:$0x3] %v770_v0  ;;  %30 = vst [vmem:[#allocation3] sm:$0x3] %v770_v0  ;;  %161 = vmatprep.mubr.f32.mxu0 %v770_v0  ;;  %232 = vmatprep.mubr.f32.mxu1 %v770_v0  ;;  %v38_v2 = vld [vmem:[#allocation4 + $0x28] sm:$0xff]  ;;  %v40_v5 = vld [vmem:[#allocation4 + $0x38] sm:$0xff] }
  0x14   :  { %v803_v4 = vpack.c.bf16 %v38_v2, %v34_v1  ;;  %v33_v6 = vld [vmem:[#allocation4] sm:$0xff]  ;;  %v805_v8 = vpack.c.bf16 %v40_v5, %v36_v3  ;;  %v35_v10 = vld [vmem:[#allocation4 + $0x10] sm:$0xff]  ;;  %v42_v12 = vld [vmem:[#allocation4 + $0x48] sm:$0xff] }
  0x15   :  { %v37_v7 = vld [vmem:[#allocation4 + $0x20] sm:$0xff]  ;;  %v39_v11 = vld [vmem:[#allocation4 + $0x30] sm:$0xff]  ;;  %v46_v14 = vld [vmem:[#allocation4 + $0x68] sm:$0xff] }
  0x16   :  { %v807_v9 = vpack.c.bf16 %v37_v7, %v33_v6  ;;  %579 = vmatprep.subr.bf16.mxu0 %v803_v4  ;;  %v810_v13 = vpack.c.bf16 %v39_v11, %v35_v10  ;;  %v44_v15 = vld [vmem:[#allocation4 + $0x58] sm:$0xff]  ;;  %611 = vmatprep.subr.bf16.mxu1 %v805_v8  ;;  %v814_v17 = vpack.c.bf16 %v46_v14, %v42_v12  ;;  %v41_v19 = vld [vmem:[#allocation4 + $0x40] sm:$0xff]  ;;  %v43_v21 = vld [vmem:[#allocation4 + $0x50] sm:$0xff] }
  0x17   :  { %v48_v16 = vld [vmem:[#allocation4 + $0x78] sm:$0xff]  ;;  %v45_v20 = vld [vmem:[#allocation4 + $0x60] sm:$0xff]  ;;  %v47_v23 = vld [vmem:[#allocation4 + $0x70] sm:$0xff] }
  0x18   :  { %581 = vmatpush1.bf16.msra.mxu0 %v807_v9  ;;  %v816_v18 = vpack.c.bf16 %v48_v16, %v44_v15  ;;  %613 = vmatpush1.bf16.msra.mxu1 %v810_v13  ;;  %v819_v22 = vpack.c.bf16 %v45_v20, %v41_v19  ;;  %v50_v24 = vld [vmem:[#allocation4 + $0x88] sm:$0xff]  ;;  %v823_v26 = vpack.c.bf16 %v47_v23, %v43_v21  ;;  %v52_v28 = vld [vmem:[#allocation4 + $0x98] sm:$0xff]  ;;  %v49_v30 = vld [vmem:[#allocation4 + $0x80] sm:$0xff] }
  0x19   :  { %v54_v25 = vld [vmem:[#allocation4 + $0xa8] sm:$0xff]  ;;  %583 = vmatprep.subr.bf16.mxu0 %v814_v17  ;;  %v56_v29 = vld [vmem:[#allocation4 + $0xb8] sm:$0xff]  ;;  %v53_v32 = vld [vmem:[#allocation4 + $0xa0] sm:$0xff] }
  0x1a   :  { %615 = vmatprep.subr.bf16.mxu1 %v816_v18  ;;  %v825_v27 = vpack.c.bf16 %v54_v25, %v50_v24  ;;  %v827_v31 = vpack.c.bf16 %v56_v29, %v52_v28  ;;  %v51_v33 = vld [vmem:[#allocation4 + $0x90] sm:$0xff]  ;;  %v830_v35 = vpack.c.bf16 %v53_v32, %v49_v30  ;;  %v58_v36 = vld [vmem:[#allocation4 + $0xc8] sm:$0xff]  ;;  %v60_v38 = vld [vmem:[#allocation4 + $0xd8] sm:$0xff] }
  0x1b   :  { %v55_v34 = vld [vmem:[#allocation4 + $0xb0] sm:$0xff]  ;;  %v62_v37 = vld [vmem:[#allocation4 + $0xe8] sm:$0xff]  ;;  %v64_v41 = vld [vmem:[#allocation4 + $0xf8] sm:$0xff] }
  0x1c   :  { %585 = vmatpush1.bf16.msra.mxu0 %v819_v22  ;;  %617 = vmatpush1.bf16.msra.mxu1 %v823_v26  ;;  %v834_v39 = vpack.c.bf16 %v55_v34, %v51_v33  ;;  %v836_v40 = vpack.c.bf16 %v62_v37, %v58_v36  ;;  %v57_v42 = vld [vmem:[#allocation4 + $0xc0] sm:$0xff]  ;;  %v839_v44 = vpack.c.bf16 %v64_v41, %v60_v38  ;;  %v59_v45 = vld [vmem:[#allocation4 + $0xd0] sm:$0xff]  ;;  %v66_v47 = vld [vmem:[#allocation4 + $0x108] sm:$0xff] }
  0x1d   :  { %587 = vmatprep.subr.bf16.mxu0 %v825_v27  ;;  %v61_v43 = vld [vmem:[#allocation4 + $0xe0] sm:$0xff]  ;;  %619 = vmatprep.subr.bf16.mxu1 %v827_v31  ;;  %v63_v46 = vld [vmem:[#allocation4 + $0xf0] sm:$0xff]  ;;  %v70_v48 = vld [vmem:[#allocation4 + $0x128] sm:$0xff] }
  0x1e   :  { %v68_v49 = vld [vmem:[#allocation4 + $0x118] sm:$0xff]  ;;  %v842_v51 = vpack.c.bf16 %v61_v43, %v57_v42  ;;  %v846_v52 = vpack.c.bf16 %v63_v46, %v59_v45  ;;  %v848_v53 = vpack.c.bf16 %v70_v48, %v66_v47  ;;  %v65_v54 = vld [vmem:[#allocation4 + $0x100] sm:$0xff]  ;;  %v67_v56 = vld [vmem:[#allocation4 + $0x110] sm:$0xff] }
  0x1f   :  { %v72_v50 = vld [vmem:[#allocation4 + $0x138] sm:$0xff]  ;;  %v69_v55 = vld [vmem:[#allocation4 + $0x120] sm:$0xff]  ;;  %v71_v58 = vld [vmem:[#allocation4 + $0x130] sm:$0xff] }
  0x20   :  { %589 = vmatpush1.bf16.msra.mxu0 %v830_v35  ;;  %621 = vmatpush1.bf16.msra.mxu1 %v834_v39  ;;  %v851_v57 = vpack.c.bf16 %v72_v50, %v68_v49  ;;  %v74_v59 = vld [vmem:[#allocation4 + $0x148] sm:$0xff]  ;;  %v76_v61 = vld [vmem:[#allocation4 + $0x158] sm:$0xff]  ;;  %v854_v63 = vpack.c.bf16 %v69_v55, %v65_v54  ;;  %v858_v1 = vpack.c.bf16 %v71_v58, %v67_v56  ;;  %v73_v3 = vld [vmem:[#allocation4 + $0x140] sm:$0xff] }
  0x21   :  { %591 = vmatprep.subr.bf16.mxu0 %v836_v40  ;;  %623 = vmatprep.subr.bf16.mxu1 %v839_v44  ;;  %v78_v60 = vld [vmem:[#allocation4 + $0x168] sm:$0xff]  ;;  %v80_v62 = vld [vmem:[#allocation4 + $0x178] sm:$0xff]  ;;  %v77_v5 = vld [vmem:[#allocation4 + $0x160] sm:$0xff] }
  0x22   :  { %v860_v2 = vpack.c.bf16 %v78_v60, %v74_v59  ;;  %v75_v6 = vld [vmem:[#allocation4 + $0x150] sm:$0xff]  ;;  %v863_v7 = vpack.c.bf16 %v80_v62, %v76_v61  ;;  %v82_v11 = vld [vmem:[#allocation4 + $0x188] sm:$0xff]  ;;  %v84_v14 = vld [vmem:[#allocation4 + $0x198] sm:$0xff]  ;;  %v600_v16 = vpack.c.bf16 %v77_v5, %v73_v3 }
  0x23   :  { %v79_v10 = vld [vmem:[#allocation4 + $0x170] sm:$0xff]  ;;  %v86_v12 = vld [vmem:[#allocation4 + $0x1a8] sm:$0xff]  ;;  %v88_v15 = vld [vmem:[#allocation4 + $0x1b8] sm:$0xff] }
  0x24   :  { %593 = vmatpush1.bf16.msra.mxu0 %v842_v51  ;;  %625 = vmatpush1.bf16.msra.mxu1 %v846_v52  ;;  %v632_v19 = vpack.c.bf16 %v79_v10, %v75_v6  ;;  %v602_v20 = vpack.c.bf16 %v86_v12, %v82_v11  ;;  %v81_v21 = vld [vmem:[#allocation4 + $0x180] sm:$0xff]  ;;  %v83_v24 = vld [vmem:[#allocation4 + $0x190] sm:$0xff]  ;;  %v634_v25 = vpack.c.bf16 %v88_v15, %v84_v14  ;;  %v90_v29 = vld [vmem:[#allocation4 + $0x1c8] sm:$0xff] }
  0x25   :  { %595 = vmatprep.subr.bf16.mxu0 %v848_v53  ;;  %627 = vmatprep.subr.bf16.mxu1 %v851_v57  ;;  %v85_v23 = vld [vmem:[#allocation4 + $0x1a0] sm:$0xff]  ;;  %v87_v28 = vld [vmem:[#allocation4 + $0x1b0] sm:$0xff]  ;;  %v94_v30 = vld [vmem:[#allocation4 + $0x1e8] sm:$0xff] }
  0x26   :  { %v92_v32 = vld [vmem:[#allocation4 + $0x1d8] sm:$0xff]  ;;  %v604_v34 = vpack.c.bf16 %v85_v23, %v81_v21  ;;  %v636_v36 = vpack.c.bf16 %v87_v28, %v83_v24  ;;  %v606_v37 = vpack.c.bf16 %v94_v30, %v90_v29  ;;  %v89_v38 = vld [vmem:[#allocation4 + $0x1c0] sm:$0xff]  ;;  %v91_v43 = vld [vmem:[#allocation4 + $0x1d0] sm:$0xff] }
  0x27   :  { %v96_v33 = vld [vmem:[#allocation4 + $0x1f8] sm:$0xff]  ;;  %v93_v41 = vld [vmem:[#allocation4 + $0x1e0] sm:$0xff]  ;;  %v95_v45 = vld [vmem:[#allocation4 + $0x1f0] sm:$0xff] }
  0x28   :  { %597 = vmatpush1.bf16.msra.mxu0 %v854_v63  ;;  %629 = vmatpush1.bf16.msra.mxu1 %v858_v1  ;;  %v638_v42 = vpack.c.bf16 %v96_v33, %v92_v32  ;;  %v608_v46 = vpack.c.bf16 %v93_v41, %v89_v38  ;;  %v640_v47 = vpack.c.bf16 %v95_v45, %v91_v43  ;;  %v32_v48 = vld [vmem:[#allocation2] sm:$0x3]  ;;  %v573_v28 = vld [vmem:[%s905_s0 + $0x8] sm:$0xff] }
  0x29   :  { %599 = vmatprep.subr.bf16.mxu0 %v860_v2  ;;  %631 = vmatprep.subr.bf16.mxu1 %v863_v7 }
  0x2c   :  { %601 = vmatpush1.bf16.msra.mxu0 %v600_v16  ;;  %633 = vmatpush1.bf16.msra.mxu1 %v632_v19 }
  0x2d   :  { %603 = vmatprep.subr.bf16.mxu0 %v602_v20  ;;  %635 = vmatprep.subr.bf16.mxu1 %v634_v25 }
  0x30   :  { %605 = vmatpush1.bf16.msra.mxu0 %v604_v34  ;;  %637 = vmatpush1.bf16.msra.mxu1 %v636_v36 }
  0x31   :  { %607 = vmatprep.subr.bf16.mxu0 %v606_v37  ;;  %639 = vmatprep.subr.bf16.mxu1 %v638_v42 }
  0x34   :  { %609 = vmatpush1.bf16.msra.mxu0 %v608_v46  ;;  %641 = vmatpush1.bf16.msra.mxu1 %v640_v47 }
  0x35   :  { %643 = vmatprep.subr.bf16.mxu0 %v803_v4  ;;  %675 = vmatprep.subr.bf16.mxu1 %v805_v8  ;;  %v248_v8 = vlaneseq }
  0x37   :  { %162 = vmatmul.mubr.f32.vlgmr.msra.gmra.mrb[0].mxu0 %v32_v48  ;;  %233 = vmatmul.mubr.f32.vlgmr.msra.gmra.mrb[0].mxu1 %v32_v48 }
  0x38   :  { %645 = vmatpush1.bf16.msra.mxu0 %v807_v9  ;;  %677 = vmatpush1.bf16.msra.mxu1 %v810_v13  ;;  %v249_v13 = vshrl.u32 %v248_v8, 7 }
  0x39   :  { %647 = vmatprep.subr.bf16.mxu0 %v814_v17  ;;  %679 = vmatprep.subr.bf16.mxu1 %v816_v18 }
  0x3a   :  { %428 = vmatprep.mubr.f32.mxu0 %v770_v0  ;;  %499 = vmatprep.mubr.f32.mxu1 %v770_v0  ;;  %v771_v0 = vmov 1983009808  }
  0x3b   :  { %v246_v4 = vunpack.c.l.s4 %v771_v0 }
  0x3c   :  { %649 = vmatpush1.bf16.msra.mxu0 %v819_v22  ;;  %681 = vmatpush1.bf16.msra.mxu1 %v823_v26 }
  0x3d   :  { %651 = vmatprep.subr.bf16.mxu0 %v825_v27  ;;  %683 = vmatprep.subr.bf16.mxu1 %v827_v31  ;;  %v247_v9 = vunpack.c.0.s8 %v246_v4 }
  0x3f   :  { %v250_v18 = vsub.s32 %v247_v9, %v249_v13 }
  0x40   :  { %653 = vmatpush1.bf16.msra.mxu0 %v830_v35  ;;  %685 = vmatpush1.bf16.msra.mxu1 %v834_v39 }
  0x41   :  { %655 = vmatprep.subr.bf16.mxu0 %v836_v40  ;;  %687 = vmatprep.subr.bf16.mxu1 %v839_v44  ;;  %v31_v44 = vld [vmem:[%s905_s0] sm:$0xff] }
  0x44   :  { %657 = vmatpush1.bf16.msra.mxu0 %v842_v51  ;;  %689 = vmatpush1.bf16.msra.mxu1 %v846_v52 }
  0x45   :  { %659 = vmatprep.subr.bf16.mxu0 %v848_v53  ;;  %691 = vmatprep.subr.bf16.mxu1 %v851_v57 }
  0x48   :  { %661 = vmatpush1.bf16.msra.mxu0 %v854_v63  ;;  %693 = vmatpush1.bf16.msra.mxu1 %v858_v1  ;;  %v288_v63 = vld [vmem:[#allocation3] sm:$0x3] }
  0x49   :  { %663 = vmatprep.subr.bf16.mxu0 %v860_v2  ;;  %695 = vmatprep.subr.bf16.mxu1 %v863_v7 }
  0x4c   :  { %665 = vmatpush1.bf16.msra.mxu0 %v600_v16  ;;  %697 = vmatpush1.bf16.msra.mxu1 %v632_v19 }
  0x4d   :  { %667 = vmatprep.subr.bf16.mxu0 %v602_v20  ;;  %699 = vmatprep.subr.bf16.mxu1 %v634_v25 }
  0x50   :  { %669 = vmatpush1.bf16.msra.mxu0 %v604_v34  ;;  %701 = vmatpush1.bf16.msra.mxu1 %v636_v36 }
  0x51   :  { %671 = vmatprep.subr.bf16.mxu0 %v606_v37  ;;  %703 = vmatprep.subr.bf16.mxu1 %v638_v42 }
  0x54   :  { %673 = vmatpush1.bf16.msra.mxu0 %v608_v46  ;;  %705 = vmatpush1.bf16.msra.mxu1 %v640_v47 }
 0x10a   :  { %v163_v17 = vpop.f32.mrb[0].mxu0  ;;  %v234_v22 = vpop.f32.mrb[0].mxu1 }
 0x10b   :  { %v165_v26 = vpop.f32.mrb[1].mxu0  ;;  %v236_v31 = vpop.f32.mrb[1].mxu1 }
 0x10c   :  { %v243_v27 = vcombine.low %v163_v17, %v165_v26  ;;  %v244_v35 = vcombine.low %v234_v22, %v236_v31 }
 0x10e   :  { %v251_v39 = vrot.slane %v243_v27, %v250_v18  ;;  %v258_v40 = vrot.slane %v244_v35, %v250_v18 }
 0x110   :  { %v259_v49 = vcombine.low %v251_v39, %v258_v40 }
 0x112   :  { %v261_v50 = vadd.f32 %v259_v49, %v31_v44 }
 0x114   :  { %v570_v51 = vmul.f32 -1.442695, %v261_v50  ;;  %v269_v52 = vrot.slane %v261_v50, 2  ;;  %v280_v54 = vrot.slane %v261_v50, 6  ;;  %v277_v57 = vrot.slane %v261_v50, 4 }
 0x116   :  { %711 = vpow2.f32 %v570_v51  ;;  %v571_v53 = vmul.f32 -1.442695, %v269_v52  ;;  %v572_v55 = vmul.f32 -1.442695, %v280_v54 }
 0x118   :  { %713 = vpow2.f32 %v571_v53 }
 0x119   :  { %715 = vpow2.f32 %v572_v55 }
 0x120   :  { %v712_v56 = vpop.eup %711 }
 0x121   :  { %v265_v58 = vadd.f32 1.0, %v712_v56 }
 0x122   :  { %v714_v59 = vpop.eup %713 }
 0x123   :  { %717 = vrcp.f32 %v265_v58  ;;  %v274_v60 = vadd.f32 1.0, %v714_v59  ;;  %v716_v61 = vpop.eup %715 }
 0x124   :  { %719 = vtanh.f32 %v277_v57  ;;  %v285_v3 = vadd.f32 1.0, %v716_v61 }
 0x125   :  { %721 = vrcp.f32 %v274_v60 }
 0x126   :  { %723 = vrcp.f32 %v285_v3 }
 0x12d   :  { %v718_v62 = vpop.eup %717 }
 0x12e   :  { %v720_v1 = vpop.eup %719 }
 0x12f   :  { %v722_v2 = vpop.eup %721  ;;  %v290_v6 = vmul.f32 %v720_v1, %v718_v62 }
 0x130   :  { %v289_v5 = vmul.f32 %v722_v2, %v288_v63  ;;  %v724_v10 = vpop.eup %723 }
 0x132   :  { %v291_v7 = vadd.f32 %v290_v6, %v289_v5 }
 0x134   :  { %725 = vtanh.f32 %v291_v7  ;;  %294 = vst [vmem:[#allocation3] sm:$0x3] %v291_v7 }
 0x13b   :  { %v555_v8 = vld [vmem:[#allocation3] sm:$0x3] }
 0x13e   :  { %v726_v11 = vpop.eup %725 }
 0x13f   :  { %v293_v12 = vmul.f32 %v726_v11, %v724_v10 }
 0x141   :  { %296 = vst [vmem:[%s907_s2] sm:$0x3] %v293_v12  ;;  %295 = vst [vmem:[#allocation2] sm:$0x3] %v293_v12 }
 0x148   :  { %v299_v14 = vld [vmem:[#allocation2] sm:$0x3] }
 0x149   :  { %429 = vmatmul.mubr.f32.vlgmr.msra.gmra.mrb[2].mxu0 %v299_v14  ;;  %500 = vmatmul.mubr.f32.vlgmr.msra.gmra.mrb[2].mxu1 %v299_v14 }
 0x21c   :  { %v430_v15 = vpop.f32.mrb[2].mxu0  ;;  %v501_v16 = vpop.f32.mrb[2].mxu1 }
 0x21d   :  { %v432_v19 = vpop.f32.mrb[3].mxu0  ;;  %v503_v20 = vpop.f32.mrb[3].mxu1 }
 0x21e   :  { %v510_v21 = vcombine.low %v430_v15, %v432_v19  ;;  %v511_v23 = vcombine.low %v501_v16, %v503_v20 }
 0x220   :  { %v518_v24 = vrot.slane %v510_v21, %v250_v18  ;;  %v525_v25 = vrot.slane %v511_v23, %v250_v18 }
 0x222   :  { %v526_v29 = vcombine.low %v518_v24, %v525_v25 }
 0x224   :  { %v528_v30 = vadd.f32 %v573_v28, %v526_v29 }
 0x226   :  { %v574_v32 = vmul.f32 -1.442695, %v528_v30  ;;  %v536_v33 = vrot.slane %v528_v30, 2  ;;  %v547_v36 = vrot.slane %v528_v30, 6  ;;  %v544_v41 = vrot.slane %v528_v30, 4 }
 0x228   :  { %727 = vpow2.f32 %v574_v32  ;;  %v575_v34 = vmul.f32 -1.442695, %v536_v33  ;;  %v576_v37 = vmul.f32 -1.442695, %v547_v36 }
 0x22a   :  { %729 = vpow2.f32 %v575_v34 }
 0x22b   :  { %731 = vpow2.f32 %v576_v37 }
 0x232   :  { %v728_v38 = vpop.eup %727 }
 0x233   :  { %v532_v42 = vadd.f32 1.0, %v728_v38 }
 0x234   :  { %v730_v43 = vpop.eup %729 }
 0x235   :  { %733 = vrcp.f32 %v532_v42  ;;  %v541_v45 = vadd.f32 1.0, %v730_v43  ;;  %v732_v46 = vpop.eup %731 }
 0x236   :  { %735 = vtanh.f32 %v544_v41  ;;  %v552_v4 = vadd.f32 1.0, %v732_v46 }
 0x237   :  { %737 = vrcp.f32 %v541_v45 }
 0x238   :  { %739 = vrcp.f32 %v552_v4 }
 0x23f   :  { %v734_v47 = vpop.eup %733 }
 0x240   :  { %v736_v48 = vpop.eup %735 }
 0x241   :  { %v738_v0 = vpop.eup %737  ;;  %v557_v13 = vmul.f32 %v736_v48, %v734_v47 }
 0x242   :  { %v556_v9 = vmul.f32 %v738_v0, %v555_v8  ;;  %v740_v18 = vpop.eup %739 }
 0x244   :  { %v558_v17 = vadd.f32 %v557_v13, %v556_v9 }
 0x246   :  { %741 = vtanh.f32 %v558_v17  ;;  %561 = vst [vmem:[#allocation3] sm:$0x3] %v558_v17 }
 0x250   :  { %v742_v22 = vpop.eup %741 }
 0x251   :  { %v560_v26 = vmul.f32 %v742_v22, %v740_v18 }
 0x253   :  { %562 = vst [vmem:[#allocation2] sm:$0x3] %v560_v26  ;;  %577 = vst [vmem:[%s907_s2 + $0x2] sm:$0x3] %v560_v26 }
 0x254   :  { %569 = vsyncpa [#allocation5], 1 }

// kernel: decoder_forward.9
= control target key start
LH: loop header
LB: loop body
LE: loop exit
PB: predicated region body
PF: predicated region fallthrough
CT: control target
= control target key end

     0   :  { %10 = vsyncpa [#allocation3], 0  ;;  %s4114_s0 = inlined_call_operand.vmem [shape: bf16[1,4,128], index: 0, kind: input, shape index: {}]   ;;  %s4115_s1 = inlined_call_operand.hbm [shape: bf16[1,128,4096], index: 1, kind: input, shape index: {}]   ;;  %s4116_s2 = inlined_call_operand.hbm [shape: f32[1,4096], index: 2, kind: input, shape index: {}]   ;;  %s4117_s3 = inlined_call_operand.vmem [shape: bf16[1,4,4096], index: 3, kind: output, shape index: {0}]   ;;  %s4118_s4 = inlined_call_operand.vmem [shape: f32[1,1,2,4096], index: 4, kind: output, shape index: {1}]  }
   0x1   :  { %11 = vsyncpa [#allocation5], 0  ;;  %s3655_s15 = smov [#allocation2]   ;;  %s3607_s19 = scalar_lea.hbm %s4115_s1, 32768 }
   0x2   :  { %s19_s16 = sshll.u32 %s3655_s15, 4  ;;  %p3608_p0 = scmp.ne.s32.totalorder %s4115_s1, %s3607_s19  ;;  %s20_s16 = int_to_ptr.vmem [resolvable:$true] %s19_s16 }
   0x3   :  { %p3611_p1 = scmp.lt.u32.totalorder %s3607_s19, %s4115_s1 }
   0x5   :  { %p3613_p2 = pnand %p3611_p1, %p3608_p0 }
   0x7   :  { %3616 = shalt.err (!%p3613_p2)
}
   0x8   :  { %s3617_s24 = scalar_lea.vmem %s20_s16, 32768  ;;  %p3622_p4 = scmp.lt.s32.totalorder %s20_s16, %s20_s16 }
   0x9   :  { %p3618_p3 = scmp.ne.s32.totalorder %s20_s16, %s3617_s24  ;;  %p3623_p5 = scmp.lt.s32.totalorder %s3617_s24, %s3617_s24 }
   0xb   :  { %p3624_p6 = por %p3623_p5, %p3622_p4 }
   0xd   :  { %p3625_p7 = pnand %p3624_p6, %p3618_p3 }
   0xf   :  { %3628 = shalt.err (!%p3625_p7)
}
  0x10   :  { %s3656_s25 = smov 2048   ;;  %s3657_s26 = smov 128  }
  0x11   :  { %25 = dma.hbm_to_vmem [thread:$0]  %s4115_s1, 32768, %s20_s16, [#allocation3], %s3656_s25, %s3656_s25, %s3657_s26  }
  0x12   :  { %s3658_s29 = smov [#allocation4]   ;;  %s3629_s7 = scalar_lea.hbm %s4116_s2, 512 }
  0x13   :  { %s32_s30 = sshll.u32 %s3658_s29, 4  ;;  %p3630_p8 = scmp.ne.s32.totalorder %s4116_s2, %s3629_s7  ;;  %s33_s30 = int_to_ptr.vmem [resolvable:$true] %s32_s30 }
  0x14   :  { %p3633_p9 = scmp.lt.u32.totalorder %s3629_s7, %s4116_s2 }
  0x16   :  { %p3635_p10 = pnand %p3633_p9, %p3630_p8 }
  0x18   :  { %3638 = shalt.err (!%p3635_p10)
}
  0x19   :  { %s3639_s12 = scalar_lea.vmem %s33_s30, 512  ;;  %p3644_p12 = scmp.lt.s32.totalorder %s33_s30, %s33_s30 }
  0x1a   :  { %p3640_p11 = scmp.ne.s32.totalorder %s33_s30, %s3639_s12  ;;  %p3645_p13 = scmp.lt.s32.totalorder %s3639_s12, %s3639_s12 }
  0x1c   :  { %p3646_p0 = por %p3645_p13, %p3644_p12 }
  0x1e   :  { %p3647_p1 = pnand %p3646_p0, %p3640_p11 }
  0x20   :  { %3650 = shalt.err (!%p3647_p1)
}
  0x21   :  { %35 = dma.hbm_to_vmem [thread:$0]  %s4116_s2, 512, %s33_s30, [#allocation5]  }
  0x22   :  { %3651 = dma.done.wait [#allocation3], 32768  }
  0x23   :  { %3652 = vsyncadd [#allocation3], 4294934528 }
  0x24   :  { %3653 = dma.done.wait [#allocation5], 512  }
  0x25   :  { %3654 = vsyncadd [#allocation5], 4294966784  ;;  %v3659_v0 = vmov 0   ;;  %v44_v1 = vld [vmem:[#allocation2] sm:$0xff]  ;;  %v45_v3 = vld [vmem:[#allocation2 + $0x8] sm:$0xff]  ;;  %vm2404_vm0 = vcmask 1043456  }
  0x26   :  { %1780 = vmatprep.mubr.bf16.mxu0 %v3659_v0  ;;  %1821 = vmatprep.mubr.bf16.mxu1 %v3659_v0  ;;  %v60_v2 = vld [vmem:[#allocation2 + $0x80] sm:$0xff]  ;;  %v61_v5 = vld [vmem:[#allocation2 + $0x88] sm:$0xff]  ;;  %v46_v63 = vld [vmem:[#allocation2 + $0x10] sm:$0xff]  ;;  %vm2885_vm1 = vcmask 1040384  }
  0x27   :  { %v3329_v4 = vcombine.high %v44_v1, %v60_v2  ;;  %v3328_v6 = vcombine.low %v44_v1, %v60_v2  ;;  %v76_v7 = vld [vmem:[#allocation2 + $0x100] sm:$0xff]  ;;  %v3331_v9 = vcombine.high %v45_v3, %v61_v5  ;;  %v3330_v10 = vcombine.low %v45_v3, %v61_v5  ;;  %v77_v12 = vld [vmem:[#allocation2 + $0x108] sm:$0xff]  ;;  %v62_v1 = vld [vmem:[#allocation2 + $0x90] sm:$0xff] }
  0x28   :  { %v92_v8 = vld [vmem:[#allocation2 + $0x180] sm:$0xff]  ;;  %v93_v13 = vld [vmem:[#allocation2 + $0x188] sm:$0xff]  ;;  %v47_v2 = vld [vmem:[#allocation2 + $0x18] sm:$0xff] }
  0x29   :  { %v3361_v11 = vcombine.high %v76_v7, %v92_v8  ;;  %v108_v14 = vld [vmem:[#allocation2 + $0x200] sm:$0xff]  ;;  %1748 = vmatprep.subr.bf16.mxu0 %v3329_v4  ;;  %v3363_v15 = vcombine.high %v77_v12, %v93_v13  ;;  %v109_v17 = vld [vmem:[#allocation2 + $0x208] sm:$0xff]  ;;  %1789 = vmatprep.subr.bf16.mxu1 %v3331_v9  ;;  %v3360_v19 = vcombine.low %v76_v7, %v92_v8  ;;  %v63_v3 = vld [vmem:[#allocation2 + $0x98] sm:$0xff] }
  0x2a   :  { %v124_v16 = vld [vmem:[#allocation2 + $0x280] sm:$0xff]  ;;  %v125_v18 = vld [vmem:[#allocation2 + $0x288] sm:$0xff]  ;;  %1749 = vmatpush1.bf16.msra.mxu0 %v3328_v6  ;;  %1790 = vmatpush1.bf16.msra.mxu1 %v3330_v10  ;;  %v3362_v20 = vcombine.low %v77_v12, %v93_v13  ;;  %v3333_v6 = vcombine.high %v46_v63, %v62_v1  ;;  %v3335_v7 = vcombine.high %v47_v2, %v63_v3  ;;  %v78_v8 = vld [vmem:[#allocation2 + $0x110] sm:$0xff] }
  0x2b   :  { %1750 = vmatprep.subr.bf16.mxu0 %v3361_v11  ;;  %v3393_v21 = vcombine.high %v108_v14, %v124_v16  ;;  %1791 = vmatprep.subr.bf16.mxu1 %v3363_v15  ;;  %v3395_v22 = vcombine.high %v109_v17, %v125_v18  ;;  %v140_v23 = vld [vmem:[#allocation2 + $0x300] sm:$0xff]  ;;  %v141_v25 = vld [vmem:[#allocation2 + $0x308] sm:$0xff]  ;;  %v3392_v27 = vcombine.low %v108_v14, %v124_v16  ;;  %v94_v9 = vld [vmem:[#allocation2 + $0x190] sm:$0xff] }
  0x2c   :  { %v156_v24 = vld [vmem:[#allocation2 + $0x380] sm:$0xff]  ;;  %v157_v26 = vld [vmem:[#allocation2 + $0x388] sm:$0xff]  ;;  %v3394_v28 = vcombine.low %v109_v17, %v125_v18  ;;  %v79_v10 = vld [vmem:[#allocation2 + $0x118] sm:$0xff]  ;;  %v3332_v13 = vcombine.low %v46_v63, %v62_v1  ;;  %v3334_v14 = vcombine.low %v47_v2, %v63_v3  ;;  %v3365_v15 = vcombine.high %v78_v8, %v94_v9 }
  0x2d   :  { %v3425_v29 = vcombine.high %v140_v23, %v156_v24  ;;  %v3427_v30 = vcombine.high %v141_v25, %v157_v26  ;;  %v172_v31 = vld [vmem:[#allocation2 + $0x400] sm:$0xff]  ;;  %v173_v33 = vld [vmem:[#allocation2 + $0x408] sm:$0xff]  ;;  %v3424_v35 = vcombine.low %v140_v23, %v156_v24  ;;  %v3426_v36 = vcombine.low %v141_v25, %v157_v26  ;;  %v95_v11 = vld [vmem:[#allocation2 + $0x198] sm:$0xff] }
  0x2e   :  { %1751 = vmatpush1.bf16.msra.mxu0 %v3360_v19  ;;  %1792 = vmatpush1.bf16.msra.mxu1 %v3362_v20  ;;  %v188_v32 = vld [vmem:[#allocation2 + $0x480] sm:$0xff]  ;;  %v189_v34 = vld [vmem:[#allocation2 + $0x488] sm:$0xff]  ;;  %v3367_v16 = vcombine.high %v79_v10, %v95_v11  ;;  %v110_v17 = vld [vmem:[#allocation2 + $0x210] sm:$0xff] }
  0x2f   :  { %1752 = vmatprep.subr.bf16.mxu0 %v3393_v21  ;;  %1793 = vmatprep.subr.bf16.mxu1 %v3395_v22  ;;  %v3457_v37 = vcombine.high %v172_v31, %v188_v32  ;;  %v3459_v38 = vcombine.high %v173_v33, %v189_v34  ;;  %v204_v39 = vld [vmem:[#allocation2 + $0x500] sm:$0xff]  ;;  %v205_v41 = vld [vmem:[#allocation2 + $0x508] sm:$0xff]  ;;  %v3456_v43 = vcombine.low %v172_v31, %v188_v32  ;;  %v126_v18 = vld [vmem:[#allocation2 + $0x290] sm:$0xff] }
  0x30   :  { %v220_v40 = vld [vmem:[#allocation2 + $0x580] sm:$0xff]  ;;  %v221_v42 = vld [vmem:[#allocation2 + $0x588] sm:$0xff]  ;;  %v3458_v44 = vcombine.low %v173_v33, %v189_v34  ;;  %v111_v19 = vld [vmem:[#allocation2 + $0x218] sm:$0xff]  ;;  %v3364_v21 = vcombine.low %v78_v8, %v94_v9  ;;  %v3366_v22 = vcombine.low %v79_v10, %v95_v11  ;;  %v3397_v23 = vcombine.high %v110_v17, %v126_v18 }
  0x31   :  { %v3489_v45 = vcombine.high %v204_v39, %v220_v40  ;;  %v3491_v46 = vcombine.high %v205_v41, %v221_v42  ;;  %v236_v47 = vld [vmem:[#allocation2 + $0x600] sm:$0xff]  ;;  %v237_v49 = vld [vmem:[#allocation2 + $0x608] sm:$0xff]  ;;  %v3488_v51 = vcombine.low %v204_v39, %v220_v40  ;;  %v3490_v52 = vcombine.low %v205_v41, %v221_v42  ;;  %v127_v20 = vld [vmem:[#allocation2 + $0x298] sm:$0xff] }
  0x32   :  { %1753 = vmatpush1.bf16.msra.mxu0 %v3392_v27  ;;  %1794 = vmatpush1.bf16.msra.mxu1 %v3394_v28  ;;  %v252_v48 = vld [vmem:[#allocation2 + $0x680] sm:$0xff]  ;;  %v253_v50 = vld [vmem:[#allocation2 + $0x688] sm:$0xff]  ;;  %v3399_v24 = vcombine.high %v111_v19, %v127_v20  ;;  %v142_v25 = vld [vmem:[#allocation2 + $0x310] sm:$0xff] }
  0x33   :  { %1754 = vmatprep.subr.bf16.mxu0 %v3425_v29  ;;  %1795 = vmatprep.subr.bf16.mxu1 %v3427_v30  ;;  %v3521_v53 = vcombine.high %v236_v47, %v252_v48  ;;  %v3523_v54 = vcombine.high %v237_v49, %v253_v50  ;;  %v268_v55 = vld [vmem:[#allocation2 + $0x700] sm:$0xff]  ;;  %v269_v57 = vld [vmem:[#allocation2 + $0x708] sm:$0xff]  ;;  %v3520_v59 = vcombine.low %v236_v47, %v252_v48  ;;  %v158_v26 = vld [vmem:[#allocation2 + $0x390] sm:$0xff] }
  0x34   :  { %v284_v56 = vld [vmem:[#allocation2 + $0x780] sm:$0xff]  ;;  %v285_v58 = vld [vmem:[#allocation2 + $0x788] sm:$0xff]  ;;  %v3522_v60 = vcombine.low %v237_v49, %v253_v50  ;;  %v143_v27 = vld [vmem:[#allocation2 + $0x318] sm:$0xff]  ;;  %v3396_v29 = vcombine.low %v110_v17, %v126_v18  ;;  %v3398_v30 = vcombine.low %v111_v19, %v127_v20  ;;  %v3429_v31 = vcombine.high %v142_v25, %v158_v26 }
  0x35   :  { %v3553_v61 = vcombine.high %v268_v55, %v284_v56  ;;  %v3555_v62 = vcombine.high %v269_v57, %v285_v58  ;;  %v3552_v4 = vcombine.low %v268_v55, %v284_v56  ;;  %v3554_v5 = vcombine.low %v269_v57, %v285_v58  ;;  %v3715_v12 = vld [vmem:[%s4114_s0] sm:$0x3]  ;;  %v159_v28 = vld [vmem:[#allocation2 + $0x398] sm:$0xff]  ;;  %v174_v33 = vld [vmem:[#allocation2 + $0x410] sm:$0xff] }
  0x36   :  { %1755 = vmatpush1.bf16.msra.mxu0 %v3424_v35  ;;  %1796 = vmatpush1.bf16.msra.mxu1 %v3426_v36  ;;  %v3431_v32 = vcombine.high %v143_v27, %v159_v28  ;;  %v190_v34 = vld [vmem:[#allocation2 + $0x490] sm:$0xff]  ;;  %v175_v35 = vld [vmem:[#allocation2 + $0x418] sm:$0xff]  ;;  %v48_v2 = vld [vmem:[#allocation2 + $0x20] sm:$0xff] }
  0x37   :  { %1756 = vmatprep.subr.bf16.mxu0 %v3457_v37  ;;  %1797 = vmatprep.subr.bf16.mxu1 %v3459_v38  ;;  %v191_v36 = vld [vmem:[#allocation2 + $0x498] sm:$0xff]  ;;  %v3428_v37 = vcombine.low %v142_v25, %v158_v26  ;;  %v3430_v38 = vcombine.low %v143_v27, %v159_v28  ;;  %v3461_v39 = vcombine.high %v174_v33, %v190_v34  ;;  %v206_v41 = vld [vmem:[#allocation2 + $0x510] sm:$0xff]  ;;  %v64_v3 = vld [vmem:[#allocation2 + $0xa0] sm:$0xff] }
  0x38   :  { %v3463_v40 = vcombine.high %v175_v35, %v191_v36  ;;  %v222_v42 = vld [vmem:[#allocation2 + $0x590] sm:$0xff]  ;;  %v3337_v8 = vcombine.high %v48_v2, %v64_v3  ;;  %v80_v10 = vld [vmem:[#allocation2 + $0x120] sm:$0xff] }
  0x39   :  { %v3493_v47 = vcombine.high %v206_v41, %v222_v42  ;;  %v238_v49 = vld [vmem:[#allocation2 + $0x610] sm:$0xff]  ;;  %v96_v11 = vld [vmem:[#allocation2 + $0x1a0] sm:$0xff] }
  0x3a   :  { %1757 = vmatpush1.bf16.msra.mxu0 %v3456_v43  ;;  %1798 = vmatpush1.bf16.msra.mxu1 %v3458_v44  ;;  %v207_v43 = vld [vmem:[#allocation2 + $0x518] sm:$0xff]  ;;  %v254_v50 = vld [vmem:[#allocation2 + $0x690] sm:$0xff]  ;;  %v3369_v17 = vcombine.high %v80_v10, %v96_v11  ;;  %v112_v19 = vld [vmem:[#allocation2 + $0x220] sm:$0xff] }
  0x3b   :  { %1758 = vmatprep.subr.bf16.mxu0 %v3489_v45  ;;  %1799 = vmatprep.subr.bf16.mxu1 %v3491_v46  ;;  %v223_v44 = vld [vmem:[#allocation2 + $0x598] sm:$0xff]  ;;  %v3460_v45 = vcombine.low %v174_v33, %v190_v34  ;;  %v3462_v46 = vcombine.low %v175_v35, %v191_v36  ;;  %v3525_v55 = vcombine.high %v238_v49, %v254_v50  ;;  %v270_v57 = vld [vmem:[#allocation2 + $0x710] sm:$0xff]  ;;  %v128_v20 = vld [vmem:[#allocation2 + $0x2a0] sm:$0xff] }
  0x3c   :  { %v3495_v48 = vcombine.high %v207_v43, %v223_v44  ;;  %v286_v58 = vld [vmem:[#allocation2 + $0x790] sm:$0xff]  ;;  %v3401_v25 = vcombine.high %v112_v19, %v128_v20  ;;  %v144_v27 = vld [vmem:[#allocation2 + $0x320] sm:$0xff] }
  0x3d   :  { %v3557_v63 = vcombine.high %v270_v57, %v286_v58  ;;  %v160_v28 = vld [vmem:[#allocation2 + $0x3a0] sm:$0xff] }
  0x3e   :  { %1759 = vmatpush1.bf16.msra.mxu0 %v3488_v51  ;;  %1800 = vmatpush1.bf16.msra.mxu1 %v3490_v52  ;;  %v239_v51 = vld [vmem:[#allocation2 + $0x618] sm:$0xff]  ;;  %v3433_v33 = vcombine.high %v144_v27, %v160_v28  ;;  %v176_v35 = vld [vmem:[#allocation2 + $0x420] sm:$0xff] }
  0x3f   :  { %1760 = vmatprep.subr.bf16.mxu0 %v3521_v53  ;;  %1801 = vmatprep.subr.bf16.mxu1 %v3523_v54  ;;  %v255_v52 = vld [vmem:[#allocation2 + $0x698] sm:$0xff]  ;;  %v3492_v53 = vcombine.low %v206_v41, %v222_v42  ;;  %v3494_v54 = vcombine.low %v207_v43, %v223_v44  ;;  %v192_v36 = vld [vmem:[#allocation2 + $0x4a0] sm:$0xff] }
  0x40   :  { %v3527_v56 = vcombine.high %v239_v51, %v255_v52  ;;  %v3465_v41 = vcombine.high %v176_v35, %v192_v36  ;;  %v208_v43 = vld [vmem:[#allocation2 + $0x520] sm:$0xff] }
  0x41   :  { %v224_v44 = vld [vmem:[#allocation2 + $0x5a0] sm:$0xff] }
  0x42   :  { %1761 = vmatpush1.bf16.msra.mxu0 %v3520_v59  ;;  %1802 = vmatpush1.bf16.msra.mxu1 %v3522_v60  ;;  %v271_v59 = vld [vmem:[#allocation2 + $0x718] sm:$0xff] }
  0x43   :  { %1762 = vmatprep.subr.bf16.mxu0 %v3553_v61  ;;  %1803 = vmatprep.subr.bf16.mxu1 %v3555_v62  ;;  %v287_v60 = vld [vmem:[#allocation2 + $0x798] sm:$0xff]  ;;  %v3524_v61 = vcombine.low %v238_v49, %v254_v50  ;;  %v3526_v62 = vcombine.low %v239_v51, %v255_v52  ;;  %v3497_v49 = vcombine.high %v208_v43, %v224_v44  ;;  %v240_v51 = vld [vmem:[#allocation2 + $0x620] sm:$0xff] }
  0x44   :  { %v3559_v1 = vcombine.high %v271_v59, %v287_v60  ;;  %v256_v52 = vld [vmem:[#allocation2 + $0x6a0] sm:$0xff] }
  0x46   :  { %1763 = vmatpush1.bf16.msra.mxu0 %v3552_v4  ;;  %1804 = vmatpush1.bf16.msra.mxu1 %v3554_v5  ;;  %v49_v4 = vld [vmem:[#allocation2 + $0x28] sm:$0xff] }
  0x47   :  { %1830 = vmatprep.subr.bf16.mxu0 %v3333_v6  ;;  %1871 = vmatprep.subr.bf16.mxu1 %v3335_v7  ;;  %v65_v5 = vld [vmem:[#allocation2 + $0xa8] sm:$0xff]  ;;  %v3556_v6 = vcombine.low %v270_v57, %v286_v58  ;;  %v3558_v7 = vcombine.low %v271_v59, %v287_v60  ;;  %v3529_v57 = vcombine.high %v240_v51, %v256_v52  ;;  %v272_v59 = vld [vmem:[#allocation2 + $0x720] sm:$0xff] }
  0x48   :  { %v3339_v9 = vcombine.high %v49_v4, %v65_v5  ;;  %v288_v60 = vld [vmem:[#allocation2 + $0x7a0] sm:$0xff] }
  0x49   :  { %1781 = vmatmul.mubr.bf16.vlgmr.msra.gmra.mrb[0].mxu0 %v3715_v12  ;;  %1822 = vmatmul.mubr.bf16.vlgmr.msra.gmra.mrb[0].mxu1 %v3715_v12 }
  0x4a   :  { %1831 = vmatpush1.bf16.msra.mxu0 %v3332_v13  ;;  %1872 = vmatpush1.bf16.msra.mxu1 %v3334_v14  ;;  %v81_v13 = vld [vmem:[#allocation2 + $0x128] sm:$0xff] }
  0x4b   :  { %1832 = vmatprep.subr.bf16.mxu0 %v3365_v15  ;;  %1873 = vmatprep.subr.bf16.mxu1 %v3367_v16  ;;  %v97_v14 = vld [vmem:[#allocation2 + $0x1a8] sm:$0xff]  ;;  %v3336_v15 = vcombine.low %v48_v2, %v64_v3  ;;  %v3338_v16 = vcombine.low %v49_v4, %v65_v5  ;;  %v3561_v2 = vcombine.high %v272_v59, %v288_v60  ;;  %v50_v4 = vld [vmem:[#allocation2 + $0x30] sm:$0xff] }
  0x4c   :  { %1862 = vmatprep.mubr.bf16.mxu0 %v3659_v0  ;;  %1903 = vmatprep.mubr.bf16.mxu1 %v3659_v0  ;;  %v3371_v18 = vcombine.high %v81_v13, %v97_v14  ;;  %v66_v5 = vld [vmem:[#allocation2 + $0xb0] sm:$0xff] }
  0x4e   :  { %1833 = vmatpush1.bf16.msra.mxu0 %v3364_v21  ;;  %1874 = vmatpush1.bf16.msra.mxu1 %v3366_v22  ;;  %v113_v21 = vld [vmem:[#allocation2 + $0x228] sm:$0xff] }
  0x4f   :  { %1834 = vmatprep.subr.bf16.mxu0 %v3397_v23  ;;  %1875 = vmatprep.subr.bf16.mxu1 %v3399_v24  ;;  %v129_v22 = vld [vmem:[#allocation2 + $0x2a8] sm:$0xff]  ;;  %v3368_v23 = vcombine.low %v80_v10, %v96_v11  ;;  %v3370_v24 = vcombine.low %v81_v13, %v97_v14  ;;  %v3341_v10 = vcombine.high %v50_v4, %v66_v5  ;;  %v82_v13 = vld [vmem:[#allocation2 + $0x130] sm:$0xff] }
  0x50   :  { %v3403_v26 = vcombine.high %v113_v21, %v129_v22  ;;  %v98_v14 = vld [vmem:[#allocation2 + $0x1b0] sm:$0xff] }
  0x52   :  { %1835 = vmatpush1.bf16.msra.mxu0 %v3396_v29  ;;  %1876 = vmatpush1.bf16.msra.mxu1 %v3398_v30  ;;  %v145_v29 = vld [vmem:[#allocation2 + $0x328] sm:$0xff] }
  0x53   :  { %1836 = vmatprep.subr.bf16.mxu0 %v3429_v31  ;;  %1877 = vmatprep.subr.bf16.mxu1 %v3431_v32  ;;  %v161_v30 = vld [vmem:[#allocation2 + $0x3a8] sm:$0xff]  ;;  %v3400_v31 = vcombine.low %v112_v19, %v128_v20  ;;  %v3402_v32 = vcombine.low %v113_v21, %v129_v22  ;;  %v3373_v19 = vcombine.high %v82_v13, %v98_v14  ;;  %v114_v21 = vld [vmem:[#allocation2 + $0x230] sm:$0xff] }
  0x54   :  { %v3435_v34 = vcombine.high %v145_v29, %v161_v30  ;;  %v130_v22 = vld [vmem:[#allocation2 + $0x2b0] sm:$0xff] }
  0x56   :  { %1837 = vmatpush1.bf16.msra.mxu0 %v3428_v37  ;;  %1878 = vmatpush1.bf16.msra.mxu1 %v3430_v38  ;;  %v177_v37 = vld [vmem:[#allocation2 + $0x428] sm:$0xff] }
  0x57   :  { %1838 = vmatprep.subr.bf16.mxu0 %v3461_v39  ;;  %1879 = vmatprep.subr.bf16.mxu1 %v3463_v40  ;;  %v193_v38 = vld [vmem:[#allocation2 + $0x4a8] sm:$0xff]  ;;  %v3432_v39 = vcombine.low %v144_v27, %v160_v28  ;;  %v3434_v40 = vcombine.low %v145_v29, %v161_v30  ;;  %v3405_v27 = vcombine.high %v114_v21, %v130_v22  ;;  %v146_v29 = vld [vmem:[#allocation2 + $0x330] sm:$0xff] }
  0x58   :  { %v3467_v42 = vcombine.high %v177_v37, %v193_v38  ;;  %v162_v30 = vld [vmem:[#allocation2 + $0x3b0] sm:$0xff] }
  0x5a   :  { %1839 = vmatpush1.bf16.msra.mxu0 %v3460_v45  ;;  %1880 = vmatpush1.bf16.msra.mxu1 %v3462_v46  ;;  %v209_v45 = vld [vmem:[#allocation2 + $0x528] sm:$0xff] }
  0x5b   :  { %1840 = vmatprep.subr.bf16.mxu0 %v3493_v47  ;;  %1881 = vmatprep.subr.bf16.mxu1 %v3495_v48  ;;  %v225_v46 = vld [vmem:[#allocation2 + $0x5a8] sm:$0xff]  ;;  %v3464_v47 = vcombine.low %v176_v35, %v192_v36  ;;  %v3466_v48 = vcombine.low %v177_v37, %v193_v38  ;;  %v3437_v35 = vcombine.high %v146_v29, %v162_v30  ;;  %v178_v37 = vld [vmem:[#allocation2 + $0x430] sm:$0xff] }
  0x5c   :  { %v3499_v50 = vcombine.high %v209_v45, %v225_v46  ;;  %v194_v38 = vld [vmem:[#allocation2 + $0x4b0] sm:$0xff] }
  0x5e   :  { %1841 = vmatpush1.bf16.msra.mxu0 %v3492_v53  ;;  %1882 = vmatpush1.bf16.msra.mxu1 %v3494_v54  ;;  %v241_v53 = vld [vmem:[#allocation2 + $0x628] sm:$0xff] }
  0x5f   :  { %1842 = vmatprep.subr.bf16.mxu0 %v3525_v55  ;;  %1883 = vmatprep.subr.bf16.mxu1 %v3527_v56  ;;  %v257_v54 = vld [vmem:[#allocation2 + $0x6a8] sm:$0xff]  ;;  %v3496_v55 = vcombine.low %v208_v43, %v224_v44  ;;  %v3498_v56 = vcombine.low %v209_v45, %v225_v46  ;;  %v3469_v43 = vcombine.high %v178_v37, %v194_v38  ;;  %v210_v45 = vld [vmem:[#allocation2 + $0x530] sm:$0xff] }
  0x60   :  { %v3531_v58 = vcombine.high %v241_v53, %v257_v54  ;;  %v226_v46 = vld [vmem:[#allocation2 + $0x5b0] sm:$0xff] }
  0x62   :  { %1843 = vmatpush1.bf16.msra.mxu0 %v3524_v61  ;;  %1884 = vmatpush1.bf16.msra.mxu1 %v3526_v62  ;;  %v273_v61 = vld [vmem:[#allocation2 + $0x728] sm:$0xff] }
  0x63   :  { %1844 = vmatprep.subr.bf16.mxu0 %v3557_v63  ;;  %1885 = vmatprep.subr.bf16.mxu1 %v3559_v1  ;;  %v289_v62 = vld [vmem:[#allocation2 + $0x7a8] sm:$0xff]  ;;  %v3528_v63 = vcombine.low %v240_v51, %v256_v52  ;;  %v3530_v1 = vcombine.low %v241_v53, %v257_v54  ;;  %v3501_v51 = vcombine.high %v210_v45, %v226_v46  ;;  %v242_v53 = vld [vmem:[#allocation2 + $0x630] sm:$0xff] }
  0x64   :  { %v3563_v3 = vcombine.high %v273_v61, %v289_v62  ;;  %v258_v54 = vld [vmem:[#allocation2 + $0x6b0] sm:$0xff] }
  0x66   :  { %1845 = vmatpush1.bf16.msra.mxu0 %v3556_v6  ;;  %1886 = vmatpush1.bf16.msra.mxu1 %v3558_v7  ;;  %v51_v6 = vld [vmem:[#allocation2 + $0x38] sm:$0xff] }
  0x67   :  { %1912 = vmatprep.subr.bf16.mxu0 %v3337_v8  ;;  %1953 = vmatprep.subr.bf16.mxu1 %v3339_v9  ;;  %v67_v7 = vld [vmem:[#allocation2 + $0xb8] sm:$0xff]  ;;  %v3560_v8 = vcombine.low %v272_v59, %v288_v60  ;;  %v3562_v9 = vcombine.low %v273_v61, %v289_v62  ;;  %v3533_v59 = vcombine.high %v242_v53, %v258_v54  ;;  %v274_v61 = vld [vmem:[#allocation2 + $0x730] sm:$0xff] }
  0x68   :  { %v3343_v11 = vcombine.high %v51_v6, %v67_v7  ;;  %v290_v62 = vld [vmem:[#allocation2 + $0x7b0] sm:$0xff] }
  0x69   :  { %1863 = vmatmul.mubr.bf16.vlgmr.msra.gmra.mrb[4].mxu0 %v3715_v12  ;;  %1904 = vmatmul.mubr.bf16.vlgmr.msra.gmra.mrb[4].mxu1 %v3715_v12 }
  0x6a   :  { %1913 = vmatpush1.bf16.msra.mxu0 %v3336_v15  ;;  %1954 = vmatpush1.bf16.msra.mxu1 %v3338_v16  ;;  %v83_v15 = vld [vmem:[#allocation2 + $0x138] sm:$0xff] }
  0x6b   :  { %1914 = vmatprep.subr.bf16.mxu0 %v3369_v17  ;;  %1955 = vmatprep.subr.bf16.mxu1 %v3371_v18  ;;  %v99_v16 = vld [vmem:[#allocation2 + $0x1b8] sm:$0xff]  ;;  %v3340_v17 = vcombine.low %v50_v4, %v66_v5  ;;  %v3342_v18 = vcombine.low %v51_v6, %v67_v7  ;;  %v3565_v4 = vcombine.high %v274_v61, %v290_v62  ;;  %v52_v6 = vld [vmem:[#allocation2 + $0x40] sm:$0xff] }
  0x6c   :  { %1944 = vmatprep.mubr.bf16.mxu0 %v3659_v0  ;;  %1985 = vmatprep.mubr.bf16.mxu1 %v3659_v0  ;;  %v3375_v20 = vcombine.high %v83_v15, %v99_v16  ;;  %v68_v7 = vld [vmem:[#allocation2 + $0xc0] sm:$0xff] }
  0x6e   :  { %1915 = vmatpush1.bf16.msra.mxu0 %v3368_v23  ;;  %1956 = vmatpush1.bf16.msra.mxu1 %v3370_v24  ;;  %v115_v23 = vld [vmem:[#allocation2 + $0x238] sm:$0xff] }
  0x6f   :  { %1916 = vmatprep.subr.bf16.mxu0 %v3401_v25  ;;  %1957 = vmatprep.subr.bf16.mxu1 %v3403_v26  ;;  %v131_v24 = vld [vmem:[#allocation2 + $0x2b8] sm:$0xff]  ;;  %v3372_v25 = vcombine.low %v82_v13, %v98_v14  ;;  %v3374_v26 = vcombine.low %v83_v15, %v99_v16  ;;  %v3345_v13 = vcombine.high %v52_v6, %v68_v7  ;;  %v84_v15 = vld [vmem:[#allocation2 + $0x140] sm:$0xff] }
  0x70   :  { %v3407_v28 = vcombine.high %v115_v23, %v131_v24  ;;  %v100_v16 = vld [vmem:[#allocation2 + $0x1c0] sm:$0xff] }
  0x72   :  { %1917 = vmatpush1.bf16.msra.mxu0 %v3400_v31  ;;  %1958 = vmatpush1.bf16.msra.mxu1 %v3402_v32  ;;  %v147_v31 = vld [vmem:[#allocation2 + $0x338] sm:$0xff] }
  0x73   :  { %1918 = vmatprep.subr.bf16.mxu0 %v3433_v33  ;;  %1959 = vmatprep.subr.bf16.mxu1 %v3435_v34  ;;  %v163_v32 = vld [vmem:[#allocation2 + $0x3b8] sm:$0xff]  ;;  %v3404_v33 = vcombine.low %v114_v21, %v130_v22  ;;  %v3406_v34 = vcombine.low %v115_v23, %v131_v24  ;;  %v3377_v21 = vcombine.high %v84_v15, %v100_v16  ;;  %v116_v23 = vld [vmem:[#allocation2 + $0x240] sm:$0xff] }
  0x74   :  { %v3439_v36 = vcombine.high %v147_v31, %v163_v32  ;;  %v132_v24 = vld [vmem:[#allocation2 + $0x2c0] sm:$0xff] }
  0x76   :  { %1919 = vmatpush1.bf16.msra.mxu0 %v3432_v39  ;;  %1960 = vmatpush1.bf16.msra.mxu1 %v3434_v40  ;;  %v179_v39 = vld [vmem:[#allocation2 + $0x438] sm:$0xff] }
  0x77   :  { %1920 = vmatprep.subr.bf16.mxu0 %v3465_v41  ;;  %1961 = vmatprep.subr.bf16.mxu1 %v3467_v42  ;;  %v195_v40 = vld [vmem:[#allocation2 + $0x4b8] sm:$0xff]  ;;  %v3436_v41 = vcombine.low %v146_v29, %v162_v30  ;;  %v3438_v42 = vcombine.low %v147_v31, %v163_v32  ;;  %v3409_v29 = vcombine.high %v116_v23, %v132_v24  ;;  %v148_v31 = vld [vmem:[#allocation2 + $0x340] sm:$0xff] }
  0x78   :  { %v3471_v44 = vcombine.high %v179_v39, %v195_v40  ;;  %v164_v32 = vld [vmem:[#allocation2 + $0x3c0] sm:$0xff] }
  0x7a   :  { %1921 = vmatpush1.bf16.msra.mxu0 %v3464_v47  ;;  %1962 = vmatpush1.bf16.msra.mxu1 %v3466_v48  ;;  %v211_v47 = vld [vmem:[#allocation2 + $0x538] sm:$0xff] }
  0x7b   :  { %1922 = vmatprep.subr.bf16.mxu0 %v3497_v49  ;;  %1963 = vmatprep.subr.bf16.mxu1 %v3499_v50  ;;  %v227_v48 = vld [vmem:[#allocation2 + $0x5b8] sm:$0xff]  ;;  %v3468_v49 = vcombine.low %v178_v37, %v194_v38  ;;  %v3470_v50 = vcombine.low %v179_v39, %v195_v40  ;;  %v3441_v37 = vcombine.high %v148_v31, %v164_v32  ;;  %v180_v39 = vld [vmem:[#allocation2 + $0x440] sm:$0xff] }
  0x7c   :  { %v3503_v52 = vcombine.high %v211_v47, %v227_v48  ;;  %v196_v40 = vld [vmem:[#allocation2 + $0x4c0] sm:$0xff] }
  0x7e   :  { %1923 = vmatpush1.bf16.msra.mxu0 %v3496_v55  ;;  %1964 = vmatpush1.bf16.msra.mxu1 %v3498_v56  ;;  %v243_v55 = vld [vmem:[#allocation2 + $0x638] sm:$0xff] }
  0x7f   :  { %1924 = vmatprep.subr.bf16.mxu0 %v3529_v57  ;;  %1965 = vmatprep.subr.bf16.mxu1 %v3531_v58  ;;  %v259_v56 = vld [vmem:[#allocation2 + $0x6b8] sm:$0xff]  ;;  %v3500_v57 = vcombine.low %v210_v45, %v226_v46  ;;  %v3502_v58 = vcombine.low %v211_v47, %v227_v48  ;;  %v3473_v45 = vcombine.high %v180_v39, %v196_v40  ;;  %v212_v47 = vld [vmem:[#allocation2 + $0x540] sm:$0xff] }
  0x80   :  { %v3535_v60 = vcombine.high %v243_v55, %v259_v56  ;;  %v228_v48 = vld [vmem:[#allocation2 + $0x5c0] sm:$0xff] }
  0x82   :  { %1925 = vmatpush1.bf16.msra.mxu0 %v3528_v63  ;;  %1966 = vmatpush1.bf16.msra.mxu1 %v3530_v1  ;;  %v275_v63 = vld [vmem:[#allocation2 + $0x738] sm:$0xff] }
  0x83   :  { %1926 = vmatprep.subr.bf16.mxu0 %v3561_v2  ;;  %1967 = vmatprep.subr.bf16.mxu1 %v3563_v3  ;;  %v291_v1 = vld [vmem:[#allocation2 + $0x7b8] sm:$0xff]  ;;  %v3532_v2 = vcombine.low %v242_v53, %v258_v54  ;;  %v3534_v3 = vcombine.low %v243_v55, %v259_v56  ;;  %v3505_v53 = vcombine.high %v212_v47, %v228_v48  ;;  %v244_v55 = vld [vmem:[#allocation2 + $0x640] sm:$0xff] }
  0x84   :  { %v3567_v5 = vcombine.high %v275_v63, %v291_v1  ;;  %v260_v56 = vld [vmem:[#allocation2 + $0x6c0] sm:$0xff] }
  0x86   :  { %1927 = vmatpush1.bf16.msra.mxu0 %v3560_v8  ;;  %1968 = vmatpush1.bf16.msra.mxu1 %v3562_v9  ;;  %v53_v8 = vld [vmem:[#allocation2 + $0x48] sm:$0xff] }
  0x87   :  { %1994 = vmatprep.subr.bf16.mxu0 %v3341_v10  ;;  %2035 = vmatprep.subr.bf16.mxu1 %v3343_v11  ;;  %v69_v9 = vld [vmem:[#allocation2 + $0xc8] sm:$0xff]  ;;  %v3564_v10 = vcombine.low %v274_v61, %v290_v62  ;;  %v3566_v11 = vcombine.low %v275_v63, %v291_v1  ;;  %v3537_v61 = vcombine.high %v244_v55, %v260_v56  ;;  %v276_v63 = vld [vmem:[#allocation2 + $0x740] sm:$0xff] }
  0x88   :  { %v3347_v14 = vcombine.high %v53_v8, %v69_v9  ;;  %v292_v1 = vld [vmem:[#allocation2 + $0x7c0] sm:$0xff] }
  0x89   :  { %1945 = vmatmul.mubr.bf16.vlgmr.msra.gmra.mrb[8].mxu0 %v3715_v12  ;;  %1986 = vmatmul.mubr.bf16.vlgmr.msra.gmra.mrb[8].mxu1 %v3715_v12 }
  0x8a   :  { %1995 = vmatpush1.bf16.msra.mxu0 %v3340_v17  ;;  %2036 = vmatpush1.bf16.msra.mxu1 %v3342_v18  ;;  %v85_v17 = vld [vmem:[#allocation2 + $0x148] sm:$0xff] }
  0x8b   :  { %1996 = vmatprep.subr.bf16.mxu0 %v3373_v19  ;;  %2037 = vmatprep.subr.bf16.mxu1 %v3375_v20  ;;  %v101_v18 = vld [vmem:[#allocation2 + $0x1c8] sm:$0xff]  ;;  %v3344_v19 = vcombine.low %v52_v6, %v68_v7  ;;  %v3346_v20 = vcombine.low %v53_v8, %v69_v9  ;;  %v3569_v6 = vcombine.high %v276_v63, %v292_v1  ;;  %v54_v8 = vld [vmem:[#allocation2 + $0x50] sm:$0xff] }
  0x8c   :  { %2026 = vmatprep.mubr.bf16.mxu0 %v3659_v0  ;;  %2067 = vmatprep.mubr.bf16.mxu1 %v3659_v0  ;;  %v3379_v22 = vcombine.high %v85_v17, %v101_v18  ;;  %v70_v9 = vld [vmem:[#allocation2 + $0xd0] sm:$0xff] }
  0x8e   :  { %1997 = vmatpush1.bf16.msra.mxu0 %v3372_v25  ;;  %2038 = vmatpush1.bf16.msra.mxu1 %v3374_v26  ;;  %v117_v25 = vld [vmem:[#allocation2 + $0x248] sm:$0xff] }
  0x8f   :  { %1998 = vmatprep.subr.bf16.mxu0 %v3405_v27  ;;  %2039 = vmatprep.subr.bf16.mxu1 %v3407_v28  ;;  %v133_v26 = vld [vmem:[#allocation2 + $0x2c8] sm:$0xff]  ;;  %v3376_v27 = vcombine.low %v84_v15, %v100_v16  ;;  %v3378_v28 = vcombine.low %v85_v17, %v101_v18  ;;  %v3349_v15 = vcombine.high %v54_v8, %v70_v9  ;;  %v86_v17 = vld [vmem:[#allocation2 + $0x150] sm:$0xff] }
  0x90   :  { %v3411_v30 = vcombine.high %v117_v25, %v133_v26  ;;  %v102_v18 = vld [vmem:[#allocation2 + $0x1d0] sm:$0xff] }
  0x92   :  { %1999 = vmatpush1.bf16.msra.mxu0 %v3404_v33  ;;  %2040 = vmatpush1.bf16.msra.mxu1 %v3406_v34  ;;  %v149_v33 = vld [vmem:[#allocation2 + $0x348] sm:$0xff] }
  0x93   :  { %2000 = vmatprep.subr.bf16.mxu0 %v3437_v35  ;;  %2041 = vmatprep.subr.bf16.mxu1 %v3439_v36  ;;  %v165_v34 = vld [vmem:[#allocation2 + $0x3c8] sm:$0xff]  ;;  %v3408_v35 = vcombine.low %v116_v23, %v132_v24  ;;  %v3410_v36 = vcombine.low %v117_v25, %v133_v26  ;;  %v3381_v23 = vcombine.high %v86_v17, %v102_v18  ;;  %v118_v25 = vld [vmem:[#allocation2 + $0x250] sm:$0xff] }
  0x94   :  { %v3443_v38 = vcombine.high %v149_v33, %v165_v34  ;;  %v134_v26 = vld [vmem:[#allocation2 + $0x2d0] sm:$0xff] }
  0x96   :  { %2001 = vmatpush1.bf16.msra.mxu0 %v3436_v41  ;;  %2042 = vmatpush1.bf16.msra.mxu1 %v3438_v42  ;;  %v181_v41 = vld [vmem:[#allocation2 + $0x448] sm:$0xff] }
  0x97   :  { %2002 = vmatprep.subr.bf16.mxu0 %v3469_v43  ;;  %2043 = vmatprep.subr.bf16.mxu1 %v3471_v44  ;;  %v197_v42 = vld [vmem:[#allocation2 + $0x4c8] sm:$0xff]  ;;  %v3440_v43 = vcombine.low %v148_v31, %v164_v32  ;;  %v3442_v44 = vcombine.low %v149_v33, %v165_v34  ;;  %v3413_v31 = vcombine.high %v118_v25, %v134_v26  ;;  %v150_v33 = vld [vmem:[#allocation2 + $0x350] sm:$0xff] }
  0x98   :  { %v3475_v46 = vcombine.high %v181_v41, %v197_v42  ;;  %v166_v34 = vld [vmem:[#allocation2 + $0x3d0] sm:$0xff] }
  0x9a   :  { %2003 = vmatpush1.bf16.msra.mxu0 %v3468_v49  ;;  %2044 = vmatpush1.bf16.msra.mxu1 %v3470_v50  ;;  %v213_v49 = vld [vmem:[#allocation2 + $0x548] sm:$0xff] }
  0x9b   :  { %2004 = vmatprep.subr.bf16.mxu0 %v3501_v51  ;;  %2045 = vmatprep.subr.bf16.mxu1 %v3503_v52  ;;  %v229_v50 = vld [vmem:[#allocation2 + $0x5c8] sm:$0xff]  ;;  %v3472_v51 = vcombine.low %v180_v39, %v196_v40  ;;  %v3474_v52 = vcombine.low %v181_v41, %v197_v42  ;;  %v3445_v39 = vcombine.high %v150_v33, %v166_v34  ;;  %v182_v41 = vld [vmem:[#allocation2 + $0x450] sm:$0xff] }
  0x9c   :  { %v3507_v54 = vcombine.high %v213_v49, %v229_v50  ;;  %v198_v42 = vld [vmem:[#allocation2 + $0x4d0] sm:$0xff] }
  0x9e   :  { %2005 = vmatpush1.bf16.msra.mxu0 %v3500_v57  ;;  %2046 = vmatpush1.bf16.msra.mxu1 %v3502_v58  ;;  %v245_v57 = vld [vmem:[#allocation2 + $0x648] sm:$0xff] }
  0x9f   :  { %2006 = vmatprep.subr.bf16.mxu0 %v3533_v59  ;;  %2047 = vmatprep.subr.bf16.mxu1 %v3535_v60  ;;  %v261_v58 = vld [vmem:[#allocation2 + $0x6c8] sm:$0xff]  ;;  %v3504_v59 = vcombine.low %v212_v47, %v228_v48  ;;  %v3506_v60 = vcombine.low %v213_v49, %v229_v50  ;;  %v3477_v47 = vcombine.high %v182_v41, %v198_v42  ;;  %v214_v49 = vld [vmem:[#allocation2 + $0x550] sm:$0xff] }
  0xa0   :  { %v3539_v62 = vcombine.high %v245_v57, %v261_v58  ;;  %v230_v50 = vld [vmem:[#allocation2 + $0x5d0] sm:$0xff] }
  0xa2   :  { %2007 = vmatpush1.bf16.msra.mxu0 %v3532_v2  ;;  %2048 = vmatpush1.bf16.msra.mxu1 %v3534_v3  ;;  %v277_v2 = vld [vmem:[#allocation2 + $0x748] sm:$0xff] }
  0xa3   :  { %2008 = vmatprep.subr.bf16.mxu0 %v3565_v4  ;;  %2049 = vmatprep.subr.bf16.mxu1 %v3567_v5  ;;  %v293_v3 = vld [vmem:[#allocation2 + $0x7c8] sm:$0xff]  ;;  %v3536_v4 = vcombine.low %v244_v55, %v260_v56  ;;  %v3538_v5 = vcombine.low %v245_v57, %v261_v58  ;;  %v3509_v55 = vcombine.high %v214_v49, %v230_v50  ;;  %v246_v57 = vld [vmem:[#allocation2 + $0x650] sm:$0xff] }
  0xa4   :  { %v3571_v7 = vcombine.high %v277_v2, %v293_v3  ;;  %v262_v58 = vld [vmem:[#allocation2 + $0x6d0] sm:$0xff] }
  0xa6   :  { %2009 = vmatpush1.bf16.msra.mxu0 %v3564_v10  ;;  %2050 = vmatpush1.bf16.msra.mxu1 %v3566_v11  ;;  %v55_v10 = vld [vmem:[#allocation2 + $0x58] sm:$0xff] }
  0xa7   :  { %2076 = vmatprep.subr.bf16.mxu0 %v3345_v13  ;;  %2117 = vmatprep.subr.bf16.mxu1 %v3347_v14  ;;  %v71_v11 = vld [vmem:[#allocation2 + $0xd8] sm:$0xff]  ;;  %v3568_v13 = vcombine.low %v276_v63, %v292_v1  ;;  %v3570_v14 = vcombine.low %v277_v2, %v293_v3  ;;  %v3541_v63 = vcombine.high %v246_v57, %v262_v58  ;;  %v278_v2 = vld [vmem:[#allocation2 + $0x750] sm:$0xff] }
  0xa8   :  { %v3351_v16 = vcombine.high %v55_v10, %v71_v11  ;;  %v294_v3 = vld [vmem:[#allocation2 + $0x7d0] sm:$0xff] }
  0xa9   :  { %2027 = vmatmul.mubr.bf16.vlgmr.msra.gmra.mrb[12].mxu0 %v3715_v12  ;;  %2068 = vmatmul.mubr.bf16.vlgmr.msra.gmra.mrb[12].mxu1 %v3715_v12 }
  0xaa   :  { %2077 = vmatpush1.bf16.msra.mxu0 %v3344_v19  ;;  %2118 = vmatpush1.bf16.msra.mxu1 %v3346_v20  ;;  %v87_v19 = vld [vmem:[#allocation2 + $0x158] sm:$0xff] }
  0xab   :  { %2078 = vmatprep.subr.bf16.mxu0 %v3377_v21  ;;  %2119 = vmatprep.subr.bf16.mxu1 %v3379_v22  ;;  %v103_v20 = vld [vmem:[#allocation2 + $0x1d8] sm:$0xff]  ;;  %v3348_v21 = vcombine.low %v54_v8, %v70_v9  ;;  %v3350_v22 = vcombine.low %v55_v10, %v71_v11  ;;  %v3573_v8 = vcombine.high %v278_v2, %v294_v3  ;;  %v56_v10 = vld [vmem:[#allocation2 + $0x60] sm:$0xff] }
  0xac   :  { %2108 = vmatprep.mubr.bf16.mxu0 %v3659_v0  ;;  %2149 = vmatprep.mubr.bf16.mxu1 %v3659_v0  ;;  %v3383_v24 = vcombine.high %v87_v19, %v103_v20  ;;  %v72_v11 = vld [vmem:[#allocation2 + $0xe0] sm:$0xff] }
  0xae   :  { %2079 = vmatpush1.bf16.msra.mxu0 %v3376_v27  ;;  %2120 = vmatpush1.bf16.msra.mxu1 %v3378_v28  ;;  %v119_v27 = vld [vmem:[#allocation2 + $0x258] sm:$0xff] }
  0xaf   :  { %2080 = vmatprep.subr.bf16.mxu0 %v3409_v29  ;;  %2121 = vmatprep.subr.bf16.mxu1 %v3411_v30  ;;  %v135_v28 = vld [vmem:[#allocation2 + $0x2d8] sm:$0xff]  ;;  %v3380_v29 = vcombine.low %v86_v17, %v102_v18  ;;  %v3382_v30 = vcombine.low %v87_v19, %v103_v20  ;;  %v3353_v17 = vcombine.high %v56_v10, %v72_v11  ;;  %v88_v19 = vld [vmem:[#allocation2 + $0x160] sm:$0xff] }
  0xb0   :  { %v3415_v32 = vcombine.high %v119_v27, %v135_v28  ;;  %v104_v20 = vld [vmem:[#allocation2 + $0x1e0] sm:$0xff] }
  0xb2   :  { %2081 = vmatpush1.bf16.msra.mxu0 %v3408_v35  ;;  %2122 = vmatpush1.bf16.msra.mxu1 %v3410_v36  ;;  %v151_v35 = vld [vmem:[#allocation2 + $0x358] sm:$0xff] }
  0xb3   :  { %2082 = vmatprep.subr.bf16.mxu0 %v3441_v37  ;;  %2123 = vmatprep.subr.bf16.mxu1 %v3443_v38  ;;  %v167_v36 = vld [vmem:[#allocation2 + $0x3d8] sm:$0xff]  ;;  %v3412_v37 = vcombine.low %v118_v25, %v134_v26  ;;  %v3414_v38 = vcombine.low %v119_v27, %v135_v28  ;;  %v3385_v25 = vcombine.high %v88_v19, %v104_v20  ;;  %v120_v27 = vld [vmem:[#allocation2 + $0x260] sm:$0xff] }
  0xb4   :  { %v3447_v40 = vcombine.high %v151_v35, %v167_v36  ;;  %v136_v28 = vld [vmem:[#allocation2 + $0x2e0] sm:$0xff] }
  0xb6   :  { %2083 = vmatpush1.bf16.msra.mxu0 %v3440_v43  ;;  %2124 = vmatpush1.bf16.msra.mxu1 %v3442_v44  ;;  %v183_v43 = vld [vmem:[#allocation2 + $0x458] sm:$0xff] }
  0xb7   :  { %2084 = vmatprep.subr.bf16.mxu0 %v3473_v45  ;;  %2125 = vmatprep.subr.bf16.mxu1 %v3475_v46  ;;  %v199_v44 = vld [vmem:[#allocation2 + $0x4d8] sm:$0xff]  ;;  %v3444_v45 = vcombine.low %v150_v33, %v166_v34  ;;  %v3446_v46 = vcombine.low %v151_v35, %v167_v36  ;;  %v3417_v34 = vcombine.high %v120_v27, %v136_v28  ;;  %v152_v36 = vld [vmem:[#allocation2 + $0x360] sm:$0xff] }
  0xb8   :  { %v3479_v48 = vcombine.high %v183_v43, %v199_v44 }
  0xba   :  { %2085 = vmatpush1.bf16.msra.mxu0 %v3472_v51  ;;  %2126 = vmatpush1.bf16.msra.mxu1 %v3474_v52  ;;  %v215_v51 = vld [vmem:[#allocation2 + $0x558] sm:$0xff] }
  0xbb   :  { %2086 = vmatprep.subr.bf16.mxu0 %v3505_v53  ;;  %2127 = vmatprep.subr.bf16.mxu1 %v3507_v54  ;;  %v231_v52 = vld [vmem:[#allocation2 + $0x5d8] sm:$0xff]  ;;  %v3476_v53 = vcombine.low %v182_v41, %v198_v42  ;;  %v3478_v54 = vcombine.low %v183_v43, %v199_v44  ;;  %v184_v43 = vld [vmem:[#allocation2 + $0x460] sm:$0xff] }
  0xbc   :  { %v3511_v56 = vcombine.high %v215_v51, %v231_v52  ;;  %v200_v44 = vld [vmem:[#allocation2 + $0x4e0] sm:$0xff] }
  0xbe   :  { %2087 = vmatpush1.bf16.msra.mxu0 %v3504_v59  ;;  %2128 = vmatpush1.bf16.msra.mxu1 %v3506_v60  ;;  %v247_v59 = vld [vmem:[#allocation2 + $0x658] sm:$0xff] }
  0xbf   :  { %2088 = vmatprep.subr.bf16.mxu0 %v3537_v61  ;;  %2129 = vmatprep.subr.bf16.mxu1 %v3539_v62  ;;  %v263_v60 = vld [vmem:[#allocation2 + $0x6d8] sm:$0xff]  ;;  %v3508_v61 = vcombine.low %v214_v49, %v230_v50  ;;  %v3510_v62 = vcombine.low %v215_v51, %v231_v52  ;;  %v3481_v49 = vcombine.high %v184_v43, %v200_v44  ;;  %v216_v51 = vld [vmem:[#allocation2 + $0x560] sm:$0xff] }
  0xc0   :  { %v3543_v1 = vcombine.high %v247_v59, %v263_v60  ;;  %v232_v52 = vld [vmem:[#allocation2 + $0x5e0] sm:$0xff] }
  0xc2   :  { %2089 = vmatpush1.bf16.msra.mxu0 %v3536_v4  ;;  %2130 = vmatpush1.bf16.msra.mxu1 %v3538_v5  ;;  %v279_v4 = vld [vmem:[#allocation2 + $0x758] sm:$0xff] }
  0xc3   :  { %2090 = vmatprep.subr.bf16.mxu0 %v3569_v6  ;;  %2131 = vmatprep.subr.bf16.mxu1 %v3571_v7  ;;  %v295_v5 = vld [vmem:[#allocation2 + $0x7d8] sm:$0xff]  ;;  %v3540_v6 = vcombine.low %v246_v57, %v262_v58  ;;  %v3542_v7 = vcombine.low %v247_v59, %v263_v60  ;;  %v3513_v57 = vcombine.high %v216_v51, %v232_v52  ;;  %v248_v59 = vld [vmem:[#allocation2 + $0x660] sm:$0xff] }
  0xc4   :  { %v3575_v9 = vcombine.high %v279_v4, %v295_v5  ;;  %v264_v60 = vld [vmem:[#allocation2 + $0x6e0] sm:$0xff] }
  0xc6   :  { %2091 = vmatpush1.bf16.msra.mxu0 %v3568_v13  ;;  %2132 = vmatpush1.bf16.msra.mxu1 %v3570_v14  ;;  %v57_v13 = vld [vmem:[#allocation2 + $0x68] sm:$0xff] }
  0xc7   :  { %2158 = vmatprep.subr.bf16.mxu0 %v3349_v15  ;;  %2199 = vmatprep.subr.bf16.mxu1 %v3351_v16  ;;  %v73_v14 = vld [vmem:[#allocation2 + $0xe8] sm:$0xff]  ;;  %v3572_v15 = vcombine.low %v278_v2, %v294_v3  ;;  %v3574_v16 = vcombine.low %v279_v4, %v295_v5  ;;  %v3545_v2 = vcombine.high %v248_v59, %v264_v60  ;;  %v280_v4 = vld [vmem:[#allocation2 + $0x760] sm:$0xff] }
  0xc8   :  { %v3355_v18 = vcombine.high %v57_v13, %v73_v14  ;;  %v296_v5 = vld [vmem:[#allocation2 + $0x7e0] sm:$0xff] }
  0xc9   :  { %2109 = vmatmul.mubr.bf16.vlgmr.msra.gmra.mrb[16].mxu0 %v3715_v12  ;;  %2150 = vmatmul.mubr.bf16.vlgmr.msra.gmra.mrb[16].mxu1 %v3715_v12 }
  0xca   :  { %2159 = vmatpush1.bf16.msra.mxu0 %v3348_v21  ;;  %2200 = vmatpush1.bf16.msra.mxu1 %v3350_v22  ;;  %v89_v21 = vld [vmem:[#allocation2 + $0x168] sm:$0xff] }
  0xcb   :  { %2160 = vmatprep.subr.bf16.mxu0 %v3381_v23  ;;  %2201 = vmatprep.subr.bf16.mxu1 %v3383_v24  ;;  %v105_v22 = vld [vmem:[#allocation2 + $0x1e8] sm:$0xff]  ;;  %v3352_v23 = vcombine.low %v56_v10, %v72_v11  ;;  %v3354_v24 = vcombine.low %v57_v13, %v73_v14  ;;  %v3577_v10 = vcombine.high %v280_v4, %v296_v5  ;;  %v58_v13 = vld [vmem:[#allocation2 + $0x70] sm:$0xff] }
  0xcc   :  { %2190 = vmatprep.mubr.bf16.mxu0 %v3659_v0  ;;  %2231 = vmatprep.mubr.bf16.mxu1 %v3659_v0  ;;  %v3387_v26 = vcombine.high %v89_v21, %v105_v22  ;;  %v3386_v33 = vcombine.low %v89_v21, %v105_v22  ;;  %v74_v14 = vld [vmem:[#allocation2 + $0xf0] sm:$0xff] }
  0xcd   :  { %v90_v21 = vld [vmem:[#allocation2 + $0x170] sm:$0xff] }
  0xce   :  { %2161 = vmatpush1.bf16.msra.mxu0 %v3380_v29  ;;  %2202 = vmatpush1.bf16.msra.mxu1 %v3382_v30  ;;  %v121_v29 = vld [vmem:[#allocation2 + $0x268] sm:$0xff]  ;;  %v106_v22 = vld [vmem:[#allocation2 + $0x1f0] sm:$0xff] }
  0xcf   :  { %2162 = vmatprep.subr.bf16.mxu0 %v3413_v31  ;;  %2203 = vmatprep.subr.bf16.mxu1 %v3415_v32  ;;  %v137_v30 = vld [vmem:[#allocation2 + $0x2e8] sm:$0xff]  ;;  %v3741_v31 = vld [vmem:[%s4114_s0] sm:$0x3]  ;;  %v3384_v32 = vcombine.low %v88_v19, %v104_v20  ;;  %v3357_v19 = vcombine.high %v58_v13, %v74_v14 }
  0xd0   :  { %v3419_v35 = vcombine.high %v121_v29, %v137_v30 }
  0xd2   :  { %2163 = vmatpush1.bf16.msra.mxu0 %v3412_v37  ;;  %2204 = vmatpush1.bf16.msra.mxu1 %v3414_v38  ;;  %v168_v37 = vld [vmem:[#allocation2 + $0x3e0] sm:$0xff]  ;;  %v169_v38 = vld [vmem:[#allocation2 + $0x3e8] sm:$0xff] }
  0xd3   :  { %2164 = vmatprep.subr.bf16.mxu0 %v3445_v39  ;;  %2205 = vmatprep.subr.bf16.mxu1 %v3447_v40  ;;  %v3416_v39 = vcombine.low %v120_v27, %v136_v28  ;;  %v3418_v40 = vcombine.low %v121_v29, %v137_v30  ;;  %v3449_v41 = vcombine.high %v152_v36, %v168_v37  ;;  %v122_v29 = vld [vmem:[#allocation2 + $0x270] sm:$0xff] }
  0xd4   :  { %v3389_v27 = vcombine.high %v90_v21, %v106_v22  ;;  %v138_v30 = vld [vmem:[#allocation2 + $0x2f0] sm:$0xff] }
  0xd6   :  { %2165 = vmatpush1.bf16.msra.mxu0 %v3444_v45  ;;  %2206 = vmatpush1.bf16.msra.mxu1 %v3446_v46  ;;  %v185_v45 = vld [vmem:[#allocation2 + $0x468] sm:$0xff] }
  0xd7   :  { %2166 = vmatprep.subr.bf16.mxu0 %v3477_v47  ;;  %2207 = vmatprep.subr.bf16.mxu1 %v3479_v48  ;;  %v201_v46 = vld [vmem:[#allocation2 + $0x4e8] sm:$0xff]  ;;  %v3448_v47 = vcombine.low %v152_v36, %v168_v37  ;;  %v3421_v36 = vcombine.high %v122_v29, %v138_v30 }
  0xd8   :  { %v3483_v50 = vcombine.high %v185_v45, %v201_v46 }
  0xda   :  { %2167 = vmatpush1.bf16.msra.mxu0 %v3476_v53  ;;  %2208 = vmatpush1.bf16.msra.mxu1 %v3478_v54  ;;  %v217_v53 = vld [vmem:[#allocation2 + $0x568] sm:$0xff] }
  0xdb   :  { %2168 = vmatprep.subr.bf16.mxu0 %v3509_v55  ;;  %2209 = vmatprep.subr.bf16.mxu1 %v3511_v56  ;;  %v233_v54 = vld [vmem:[#allocation2 + $0x5e8] sm:$0xff]  ;;  %v3480_v55 = vcombine.low %v184_v43, %v200_v44  ;;  %v3482_v56 = vcombine.low %v185_v45, %v201_v46  ;;  %v186_v46 = vld [vmem:[#allocation2 + $0x470] sm:$0xff] }
  0xdc   :  { %v3515_v58 = vcombine.high %v217_v53, %v233_v54 }
  0xde   :  { %2169 = vmatpush1.bf16.msra.mxu0 %v3508_v61  ;;  %2210 = vmatpush1.bf16.msra.mxu1 %v3510_v62  ;;  %v249_v61 = vld [vmem:[#allocation2 + $0x668] sm:$0xff] }
  0xdf   :  { %2170 = vmatprep.subr.bf16.mxu0 %v3541_v63  ;;  %2211 = vmatprep.subr.bf16.mxu1 %v3543_v1  ;;  %v265_v62 = vld [vmem:[#allocation2 + $0x6e8] sm:$0xff]  ;;  %v3512_v63 = vcombine.low %v216_v51, %v232_v52  ;;  %v3514_v1 = vcombine.low %v217_v53, %v233_v54  ;;  %v218_v54 = vld [vmem:[#allocation2 + $0x570] sm:$0xff] }
  0xe0   :  { %v3547_v3 = vcombine.high %v249_v61, %v265_v62 }
  0xe2   :  { %2171 = vmatpush1.bf16.msra.mxu0 %v3540_v6  ;;  %2212 = vmatpush1.bf16.msra.mxu1 %v3542_v7  ;;  %v281_v6 = vld [vmem:[#allocation2 + $0x768] sm:$0xff] }
  0xe3   :  { %2172 = vmatprep.subr.bf16.mxu0 %v3573_v8  ;;  %2213 = vmatprep.subr.bf16.mxu1 %v3575_v9  ;;  %v297_v7 = vld [vmem:[#allocation2 + $0x7e8] sm:$0xff]  ;;  %v3544_v8 = vcombine.low %v248_v59, %v264_v60  ;;  %v3546_v9 = vcombine.low %v249_v61, %v265_v62  ;;  %v3755_v60 = vld [vmem:[#allocation4] sm:$0xff] }
  0xe4   :  { %v3579_v11 = vcombine.high %v281_v6, %v297_v7 }
  0xe6   :  { %2173 = vmatpush1.bf16.msra.mxu0 %v3572_v15  ;;  %2214 = vmatpush1.bf16.msra.mxu1 %v3574_v16  ;;  %v59_v15 = vld [vmem:[#allocation2 + $0x78] sm:$0xff] }
  0xe7   :  { %2240 = vmatprep.subr.bf16.mxu0 %v3353_v17  ;;  %2281 = vmatprep.subr.bf16.mxu1 %v3355_v18  ;;  %v75_v16 = vld [vmem:[#allocation2 + $0xf8] sm:$0xff]  ;;  %v3576_v17 = vcombine.low %v280_v4, %v296_v5  ;;  %v3578_v18 = vcombine.low %v281_v6, %v297_v7  ;;  %v250_v6 = vld [vmem:[#allocation2 + $0x670] sm:$0xff] }
  0xe8   :  { %v3359_v20 = vcombine.high %v59_v15, %v75_v16  ;;  %v266_v7 = vld [vmem:[#allocation2 + $0x6f0] sm:$0xff] }
  0xe9   :  { %2191 = vmatmul.mubr.bf16.vlgmr.msra.gmra.mrb[20].mxu0 %v3715_v12  ;;  %2232 = vmatmul.mubr.bf16.vlgmr.msra.gmra.mrb[20].mxu1 %v3741_v31  ;;  %v153_v12 = vld [vmem:[#allocation2 + $0x368] sm:$0xff] }
  0xea   :  { %2241 = vmatpush1.bf16.msra.mxu0 %v3352_v23  ;;  %2282 = vmatpush1.bf16.msra.mxu1 %v3354_v24  ;;  %v3451_v42 = vcombine.high %v153_v12, %v169_v38  ;;  %v3450_v48 = vcombine.low %v153_v12, %v169_v38  ;;  %v91_v23 = vld [vmem:[#allocation2 + $0x178] sm:$0xff]  ;;  %v154_v12 = vld [vmem:[#allocation2 + $0x370] sm:$0xff] }
  0xeb   :  { %2242 = vmatprep.subr.bf16.mxu0 %v3385_v25  ;;  %2283 = vmatprep.subr.bf16.mxu1 %v3387_v26  ;;  %v107_v24 = vld [vmem:[#allocation2 + $0x1f8] sm:$0xff]  ;;  %v3356_v25 = vcombine.low %v58_v13, %v74_v14  ;;  %v3358_v26 = vcombine.low %v59_v15, %v75_v16  ;;  %v170_v38 = vld [vmem:[#allocation2 + $0x3f0] sm:$0xff] }
  0xec   :  { %2272 = vmatprep.mubr.bf16.mxu0 %v3659_v0  ;;  %2313 = vmatprep.mubr.bf16.mxu1 %v3659_v0  ;;  %v3391_v28 = vcombine.high %v91_v23, %v107_v24  ;;  %v3453_v44 = vcombine.high %v154_v12, %v170_v38  ;;  %v3452_v51 = vcombine.low %v154_v12, %v170_v38  ;;  %v3774_v15 = vld [vmem:[#allocation2 + $0x770] sm:$0xff] }
  0xed   :  { %v3776_v16 = vld [vmem:[#allocation2 + $0x7f0] sm:$0xff] }
  0xee   :  { %2243 = vmatpush1.bf16.msra.mxu0 %v3384_v32  ;;  %2284 = vmatpush1.bf16.msra.mxu1 %v3386_v33  ;;  %v123_v32 = vld [vmem:[#allocation2 + $0x278] sm:$0xff] }
  0xef   :  { %2244 = vmatprep.subr.bf16.mxu0 %v3417_v34  ;;  %2285 = vmatprep.subr.bf16.mxu1 %v3419_v35  ;;  %v139_v33 = vld [vmem:[#allocation2 + $0x2f8] sm:$0xff]  ;;  %v3388_v34 = vcombine.low %v90_v21, %v106_v22  ;;  %v3390_v35 = vcombine.low %v91_v23, %v107_v24 }
  0xf0   :  { %v3423_v37 = vcombine.high %v123_v32, %v139_v33  ;;  %v3422_v43 = vcombine.low %v123_v32, %v139_v33  ;;  %v3782_v21 = vld [vmem:[#allocation2 + $0x7f8] sm:$0xff] }
  0xf2   :  { %2245 = vmatpush1.bf16.msra.mxu0 %v3416_v39  ;;  %2286 = vmatpush1.bf16.msra.mxu1 %v3418_v40  ;;  %v155_v39 = vld [vmem:[#allocation2 + $0x378] sm:$0xff] }
  0xf3   :  { %2246 = vmatprep.subr.bf16.mxu0 %v3449_v41  ;;  %2287 = vmatprep.subr.bf16.mxu1 %v3451_v42  ;;  %v171_v40 = vld [vmem:[#allocation2 + $0x3f8] sm:$0xff]  ;;  %v308_v41 = vlaneseq  ;;  %v3420_v42 = vcombine.low %v122_v29, %v138_v30  ;;  %v3581_v30 = vcombine.high %v3774_v15, %v3776_v16 }
  0xf4   :  { %v3455_v45 = vcombine.high %v155_v39, %v171_v40  ;;  %v3454_v52 = vcombine.low %v155_v39, %v171_v40 }
  0xf6   :  { %2247 = vmatpush1.bf16.msra.mxu0 %v3448_v47  ;;  %2288 = vmatpush1.bf16.msra.mxu1 %v3450_v48  ;;  %v202_v47 = vld [vmem:[#allocation2 + $0x4f0] sm:$0xff]  ;;  %v187_v48 = vld [vmem:[#allocation2 + $0x478] sm:$0xff] }
  0xf7   :  { %2248 = vmatprep.subr.bf16.mxu0 %v3481_v49  ;;  %2289 = vmatprep.subr.bf16.mxu1 %v3483_v50  ;;  %v203_v49 = vld [vmem:[#allocation2 + $0x4f8] sm:$0xff]  ;;  %v3750_v50 = vshrl.u32 %v308_v41, 7  ;;  %v3484_v59 = vcombine.low %v186_v46, %v202_v47 }
  0xf8   :  { %v3487_v53 = vcombine.high %v187_v48, %v203_v49 }
  0xf9   :  { %v3758_v61 = vsub.s32 2, %v3750_v50  ;;  %v3761_v62 = vsub.s32 1, %v3750_v50 }
  0xfa   :  { %2249 = vmatpush1.bf16.msra.mxu0 %v3480_v55  ;;  %2290 = vmatpush1.bf16.msra.mxu1 %v3482_v56  ;;  %v234_v55 = vld [vmem:[#allocation2 + $0x5f0] sm:$0xff]  ;;  %v3753_v56 = vsub.s32 0, %v3750_v50 }
  0xfb   :  { %2250 = vmatprep.subr.bf16.mxu0 %v3513_v57  ;;  %2291 = vmatprep.subr.bf16.mxu1 %v3515_v58  ;;  %v219_v57 = vld [vmem:[#allocation2 + $0x578] sm:$0xff]  ;;  %v315_v13 = vrot.slane %v3755_v60, %v3761_v62  ;;  %v3516_v14 = vcombine.low %v218_v54, %v234_v55 }
  0xfc   :  { %v235_v58 = vld [vmem:[#allocation2 + $0x5f8] sm:$0xff] }
  0xfd   :  { %v3519_v5 = vcombine.high %v219_v57, %v235_v58 }
  0xfe   :  { %2251 = vmatpush1.bf16.msra.mxu0 %v3512_v63  ;;  %2292 = vmatpush1.bf16.msra.mxu1 %v3514_v1  ;;  %v3486_v63 = vcombine.low %v187_v48, %v203_v49  ;;  %v3764_v1 = vsub.s32 3, %v3750_v50 }
  0xff   :  { %2252 = vmatprep.subr.bf16.mxu0 %v3545_v2  ;;  %2293 = vmatprep.subr.bf16.mxu1 %v3547_v3  ;;  %v3517_v2 = vcombine.high %v218_v54, %v234_v55  ;;  %v3660_v3 = vmov 1983009808  }
 0x100   :  { %v3766_v4 = vunpack.c.l.s4 %v3660_v3 }
 0x102   :  { %2253 = vmatpush1.bf16.msra.mxu0 %v3544_v8  ;;  %2294 = vmatpush1.bf16.msra.mxu1 %v3546_v9  ;;  %v311_v8 = vrot.slane %v3755_v60, %v3753_v56  ;;  %v251_v9 = vld [vmem:[#allocation2 + $0x678] sm:$0xff]  ;;  %v2954_v23 = vunpack.c.0.s8 %v3766_v4 }
 0x103   :  { %2254 = vmatprep.subr.bf16.mxu0 %v3577_v10  ;;  %2295 = vmatprep.subr.bf16.mxu1 %v3579_v11  ;;  %v267_v10 = vld [vmem:[#allocation2 + $0x6f8] sm:$0xff]  ;;  %v319_v11 = vrot.slane %v3755_v60, %v3758_v61 }
 0x104   :  { %v3551_v24 = vcombine.high %v251_v9, %v267_v10  ;;  %v3550_v29 = vcombine.low %v251_v9, %v267_v10 }
 0x106   :  { %2255 = vmatpush1.bf16.msra.mxu0 %v3576_v17  ;;  %2296 = vmatpush1.bf16.msra.mxu1 %v3578_v18  ;;  %v323_v17 = vrot.slane %v3755_v60, %v3764_v1  ;;  %v3518_v18 = vcombine.low %v219_v57, %v235_v58 }
 0x107   :  { %2322 = vmatprep.subr.bf16.mxu0 %v3357_v19  ;;  %2363 = vmatprep.subr.bf16.mxu1 %v3359_v20  ;;  %v3549_v19 = vcombine.high %v250_v6, %v266_v7  ;;  %v3780_v20 = vld [vmem:[#allocation2 + $0x778] sm:$0xff] }
 0x109   :  { %2273 = vmatmul.mubr.bf16.vlgmr.msra.gmra.mrb[24].mxu0 %v3741_v31  ;;  %2314 = vmatmul.mubr.bf16.vlgmr.msra.gmra.mrb[24].mxu1 %v3741_v31 }
 0x10a   :  { %2323 = vmatpush1.bf16.msra.mxu0 %v3356_v25  ;;  %2364 = vmatpush1.bf16.msra.mxu1 %v3358_v26 }
 0x10b   :  { %2324 = vmatprep.subr.bf16.mxu0 %v3389_v27  ;;  %2365 = vmatprep.subr.bf16.mxu1 %v3391_v28  ;;  %v3548_v28 = vcombine.low %v250_v6, %v266_v7  ;;  %v3819_v7 = vsub.s32 %v2954_v23, %v3750_v50 }
 0x10c   :  { %2354 = vmatprep.mubr.bf16.mxu0 %v3659_v0  ;;  %2395 = vmatprep.mubr.bf16.mxu1 %v3659_v0  ;;  %v3485_v0 = vcombine.high %v186_v46, %v202_v47 }
 0x10e   :  { %2325 = vmatpush1.bf16.msra.mxu0 %v3388_v34  ;;  %2366 = vmatpush1.bf16.msra.mxu1 %v3390_v35 }
 0x10f   :  { %2326 = vmatprep.subr.bf16.mxu0 %v3421_v36  ;;  %2367 = vmatprep.subr.bf16.mxu1 %v3423_v37  ;;  %v3580_v36 = vcombine.low %v3774_v15, %v3776_v16  ;;  %v3582_v37 = vcombine.low %v3780_v20, %v3782_v21 }
 0x112   :  { %2327 = vmatpush1.bf16.msra.mxu0 %v3420_v42  ;;  %2368 = vmatpush1.bf16.msra.mxu1 %v3422_v43  ;;  %v3583_v42 = vcombine.high %v3780_v20, %v3782_v21 }
 0x113   :  { %2328 = vmatprep.subr.bf16.mxu0 %v3453_v44  ;;  %2369 = vmatprep.subr.bf16.mxu1 %v3455_v45 }
 0x116   :  { %2329 = vmatpush1.bf16.msra.mxu0 %v3452_v51  ;;  %2370 = vmatpush1.bf16.msra.mxu1 %v3454_v52 }
 0x117   :  { %2330 = vmatprep.subr.bf16.mxu0 %v3485_v0  ;;  %2371 = vmatprep.subr.bf16.mxu1 %v3487_v53 }
 0x11a   :  { %2331 = vmatpush1.bf16.msra.mxu0 %v3484_v59  ;;  %2372 = vmatpush1.bf16.msra.mxu1 %v3486_v63 }
 0x11b   :  { %2332 = vmatprep.subr.bf16.mxu0 %v3517_v2  ;;  %2373 = vmatprep.subr.bf16.mxu1 %v3519_v5 }
 0x11c   :  { %v1782_v22 = vpop.f32.mrb[0].mxu0  ;;  %v1823_v26 = vpop.f32.mrb[0].mxu1 }
 0x11d   :  { %v3785_v25 = vadd.f32 %v1782_v22, %v311_v8  ;;  %v1784_v27 = vpop.f32.mrb[1].mxu0  ;;  %v3789_v32 = vadd.f32 %v1823_v26, %v319_v11  ;;  %v1825_v34 = vpop.f32.mrb[1].mxu1 }
 0x11e   :  { %v3791_v33 = vadd.f32 %v1784_v27, %v315_v13  ;;  %v1786_v35 = vpop.f32.mrb[2].mxu0  ;;  %2333 = vmatpush1.bf16.msra.mxu0 %v3516_v14  ;;  %v3801_v39 = vadd.f32 %v1825_v34, %v323_v17  ;;  %v1827_v40 = vpop.f32.mrb[2].mxu1  ;;  %2374 = vmatpush1.bf16.msra.mxu1 %v3518_v18 }
 0x11f   :  { %v2405_v12 = vsel %vm2404_vm0, %v3785_v25, 0.0  ;;  %v2629_v38 = vmul.f32 %v3785_v25, %v3785_v25  ;;  %v1787_v41 = vpop.f32.mrb[3].mxu0  ;;  %2334 = vmatprep.subr.bf16.mxu0 %v3549_v19  ;;  %v2419_v44 = vsel %vm2404_vm0, %v3789_v32, 0.0  ;;  %v2631_v45 = vmul.f32 %v3789_v32, %v3789_v32  ;;  %v1828_v47 = vpop.f32.mrb[3].mxu1  ;;  %2375 = vmatprep.subr.bf16.mxu1 %v3551_v24 }
 0x120   :  { %v2406_v43 = vrot.slane %v2405_v12, 4  ;;  %v2412_v46 = vsel %vm2404_vm0, %v3791_v33, 0.0  ;;  %v2420_v49 = vrot.slane %v2419_v44, 4  ;;  %v2630_v52 = vmul.f32 %v3791_v33, %v3791_v33 }
 0x121   :  { %v2661_v48 = vsel %vm2404_vm0, %v2629_v38, 0.0  ;;  %v2413_v51 = vrot.slane %v2412_v46, 4  ;;  %v2675_v54 = vsel %vm2404_vm0, %v2631_v45, 0.0  ;;  %v3584_v55 = vpack.c.bf16 %v3791_v33, %v3785_v25 }
 0x122   :  { %v2407_v0 = vadd.f32 %v2406_v43, %v2405_v12  ;;  %v2662_v53 = vrot.slane %v2661_v48, 4  ;;  %2335 = vmatpush1.bf16.msra.mxu0 %v3548_v28  ;;  %v2421_v57 = vadd.f32 %v2420_v49, %v2419_v44  ;;  %v2676_v58 = vrot.slane %v2675_v54, 4  ;;  %2376 = vmatpush1.bf16.msra.mxu1 %v3550_v29 }
 0x123   :  { %v2414_v59 = vadd.f32 %v2413_v51, %v2412_v46  ;;  %v2668_v63 = vsel %vm2404_vm0, %v2630_v52, 0.0  ;;  %2336 = vmatprep.subr.bf16.mxu0 %v3581_v30  ;;  %2377 = vmatprep.subr.bf16.mxu1 %v3583_v42  ;;  %v2426_v8 = vsel %vm2404_vm0, %v3801_v39, 0.0  ;;  %v2632_v17 = vmul.f32 %v3801_v39, %v3801_v39 }
 0x124   :  { %v2408_v2 = vrot.slane %v2407_v0, 2  ;;  %v2663_v3 = vadd.f32 %v2662_v53, %v2661_v48  ;;  %v2669_v4 = vrot.slane %v2668_v63, 4  ;;  %v2677_v5 = vadd.f32 %v2676_v58, %v2675_v54 }
 0x125   :  { %v2415_v6 = vrot.slane %v2414_v59, 2  ;;  %v2427_v13 = vrot.slane %v2426_v8, 4  ;;  %v2422_v14 = vrot.slane %v2421_v57, 2  ;;  %v2682_v23 = vsel %vm2404_vm0, %v2632_v17, 0.0 }
 0x126   :  { %v2409_v9 = vadd.f32 %v2408_v2, %v2407_v0  ;;  %v2664_v10 = vrot.slane %v2663_v3, 2  ;;  %v2670_v11 = vadd.f32 %v2669_v4, %v2668_v63  ;;  %2337 = vmatpush1.bf16.msra.mxu0 %v3580_v36  ;;  %v2678_v15 = vrot.slane %v2677_v5, 2  ;;  %2378 = vmatpush1.bf16.msra.mxu1 %v3582_v37 }
 0x127   :  { %v2416_v16 = vadd.f32 %v2415_v6, %v2414_v59  ;;  %v2428_v21 = vadd.f32 %v2427_v13, %v2426_v8  ;;  %v2423_v28 = vadd.f32 %v2422_v14, %v2421_v57  ;;  %v3174_v29 = vrot.slane %v3584_v55, %v3819_v7 }
 0x128   :  { %v2410_v18 = vrot.slane %v2409_v9, 1  ;;  %v2665_v19 = vadd.f32 %v2664_v10, %v2663_v3  ;;  %v2671_v20 = vrot.slane %v2670_v11, 2  ;;  %v2679_v22 = vadd.f32 %v2678_v15, %v2677_v5 }
 0x129   :  { %2355 = vmatmul.mubr.bf16.vlgmr.msra.gmra.mrb[28].mxu0 %v3741_v31  ;;  %v2417_v25 = vrot.slane %v2416_v16, 1  ;;  %v2429_v27 = vrot.slane %v2428_v21, 2  ;;  %2396 = vmatmul.mubr.bf16.vlgmr.msra.gmra.mrb[28].mxu1 %v3741_v31  ;;  %v2683_v30 = vrot.slane %v2682_v23, 4  ;;  %v3585_v36 = vpack.c.bf16 %v3801_v39, %v3789_v32 }
 0x12a   :  { %v2666_v24 = vrot.slane %v2665_v19, 1  ;;  %v2672_v26 = vadd.f32 %v2671_v20, %v2670_v11  ;;  %v2411_v33 = vadd.f32 %v2410_v18, %v2409_v9  ;;  %v2680_v37 = vrot.slane %v2679_v22, 1 }
 0x12b   :  { %v2430_v12 = vadd.f32 %v2429_v27, %v2428_v21  ;;  %v2684_v38 = vadd.f32 %v2683_v30, %v2682_v23  ;;  %v2418_v41 = vadd.f32 %v2417_v25, %v2416_v16  ;;  %v3181_v31 = vrot.slane %v3585_v36, %v3819_v7 }
 0x12c   :  { %v2667_v34 = vadd.f32 %v2666_v24, %v2665_v19  ;;  %v2673_v35 = vrot.slane %v2672_v26, 1  ;;  %v2424_v43 = vrot.slane %v2423_v28, 1  ;;  %v2681_v47 = vadd.f32 %v2680_v37, %v2679_v22 }
 0x12d   :  { %v2685_v44 = vrot.slane %v2684_v38, 2  ;;  %v3182_v46 = vcombine.low %v3174_v29, %v3181_v31  ;;  %v2431_v49 = vrot.slane %v2430_v12, 1  ;;  %v3839_v54 = vsub.s32 4, %v3750_v50 }
 0x12e   :  { %v2886_v40 = vsel %vm2885_vm1, %v2411_v33, %v2667_v34  ;;  %v2674_v42 = vadd.f32 %v2673_v35, %v2672_v26  ;;  %v2425_v32 = vadd.f32 %v2424_v43, %v2423_v28  ;;  %v3842_v55 = vsub.s32 6, %v3750_v50 }
 0x12f   :  { %v2686_v51 = vadd.f32 %v2685_v44, %v2684_v38  ;;  %3310 = vst [vmem:[%s4117_s3] sm:$0xff] %v3182_v46  ;;  %v2432_v0 = vadd.f32 %v2431_v49, %v2430_v12  ;;  %v3845_v57 = vsub.s32 5, %v3750_v50  ;;  %v3849_v59 = vsub.s32 7, %v3750_v50 }
 0x130   :  { %v2887_v45 = vsel %vm2885_vm1, %v2418_v41, %v2674_v42  ;;  %v2888_v52 = vsel %vm2885_vm1, %v2425_v32, %v2681_v47  ;;  %v327_v3 = vrot.slane %v3755_v60, %v3839_v54  ;;  %v335_v5 = vrot.slane %v3755_v60, %v3842_v55 }
 0x131   :  { %v2950_v48 = vcombine.low %v2886_v40, %v2887_v45  ;;  %v2687_v39 = vrot.slane %v2686_v51, 1  ;;  %v331_v6 = vrot.slane %v3755_v60, %v3845_v57  ;;  %v339_v8 = vrot.slane %v3755_v60, %v3849_v59 }
 0x133   :  { %v2688_v53 = vadd.f32 %v2687_v39, %v2686_v51  ;;  %v2958_v63 = vrot.slane %v2950_v48, %v3819_v7 }
 0x135   :  { %v2889_v58 = vsel %vm2885_vm1, %v2432_v0, %v2688_v53 }
 0x136   :  { %v2951_v2 = vcombine.low %v2888_v52, %v2889_v58 }
 0x138   :  { %v2965_v4 = vrot.slane %v2951_v2, %v3819_v7 }
 0x13a   :  { %v2966_v9 = vcombine.low %v2958_v63, %v2965_v4 }
 0x13c   :  { %v1864_v50 = vpop.f32.mrb[4].mxu0  ;;  %v1905_v11 = vpop.f32.mrb[4].mxu1  ;;  %3094 = vst [vmem:[%s4118_s4] sm:$0xff] %v2966_v9 }
 0x13d   :  { %v1865_v10 = vadd.f32 %v1864_v50, %v327_v3  ;;  %v1866_v13 = vpop.f32.mrb[5].mxu0  ;;  %v3864_v14 = vadd.f32 %v1905_v11, %v335_v5  ;;  %v1907_v16 = vpop.f32.mrb[5].mxu1 }
 0x13e   :  { %v1867_v15 = vadd.f32 %v1866_v13, %v331_v6  ;;  %v1868_v17 = vpop.f32.mrb[6].mxu0  ;;  %v1908_v20 = vadd.f32 %v1907_v16, %v339_v8  ;;  %v1909_v21 = vpop.f32.mrb[6].mxu1 }
 0x13f   :  { %v2433_v18 = vsel %vm2404_vm0, %v1865_v10, 0.0  ;;  %v2633_v19 = vmul.f32 %v1865_v10, %v1865_v10  ;;  %v1869_v60 = vpop.f32.mrb[7].mxu0  ;;  %v2447_v23 = vsel %vm2404_vm0, %v3864_v14, 0.0  ;;  %v2635_v24 = vmul.f32 %v3864_v14, %v3864_v14  ;;  %v1910_v26 = vpop.f32.mrb[7].mxu1 }
 0x140   :  { %v2434_v22 = vrot.slane %v2433_v18, 4  ;;  %v2440_v25 = vsel %vm2404_vm0, %v1867_v15, 0.0  ;;  %v2448_v28 = vrot.slane %v2447_v23, 4  ;;  %v2634_v30 = vmul.f32 %v1867_v15, %v1867_v15 }
 0x141   :  { %v2689_v27 = vsel %vm2404_vm0, %v2633_v19, 0.0  ;;  %v2441_v29 = vrot.slane %v2440_v25, 4  ;;  %v2703_v35 = vsel %vm2404_vm0, %v2635_v24, 0.0  ;;  %v3586_v36 = vpack.c.bf16 %v1867_v15, %v1865_v10 }
 0x142   :  { %v2435_v33 = vadd.f32 %v2434_v22, %v2433_v18  ;;  %v2690_v34 = vrot.slane %v2689_v27, 4  ;;  %v2449_v37 = vadd.f32 %v2448_v28, %v2447_v23  ;;  %v2704_v12 = vrot.slane %v2703_v35, 4 }
 0x143   :  { %v2442_v38 = vadd.f32 %v2441_v29, %v2440_v25  ;;  %v2696_v40 = vsel %vm2404_vm0, %v2634_v30, 0.0  ;;  %v2454_v45 = vsel %vm2404_vm0, %v1908_v20, 0.0  ;;  %v2636_v52 = vmul.f32 %v1908_v20, %v1908_v20 }
 0x144   :  { %v2436_v41 = vrot.slane %v2435_v33, 2  ;;  %v2691_v42 = vadd.f32 %v2690_v34, %v2689_v27  ;;  %v2697_v31 = vrot.slane %v2696_v40, 4  ;;  %v2705_v43 = vadd.f32 %v2704_v12, %v2703_v35 }
 0x145   :  { %v2443_v44 = vrot.slane %v2442_v38, 2  ;;  %v2455_v49 = vrot.slane %v2454_v45, 4  ;;  %v2450_v51 = vrot.slane %v2449_v37, 2  ;;  %v2710_v3 = vsel %vm2404_vm0, %v2636_v52, 0.0 }
 0x146   :  { %v2437_v46 = vadd.f32 %v2436_v41, %v2435_v33  ;;  %v2692_v47 = vrot.slane %v2691_v42, 2  ;;  %v2698_v48 = vadd.f32 %v2697_v31, %v2696_v40  ;;  %v2706_v32 = vrot.slane %v2705_v43, 2 }
 0x147   :  { %v2444_v39 = vadd.f32 %v2443_v44, %v2442_v38  ;;  %v2456_v63 = vadd.f32 %v2455_v49, %v2454_v45  ;;  %v2451_v9 = vadd.f32 %v2450_v51, %v2449_v37  ;;  %v3191_v50 = vrot.slane %v3586_v36, %v3819_v7  ;;  %v3886_v37 = vld [vmem:[#allocation4 + $0x8] sm:$0xff] }
 0x148   :  { %v2438_v0 = vrot.slane %v2437_v46, 1  ;;  %v2693_v53 = vadd.f32 %v2692_v47, %v2691_v42  ;;  %v2699_v58 = vrot.slane %v2698_v48, 2  ;;  %v2707_v2 = vadd.f32 %v2706_v32, %v2705_v43 }
 0x149   :  { %v2445_v5 = vrot.slane %v2444_v39, 1  ;;  %v2457_v8 = vrot.slane %v2456_v63, 2  ;;  %v2711_v10 = vrot.slane %v2710_v3, 4  ;;  %v3587_v16 = vpack.c.bf16 %v1908_v20, %v3864_v14 }
 0x14a   :  { %v2694_v4 = vrot.slane %v2693_v53, 1  ;;  %v2700_v6 = vadd.f32 %v2699_v58, %v2698_v48  ;;  %v2439_v11 = vadd.f32 %v2438_v0, %v2437_v46  ;;  %v2708_v17 = vrot.slane %v2707_v2, 1 }
 0x14b   :  { %v2458_v18 = vadd.f32 %v2457_v8, %v2456_v63  ;;  %v2712_v19 = vadd.f32 %v2711_v10, %v2710_v3  ;;  %v2446_v60 = vadd.f32 %v2445_v5, %v2444_v39  ;;  %v3198_v23 = vrot.slane %v3587_v16, %v3819_v7 }
 0x14c   :  { %v2695_v13 = vadd.f32 %v2694_v4, %v2693_v53  ;;  %v2701_v15 = vrot.slane %v2700_v6, 1  ;;  %v2452_v24 = vrot.slane %v2451_v9, 1  ;;  %v2709_v28 = vadd.f32 %v2708_v17, %v2707_v2 }
 0x14d   :  { %v2713_v25 = vrot.slane %v2712_v19, 2  ;;  %v3199_v27 = vcombine.low %v3191_v50, %v3198_v23  ;;  %v2459_v30 = vrot.slane %v2458_v18, 1  ;;  %v343_v41 = vrot.slane %v3886_v37, %v3753_v56 }
 0x14e   :  { %v2890_v21 = vsel %vm2885_vm1, %v2439_v11, %v2695_v13  ;;  %v2702_v22 = vadd.f32 %v2701_v15, %v2700_v6  ;;  %v2453_v14 = vadd.f32 %v2452_v24, %v2451_v9  ;;  %v351_v31 = vrot.slane %v3886_v37, %v3758_v61 }
 0x14f   :  { %v2714_v33 = vadd.f32 %v2713_v25, %v2712_v19  ;;  %3311 = vst [vmem:[%s4117_s3 + $0x8] sm:$0xff] %v3199_v27  ;;  %v2460_v35 = vadd.f32 %v2459_v30, %v2458_v18  ;;  %v347_v43 = vrot.slane %v3886_v37, %v3761_v62  ;;  %v355_v44 = vrot.slane %v3886_v37, %v3764_v1 }
 0x150   :  { %v2891_v26 = vsel %vm2885_vm1, %v2446_v60, %v2702_v22  ;;  %v2892_v34 = vsel %vm2885_vm1, %v2453_v14, %v2709_v28 }
 0x151   :  { %v2967_v29 = vcombine.low %v2890_v21, %v2891_v26  ;;  %v2715_v20 = vrot.slane %v2714_v33, 1 }
 0x153   :  { %v2716_v36 = vadd.f32 %v2715_v20, %v2714_v33  ;;  %v2975_v38 = vrot.slane %v2967_v29, %v3819_v7 }
 0x155   :  { %v2893_v12 = vsel %vm2885_vm1, %v2460_v35, %v2716_v36 }
 0x156   :  { %v2968_v40 = vcombine.low %v2892_v34, %v2893_v12 }
 0x158   :  { %v2982_v42 = vrot.slane %v2968_v40, %v3819_v7 }
 0x15a   :  { %v2983_v45 = vcombine.low %v2975_v38, %v2982_v42 }
 0x15c   :  { %v1946_v46 = vpop.f32.mrb[8].mxu0  ;;  %v1987_v48 = vpop.f32.mrb[8].mxu1  ;;  %3095 = vst [vmem:[%s4118_s4 + $0x8] sm:$0xff] %v2983_v45 }
 0x15d   :  { %v1947_v47 = vadd.f32 %v1946_v46, %v343_v41  ;;  %v1948_v49 = vpop.f32.mrb[9].mxu0  ;;  %v3902_v51 = vadd.f32 %v1987_v48, %v351_v31  ;;  %v1989_v39 = vpop.f32.mrb[9].mxu1 }
 0x15e   :  { %v1949_v32 = vadd.f32 %v1948_v49, %v347_v43  ;;  %v1950_v52 = vpop.f32.mrb[10].mxu0  ;;  %v1990_v58 = vadd.f32 %v1989_v39, %v355_v44  ;;  %v1991_v63 = vpop.f32.mrb[10].mxu1 }
 0x15f   :  { %v2461_v0 = vsel %vm2404_vm0, %v1947_v47, 0.0  ;;  %v2637_v53 = vmul.f32 %v1947_v47, %v1947_v47  ;;  %v1951_v2 = vpop.f32.mrb[11].mxu0  ;;  %v2475_v4 = vsel %vm2404_vm0, %v3902_v51, 0.0  ;;  %v2639_v5 = vmul.f32 %v3902_v51, %v3902_v51  ;;  %v1992_v8 = vpop.f32.mrb[11].mxu1 }
 0x160   :  { %v2462_v3 = vrot.slane %v2461_v0, 4  ;;  %v2468_v6 = vsel %vm2404_vm0, %v1949_v32, 0.0  ;;  %v2476_v50 = vrot.slane %v2475_v4, 4  ;;  %v2638_v11 = vmul.f32 %v1949_v32, %v1949_v32 }
 0x161   :  { %v2717_v9 = vsel %vm2404_vm0, %v2637_v53, 0.0  ;;  %v2469_v10 = vrot.slane %v2468_v6, 4  ;;  %v2731_v16 = vsel %vm2404_vm0, %v2639_v5, 0.0  ;;  %v3588_v17 = vpack.c.bf16 %v1949_v32, %v1947_v47 }
 0x162   :  { %v2463_v13 = vadd.f32 %v2462_v3, %v2461_v0  ;;  %v2718_v15 = vrot.slane %v2717_v9, 4  ;;  %v2477_v18 = vadd.f32 %v2476_v50, %v2475_v4  ;;  %v2732_v19 = vrot.slane %v2731_v16, 4 }
 0x163   :  { %v2470_v21 = vadd.f32 %v2469_v10, %v2468_v6  ;;  %v2724_v60 = vsel %vm2404_vm0, %v2638_v11, 0.0  ;;  %v2482_v27 = vsel %vm2404_vm0, %v1990_v58, 0.0  ;;  %v2640_v35 = vmul.f32 %v1990_v58, %v1990_v58 }
 0x164   :  { %v2464_v22 = vrot.slane %v2463_v13, 2  ;;  %v2719_v23 = vadd.f32 %v2718_v15, %v2717_v9  ;;  %v2725_v24 = vrot.slane %v2724_v60, 4  ;;  %v2733_v25 = vadd.f32 %v2732_v19, %v2731_v16 }
 0x165   :  { %v2471_v26 = vrot.slane %v2470_v21, 2  ;;  %v2483_v33 = vrot.slane %v2482_v27, 4  ;;  %v2478_v14 = vrot.slane %v2477_v18, 2  ;;  %v2738_v42 = vsel %vm2404_vm0, %v2640_v35, 0.0 }
 0x166   :  { %v2465_v28 = vadd.f32 %v2464_v22, %v2463_v13  ;;  %v2720_v29 = vrot.slane %v2719_v23, 2  ;;  %v2726_v30 = vadd.f32 %v2725_v24, %v2724_v60  ;;  %v2734_v20 = vrot.slane %v2733_v25, 2 }
 0x167   :  { %v2472_v34 = vadd.f32 %v2471_v26, %v2470_v21  ;;  %v2484_v40 = vadd.f32 %v2483_v33, %v2482_v27  ;;  %v2479_v46 = vadd.f32 %v2478_v14, %v2477_v18  ;;  %v3208_v47 = vrot.slane %v3588_v17, %v3819_v7 }
 0x168   :  { %v2466_v36 = vrot.slane %v2465_v28, 1  ;;  %v2721_v12 = vadd.f32 %v2720_v29, %v2719_v23  ;;  %v2727_v38 = vrot.slane %v2726_v30, 2  ;;  %v2735_v41 = vadd.f32 %v2734_v20, %v2733_v25 }
 0x169   :  { %v2473_v43 = vrot.slane %v2472_v34, 1  ;;  %v2485_v45 = vrot.slane %v2484_v40, 2  ;;  %v2739_v48 = vrot.slane %v2738_v42, 4  ;;  %v3589_v52 = vpack.c.bf16 %v1990_v58, %v3902_v51 }
 0x16a   :  { %v2722_v31 = vrot.slane %v2721_v12, 1  ;;  %v2728_v44 = vadd.f32 %v2727_v38, %v2726_v30  ;;  %v2467_v49 = vadd.f32 %v2466_v36, %v2465_v28  ;;  %v2736_v0 = vrot.slane %v2735_v41, 1 }
 0x16b   :  { %v2486_v53 = vadd.f32 %v2485_v45, %v2484_v40  ;;  %v2740_v63 = vadd.f32 %v2739_v48, %v2738_v42  ;;  %v2474_v3 = vadd.f32 %v2473_v43, %v2472_v34  ;;  %v3215_v5 = vrot.slane %v3589_v52, %v3819_v7 }
 0x16c   :  { %v2723_v32 = vadd.f32 %v2722_v31, %v2721_v12  ;;  %v2729_v39 = vrot.slane %v2728_v44, 1  ;;  %v2480_v6 = vrot.slane %v2479_v46, 1  ;;  %v2737_v10 = vadd.f32 %v2736_v0, %v2735_v41 }
 0x16d   :  { %v2741_v8 = vrot.slane %v2740_v63, 2  ;;  %v3216_v50 = vcombine.low %v3208_v47, %v3215_v5  ;;  %v2487_v13 = vrot.slane %v2486_v53, 1  ;;  %v359_v22 = vrot.slane %v3886_v37, %v3839_v54 }
 0x16e   :  { %v2894_v2 = vsel %vm2885_vm1, %v2467_v49, %v2723_v32  ;;  %v2730_v4 = vadd.f32 %v2729_v39, %v2728_v44  ;;  %v2481_v51 = vadd.f32 %v2480_v6, %v2479_v46  ;;  %v367_v24 = vrot.slane %v3886_v37, %v3842_v55 }
 0x16f   :  { %v2742_v15 = vadd.f32 %v2741_v8, %v2740_v63  ;;  %3312 = vst [vmem:[%s4117_s3 + $0x10] sm:$0xff] %v3216_v50  ;;  %v2488_v17 = vadd.f32 %v2487_v13, %v2486_v53  ;;  %v363_v25 = vrot.slane %v3886_v37, %v3845_v57  ;;  %v371_v26 = vrot.slane %v3886_v37, %v3849_v59 }
 0x170   :  { %v2895_v9 = vsel %vm2885_vm1, %v2474_v3, %v2730_v4  ;;  %v2896_v16 = vsel %vm2885_vm1, %v2481_v51, %v2737_v10 }
 0x171   :  { %v2984_v11 = vcombine.low %v2894_v2, %v2895_v9  ;;  %v2743_v58 = vrot.slane %v2742_v15, 1 }
 0x173   :  { %v2744_v18 = vadd.f32 %v2743_v58, %v2742_v15  ;;  %v2992_v21 = vrot.slane %v2984_v11, %v3819_v7 }
 0x175   :  { %v2897_v19 = vsel %vm2885_vm1, %v2488_v17, %v2744_v18 }
 0x176   :  { %v2985_v60 = vcombine.low %v2896_v16, %v2897_v19 }
 0x178   :  { %v2999_v23 = vrot.slane %v2985_v60, %v3819_v7 }
 0x17a   :  { %v3000_v27 = vcombine.low %v2992_v21, %v2999_v23 }
 0x17c   :  { %v2028_v28 = vpop.f32.mrb[12].mxu0  ;;  %v2069_v30 = vpop.f32.mrb[12].mxu1  ;;  %3096 = vst [vmem:[%s4118_s4 + $0x10] sm:$0xff] %v3000_v27 }
 0x17d   :  { %v2029_v29 = vadd.f32 %v2028_v28, %v359_v22  ;;  %v2030_v33 = vpop.f32.mrb[13].mxu0  ;;  %v3938_v14 = vadd.f32 %v2069_v30, %v367_v24  ;;  %v2071_v34 = vpop.f32.mrb[13].mxu1 }
 0x17e   :  { %v2031_v20 = vadd.f32 %v2030_v33, %v363_v25  ;;  %v2032_v35 = vpop.f32.mrb[14].mxu0  ;;  %v2072_v38 = vadd.f32 %v2071_v34, %v371_v26  ;;  %v2073_v40 = vpop.f32.mrb[14].mxu1 }
 0x17f   :  { %v2489_v36 = vsel %vm2404_vm0, %v2029_v29, 0.0  ;;  %v2641_v12 = vmul.f32 %v2029_v29, %v2029_v29  ;;  %v2033_v37 = vpop.f32.mrb[15].mxu0  ;;  %v2503_v42 = vsel %vm2404_vm0, %v3938_v14, 0.0  ;;  %v2643_v31 = vmul.f32 %v3938_v14, %v3938_v14  ;;  %v2074_v44 = vpop.f32.mrb[15].mxu1 }
 0x180   :  { %v2490_v41 = vrot.slane %v2489_v36, 4  ;;  %v2496_v43 = vsel %vm2404_vm0, %v2031_v20, 0.0  ;;  %v2504_v46 = vrot.slane %v2503_v42, 4  ;;  %v2642_v48 = vmul.f32 %v2031_v20, %v2031_v20 }
 0x181   :  { %v2745_v45 = vsel %vm2404_vm0, %v2641_v12, 0.0  ;;  %v2497_v47 = vrot.slane %v2496_v43, 4  ;;  %v2759_v39 = vsel %vm2404_vm0, %v2643_v31, 0.0  ;;  %v3590_v52 = vpack.c.bf16 %v2031_v20, %v2029_v29 }
 0x182   :  { %v2491_v49 = vadd.f32 %v2490_v41, %v2489_v36  ;;  %v2746_v32 = vrot.slane %v2745_v45, 4  ;;  %v2505_v0 = vadd.f32 %v2504_v46, %v2503_v42  ;;  %v2760_v53 = vrot.slane %v2759_v39, 4 }
 0x183   :  { %v2498_v63 = vadd.f32 %v2497_v47, %v2496_v43  ;;  %v2752_v2 = vsel %vm2404_vm0, %v2642_v48, 0.0  ;;  %v2510_v9 = vsel %vm2404_vm0, %v2072_v38, 0.0  ;;  %v2644_v16 = vmul.f32 %v2072_v38, %v2072_v38 }
 0x184   :  { %v2492_v3 = vrot.slane %v2491_v49, 2  ;;  %v2747_v4 = vadd.f32 %v2746_v32, %v2745_v45  ;;  %v2753_v5 = vrot.slane %v2752_v2, 4  ;;  %v2761_v6 = vadd.f32 %v2760_v53, %v2759_v39 }
 0x185   :  { %v2499_v8 = vrot.slane %v2498_v63, 2  ;;  %v2511_v13 = vrot.slane %v2510_v9, 4  ;;  %v2506_v15 = vrot.slane %v2505_v0, 2  ;;  %v2766_v22 = vsel %vm2404_vm0, %v2644_v16, 0.0 }
 0x186   :  { %v2493_v50 = vadd.f32 %v2492_v3, %v2491_v49  ;;  %v2748_v10 = vrot.slane %v2747_v4, 2  ;;  %v2754_v11 = vadd.f32 %v2753_v5, %v2752_v2  ;;  %v2762_v51 = vrot.slane %v2761_v6, 2 }
 0x187   :  { %v2500_v58 = vadd.f32 %v2499_v8, %v2498_v63  ;;  %v2512_v21 = vadd.f32 %v2511_v13, %v2510_v9  ;;  %v2507_v27 = vadd.f32 %v2506_v15, %v2505_v0  ;;  %v3225_v28 = vrot.slane %v3590_v52, %v3819_v7  ;;  %v3960_v0 = vld [vmem:[#allocation4 + $0x10] sm:$0xff] }
 0x188   :  { %v2494_v17 = vrot.slane %v2493_v50, 1  ;;  %v2749_v18 = vadd.f32 %v2748_v10, %v2747_v4  ;;  %v2755_v19 = vrot.slane %v2754_v11, 2  ;;  %v2763_v60 = vadd.f32 %v2762_v51, %v2761_v6 }
 0x189   :  { %v2501_v24 = vrot.slane %v2500_v58, 1  ;;  %v2513_v26 = vrot.slane %v2512_v21, 2  ;;  %v2767_v29 = vrot.slane %v2766_v22, 4  ;;  %v3591_v34 = vpack.c.bf16 %v2072_v38, %v3938_v14 }
 0x18a   :  { %v2750_v23 = vrot.slane %v2749_v18, 1  ;;  %v2756_v25 = vadd.f32 %v2755_v19, %v2754_v11  ;;  %v2495_v30 = vadd.f32 %v2494_v17, %v2493_v50  ;;  %v2764_v35 = vrot.slane %v2763_v60, 1 }
 0x18b   :  { %v2514_v36 = vadd.f32 %v2513_v26, %v2512_v21  ;;  %v2768_v12 = vadd.f32 %v2767_v29, %v2766_v22  ;;  %v2502_v37 = vadd.f32 %v2501_v24, %v2500_v58  ;;  %v3232_v42 = vrot.slane %v3591_v34, %v3819_v7 }
 0x18c   :  { %v2751_v33 = vadd.f32 %v2750_v23, %v2749_v18  ;;  %v2757_v20 = vrot.slane %v2756_v25, 1  ;;  %v2508_v31 = vrot.slane %v2507_v27, 1  ;;  %v2765_v46 = vadd.f32 %v2764_v35, %v2763_v60 }
 0x18d   :  { %v2769_v43 = vrot.slane %v2768_v12, 2  ;;  %v3233_v45 = vcombine.low %v3225_v28, %v3232_v42  ;;  %v2515_v48 = vrot.slane %v2514_v36, 1  ;;  %v375_v3 = vrot.slane %v3960_v0, %v3753_v56 }
 0x18e   :  { %v2898_v40 = vsel %vm2885_vm1, %v2495_v30, %v2751_v33  ;;  %v2758_v41 = vadd.f32 %v2757_v20, %v2756_v25  ;;  %v2509_v14 = vadd.f32 %v2508_v31, %v2507_v27  ;;  %v383_v5 = vrot.slane %v3960_v0, %v3758_v61 }
 0x18f   :  { %v2770_v49 = vadd.f32 %v2769_v43, %v2768_v12  ;;  %3313 = vst [vmem:[%s4117_s3 + $0x18] sm:$0xff] %v3233_v45  ;;  %v2516_v39 = vadd.f32 %v2515_v48, %v2514_v36  ;;  %v379_v6 = vrot.slane %v3960_v0, %v3761_v62  ;;  %v387_v8 = vrot.slane %v3960_v0, %v3764_v1 }
 0x190   :  { %v2899_v44 = vsel %vm2885_vm1, %v2502_v37, %v2758_v41  ;;  %v2900_v32 = vsel %vm2885_vm1, %v2509_v14, %v2765_v46 }
 0x191   :  { %v3001_v47 = vcombine.low %v2898_v40, %v2899_v44  ;;  %v2771_v38 = vrot.slane %v2770_v49, 1 }
 0x193   :  { %v2772_v52 = vadd.f32 %v2771_v38, %v2770_v49  ;;  %v3009_v63 = vrot.slane %v3001_v47, %v3819_v7 }
 0x195   :  { %v2901_v53 = vsel %vm2885_vm1, %v2516_v39, %v2772_v52 }
 0x196   :  { %v3002_v2 = vcombine.low %v2900_v32, %v2901_v53 }
 0x198   :  { %v3016_v4 = vrot.slane %v3002_v2, %v3819_v7 }
 0x19a   :  { %v3017_v9 = vcombine.low %v3009_v63, %v3016_v4 }
 0x19c   :  { %v2110_v50 = vpop.f32.mrb[16].mxu0  ;;  %v2151_v11 = vpop.f32.mrb[16].mxu1  ;;  %3097 = vst [vmem:[%s4118_s4 + $0x18] sm:$0xff] %v3017_v9 }
 0x19d   :  { %v2111_v10 = vadd.f32 %v2110_v50, %v375_v3  ;;  %v2112_v13 = vpop.f32.mrb[17].mxu0  ;;  %v3976_v15 = vadd.f32 %v2151_v11, %v383_v5  ;;  %v2153_v58 = vpop.f32.mrb[17].mxu1 }
 0x19e   :  { %v2113_v51 = vadd.f32 %v2112_v13, %v379_v6  ;;  %v2114_v16 = vpop.f32.mrb[18].mxu0  ;;  %v2154_v19 = vadd.f32 %v2153_v58, %v387_v8  ;;  %v2155_v21 = vpop.f32.mrb[18].mxu1 }
 0x19f   :  { %v2517_v17 = vsel %vm2404_vm0, %v2111_v10, 0.0  ;;  %v2645_v18 = vmul.f32 %v2111_v10, %v2111_v10  ;;  %v2115_v60 = vpop.f32.mrb[19].mxu0  ;;  %v2531_v23 = vsel %vm2404_vm0, %v3976_v15, 0.0  ;;  %v2647_v24 = vmul.f32 %v3976_v15, %v3976_v15  ;;  %v2156_v26 = vpop.f32.mrb[19].mxu1 }
 0x1a0   :  { %v2518_v22 = vrot.slane %v2517_v17, 4  ;;  %v2524_v25 = vsel %vm2404_vm0, %v2113_v51, 0.0  ;;  %v2532_v28 = vrot.slane %v2531_v23, 4  ;;  %v2646_v30 = vmul.f32 %v2113_v51, %v2113_v51 }
 0x1a1   :  { %v2773_v27 = vsel %vm2404_vm0, %v2645_v18, 0.0  ;;  %v2525_v29 = vrot.slane %v2524_v25, 4  ;;  %v2787_v34 = vsel %vm2404_vm0, %v2647_v24, 0.0  ;;  %v3592_v35 = vpack.c.bf16 %v2113_v51, %v2111_v10 }
 0x1a2   :  { %v2519_v33 = vadd.f32 %v2518_v22, %v2517_v17  ;;  %v2774_v20 = vrot.slane %v2773_v27, 4  ;;  %v2533_v36 = vadd.f32 %v2532_v28, %v2531_v23  ;;  %v2788_v12 = vrot.slane %v2787_v34, 4 }
 0x1a3   :  { %v2526_v40 = vadd.f32 %v2525_v29, %v2524_v25  ;;  %v2780_v37 = vsel %vm2404_vm0, %v2646_v30, 0.0  ;;  %v2538_v45 = vsel %vm2404_vm0, %v2154_v19, 0.0  ;;  %v2648_v39 = vmul.f32 %v2154_v19, %v2154_v19 }
 0x1a4   :  { %v2520_v41 = vrot.slane %v2519_v33, 2  ;;  %v2775_v42 = vadd.f32 %v2774_v20, %v2773_v27  ;;  %v2781_v31 = vrot.slane %v2780_v37, 4  ;;  %v2789_v43 = vadd.f32 %v2788_v12, %v2787_v34 }
 0x1a5   :  { %v2527_v44 = vrot.slane %v2526_v40, 2  ;;  %v2539_v49 = vrot.slane %v2538_v45, 4  ;;  %v2534_v14 = vrot.slane %v2533_v36, 2  ;;  %v2794_v4 = vsel %vm2404_vm0, %v2648_v39, 0.0 }
 0x1a6   :  { %v2521_v46 = vadd.f32 %v2520_v41, %v2519_v33  ;;  %v2776_v47 = vrot.slane %v2775_v42, 2  ;;  %v2782_v48 = vadd.f32 %v2781_v31, %v2780_v37  ;;  %v2790_v38 = vrot.slane %v2789_v43, 2 }
 0x1a7   :  { %v2528_v32 = vadd.f32 %v2527_v44, %v2526_v40  ;;  %v2540_v2 = vadd.f32 %v2539_v49, %v2538_v45  ;;  %v2535_v50 = vadd.f32 %v2534_v14, %v2533_v36  ;;  %v3242_v10 = vrot.slane %v3592_v35, %v3819_v7 }
 0x1a8   :  { %v2522_v52 = vrot.slane %v2521_v46, 1  ;;  %v2777_v53 = vadd.f32 %v2776_v47, %v2775_v42  ;;  %v2783_v63 = vrot.slane %v2782_v48, 2  ;;  %v2791_v3 = vadd.f32 %v2790_v38, %v2789_v43 }
 0x1a9   :  { %v2529_v6 = vrot.slane %v2528_v32, 1  ;;  %v2541_v9 = vrot.slane %v2540_v2, 2  ;;  %v2795_v11 = vrot.slane %v2794_v4, 4  ;;  %v3593_v16 = vpack.c.bf16 %v2154_v19, %v3976_v15 }
 0x1aa   :  { %v2778_v5 = vrot.slane %v2777_v53, 1  ;;  %v2784_v8 = vadd.f32 %v2783_v63, %v2782_v48  ;;  %v2523_v13 = vadd.f32 %v2522_v52, %v2521_v46  ;;  %v2792_v17 = vrot.slane %v2791_v3, 1 }
 0x1ab   :  { %v2542_v18 = vadd.f32 %v2541_v9, %v2540_v2  ;;  %v2796_v21 = vadd.f32 %v2795_v11, %v2794_v4  ;;  %v2530_v22 = vadd.f32 %v2529_v6, %v2528_v32  ;;  %v3249_v24 = vrot.slane %v3593_v16, %v3819_v7 }
 0x1ac   :  { %v2779_v51 = vadd.f32 %v2778_v5, %v2777_v53  ;;  %v2785_v58 = vrot.slane %v2784_v8, 1  ;;  %v2536_v25 = vrot.slane %v2535_v50, 1  ;;  %v2793_v29 = vadd.f32 %v2792_v17, %v2791_v3 }
 0x1ad   :  { %v2797_v26 = vrot.slane %v2796_v21, 2  ;;  %v3250_v28 = vcombine.low %v3242_v10, %v3249_v24  ;;  %v2543_v33 = vrot.slane %v2542_v18, 1  ;;  %v391_v41 = vrot.slane %v3960_v0, %v3839_v54 }
 0x1ae   :  { %v2902_v60 = vsel %vm2885_vm1, %v2523_v13, %v2779_v51  ;;  %v2786_v23 = vadd.f32 %v2785_v58, %v2784_v8  ;;  %v2537_v15 = vadd.f32 %v2536_v25, %v2535_v50  ;;  %v399_v31 = vrot.slane %v3960_v0, %v3842_v55 }
 0x1af   :  { %v2798_v20 = vadd.f32 %v2797_v26, %v2796_v21  ;;  %3314 = vst [vmem:[%s4117_s3 + $0x20] sm:$0xff] %v3250_v28  ;;  %v2544_v35 = vadd.f32 %v2543_v33, %v2542_v18  ;;  %v395_v43 = vrot.slane %v3960_v0, %v3845_v57  ;;  %v403_v44 = vrot.slane %v3960_v0, %v3849_v59 }
 0x1b0   :  { %v2903_v27 = vsel %vm2885_vm1, %v2530_v22, %v2786_v23  ;;  %v2904_v34 = vsel %vm2885_vm1, %v2537_v15, %v2793_v29 }
 0x1b1   :  { %v3018_v30 = vcombine.low %v2902_v60, %v2903_v27  ;;  %v2799_v19 = vrot.slane %v2798_v20, 1 }
 0x1b3   :  { %v2800_v36 = vadd.f32 %v2799_v19, %v2798_v20  ;;  %v3026_v40 = vrot.slane %v3018_v30, %v3819_v7 }
 0x1b5   :  { %v2905_v12 = vsel %vm2885_vm1, %v2544_v35, %v2800_v36 }
 0x1b6   :  { %v3019_v37 = vcombine.low %v2904_v34, %v2905_v12 }
 0x1b8   :  { %v3033_v42 = vrot.slane %v3019_v37, %v3819_v7 }
 0x1ba   :  { %v3034_v45 = vcombine.low %v3026_v40, %v3033_v42 }
 0x1bc   :  { %v2192_v46 = vpop.f32.mrb[20].mxu0  ;;  %v2233_v48 = vpop.f32.mrb[20].mxu1  ;;  %3098 = vst [vmem:[%s4118_s4 + $0x20] sm:$0xff] %v3034_v45 }
 0x1bd   :  { %v2193_v47 = vadd.f32 %v2192_v46, %v391_v41  ;;  %v2194_v49 = vpop.f32.mrb[21].mxu0  ;;  %v4012_v14 = vadd.f32 %v2233_v48, %v399_v31  ;;  %v2235_v32 = vpop.f32.mrb[21].mxu1 }
 0x1be   :  { %v2195_v38 = vadd.f32 %v2194_v49, %v395_v43  ;;  %v2196_v39 = vpop.f32.mrb[22].mxu0  ;;  %v2236_v63 = vadd.f32 %v2235_v32, %v403_v44  ;;  %v2237_v2 = vpop.f32.mrb[22].mxu1 }
 0x1bf   :  { %v2545_v52 = vsel %vm2404_vm0, %v2193_v47, 0.0  ;;  %v2649_v53 = vmul.f32 %v2193_v47, %v2193_v47  ;;  %v2197_v0 = vpop.f32.mrb[23].mxu0  ;;  %v2559_v4 = vsel %vm2404_vm0, %v4012_v14, 0.0  ;;  %v2651_v5 = vmul.f32 %v4012_v14, %v4012_v14  ;;  %v2238_v8 = vpop.f32.mrb[23].mxu1 }
 0x1c0   :  { %v2546_v3 = vrot.slane %v2545_v52, 4  ;;  %v2552_v6 = vsel %vm2404_vm0, %v2195_v38, 0.0  ;;  %v2560_v50 = vrot.slane %v2559_v4, 4  ;;  %v2650_v11 = vmul.f32 %v2195_v38, %v2195_v38 }
 0x1c1   :  { %v2801_v9 = vsel %vm2404_vm0, %v2649_v53, 0.0  ;;  %v2553_v10 = vrot.slane %v2552_v6, 4  ;;  %v2815_v58 = vsel %vm2404_vm0, %v2651_v5, 0.0  ;;  %v3594_v16 = vpack.c.bf16 %v2195_v38, %v2193_v47 }
 0x1c2   :  { %v2547_v13 = vadd.f32 %v2546_v3, %v2545_v52  ;;  %v2802_v51 = vrot.slane %v2801_v9, 4  ;;  %v2561_v17 = vadd.f32 %v2560_v50, %v2559_v4  ;;  %v2816_v18 = vrot.slane %v2815_v58, 4 }
 0x1c3   :  { %v2554_v21 = vadd.f32 %v2553_v10, %v2552_v6  ;;  %v2808_v60 = vsel %vm2404_vm0, %v2650_v11, 0.0  ;;  %v2566_v27 = vsel %vm2404_vm0, %v2236_v63, 0.0  ;;  %v2652_v34 = vmul.f32 %v2236_v63, %v2236_v63 }
 0x1c4   :  { %v2548_v22 = vrot.slane %v2547_v13, 2  ;;  %v2803_v23 = vadd.f32 %v2802_v51, %v2801_v9  ;;  %v2809_v24 = vrot.slane %v2808_v60, 4  ;;  %v2817_v25 = vadd.f32 %v2816_v18, %v2815_v58 }
 0x1c5   :  { %v2555_v26 = vrot.slane %v2554_v21, 2  ;;  %v2567_v33 = vrot.slane %v2566_v27, 4  ;;  %v2562_v20 = vrot.slane %v2561_v17, 2  ;;  %v2822_v41 = vsel %vm2404_vm0, %v2652_v34, 0.0 }
 0x1c6   :  { %v2549_v28 = vadd.f32 %v2548_v22, %v2547_v13  ;;  %v2804_v29 = vrot.slane %v2803_v23, 2  ;;  %v2810_v30 = vadd.f32 %v2809_v24, %v2808_v60  ;;  %v2818_v15 = vrot.slane %v2817_v25, 2 }
 0x1c7   :  { %v2556_v19 = vadd.f32 %v2555_v26, %v2554_v21  ;;  %v2568_v40 = vadd.f32 %v2567_v33, %v2566_v27  ;;  %v2563_v45 = vadd.f32 %v2562_v20, %v2561_v17  ;;  %v3259_v46 = vrot.slane %v3594_v16, %v3819_v7  ;;  %v4034_v17 = vld [vmem:[#allocation4 + $0x18] sm:$0xff] }
 0x1c8   :  { %v2550_v35 = vrot.slane %v2549_v28, 1  ;;  %v2805_v36 = vadd.f32 %v2804_v29, %v2803_v23  ;;  %v2811_v12 = vrot.slane %v2810_v30, 2  ;;  %v2819_v37 = vadd.f32 %v2818_v15, %v2817_v25 }
 0x1c9   :  { %v2557_v31 = vrot.slane %v2556_v19, 1  ;;  %v2569_v44 = vrot.slane %v2568_v40, 2  ;;  %v2823_v47 = vrot.slane %v2822_v41, 4  ;;  %v3595_v32 = vpack.c.bf16 %v2236_v63, %v4012_v14 }
 0x1ca   :  { %v2806_v42 = vrot.slane %v2805_v36, 1  ;;  %v2812_v43 = vadd.f32 %v2811_v12, %v2810_v30  ;;  %v2551_v48 = vadd.f32 %v2550_v35, %v2549_v28  ;;  %v2820_v39 = vrot.slane %v2819_v37, 1 }
 0x1cb   :  { %v2570_v52 = vadd.f32 %v2569_v44, %v2568_v40  ;;  %v2824_v53 = vadd.f32 %v2823_v47, %v2822_v41  ;;  %v2558_v0 = vadd.f32 %v2557_v31, %v2556_v19  ;;  %v3266_v4 = vrot.slane %v3595_v32, %v3819_v7 }
 0x1cc   :  { %v2807_v49 = vadd.f32 %v2806_v42, %v2805_v36  ;;  %v2813_v38 = vrot.slane %v2812_v43, 1  ;;  %v2564_v5 = vrot.slane %v2563_v45, 1  ;;  %v2821_v50 = vadd.f32 %v2820_v39, %v2819_v37 }
 0x1cd   :  { %v2825_v6 = vrot.slane %v2824_v53, 2  ;;  %v3267_v9 = vcombine.low %v3259_v46, %v3266_v4  ;;  %v2571_v11 = vrot.slane %v2570_v52, 1  ;;  %v407_v22 = vrot.slane %v4034_v17, %v3753_v56 }
 0x1ce   :  { %v2906_v2 = vsel %vm2885_vm1, %v2551_v48, %v2807_v49  ;;  %v2814_v3 = vadd.f32 %v2813_v38, %v2812_v43  ;;  %v2565_v14 = vadd.f32 %v2564_v5, %v2563_v45  ;;  %v415_v24 = vrot.slane %v4034_v17, %v3758_v61 }
 0x1cf   :  { %v2826_v13 = vadd.f32 %v2825_v6, %v2824_v53  ;;  %3315 = vst [vmem:[%s4117_s3 + $0x28] sm:$0xff] %v3267_v9  ;;  %v2572_v58 = vadd.f32 %v2571_v11, %v2570_v52  ;;  %v411_v25 = vrot.slane %v4034_v17, %v3761_v62  ;;  %v419_v26 = vrot.slane %v4034_v17, %v3764_v1 }
 0x1d0   :  { %v2907_v8 = vsel %vm2885_vm1, %v2558_v0, %v2814_v3  ;;  %v2908_v51 = vsel %vm2885_vm1, %v2565_v14, %v2821_v50 }
 0x1d1   :  { %v3035_v10 = vcombine.low %v2906_v2, %v2907_v8  ;;  %v2827_v63 = vrot.slane %v2826_v13, 1 }
 0x1d3   :  { %v2828_v16 = vadd.f32 %v2827_v63, %v2826_v13  ;;  %v3043_v21 = vrot.slane %v3035_v10, %v3819_v7 }
 0x1d5   :  { %v2909_v18 = vsel %vm2885_vm1, %v2572_v58, %v2828_v16 }
 0x1d6   :  { %v3036_v60 = vcombine.low %v2908_v51, %v2909_v18 }
 0x1d8   :  { %v3050_v23 = vrot.slane %v3036_v60, %v3819_v7 }
 0x1da   :  { %v3051_v27 = vcombine.low %v3043_v21, %v3050_v23 }
 0x1dc   :  { %v2274_v28 = vpop.f32.mrb[24].mxu0  ;;  %v2315_v30 = vpop.f32.mrb[24].mxu1  ;;  %3099 = vst [vmem:[%s4118_s4 + $0x28] sm:$0xff] %v3051_v27 }
 0x1dd   :  { %v2275_v29 = vadd.f32 %v2274_v28, %v407_v22  ;;  %v2276_v33 = vpop.f32.mrb[25].mxu0  ;;  %v4050_v56 = vadd.f32 %v2315_v30, %v415_v24  ;;  %v2317_v15 = vpop.f32.mrb[25].mxu1 }
 0x1de   :  { %v2277_v20 = vadd.f32 %v2276_v33, %v411_v25  ;;  %v2278_v61 = vpop.f32.mrb[26].mxu0  ;;  %v2318_v34 = vadd.f32 %v2317_v15, %v419_v26  ;;  %v2319_v35 = vpop.f32.mrb[26].mxu1 }
 0x1df   :  { %v2573_v19 = vsel %vm2404_vm0, %v2275_v29, 0.0  ;;  %v2653_v62 = vmul.f32 %v2275_v29, %v2275_v29  ;;  %v2279_v1 = vpop.f32.mrb[27].mxu0  ;;  %v2587_v12 = vsel %vm2404_vm0, %v4050_v56, 0.0  ;;  %v2655_v40 = vmul.f32 %v4050_v56, %v4050_v56  ;;  %v2320_v41 = vpop.f32.mrb[27].mxu1 }
 0x1e0   :  { %v2574_v36 = vrot.slane %v2573_v19, 4  ;;  %v2580_v37 = vsel %vm2404_vm0, %v2277_v20, 0.0  ;;  %v2588_v31 = vrot.slane %v2587_v12, 4  ;;  %v2654_v44 = vmul.f32 %v2277_v20, %v2277_v20 }
 0x1e1   :  { %v2829_v42 = vsel %vm2404_vm0, %v2653_v62, 0.0  ;;  %v2581_v43 = vrot.slane %v2580_v37, 4  ;;  %v2843_v47 = vsel %vm2404_vm0, %v2655_v40, 0.0  ;;  %v3596_v48 = vpack.c.bf16 %v2277_v20, %v2275_v29 }
 0x1e2   :  { %v2575_v45 = vadd.f32 %v2574_v36, %v2573_v19  ;;  %v2830_v46 = vrot.slane %v2829_v42, 4  ;;  %v2589_v49 = vadd.f32 %v2588_v31, %v2587_v12  ;;  %v2844_v38 = vrot.slane %v2843_v47, 4 }
 0x1e3   :  { %v2582_v32 = vadd.f32 %v2581_v43, %v2580_v37  ;;  %v2836_v39 = vsel %vm2404_vm0, %v2654_v44, 0.0  ;;  %v2594_v4 = vsel %vm2404_vm0, %v2318_v34, 0.0  ;;  %v2656_v13 = vmul.f32 %v2318_v34, %v2318_v34 }
 0x1e4   :  { %v2576_v52 = vrot.slane %v2575_v45, 2  ;;  %v2831_v53 = vadd.f32 %v2830_v46, %v2829_v42  ;;  %v2837_v2 = vrot.slane %v2836_v39, 4  ;;  %v2845_v0 = vadd.f32 %v2844_v38, %v2843_v47 }
 0x1e5   :  { %v2583_v3 = vrot.slane %v2582_v32, 2  ;;  %v2595_v9 = vrot.slane %v2594_v4, 4  ;;  %v2590_v50 = vrot.slane %v2589_v49, 2  ;;  %v2850_v18 = vsel %vm2404_vm0, %v2656_v13, 0.0 }
 0x1e6   :  { %v2577_v5 = vadd.f32 %v2576_v52, %v2575_v45  ;;  %v2832_v6 = vrot.slane %v2831_v53, 2  ;;  %v2838_v8 = vadd.f32 %v2837_v2, %v2836_v39  ;;  %v2846_v10 = vrot.slane %v2845_v0, 2 }
 0x1e7   :  { %v2584_v11 = vadd.f32 %v2583_v3, %v2582_v32  ;;  %v2596_v58 = vadd.f32 %v2595_v9, %v2594_v4  ;;  %v2591_v24 = vadd.f32 %v2590_v50, %v2589_v49  ;;  %v3276_v25 = vrot.slane %v3596_v48, %v3819_v7 }
 0x1e8   :  { %v2578_v14 = vrot.slane %v2577_v5, 1  ;;  %v2833_v63 = vadd.f32 %v2832_v6, %v2831_v53  ;;  %v2839_v51 = vrot.slane %v2838_v8, 2  ;;  %v2847_v16 = vadd.f32 %v2846_v10, %v2845_v0 }
 0x1e9   :  { %v2585_v60 = vrot.slane %v2584_v11, 1  ;;  %v2597_v23 = vrot.slane %v2596_v58, 2  ;;  %v2851_v26 = vrot.slane %v2850_v18, 4  ;;  %v3597_v30 = vpack.c.bf16 %v2318_v34, %v4050_v56 }
 0x1ea   :  { %v2834_v21 = vrot.slane %v2833_v63, 1  ;;  %v2840_v22 = vadd.f32 %v2839_v51, %v2838_v8  ;;  %v2579_v27 = vadd.f32 %v2578_v14, %v2577_v5  ;;  %v2848_v33 = vrot.slane %v2847_v16, 1 }
 0x1eb   :  { %v2598_v20 = vadd.f32 %v2597_v23, %v2596_v58  ;;  %v2852_v15 = vadd.f32 %v2851_v26, %v2850_v18  ;;  %v2586_v19 = vadd.f32 %v2585_v60, %v2584_v11  ;;  %v3283_v35 = vrot.slane %v3597_v30, %v3819_v7 }
 0x1ec   :  { %v2835_v28 = vadd.f32 %v2834_v21, %v2833_v63  ;;  %v2841_v29 = vrot.slane %v2840_v22, 1  ;;  %v2592_v1 = vrot.slane %v2591_v24, 1  ;;  %v2849_v37 = vadd.f32 %v2848_v33, %v2847_v16 }
 0x1ed   :  { %v2853_v36 = vrot.slane %v2852_v15, 2  ;;  %v3284_v40 = vcombine.low %v3276_v25, %v3283_v35  ;;  %v2599_v42 = vrot.slane %v2598_v20, 1  ;;  %v423_v49 = vrot.slane %v4034_v17, %v3839_v54 }
 0x1ee   :  { %v2910_v61 = vsel %vm2885_vm1, %v2579_v27, %v2835_v28  ;;  %v2842_v62 = vadd.f32 %v2841_v29, %v2840_v22  ;;  %v2593_v56 = vadd.f32 %v2592_v1, %v2591_v24  ;;  %v431_v32 = vrot.slane %v4034_v17, %v3842_v55 }
 0x1ef   :  { %v2854_v31 = vadd.f32 %v2853_v36, %v2852_v15  ;;  %3316 = vst [vmem:[%s4117_s3 + $0x30] sm:$0xff] %v3284_v40  ;;  %v2600_v44 = vadd.f32 %v2599_v42, %v2598_v20  ;;  %v427_v39 = vrot.slane %v4034_v17, %v3845_v57  ;;  %v435_v52 = vrot.slane %v4034_v17, %v3849_v59 }
 0x1f0   :  { %v2911_v12 = vsel %vm2885_vm1, %v2586_v19, %v2842_v62  ;;  %v2912_v43 = vsel %vm2885_vm1, %v2593_v56, %v2849_v37 }
 0x1f1   :  { %v3052_v41 = vcombine.low %v2910_v61, %v2911_v12  ;;  %v2855_v34 = vrot.slane %v2854_v31, 1 }
 0x1f3   :  { %v2856_v45 = vadd.f32 %v2855_v34, %v2854_v31  ;;  %v3060_v47 = vrot.slane %v3052_v41, %v3819_v7 }
 0x1f5   :  { %v2913_v46 = vsel %vm2885_vm1, %v2600_v44, %v2856_v45 }
 0x1f6   :  { %v3053_v48 = vcombine.low %v2912_v43, %v2913_v46 }
 0x1f8   :  { %v3067_v38 = vrot.slane %v3053_v48, %v3819_v7 }
 0x1fa   :  { %v3068_v53 = vcombine.low %v3060_v47, %v3067_v38 }
 0x1fc   :  { %v2356_v2 = vpop.f32.mrb[28].mxu0  ;;  %v2397_v3 = vpop.f32.mrb[28].mxu1  ;;  %3100 = vst [vmem:[%s4118_s4 + $0x30] sm:$0xff] %v3068_v53 }
 0x1fd   :  { %v2357_v0 = vadd.f32 %v2356_v2, %v423_v49  ;;  %v2358_v4 = vpop.f32.mrb[29].mxu0  ;;  %v4086_v54 = vadd.f32 %v2397_v3, %v431_v32  ;;  %v2399_v6 = vpop.f32.mrb[29].mxu1 }
 0x1fe   :  { %v2359_v5 = vadd.f32 %v2358_v4, %v427_v39  ;;  %v2360_v55 = vpop.f32.mrb[30].mxu0  ;;  %v2400_v9 = vadd.f32 %v2399_v6, %v435_v52  ;;  %v2401_v50 = vpop.f32.mrb[30].mxu1 }
 0x1ff   :  { %v2601_v8 = vsel %vm2404_vm0, %v2357_v0, 0.0  ;;  %v2657_v57 = vmul.f32 %v2357_v0, %v2357_v0  ;;  %v2361_v59 = vpop.f32.mrb[31].mxu0  ;;  %v2615_v10 = vsel %vm2404_vm0, %v4086_v54, 0.0  ;;  %v2659_v11 = vmul.f32 %v4086_v54, %v4086_v54  ;;  %v2402_v14 = vpop.f32.mrb[31].mxu1 }
 0x200   :  { %v2602_v17 = vrot.slane %v2601_v8, 4  ;;  %v2608_v13 = vsel %vm2404_vm0, %v2359_v5, 0.0  ;;  %v2616_v51 = vrot.slane %v2615_v10, 4  ;;  %v2658_v16 = vmul.f32 %v2359_v5, %v2359_v5 }
 0x201   :  { %v2857_v63 = vsel %vm2404_vm0, %v2657_v57, 0.0  ;;  %v2609_v58 = vrot.slane %v2608_v13, 4  ;;  %v2871_v60 = vsel %vm2404_vm0, %v2659_v11, 0.0  ;;  %v3598_v22 = vpack.c.bf16 %v2359_v5, %v2357_v0 }
 0x202   :  { %v2603_v18 = vadd.f32 %v2602_v17, %v2601_v8  ;;  %v2858_v21 = vrot.slane %v2857_v63, 4  ;;  %v2617_v23 = vadd.f32 %v2616_v51, %v2615_v10  ;;  %v2872_v24 = vrot.slane %v2871_v60, 4 }
 0x203   :  { %v2610_v25 = vadd.f32 %v2609_v58, %v2608_v13  ;;  %v2864_v26 = vsel %vm2404_vm0, %v2658_v16, 0.0  ;;  %v2622_v20 = vsel %vm2404_vm0, %v2400_v9, 0.0  ;;  %v2660_v12 = vmul.f32 %v2400_v9, %v2400_v9 }
 0x204   :  { %v2604_v27 = vrot.slane %v2603_v18, 2  ;;  %v2859_v28 = vadd.f32 %v2858_v21, %v2857_v63  ;;  %v2865_v29 = vrot.slane %v2864_v26, 4  ;;  %v2873_v30 = vadd.f32 %v2872_v24, %v2871_v60 }
 0x205   :  { %v2611_v33 = vrot.slane %v2610_v25, 2  ;;  %v2623_v62 = vrot.slane %v2622_v20, 4  ;;  %v2618_v35 = vrot.slane %v2617_v23, 2  ;;  %v2878_v56 = vsel %vm2404_vm0, %v2660_v12, 0.0 }
 0x206   :  { %v2605_v15 = vadd.f32 %v2604_v27, %v2603_v18  ;;  %v2860_v61 = vrot.slane %v2859_v28, 2  ;;  %v2866_v19 = vadd.f32 %v2865_v29, %v2864_v26  ;;  %v2874_v1 = vrot.slane %v2873_v30, 2 }
 0x207   :  { %v2612_v36 = vadd.f32 %v2611_v33, %v2610_v25  ;;  %v2624_v42 = vadd.f32 %v2623_v62, %v2622_v20  ;;  %v2619_v46 = vadd.f32 %v2618_v35, %v2617_v23  ;;  %v3293_v47 = vrot.slane %v3598_v22, %v3819_v7 }
 0x208   :  { %v2606_v40 = vrot.slane %v2605_v15, 1  ;;  %v2861_v37 = vadd.f32 %v2860_v61, %v2859_v28  ;;  %v2867_v41 = vrot.slane %v2866_v19, 2  ;;  %v2875_v31 = vadd.f32 %v2874_v1, %v2873_v30 }
 0x209   :  { %v2613_v43 = vrot.slane %v2612_v36, 1  ;;  %v2625_v45 = vrot.slane %v2624_v42, 2  ;;  %v2879_v48 = vrot.slane %v2878_v56, 4  ;;  %v3599_v39 = vpack.c.bf16 %v2400_v9, %v4086_v54 }
 0x20a   :  { %v2862_v34 = vrot.slane %v2861_v37, 1  ;;  %v2868_v44 = vadd.f32 %v2867_v41, %v2866_v19  ;;  %v2607_v49 = vadd.f32 %v2606_v40, %v2605_v15  ;;  %v2876_v52 = vrot.slane %v2875_v31, 1 }
 0x20b   :  { %v2626_v53 = vadd.f32 %v2625_v45, %v2624_v42  ;;  %v2880_v2 = vadd.f32 %v2879_v48, %v2878_v56  ;;  %v2614_v3 = vadd.f32 %v2613_v43, %v2612_v36  ;;  %v3300_v5 = vrot.slane %v3599_v39, %v3819_v7 }
 0x20c   :  { %v2863_v38 = vadd.f32 %v2862_v34, %v2861_v37  ;;  %v2869_v32 = vrot.slane %v2868_v44, 1  ;;  %v2620_v6 = vrot.slane %v2619_v46, 1  ;;  %v2877_v50 = vadd.f32 %v2876_v52, %v2875_v31 }
 0x20d   :  { %v2881_v55 = vrot.slane %v2880_v2, 2  ;;  %v3301_v57 = vcombine.low %v3293_v47, %v3300_v5  ;;  %v2627_v17 = vrot.slane %v2626_v53, 1 }
 0x20e   :  { %v2914_v0 = vsel %vm2885_vm1, %v2607_v49, %v2863_v38  ;;  %v2870_v4 = vadd.f32 %v2869_v32, %v2868_v44  ;;  %v2621_v54 = vadd.f32 %v2620_v6, %v2619_v46 }
 0x20f   :  { %v2882_v10 = vadd.f32 %v2881_v55, %v2880_v2  ;;  %3317 = vst [vmem:[%s4117_s3 + $0x38] sm:$0xff] %v3301_v57  ;;  %v2628_v13 = vadd.f32 %v2627_v17, %v2626_v53 }
 0x210   :  { %v2915_v8 = vsel %vm2885_vm1, %v2614_v3, %v2870_v4  ;;  %v2916_v11 = vsel %vm2885_vm1, %v2621_v54, %v2877_v50 }
 0x211   :  { %v3069_v59 = vcombine.low %v2914_v0, %v2915_v8  ;;  %v2883_v9 = vrot.slane %v2882_v10, 1 }
 0x213   :  { %v2884_v14 = vadd.f32 %v2883_v9, %v2882_v10  ;;  %v3077_v51 = vrot.slane %v3069_v59, %v3819_v7 }
 0x215   :  { %v2917_v63 = vsel %vm2885_vm1, %v2628_v13, %v2884_v14 }
 0x216   :  { %v3070_v58 = vcombine.low %v2916_v11, %v2917_v63 }
 0x218   :  { %v3084_v16 = vrot.slane %v3070_v58, %v3819_v7 }
 0x21a   :  { %v3085_v18 = vcombine.low %v3077_v51, %v3084_v16 }
 0x21c   :  { %3101 = vst [vmem:[%s4118_s4 + $0x38] sm:$0xff] %v3085_v18 }
 0x21d   :  { %3326 = vsyncpa [#allocation3], 1 }
 0x21e   :  { %3327 = vsyncpa [#allocation5], 1 }

// kernel: decoder_forward.10
= control target key start
LH: loop header
LB: loop body
LE: loop exit
PB: predicated region body
PF: predicated region fallthrough
CT: control target
= control target key end

     0   :  { %s1921_s15 = smov 0   ;;  %s1923_s16 = smov 0   ;;  %s2096_s0 = inlined_call_operand.vmem [shape: bf16[4,64,1024], index: 0, kind: input, shape index: {}]   ;;  %s2097_s1 = inlined_call_operand.vmem [shape: bf16[4,1024,128], index: 1, kind: input, shape index: {}]   ;;  %s2098_s2 = inlined_call_operand.vmem [shape: f32[1,128], index: 2, kind: input, shape index: {}]   ;;  %s2099_s3 = inlined_call_operand.vmem [shape: bf16[4,64,128], index: 3, kind: output, shape index: {0}]   ;;  %s2100_s4 = inlined_call_operand.vmem [shape: f32[4,1,2,128], index: 4, kind: output, shape index: {1}]  }
   0x1   :  { %s1925_s17 = smov 0  }
   0x2 LB: > { %s27_s18 = sadd.s32 1, %s1890_s16  ;;  %p1475_p0 = scmp.ge.s32.totalorder %s1894_s17, 1  ;;  %s1894_s17 = sphi %s1925_s17, %s15_s17   ;;  %s1890_s16 = sphi %s1923_s16, %s2102_s16   ;;  %s1886_s15 = sphi %s1921_s15, %s2101_s15  }
   0x3   : > { %p29_p1 = scmp.ge.s32.totalorder %s27_s18, 4  ;;  %p199_p2 = scmp.lt.s32.totalorder %s1894_s17, 5 }
   0x5   : > { %s2104_s18 = smov (%p29_p1, %s27_s18), 0  ;;  %p200_p3 = pnand %p1475_p0, %p199_p2 }
   0x6   : > { %p247_p4 = scmp.lt.s32.totalorder (!%p200_p3), %s1886_s15, 3  ;;  %vm1285_vm0 = vcmask (!%p200_p3), 1040384  }
   0x7   : > { %203 = sbr.rel (%p200_p3) target bundleno = 346 (0x15a), region = 32 }
   0xe   : > { %s2106_s15 = smov (!%p247_p4, %s1886_s15), 3 }
   0xf   : > { %s1591_s19 = sshll.u32 %s2106_s15, 9  ;;  %s1590_s23 = sshll.u32 %s2106_s15, 8 }
  0x10   : > { %s1945_s22 = scalar_lea.vmem %s2097_s1, %s1591_s19  ;;  %s1981_s26 = scalar_lea.vmem %s2096_s0, %s1590_s23 }
  0x11   : > { %v1808_v0 = vld [vmem:[%s1945_s22 + $0x40] sm:$0xff]   ;;  %v1812_v4 = vld [vmem:[%s1945_s22 + $0x48] sm:$0xff]   ;;  %v1816_v8 = vld [vmem:[%s1945_s22 + $0x50] sm:$0xff]   ;;  %s1592_s29 = sshll.u32 %s2106_s15, 5  ;;  %s1482_s7 = sshll.u32 %s2106_s15, 1 }
  0x12   : > { %v1809_v1 = vld [vmem:[%s1945_s22 + $0xc0] sm:$0xff]   ;;  %1624 = vmatprep.subr.bf16.mxu0 %v1808_v0  ;;  %v1813_v5 = vld [vmem:[%s1945_s22 + $0xc8] sm:$0xff]   ;;  %v1817_v9 = vld [vmem:[%s1945_s22 + $0xd0] sm:$0xff]   ;;  %s2071_s6 = scalar_lea.vmem %s2099_s3, %s1592_s29  ;;  %s278_s10 = scalar_lea.vmem %s2100_s4, %s1482_s7 }
  0x13   : > { %v1810_v2 = vld [vmem:[%s1945_s22] sm:$0xff]   ;;  %1664 = vmatprep.subr.bf16.mxu1 %v1809_v1  ;;  %v1814_v6 = vld [vmem:[%s1945_s22 + $0x8] sm:$0xff]   ;;  %v1818_v10 = vld [vmem:[%s1945_s22 + $0x10] sm:$0xff]  }
  0x14   : > { %v1811_v3 = vld [vmem:[%s1945_s22 + $0x80] sm:$0xff]   ;;  %1625 = vmatpush3.bf16.msra.mxu0 %v1810_v2  ;;  %v1815_v7 = vld [vmem:[%s1945_s22 + $0x88] sm:$0xff]   ;;  %v1819_v11 = vld [vmem:[%s1945_s22 + $0x90] sm:$0xff]  }
  0x15   : > { %1665 = vmatpush3.bf16.msra.mxu1 %v1811_v3  ;;  %1626 = vmatprep.subr.bf16.mxu0 %v1812_v4  ;;  %v1820_v12 = vld [vmem:[%s1945_s22 + $0x58] sm:$0xff]   ;;  %v1824_v16 = vld [vmem:[%s1945_s22 + $0x60] sm:$0xff]   ;;  %v1828_v20 = vld [vmem:[%s1945_s22 + $0x68] sm:$0xff]  }
  0x16   : > { %1666 = vmatprep.subr.bf16.mxu1 %v1813_v5  ;;  %v1821_v13 = vld [vmem:[%s1945_s22 + $0xd8] sm:$0xff]   ;;  %v1825_v17 = vld [vmem:[%s1945_s22 + $0xe0] sm:$0xff]   ;;  %v1829_v21 = vld [vmem:[%s1945_s22 + $0xe8] sm:$0xff]  }
  0x17   : > { %v1822_v14 = vld [vmem:[%s1945_s22 + $0x18] sm:$0xff]   ;;  %v1826_v18 = vld [vmem:[%s1945_s22 + $0x20] sm:$0xff]   ;;  %v1830_v22 = vld [vmem:[%s1945_s22 + $0x28] sm:$0xff]  }
  0x18   : > { %1627 = vmatpush3.bf16.msra.mxu0 %v1814_v6  ;;  %v1823_v15 = vld [vmem:[%s1945_s22 + $0x98] sm:$0xff]   ;;  %v1827_v19 = vld [vmem:[%s1945_s22 + $0xa0] sm:$0xff]   ;;  %v1831_v23 = vld [vmem:[%s1945_s22 + $0xa8] sm:$0xff]  }
  0x19   : > { %1667 = vmatpush3.bf16.msra.mxu1 %v1815_v7  ;;  %1628 = vmatprep.subr.bf16.mxu0 %v1816_v8  ;;  %v1832_v24 = vld [vmem:[%s1945_s22 + $0x70] sm:$0xff]   ;;  %v1836_v28 = vld [vmem:[%s1945_s22 + $0x78] sm:$0xff]   ;;  %v280_v32 = vld [vmem:[%s1981_s26] sm:$0xff] }
  0x1a   : > { %1668 = vmatprep.subr.bf16.mxu1 %v1817_v9  ;;  %v1833_v25 = vld [vmem:[%s1945_s22 + $0xf0] sm:$0xff]   ;;  %v1837_v29 = vld [vmem:[%s1945_s22 + $0xf8] sm:$0xff]   ;;  %v284_v33 = vld [vmem:[%s1981_s26 + $0x20] sm:$0xff] }
  0x1b   : > { %v1834_v26 = vld [vmem:[%s1945_s22 + $0x30] sm:$0xff]   ;;  %v1838_v30 = vld [vmem:[%s1945_s22 + $0x38] sm:$0xff]   ;;  %v281_v34 = vld [vmem:[%s1981_s26 + $0x8] sm:$0xff]  ;;  %v1484_v35 = vcombine.low %v280_v32, %v284_v33  ;;  %v1485_v36 = vcombine.high %v280_v32, %v284_v33 }
  0x1c   : > { %1629 = vmatpush3.bf16.msra.mxu0 %v1818_v10  ;;  %v1835_v27 = vld [vmem:[%s1945_s22 + $0xb0] sm:$0xff]   ;;  %v1839_v31 = vld [vmem:[%s1945_s22 + $0xb8] sm:$0xff]   ;;  %v285_v37 = vld [vmem:[%s1981_s26 + $0x28] sm:$0xff] }
  0x1d   : > { %1669 = vmatpush3.bf16.msra.mxu1 %v1819_v11  ;;  %1630 = vmatprep.subr.bf16.mxu0 %v1820_v12  ;;  %v1486_v38 = vcombine.low %v281_v34, %v285_v37  ;;  %v1487_v39 = vcombine.high %v281_v34, %v285_v37  ;;  %v1840_v40 = vld [vmem:[%s1945_s22 + $0x140] sm:$0xff]   ;;  %v1844_v44 = vld [vmem:[%s1945_s22 + $0x148] sm:$0xff]   ;;  %v1848_v56 = vld [vmem:[%s1945_s22 + $0x150] sm:$0xff]  }
  0x1e   : > { %1670 = vmatprep.subr.bf16.mxu1 %v1821_v13  ;;  %1023 = vmatprep.mubr.bf16.mxu0 %v1485_v36  ;;  %v1841_v41 = vld [vmem:[%s1945_s22 + $0x1c0] sm:$0xff]   ;;  %v1845_v45 = vld [vmem:[%s1945_s22 + $0x1c8] sm:$0xff]   ;;  %v1849_v57 = vld [vmem:[%s1945_s22 + $0x1d0] sm:$0xff]  }
  0x1f   : > { %1088 = vmatprep.mubr.bf16.mxu1 %v1487_v39  ;;  %v1842_v42 = vld [vmem:[%s1945_s22 + $0x100] sm:$0xff]   ;;  %v1846_v46 = vld [vmem:[%s1945_s22 + $0x108] sm:$0xff]   ;;  %v1850_v58 = vld [vmem:[%s1945_s22 + $0x110] sm:$0xff]  }
  0x20   : > { %1631 = vmatpush3.bf16.msra.mxu0 %v1822_v14  ;;  %v1843_v43 = vld [vmem:[%s1945_s22 + $0x180] sm:$0xff]   ;;  %v1847_v47 = vld [vmem:[%s1945_s22 + $0x188] sm:$0xff]   ;;  %v1851_v59 = vld [vmem:[%s1945_s22 + $0x190] sm:$0xff]  }
  0x21   : > { %1671 = vmatpush3.bf16.msra.mxu1 %v1823_v15  ;;  %1632 = vmatprep.subr.bf16.mxu0 %v1824_v16  ;;  %v288_v48 = vld [vmem:[%s1981_s26 + $0x40] sm:$0xff]  ;;  %v289_v51 = vld [vmem:[%s1981_s26 + $0x48] sm:$0xff]  ;;  %v1852_v60 = vld [vmem:[%s1945_s22 + $0x158] sm:$0xff]  }
  0x22   : > { %1672 = vmatprep.subr.bf16.mxu1 %v1825_v17  ;;  %v292_v49 = vld [vmem:[%s1981_s26 + $0x60] sm:$0xff]  ;;  %v293_v52 = vld [vmem:[%s1981_s26 + $0x68] sm:$0xff]  ;;  %v1853_v61 = vld [vmem:[%s1945_s22 + $0x1d8] sm:$0xff]  }
  0x23   : > { %v1493_v50 = vcombine.high %v288_v48, %v292_v49  ;;  %v1492_v53 = vcombine.low %v288_v48, %v292_v49  ;;  %v1495_v54 = vcombine.high %v289_v51, %v293_v52  ;;  %v1494_v55 = vcombine.low %v289_v51, %v293_v52  ;;  %v1854_v62 = vld [vmem:[%s1945_s22 + $0x118] sm:$0xff]   ;;  %v296_v0 = vld [vmem:[%s1981_s26 + $0x80] sm:$0xff]  ;;  %v297_v2 = vld [vmem:[%s1981_s26 + $0x88] sm:$0xff] }
  0x24   : > { %1633 = vmatpush3.bf16.msra.mxu0 %v1826_v18  ;;  %v1855_v63 = vld [vmem:[%s1945_s22 + $0x198] sm:$0xff]   ;;  %v300_v1 = vld [vmem:[%s1981_s26 + $0xa0] sm:$0xff]  ;;  %v301_v3 = vld [vmem:[%s1981_s26 + $0xa8] sm:$0xff] }
  0x25   : > { %1673 = vmatpush3.bf16.msra.mxu1 %v1827_v19  ;;  %1634 = vmatprep.subr.bf16.mxu0 %v1828_v20  ;;  %v1501_v4 = vcombine.high %v296_v0, %v300_v1  ;;  %v1503_v5 = vcombine.high %v297_v2, %v301_v3  ;;  %v1500_v6 = vcombine.low %v296_v0, %v300_v1  ;;  %v1856_v8 = vld [vmem:[%s1945_s22 + $0x160] sm:$0xff]   ;;  %v1860_v12 = vld [vmem:[%s1945_s22 + $0x168] sm:$0xff]   ;;  %v282_v32 = vld [vmem:[%s1981_s26 + $0x10] sm:$0xff] }
  0x26   : > { %1674 = vmatprep.subr.bf16.mxu1 %v1829_v21  ;;  %v1502_v7 = vcombine.low %v297_v2, %v301_v3  ;;  %v1857_v9 = vld [vmem:[%s1945_s22 + $0x1e0] sm:$0xff]   ;;  %v1861_v13 = vld [vmem:[%s1945_s22 + $0x1e8] sm:$0xff]   ;;  %v286_v33 = vld [vmem:[%s1981_s26 + $0x30] sm:$0xff] }
  0x27   : > { %v1858_v10 = vld [vmem:[%s1945_s22 + $0x120] sm:$0xff]   ;;  %v1862_v14 = vld [vmem:[%s1945_s22 + $0x128] sm:$0xff]   ;;  %v1488_v34 = vcombine.low %v282_v32, %v286_v33  ;;  %v283_v36 = vld [vmem:[%s1981_s26 + $0x18] sm:$0xff] }
  0x28   : > { %1635 = vmatpush3.bf16.msra.mxu0 %v1830_v22  ;;  %v1859_v11 = vld [vmem:[%s1945_s22 + $0x1a0] sm:$0xff]   ;;  %v1863_v15 = vld [vmem:[%s1945_s22 + $0x1a8] sm:$0xff]   ;;  %v287_v37 = vld [vmem:[%s1981_s26 + $0x38] sm:$0xff] }
  0x29   : > { %1675 = vmatpush3.bf16.msra.mxu1 %v1831_v23  ;;  %1636 = vmatprep.subr.bf16.mxu0 %v1832_v24  ;;  %v304_v16 = vld [vmem:[%s1981_s26 + $0xc0] sm:$0xff]  ;;  %v305_v18 = vld [vmem:[%s1981_s26 + $0xc8] sm:$0xff]  ;;  %v1864_v24 = vld [vmem:[%s1945_s22 + $0x170] sm:$0xff]   ;;  %v1490_v39 = vcombine.low %v283_v36, %v287_v37 }
  0x2a   : > { %1676 = vmatprep.subr.bf16.mxu1 %v1833_v25  ;;  %v308_v17 = vld [vmem:[%s1981_s26 + $0xe0] sm:$0xff]  ;;  %v309_v20 = vld [vmem:[%s1981_s26 + $0xe8] sm:$0xff]  ;;  %v1865_v25 = vld [vmem:[%s1945_s22 + $0x1f0] sm:$0xff]  }
  0x2b   : > { %v1509_v19 = vcombine.high %v304_v16, %v308_v17  ;;  %v1508_v21 = vcombine.low %v304_v16, %v308_v17  ;;  %v1511_v22 = vcombine.high %v305_v18, %v309_v20  ;;  %v1510_v23 = vcombine.low %v305_v18, %v309_v20  ;;  %v299_v48 = vld [vmem:[%s1981_s26 + $0x98] sm:$0xff]  ;;  %v1483_v2 = vld [vmem:[%s2098_s2] ss:$0 sm:$0xff] }
  0x2c   : > { %1637 = vmatpush3.bf16.msra.mxu0 %v1834_v26  ;;  %v1866_v26 = vld [vmem:[%s1945_s22 + $0x130] sm:$0xff]   ;;  %v303_v49 = vld [vmem:[%s1981_s26 + $0xb8] sm:$0xff] }
  0x2d   : > { %1677 = vmatpush3.bf16.msra.mxu1 %v1835_v27  ;;  %1638 = vmatprep.subr.bf16.mxu0 %v1836_v28  ;;  %v1867_v27 = vld [vmem:[%s1945_s22 + $0x1b0] sm:$0xff]   ;;  %v1868_v28 = vld [vmem:[%s1945_s22 + $0x178] sm:$0xff]  }
  0x2e   : > { %1678 = vmatprep.subr.bf16.mxu1 %v1837_v29  ;;  %v1869_v29 = vld [vmem:[%s1945_s22 + $0x1f8] sm:$0xff]  }
  0x30   : > { %1639 = vmatpush3.bf16.msra.mxu0 %v1838_v30  ;;  %v1870_v30 = vld [vmem:[%s1945_s22 + $0x138] sm:$0xff]  }
  0x31   : > { %1679 = vmatpush3.bf16.msra.mxu1 %v1839_v31  ;;  %1704 = vmatprep.subr.bf16.mxu0 %v1840_v40  ;;  %v1871_v31 = vld [vmem:[%s1945_s22 + $0x1b8] sm:$0xff]   ;;  %v1491_v40 = vcombine.high %v283_v36, %v287_v37 }
  0x32   : > { %1744 = vmatprep.subr.bf16.mxu1 %v1841_v41  ;;  %v294_v41 = vld [vmem:[%s1981_s26 + $0x70] sm:$0xff] }
  0x33   : > { %1024 = vmatmul.mubr.bf16.vlgmr.msra.gmra.mrb[0].mxu0 %v1484_v35  ;;  %v1489_v35 = vcombine.high %v282_v32, %v286_v33 }
  0x34   : > { %1089 = vmatmul.mubr.bf16.vlgmr.msra.gmra.mrb[0].mxu1 %v1486_v38  ;;  %1705 = vmatpush3.bf16.msra.mxu0 %v1842_v42  ;;  %v290_v38 = vld [vmem:[%s1981_s26 + $0x50] sm:$0xff]  ;;  %v291_v42 = vld [vmem:[%s1981_s26 + $0x58] sm:$0xff] }
  0x35   : > { %1745 = vmatpush3.bf16.msra.mxu1 %v1843_v43  ;;  %1706 = vmatprep.subr.bf16.mxu0 %v1844_v44  ;;  %v295_v43 = vld [vmem:[%s1981_s26 + $0x78] sm:$0xff]  ;;  %v1497_v44 = vcombine.high %v290_v38, %v294_v41 }
  0x36   : > { %1746 = vmatprep.subr.bf16.mxu1 %v1845_v45  ;;  %1031 = vmatprep.mubr.bf16.mxu0 %v1493_v50  ;;  %v1499_v45 = vcombine.high %v291_v42, %v295_v43  ;;  %v1496_v50 = vcombine.low %v290_v38, %v294_v41  ;;  %v1498_v51 = vcombine.low %v291_v42, %v295_v43 }
  0x37   : > { %1096 = vmatprep.mubr.bf16.mxu1 %v1495_v54  ;;  %v306_v54 = vld [vmem:[%s1981_s26 + $0xd0] sm:$0xff] }
  0x38   : > { %1707 = vmatpush3.bf16.msra.mxu0 %v1846_v46  ;;  %v298_v46 = vld [vmem:[%s1981_s26 + $0x90] sm:$0xff] }
  0x39   : > { %1747 = vmatpush3.bf16.msra.mxu1 %v1847_v47  ;;  %1708 = vmatprep.subr.bf16.mxu0 %v1848_v56  ;;  %v302_v47 = vld [vmem:[%s1981_s26 + $0xb0] sm:$0xff]  ;;  %v307_v56 = vld [vmem:[%s1981_s26 + $0xd8] sm:$0xff] }
  0x3a   : > { %1748 = vmatprep.subr.bf16.mxu1 %v1849_v57  ;;  %v1505_v52 = vcombine.high %v298_v46, %v302_v47  ;;  %v311_v57 = vld [vmem:[%s1981_s26 + $0xf8] sm:$0xff] }
  0x3b   : > { %1032 = vmatmul.mubr.bf16.gmra.mrb[4].mxu0 %v1492_v53  ;;  %v1507_v53 = vcombine.high %v299_v48, %v303_v49 }
  0x3c   : > { %1097 = vmatmul.mubr.bf16.gmra.mrb[4].mxu1 %v1494_v55  ;;  %1709 = vmatpush3.bf16.msra.mxu0 %v1850_v58  ;;  %v310_v55 = vld [vmem:[%s1981_s26 + $0xf0] sm:$0xff]  ;;  %v1504_v58 = vcombine.low %v298_v46, %v302_v47 }
  0x3d   : > { %1749 = vmatpush3.bf16.msra.mxu1 %v1851_v59  ;;  %1710 = vmatprep.subr.bf16.mxu0 %v1852_v60  ;;  %v1506_v59 = vcombine.low %v299_v48, %v303_v49  ;;  %v1513_v60 = vcombine.high %v306_v54, %v310_v55 }
  0x3e   : > { %1750 = vmatprep.subr.bf16.mxu1 %v1853_v61  ;;  %1039 = vmatprep.mubr.bf16.mxu0 %v1501_v4  ;;  %v1515_v61 = vcombine.high %v307_v56, %v311_v57 }
  0x3f   : > { %1104 = vmatprep.mubr.bf16.mxu1 %v1503_v5 }
  0x40   : > { %1711 = vmatpush3.bf16.msra.mxu0 %v1854_v62  ;;  %v1512_v62 = vcombine.low %v306_v54, %v310_v55 }
  0x41   : > { %1751 = vmatpush3.bf16.msra.mxu1 %v1855_v63  ;;  %1712 = vmatprep.subr.bf16.mxu0 %v1856_v8  ;;  %v1514_v63 = vcombine.low %v307_v56, %v311_v57 }
  0x42   : > { %1752 = vmatprep.subr.bf16.mxu1 %v1857_v9 }
  0x43   : > { %1040 = vmatmul.mubr.bf16.gmra.mrb[8].mxu0 %v1500_v6 }
  0x44   : > { %1105 = vmatmul.mubr.bf16.gmra.mrb[8].mxu1 %v1502_v7  ;;  %1713 = vmatpush3.bf16.msra.mxu0 %v1858_v10 }
  0x45   : > { %1753 = vmatpush3.bf16.msra.mxu1 %v1859_v11  ;;  %1714 = vmatprep.subr.bf16.mxu0 %v1860_v12 }
  0x46   : > { %1754 = vmatprep.subr.bf16.mxu1 %v1861_v13  ;;  %1047 = vmatprep.mubr.bf16.mxu0 %v1509_v19 }
  0x47   : > { %1112 = vmatprep.mubr.bf16.mxu1 %v1511_v22 }
  0x48   : > { %1715 = vmatpush3.bf16.msra.mxu0 %v1862_v14 }
  0x49   : > { %1755 = vmatpush3.bf16.msra.mxu1 %v1863_v15  ;;  %1716 = vmatprep.subr.bf16.mxu0 %v1864_v24 }
  0x4a   : > { %1756 = vmatprep.subr.bf16.mxu1 %v1865_v25 }
  0x4b   : > { %1048 = vmatmul.mubr.bf16.gmra.mrb[12].mxu0 %v1508_v21 }
  0x4c   : > { %1113 = vmatmul.mubr.bf16.gmra.mrb[12].mxu1 %v1510_v23  ;;  %1717 = vmatpush3.bf16.msra.mxu0 %v1866_v26 }
  0x4d   : > { %1757 = vmatpush3.bf16.msra.mxu1 %v1867_v27  ;;  %1718 = vmatprep.subr.bf16.mxu0 %v1868_v28 }
  0x4e   : > { %1758 = vmatprep.subr.bf16.mxu1 %v1869_v29  ;;  %1153 = vmatprep.mubr.bf16.mxu0 %v1489_v35 }
  0x4f   : > { %1218 = vmatprep.mubr.bf16.mxu1 %v1491_v40 }
  0x50   : > { %1719 = vmatpush3.bf16.msra.mxu0 %v1870_v30 }
  0x51   : > { %1759 = vmatpush3.bf16.msra.mxu1 %v1871_v31 }
  0x53   : > { %1154 = vmatmul.mubr.bf16.vlgmr.msra.gmra.mrb[16].mxu0 %v1488_v34 }
  0x54   : > { %1219 = vmatmul.mubr.bf16.vlgmr.msra.gmra.mrb[16].mxu1 %v1490_v39  ;;  %1161 = vmatprep.mubr.bf16.mxu0 %v1497_v44 }
  0x55   : > { %1226 = vmatprep.mubr.bf16.mxu1 %v1499_v45 }
  0x5b   : > { %1162 = vmatmul.mubr.bf16.gmra.mrb[20].mxu0 %v1496_v50 }
  0x5c   : > { %1227 = vmatmul.mubr.bf16.gmra.mrb[20].mxu1 %v1498_v51  ;;  %1169 = vmatprep.mubr.bf16.mxu0 %v1505_v52 }
  0x5d   : > { %1234 = vmatprep.mubr.bf16.mxu1 %v1507_v53 }
  0x63   : > { %1170 = vmatmul.mubr.bf16.gmra.mrb[24].mxu0 %v1504_v58 }
  0x64   : > { %1235 = vmatmul.mubr.bf16.gmra.mrb[24].mxu1 %v1506_v59  ;;  %1177 = vmatprep.mubr.bf16.mxu0 %v1513_v60 }
  0x65   : > { %1242 = vmatprep.mubr.bf16.mxu1 %v1515_v61 }
  0x6b   : > { %1178 = vmatmul.mubr.bf16.gmra.mrb[28].mxu0 %v1512_v62 }
  0x6c   : > { %1243 = vmatmul.mubr.bf16.gmra.mrb[28].mxu1 %v1514_v63 }
 0x106   : > { %v1640_v0 = vpop.f32.mrb[0].mxu0 }
 0x107   : > { %v1680_v1 = vpop.f32.mrb[0].mxu1  ;;  %v1641_v3 = vpop.f32.mrb[1].mxu0 }
 0x108   : > { %v1642_v4 = vadd.f32 %v1641_v3, %v1640_v0  ;;  %v1681_v5 = vpop.f32.mrb[1].mxu1  ;;  %v1643_v6 = vpop.f32.mrb[2].mxu0 }
 0x109   : > { %v1682_v7 = vadd.f32 %v1681_v5, %v1680_v1  ;;  %v1683_v8 = vpop.f32.mrb[2].mxu1  ;;  %v1644_v9 = vpop.f32.mrb[3].mxu0 }
 0x10a   : > { %v1026_v10 = vadd.f32 %v1642_v4, %v1483_v2  ;;  %v1645_v11 = vadd.f32 %v1644_v9, %v1643_v6  ;;  %v1684_v12 = vpop.f32.mrb[3].mxu1 }
 0x10b   : > { %v1685_v13 = vadd.f32 %v1684_v12, %v1683_v8 }
 0x10c   : > { %v1091_v14 = vadd.f32 %v1682_v7, %v1026_v10  ;;  %v1029_v15 = vadd.f32 %v1645_v11, %v1483_v2 }
 0x10e   : > { %v2052_v16 = vadd.f32 %v1685_v13, %v1029_v15  ;;  %v1646_v17 = vpop.f32.mrb[4].mxu0 }
 0x10f   : > { %v1686_v18 = vpop.f32.mrb[4].mxu1  ;;  %v1647_v19 = vpop.f32.mrb[5].mxu0 }
 0x110   : > { %v1648_v20 = vadd.f32 %v1647_v19, %v1646_v17  ;;  %v1687_v21 = vpop.f32.mrb[5].mxu1  ;;  %v1649_v22 = vpop.f32.mrb[6].mxu0 }
 0x111   : > { %v1688_v23 = vadd.f32 %v1687_v21, %v1686_v18  ;;  %v1689_v24 = vpop.f32.mrb[6].mxu1  ;;  %v1650_v25 = vpop.f32.mrb[7].mxu0 }
 0x112   : > { %v1034_v26 = vadd.f32 %v1648_v20, %v1483_v2  ;;  %v1651_v27 = vadd.f32 %v1650_v25, %v1649_v22  ;;  %v1690_v28 = vpop.f32.mrb[7].mxu1 }
 0x113   : > { %v1691_v29 = vadd.f32 %v1690_v28, %v1689_v24 }
 0x114   : > { %v2054_v30 = vadd.f32 %v1688_v23, %v1034_v26  ;;  %v1037_v31 = vadd.f32 %v1651_v27, %v1483_v2 }
 0x116   : > { %v2056_v32 = vadd.f32 %v1691_v29, %v1037_v31  ;;  %v1652_v33 = vpop.f32.mrb[8].mxu0 }
 0x117   : > { %v1692_v34 = vpop.f32.mrb[8].mxu1  ;;  %v1653_v35 = vpop.f32.mrb[9].mxu0 }
 0x118   : > { %v1693_v36 = vpop.f32.mrb[9].mxu1  ;;  %v1654_v37 = vadd.f32 %v1653_v35, %v1652_v33  ;;  %v1655_v39 = vpop.f32.mrb[10].mxu0 }
 0x119   : > { %v1694_v38 = vadd.f32 %v1693_v36, %v1692_v34  ;;  %v1695_v40 = vpop.f32.mrb[10].mxu1  ;;  %v1656_v41 = vpop.f32.mrb[11].mxu0 }
 0x11a   : > { %v1696_v42 = vpop.f32.mrb[11].mxu1  ;;  %v1042_v43 = vadd.f32 %v1654_v37, %v1483_v2  ;;  %v1657_v44 = vadd.f32 %v1656_v41, %v1655_v39 }
 0x11b   : > { %v1697_v45 = vadd.f32 %v1696_v42, %v1695_v40 }
 0x11c   : > { %v2058_v46 = vadd.f32 %v1694_v38, %v1042_v43  ;;  %v1045_v47 = vadd.f32 %v1657_v44, %v1483_v2 }
 0x11e   : > { %v2060_v48 = vadd.f32 %v1697_v45, %v1045_v47  ;;  %v1658_v49 = vpop.f32.mrb[12].mxu0 }
 0x11f   : > { %v1698_v50 = vpop.f32.mrb[12].mxu1  ;;  %v1659_v51 = vpop.f32.mrb[13].mxu0 }
 0x120   : > { %v1660_v52 = vadd.f32 %v1659_v51, %v1658_v49  ;;  %v1699_v53 = vpop.f32.mrb[13].mxu1  ;;  %v1661_v54 = vpop.f32.mrb[14].mxu0 }
 0x121   : > { %v1700_v55 = vadd.f32 %v1699_v53, %v1698_v50  ;;  %v1701_v56 = vpop.f32.mrb[14].mxu1  ;;  %v1662_v57 = vpop.f32.mrb[15].mxu0 }
 0x122   : > { %v1050_v58 = vadd.f32 %v1660_v52, %v1483_v2  ;;  %v1663_v59 = vadd.f32 %v1662_v57, %v1661_v54  ;;  %v1702_v60 = vpop.f32.mrb[15].mxu1 }
 0x123   : > { %v1703_v61 = vadd.f32 %v1702_v60, %v1701_v56 }
 0x124   : > { %v2062_v62 = vadd.f32 %v1700_v55, %v1050_v58  ;;  %v1053_v63 = vadd.f32 %v1663_v59, %v1483_v2 }
 0x126   : > { %v2064_v0 = vadd.f32 %v1703_v61, %v1053_v63  ;;  %v1720_v1 = vpop.f32.mrb[16].mxu0 }
 0x127   : > { %v1760_v3 = vpop.f32.mrb[16].mxu1  ;;  %v1721_v4 = vpop.f32.mrb[17].mxu0 }
 0x128   : > { %v1722_v5 = vadd.f32 %v1721_v4, %v1720_v1  ;;  %v1761_v6 = vpop.f32.mrb[17].mxu1  ;;  %v1723_v7 = vpop.f32.mrb[18].mxu0 }
 0x129   : > { %v1762_v8 = vadd.f32 %v1761_v6, %v1760_v3  ;;  %v1763_v9 = vpop.f32.mrb[18].mxu1  ;;  %v1724_v10 = vpop.f32.mrb[19].mxu0 }
 0x12a   : > { %v1156_v11 = vadd.f32 %v1722_v5, %v1091_v14  ;;  %v1725_v12 = vadd.f32 %v1724_v10, %v1723_v7  ;;  %v1764_v13 = vpop.f32.mrb[19].mxu1 }
 0x12b   : > { %v1765_v15 = vadd.f32 %v1764_v13, %v1763_v9 }
 0x12c   : > { %v1221_v17 = vadd.f32 %v1762_v8, %v1156_v11  ;;  %v1159_v18 = vadd.f32 %v1725_v12, %v2052_v16 }
 0x12e   : > { %v1224_v2 = vadd.f32 %v1765_v15, %v1159_v18  ;;  %v1726_v19 = vpop.f32.mrb[20].mxu0  ;;  %v1264_v20 = vmul.f32 %v1221_v17, %v1221_v17 }
 0x12f   : > { %v1766_v21 = vpop.f32.mrb[20].mxu1  ;;  %v1727_v22 = vpop.f32.mrb[21].mxu0 }
 0x130   : > { %v1251_v23 = vadd.f32 %v1224_v2, %v1221_v17  ;;  %v1265_v14 = vmul.f32 %v1224_v2, %v1224_v2  ;;  %v1604_v24 = vpack.c.bf16 %v1224_v2, %v1221_v17  ;;  %v1728_v25 = vadd.f32 %v1727_v22, %v1726_v19  ;;  %v1767_v26 = vpop.f32.mrb[21].mxu1  ;;  %v1729_v27 = vpop.f32.mrb[22].mxu0 }
 0x131   : > { %v1768_v28 = vadd.f32 %v1767_v26, %v1766_v21  ;;  %v1769_v16 = vpop.f32.mrb[22].mxu1  ;;  %v1730_v29 = vpop.f32.mrb[23].mxu0 }
 0x132   : > { %v1272_v31 = vadd.f32 %v1265_v14, %v1264_v20  ;;  %1605 = vst [vmem:[%s2071_s6] sm:$0xff] %v1604_v24   ;;  %v1164_v33 = vadd.f32 %v1728_v25, %v2054_v30  ;;  %v1731_v34 = vadd.f32 %v1730_v29, %v1729_v27  ;;  %v1770_v35 = vpop.f32.mrb[23].mxu1 }
 0x133   : > { %v1771_v36 = vadd.f32 %v1770_v35, %v1769_v16 }
 0x134   : > { %v1229_v37 = vadd.f32 %v1768_v28, %v1164_v33  ;;  %v1167_v38 = vadd.f32 %v1731_v34, %v2056_v32 }
 0x136   : > { %v1252_v39 = vadd.f32 %v1251_v23, %v1229_v37  ;;  %v1266_v40 = vmul.f32 %v1229_v37, %v1229_v37  ;;  %v1232_v41 = vadd.f32 %v1771_v36, %v1167_v38  ;;  %v1732_v42 = vpop.f32.mrb[24].mxu0 }
 0x137   : > { %v1772_v43 = vpop.f32.mrb[24].mxu1  ;;  %v1733_v44 = vpop.f32.mrb[25].mxu0 }
 0x138   : > { %v1273_v45 = vadd.f32 %v1272_v31, %v1266_v40  ;;  %v1253_v47 = vadd.f32 %v1252_v39, %v1232_v41  ;;  %v1267_v49 = vmul.f32 %v1232_v41, %v1232_v41  ;;  %v1609_v50 = vpack.c.bf16 %v1232_v41, %v1229_v37  ;;  %v1773_v51 = vpop.f32.mrb[25].mxu1  ;;  %v1735_v52 = vpop.f32.mrb[26].mxu0 }
 0x139   : > { %v1734_v30 = vadd.f32 %v1733_v44, %v1732_v42  ;;  %v1774_v53 = vadd.f32 %v1773_v51, %v1772_v43  ;;  %v1775_v54 = vpop.f32.mrb[26].mxu1  ;;  %v1736_v55 = vpop.f32.mrb[27].mxu0 }
 0x13a   : > { %v1274_v56 = vadd.f32 %v1273_v45, %v1267_v49  ;;  %1621 = vst [vmem:[%s2071_s6 + $0x8] sm:$0xff] %v1609_v50   ;;  %v1737_v32 = vadd.f32 %v1736_v55, %v1735_v52  ;;  %v1776_v57 = vpop.f32.mrb[27].mxu1 }
 0x13b   : > { %v1172_v58 = vadd.f32 %v1734_v30, %v2058_v46  ;;  %v1777_v59 = vadd.f32 %v1776_v57, %v1775_v54 }
 0x13c   : > { %v1175_v60 = vadd.f32 %v1737_v32, %v2060_v48 }
 0x13d   : > { %v1237_v61 = vadd.f32 %v1774_v53, %v1172_v58 }
 0x13e   : > { %v1240_v63 = vadd.f32 %v1777_v59, %v1175_v60  ;;  %v1738_v1 = vpop.f32.mrb[28].mxu0 }
 0x13f   : > { %v1254_v3 = vadd.f32 %v1253_v47, %v1237_v61  ;;  %v1268_v4 = vmul.f32 %v1237_v61, %v1237_v61  ;;  %v1778_v5 = vpop.f32.mrb[28].mxu1  ;;  %v1739_v6 = vpop.f32.mrb[29].mxu0 }
 0x140   : > { %v1269_v7 = vmul.f32 %v1240_v63, %v1240_v63  ;;  %v1614_v8 = vpack.c.bf16 %v1240_v63, %v1237_v61  ;;  %v1740_v9 = vadd.f32 %v1739_v6, %v1738_v1  ;;  %v1779_v10 = vpop.f32.mrb[29].mxu1  ;;  %v1741_v11 = vpop.f32.mrb[30].mxu0 }
 0x141   : > { %v1275_v12 = vadd.f32 %v1274_v56, %v1268_v4  ;;  %v1255_v13 = vadd.f32 %v1254_v3, %v1240_v63  ;;  %v1780_v15 = vadd.f32 %v1779_v10, %v1778_v5  ;;  %v1781_v46 = vpop.f32.mrb[30].mxu1  ;;  %v1742_v17 = vpop.f32.mrb[31].mxu0 }
 0x142   : > { %1622 = vst [vmem:[%s2071_s6 + $0x10] sm:$0xff] %v1614_v8   ;;  %v1180_v48 = vadd.f32 %v1740_v9, %v2062_v62  ;;  %v1743_v18 = vadd.f32 %v1742_v17, %v1741_v11  ;;  %v1782_v2 = vpop.f32.mrb[31].mxu1 }
 0x143   : > { %v1276_v19 = vadd.f32 %v1275_v12, %v1269_v7  ;;  %v1783_v20 = vadd.f32 %v1782_v2, %v1781_v46 }
 0x144   : > { %v1245_v21 = vadd.f32 %v1780_v15, %v1180_v48  ;;  %v1183_v22 = vadd.f32 %v1743_v18, %v2064_v0 }
 0x146   : > { %v1256_v23 = vadd.f32 %v1255_v13, %v1245_v21  ;;  %v1270_v14 = vmul.f32 %v1245_v21, %v1245_v21  ;;  %v1248_v24 = vadd.f32 %v1783_v20, %v1183_v22 }
 0x148   : > { %v1277_v25 = vadd.f32 %v1276_v19, %v1270_v14  ;;  %v1257_v26 = vadd.f32 %v1256_v23, %v1248_v24  ;;  %v1271_v27 = vmul.f32 %v1248_v24, %v1248_v24  ;;  %v1619_v28 = vpack.c.bf16 %v1248_v24, %v1245_v21 }
 0x14a   : > { %v1258_v16 = vrot.slane %v1257_v26, 4  ;;  %v1278_v29 = vadd.f32 %v1277_v25, %v1271_v27  ;;  %1623 = vst [vmem:[%s2071_s6 + $0x18] sm:$0xff] %v1619_v28  }
 0x14c   : > { %v1259_v62 = vadd.f32 %v1258_v16, %v1257_v26  ;;  %v1279_v31 = vrot.slane %v1278_v29, 4 }
 0x14e   : > { %v1260_v33 = vrot.slane %v1259_v62, 2  ;;  %v1280_v34 = vadd.f32 %v1279_v31, %v1278_v29 }
 0x150   : > { %v1261_v35 = vadd.f32 %v1260_v33, %v1259_v62  ;;  %v1281_v36 = vrot.slane %v1280_v34, 2 }
 0x152   : > { %v1262_v37 = vrot.slane %v1261_v35, 1  ;;  %v1282_v38 = vadd.f32 %v1281_v36, %v1280_v34 }
 0x154   : > { %v1283_v0 = vrot.slane %v1282_v38, 1  ;;  %v1263_v39 = vadd.f32 %v1262_v37, %v1261_v35 }
 0x156   : > { %v1284_v40 = vadd.f32 %v1283_v0, %v1282_v38 }
 0x158   : > { %v1286_v41 = vsel %vm1285_vm0, %v1263_v39, %v1284_v40 }
 0x159   : > { %1287 = vst [vmem:[%s278_s10] sm:$0x3] %v1286_v41 }
 0x15a PF: > { %s15_s17 = sadd.s32 1, %s1894_s17   ;;  %s2101_s15 = smov %s1890_s16 }
 0x15b   : > { %p12_p5 = scmp.ge.s32.totalorder %s15_s17, 6   ;;  %s2102_s16 = smov %s2104_s18 }
 0x15d   :  { %14 = sbr.rel (!%p12_p5) target bundleno = 2 (0x2), region = 77 }

// kernel: decoder_forward.11
= control target key start
LH: loop header
LB: loop body
LE: loop exit
PB: predicated region body
PF: predicated region fallthrough
CT: control target
= control target key end

     0   :  { %s2359_s15 = smov 0   ;;  %s2361_s16 = smov 0   ;;  %s2559_s0 = inlined_call_operand.vmem [shape: bf16[4,256,512], index: 0, kind: input, shape index: {}]   ;;  %s2560_s1 = inlined_call_operand.vmem [shape: bf16[4,512,128], index: 1, kind: input, shape index: {}]   ;;  %s2561_s2 = inlined_call_operand.vmem [shape: f32[1,128], index: 2, kind: input, shape index: {}]   ;;  %s2562_s3 = inlined_call_operand.vmem [shape: bf16[4,256,128], index: 3, kind: output, shape index: {0}]   ;;  %s2563_s4 = inlined_call_operand.vmem [shape: f32[4,1,2,128], index: 4, kind: output, shape index: {1}]  }
   0x1   :  { %s2363_s17 = smov 0  }
   0x2 LB: > { %s27_s18 = sadd.s32 1, %s2328_s16  ;;  %p1665_p0 = scmp.ge.s32.totalorder %s2332_s17, 1  ;;  %s2332_s17 = sphi %s2363_s17, %s15_s17   ;;  %s2328_s16 = sphi %s2361_s16, %s2565_s16   ;;  %s2324_s15 = sphi %s2359_s15, %s2564_s15  }
   0x3   : > { %p29_p1 = scmp.ge.s32.totalorder %s27_s18, 4  ;;  %p199_p2 = scmp.lt.s32.totalorder %s2332_s17, 5 }
   0x5   : > { %s2567_s18 = smov (%p29_p1, %s27_s18), 0  ;;  %p200_p3 = pnand %p1665_p0, %p199_p2 }
   0x6   : > { %p247_p4 = scmp.lt.s32.totalorder (!%p200_p3), %s2324_s15, 3  ;;  %vm1355_vm0 = vcmask (!%p200_p3), 1040384  }
   0x7   : > { %203 = sbr.rel (%p200_p3) target bundleno = 410 (0x19a), region = 32 }
   0xe   : > { %s2569_s15 = smov (!%p247_p4, %s2324_s15), 3 }
   0xf   : > { %s1805_s19 = sshll.u32 %s2569_s15, 8  ;;  %s1804_s23 = sshll.u32 %s2569_s15, 9 }
  0x10   : > { %s2383_s22 = scalar_lea.vmem %s2560_s1, %s1805_s19  ;;  %s2419_s26 = scalar_lea.vmem %s2559_s0, %s1804_s23 }
  0x11   : > { %v2182_v0 = vld [vmem:[%s2383_s22 + $0x40] sm:$0xff]   ;;  %v2186_v4 = vld [vmem:[%s2383_s22 + $0x48] sm:$0xff]   ;;  %v2190_v8 = vld [vmem:[%s2383_s22 + $0x50] sm:$0xff]   ;;  %s1806_s29 = sshll.u32 %s2569_s15, 7  ;;  %s1672_s7 = sshll.u32 %s2569_s15, 1 }
  0x12   : > { %v2183_v1 = vld [vmem:[%s2383_s22 + $0xc0] sm:$0xff]   ;;  %1934 = vmatprep.subr.bf16.mxu0 %v2182_v0  ;;  %v2187_v5 = vld [vmem:[%s2383_s22 + $0xc8] sm:$0xff]   ;;  %v2191_v9 = vld [vmem:[%s2383_s22 + $0xd0] sm:$0xff]   ;;  %s2498_s6 = scalar_lea.vmem %s2562_s3, %s1806_s29  ;;  %s278_s10 = scalar_lea.vmem %s2563_s4, %s1672_s7 }
  0x13   : > { %v2184_v2 = vld [vmem:[%s2383_s22] sm:$0xff]   ;;  %2046 = vmatprep.subr.bf16.mxu1 %v2183_v1  ;;  %v2188_v6 = vld [vmem:[%s2383_s22 + $0x8] sm:$0xff]   ;;  %v2192_v10 = vld [vmem:[%s2383_s22 + $0x10] sm:$0xff]  }
  0x14   : > { %v2185_v3 = vld [vmem:[%s2383_s22 + $0x80] sm:$0xff]   ;;  %1935 = vmatpush3.bf16.msra.mxu0 %v2184_v2  ;;  %v2189_v7 = vld [vmem:[%s2383_s22 + $0x88] sm:$0xff]   ;;  %v2193_v11 = vld [vmem:[%s2383_s22 + $0x90] sm:$0xff]  }
  0x15   : > { %2047 = vmatpush3.bf16.msra.mxu1 %v2185_v3  ;;  %1936 = vmatprep.subr.bf16.mxu0 %v2186_v4  ;;  %v2194_v12 = vld [vmem:[%s2383_s22 + $0x58] sm:$0xff]   ;;  %v2198_v16 = vld [vmem:[%s2383_s22 + $0x60] sm:$0xff]   ;;  %v2202_v20 = vld [vmem:[%s2383_s22 + $0x68] sm:$0xff]  }
  0x16   : > { %2048 = vmatprep.subr.bf16.mxu1 %v2187_v5  ;;  %v2195_v13 = vld [vmem:[%s2383_s22 + $0xd8] sm:$0xff]   ;;  %v2199_v17 = vld [vmem:[%s2383_s22 + $0xe0] sm:$0xff]   ;;  %v2203_v21 = vld [vmem:[%s2383_s22 + $0xe8] sm:$0xff]  }
  0x17   : > { %v2196_v14 = vld [vmem:[%s2383_s22 + $0x18] sm:$0xff]   ;;  %v2200_v18 = vld [vmem:[%s2383_s22 + $0x20] sm:$0xff]   ;;  %v2204_v22 = vld [vmem:[%s2383_s22 + $0x28] sm:$0xff]  }
  0x18   : > { %1937 = vmatpush3.bf16.msra.mxu0 %v2188_v6  ;;  %v2197_v15 = vld [vmem:[%s2383_s22 + $0x98] sm:$0xff]   ;;  %v2201_v19 = vld [vmem:[%s2383_s22 + $0xa0] sm:$0xff]   ;;  %v2205_v23 = vld [vmem:[%s2383_s22 + $0xa8] sm:$0xff]  }
  0x19   : > { %2049 = vmatpush3.bf16.msra.mxu1 %v2189_v7  ;;  %1938 = vmatprep.subr.bf16.mxu0 %v2190_v8  ;;  %v2206_v24 = vld [vmem:[%s2383_s22 + $0x70] sm:$0xff]   ;;  %v2210_v28 = vld [vmem:[%s2383_s22 + $0x78] sm:$0xff]  }
  0x1a   : > { %2050 = vmatprep.subr.bf16.mxu1 %v2191_v9  ;;  %v2207_v25 = vld [vmem:[%s2383_s22 + $0xf0] sm:$0xff]   ;;  %v2211_v29 = vld [vmem:[%s2383_s22 + $0xf8] sm:$0xff]  }
  0x1b   : > { %v2208_v26 = vld [vmem:[%s2383_s22 + $0x30] sm:$0xff]   ;;  %v2212_v30 = vld [vmem:[%s2383_s22 + $0x38] sm:$0xff]  }
  0x1c   : > { %1939 = vmatpush3.bf16.msra.mxu0 %v2192_v10  ;;  %v2209_v27 = vld [vmem:[%s2383_s22 + $0xb0] sm:$0xff]   ;;  %v2213_v31 = vld [vmem:[%s2383_s22 + $0xb8] sm:$0xff]  }
  0x1d   : > { %2051 = vmatpush3.bf16.msra.mxu1 %v2193_v11  ;;  %1940 = vmatprep.subr.bf16.mxu0 %v2194_v12  ;;  %v2214_v32 = vld [vmem:[%s2419_s26] ss:$16 sps:$4 sm:$0xff]   ;;  %v2216_v33 = vld [vmem:[%s2419_s26 + $0x4] ss:$16 sps:$4 sm:$0xff]   ;;  %v2217_v34 = vld [vmem:[%s2419_s26 + $0x8] ss:$16 sps:$4 sm:$0xff]  }
  0x1e   : > { %2052 = vmatprep.subr.bf16.mxu1 %v2195_v13  ;;  %v2219_v35 = vld [vmem:[%s2419_s26 + $0xc] ss:$16 sps:$4 sm:$0xff]   ;;  %959 = vmatprep.mubr.bf16.mxu0 %v2216_v33  ;;  %v2220_v36 = vld [vmem:[%s2419_s26 + $0x24] ss:$16 sps:$4 sm:$0xff]   ;;  %v2224_v38 = vld [vmem:[%s2419_s26 + $0x20] ss:$16 sps:$4 sm:$0xff]  }
  0x1f   : > { %1120 = vmatprep.mubr.bf16.mxu1 %v2219_v35  ;;  %v2222_v37 = vld [vmem:[%s2419_s26 + $0x2c] ss:$16 sps:$4 sm:$0xff]   ;;  %v2225_v39 = vld [vmem:[%s2419_s26 + $0x28] ss:$16 sps:$4 sm:$0xff]   ;;  %v2226_v40 = vld [vmem:[%s2419_s26 + $0x44] ss:$16 sps:$4 sm:$0xff]  }
  0x20   : > { %1941 = vmatpush3.bf16.msra.mxu0 %v2196_v14  ;;  %v2228_v41 = vld [vmem:[%s2419_s26 + $0x4c] ss:$16 sps:$4 sm:$0xff]   ;;  %v2230_v42 = vld [vmem:[%s2419_s26 + $0x40] ss:$16 sps:$4 sm:$0xff]   ;;  %v2231_v43 = vld [vmem:[%s2419_s26 + $0x48] ss:$16 sps:$4 sm:$0xff]  }
  0x21   : > { %2053 = vmatpush3.bf16.msra.mxu1 %v2197_v15  ;;  %1942 = vmatprep.subr.bf16.mxu0 %v2198_v16  ;;  %v2232_v44 = vld [vmem:[%s2419_s26 + $0x64] ss:$16 sps:$4 sm:$0xff]   ;;  %v2234_v45 = vld [vmem:[%s2419_s26 + $0x6c] ss:$16 sps:$4 sm:$0xff]   ;;  %v2236_v46 = vld [vmem:[%s2419_s26 + $0x60] ss:$16 sps:$4 sm:$0xff]  }
  0x22   : > { %2054 = vmatprep.subr.bf16.mxu1 %v2199_v17  ;;  %v2237_v47 = vld [vmem:[%s2419_s26 + $0x68] ss:$16 sps:$4 sm:$0xff]   ;;  %v2238_v48 = vld [vmem:[%s2419_s26 + $0x84] ss:$16 sps:$4 sm:$0xff]   ;;  %v2240_v49 = vld [vmem:[%s2419_s26 + $0x8c] ss:$16 sps:$4 sm:$0xff]  }
  0x23   : > { %v2242_v50 = vld [vmem:[%s2419_s26 + $0x80] ss:$16 sps:$4 sm:$0xff]   ;;  %v2243_v51 = vld [vmem:[%s2419_s26 + $0x88] ss:$16 sps:$4 sm:$0xff]   ;;  %v2244_v52 = vld [vmem:[%s2419_s26 + $0xa4] ss:$16 sps:$4 sm:$0xff]  }
  0x24   : > { %1943 = vmatpush3.bf16.msra.mxu0 %v2200_v18  ;;  %v2246_v53 = vld [vmem:[%s2419_s26 + $0xac] ss:$16 sps:$4 sm:$0xff]   ;;  %v2248_v54 = vld [vmem:[%s2419_s26 + $0xa0] ss:$16 sps:$4 sm:$0xff]   ;;  %v2249_v55 = vld [vmem:[%s2419_s26 + $0xa8] ss:$16 sps:$4 sm:$0xff]  }
  0x25   : > { %2055 = vmatpush3.bf16.msra.mxu1 %v2201_v19  ;;  %1944 = vmatprep.subr.bf16.mxu0 %v2202_v20  ;;  %v2250_v56 = vld [vmem:[%s2419_s26 + $0xc4] ss:$16 sps:$4 sm:$0xff]   ;;  %v2252_v57 = vld [vmem:[%s2419_s26 + $0xcc] ss:$16 sps:$4 sm:$0xff]   ;;  %v2254_v58 = vld [vmem:[%s2419_s26 + $0xc0] ss:$16 sps:$4 sm:$0xff]  }
  0x26   : > { %2056 = vmatprep.subr.bf16.mxu1 %v2203_v21  ;;  %v2255_v59 = vld [vmem:[%s2419_s26 + $0xc8] ss:$16 sps:$4 sm:$0xff]   ;;  %v2256_v60 = vld [vmem:[%s2419_s26 + $0xe4] ss:$16 sps:$4 sm:$0xff]   ;;  %v2258_v61 = vld [vmem:[%s2419_s26 + $0xec] ss:$16 sps:$4 sm:$0xff]  }
  0x27   : > { %v2260_v62 = vld [vmem:[%s2419_s26 + $0xe0] ss:$16 sps:$4 sm:$0xff]   ;;  %v2261_v63 = vld [vmem:[%s2419_s26 + $0xe8] ss:$16 sps:$4 sm:$0xff]   ;;  %v2262_v0 = vld [vmem:[%s2419_s26 + $0x104] ss:$16 sps:$4 sm:$0xff]  }
  0x28   : > { %1945 = vmatpush3.bf16.msra.mxu0 %v2204_v22  ;;  %v2264_v1 = vld [vmem:[%s2419_s26 + $0x10c] ss:$16 sps:$4 sm:$0xff]   ;;  %v2266_v2 = vld [vmem:[%s2419_s26 + $0x100] ss:$16 sps:$4 sm:$0xff]   ;;  %v2267_v3 = vld [vmem:[%s2419_s26 + $0x108] ss:$16 sps:$4 sm:$0xff]  }
  0x29   : > { %2057 = vmatpush3.bf16.msra.mxu1 %v2205_v23  ;;  %1946 = vmatprep.subr.bf16.mxu0 %v2206_v24  ;;  %v2268_v4 = vld [vmem:[%s2419_s26 + $0x124] ss:$16 sps:$4 sm:$0xff]   ;;  %v2270_v5 = vld [vmem:[%s2419_s26 + $0x12c] ss:$16 sps:$4 sm:$0xff]   ;;  %v2272_v6 = vld [vmem:[%s2419_s26 + $0x120] ss:$16 sps:$4 sm:$0xff]  }
  0x2a   : > { %2058 = vmatprep.subr.bf16.mxu1 %v2207_v25  ;;  %v2273_v7 = vld [vmem:[%s2419_s26 + $0x128] ss:$16 sps:$4 sm:$0xff]   ;;  %v2274_v8 = vld [vmem:[%s2419_s26 + $0x144] ss:$16 sps:$4 sm:$0xff]   ;;  %v2276_v9 = vld [vmem:[%s2419_s26 + $0x14c] ss:$16 sps:$4 sm:$0xff]  }
  0x2b   : > { %v2278_v10 = vld [vmem:[%s2419_s26 + $0x140] ss:$16 sps:$4 sm:$0xff]   ;;  %v2279_v11 = vld [vmem:[%s2419_s26 + $0x148] ss:$16 sps:$4 sm:$0xff]   ;;  %v2280_v12 = vld [vmem:[%s2419_s26 + $0x164] ss:$16 sps:$4 sm:$0xff]  }
  0x2c   : > { %1947 = vmatpush3.bf16.msra.mxu0 %v2208_v26  ;;  %v2282_v13 = vld [vmem:[%s2419_s26 + $0x16c] ss:$16 sps:$4 sm:$0xff]   ;;  %v2284_v14 = vld [vmem:[%s2419_s26 + $0x160] ss:$16 sps:$4 sm:$0xff]   ;;  %v2285_v15 = vld [vmem:[%s2419_s26 + $0x168] ss:$16 sps:$4 sm:$0xff]  }
  0x2d   : > { %2059 = vmatpush3.bf16.msra.mxu1 %v2209_v27  ;;  %1948 = vmatprep.subr.bf16.mxu0 %v2210_v28  ;;  %v2286_v16 = vld [vmem:[%s2419_s26 + $0x184] ss:$16 sps:$4 sm:$0xff]   ;;  %v2288_v17 = vld [vmem:[%s2419_s26 + $0x18c] ss:$16 sps:$4 sm:$0xff]   ;;  %v2290_v18 = vld [vmem:[%s2419_s26 + $0x180] ss:$16 sps:$4 sm:$0xff]  }
  0x2e   : > { %2060 = vmatprep.subr.bf16.mxu1 %v2211_v29  ;;  %v2291_v19 = vld [vmem:[%s2419_s26 + $0x188] ss:$16 sps:$4 sm:$0xff]   ;;  %v2292_v20 = vld [vmem:[%s2419_s26 + $0x1a4] ss:$16 sps:$4 sm:$0xff]   ;;  %v2294_v21 = vld [vmem:[%s2419_s26 + $0x1ac] ss:$16 sps:$4 sm:$0xff]  }
  0x2f   : > { %v2296_v22 = vld [vmem:[%s2419_s26 + $0x1a0] ss:$16 sps:$4 sm:$0xff]   ;;  %v2297_v23 = vld [vmem:[%s2419_s26 + $0x1a8] ss:$16 sps:$4 sm:$0xff]   ;;  %v2298_v24 = vld [vmem:[%s2419_s26 + $0x1c4] ss:$16 sps:$4 sm:$0xff]  }
  0x30   : > { %1949 = vmatpush3.bf16.msra.mxu0 %v2212_v30  ;;  %v2300_v25 = vld [vmem:[%s2419_s26 + $0x1cc] ss:$16 sps:$4 sm:$0xff]   ;;  %v2302_v26 = vld [vmem:[%s2419_s26 + $0x1c0] ss:$16 sps:$4 sm:$0xff]   ;;  %v2303_v27 = vld [vmem:[%s2419_s26 + $0x1c8] ss:$16 sps:$4 sm:$0xff]  }
  0x31   : > { %2061 = vmatpush3.bf16.msra.mxu1 %v2213_v31  ;;  %v2304_v28 = vld [vmem:[%s2419_s26 + $0x1e4] ss:$16 sps:$4 sm:$0xff]   ;;  %v2306_v29 = vld [vmem:[%s2419_s26 + $0x1ec] ss:$16 sps:$4 sm:$0xff]   ;;  %v2308_v30 = vld [vmem:[%s2419_s26 + $0x1e0] ss:$16 sps:$4 sm:$0xff]  }
  0x32   : > { %v2309_v31 = vld [vmem:[%s2419_s26 + $0x1e8] ss:$16 sps:$4 sm:$0xff]  }
  0x33   : > { %960 = vmatmul.mubr.bf16.vlgmr.msra.gmra.mrb[0].mxu0 %v2214_v32 }
  0x34   : > { %1121 = vmatmul.mubr.bf16.vlgmr.msra.gmra.mrb[0].mxu1 %v2217_v34  ;;  %967 = vmatprep.mubr.bf16.mxu0 %v2220_v36  ;;  %v2490_v34 = vld [vmem:[%s2561_s2] ss:$0 sm:$0xff] }
  0x35   : > { %1128 = vmatprep.mubr.bf16.mxu1 %v2222_v37 }
  0x3b   : > { %968 = vmatmul.mubr.bf16.gmra.mrb[4].mxu0 %v2224_v38 }
  0x3c   : > { %1129 = vmatmul.mubr.bf16.gmra.mrb[4].mxu1 %v2225_v39  ;;  %975 = vmatprep.mubr.bf16.mxu0 %v2226_v40 }
  0x3d   : > { %1136 = vmatprep.mubr.bf16.mxu1 %v2228_v41 }
  0x43   : > { %976 = vmatmul.mubr.bf16.gmra.mrb[8].mxu0 %v2230_v42 }
  0x44   : > { %1137 = vmatmul.mubr.bf16.gmra.mrb[8].mxu1 %v2231_v43  ;;  %983 = vmatprep.mubr.bf16.mxu0 %v2232_v44 }
  0x45   : > { %1144 = vmatprep.mubr.bf16.mxu1 %v2234_v45 }
  0x4b   : > { %984 = vmatmul.mubr.bf16.gmra.mrb[12].mxu0 %v2236_v46 }
  0x4c   : > { %1145 = vmatmul.mubr.bf16.gmra.mrb[12].mxu1 %v2237_v47  ;;  %991 = vmatprep.mubr.bf16.mxu0 %v2238_v48 }
  0x4d   : > { %1152 = vmatprep.mubr.bf16.mxu1 %v2240_v49 }
  0x53   : > { %992 = vmatmul.mubr.bf16.gmra.mrb[16].mxu0 %v2242_v50 }
  0x54   : > { %1153 = vmatmul.mubr.bf16.gmra.mrb[16].mxu1 %v2243_v51  ;;  %999 = vmatprep.mubr.bf16.mxu0 %v2244_v52 }
  0x55   : > { %1160 = vmatprep.mubr.bf16.mxu1 %v2246_v53 }
  0x5b   : > { %1000 = vmatmul.mubr.bf16.gmra.mrb[20].mxu0 %v2248_v54 }
  0x5c   : > { %1161 = vmatmul.mubr.bf16.gmra.mrb[20].mxu1 %v2249_v55  ;;  %1007 = vmatprep.mubr.bf16.mxu0 %v2250_v56 }
  0x5d   : > { %1168 = vmatprep.mubr.bf16.mxu1 %v2252_v57 }
  0x63   : > { %1008 = vmatmul.mubr.bf16.gmra.mrb[24].mxu0 %v2254_v58 }
  0x64   : > { %1169 = vmatmul.mubr.bf16.gmra.mrb[24].mxu1 %v2255_v59  ;;  %1015 = vmatprep.mubr.bf16.mxu0 %v2256_v60 }
  0x65   : > { %1176 = vmatprep.mubr.bf16.mxu1 %v2258_v61 }
  0x6b   : > { %1016 = vmatmul.mubr.bf16.gmra.mrb[28].mxu0 %v2260_v62 }
  0x6c   : > { %1177 = vmatmul.mubr.bf16.gmra.mrb[28].mxu1 %v2261_v63  ;;  %1023 = vmatprep.mubr.bf16.mxu0 %v2262_v0 }
  0x6d   : > { %1184 = vmatprep.mubr.bf16.mxu1 %v2264_v1 }
  0x73   : > { %1024 = vmatmul.mubr.bf16.gmra.mrb[32].mxu0 %v2266_v2 }
  0x74   : > { %1185 = vmatmul.mubr.bf16.gmra.mrb[32].mxu1 %v2267_v3  ;;  %1031 = vmatprep.mubr.bf16.mxu0 %v2268_v4 }
  0x75   : > { %1192 = vmatprep.mubr.bf16.mxu1 %v2270_v5 }
  0x7b   : > { %1032 = vmatmul.mubr.bf16.gmra.mrb[36].mxu0 %v2272_v6 }
  0x7c   : > { %1193 = vmatmul.mubr.bf16.gmra.mrb[36].mxu1 %v2273_v7  ;;  %1039 = vmatprep.mubr.bf16.mxu0 %v2274_v8 }
  0x7d   : > { %1200 = vmatprep.mubr.bf16.mxu1 %v2276_v9 }
  0x83   : > { %1040 = vmatmul.mubr.bf16.gmra.mrb[40].mxu0 %v2278_v10 }
  0x84   : > { %1201 = vmatmul.mubr.bf16.gmra.mrb[40].mxu1 %v2279_v11  ;;  %1047 = vmatprep.mubr.bf16.mxu0 %v2280_v12 }
  0x85   : > { %1208 = vmatprep.mubr.bf16.mxu1 %v2282_v13 }
  0x8b   : > { %1048 = vmatmul.mubr.bf16.gmra.mrb[44].mxu0 %v2284_v14 }
  0x8c   : > { %1209 = vmatmul.mubr.bf16.gmra.mrb[44].mxu1 %v2285_v15  ;;  %1055 = vmatprep.mubr.bf16.mxu0 %v2286_v16 }
  0x8d   : > { %1216 = vmatprep.mubr.bf16.mxu1 %v2288_v17 }
  0x93   : > { %1056 = vmatmul.mubr.bf16.gmra.mrb[48].mxu0 %v2290_v18 }
  0x94   : > { %1217 = vmatmul.mubr.bf16.gmra.mrb[48].mxu1 %v2291_v19  ;;  %1063 = vmatprep.mubr.bf16.mxu0 %v2292_v20 }
  0x95   : > { %1224 = vmatprep.mubr.bf16.mxu1 %v2294_v21 }
  0x9b   : > { %1064 = vmatmul.mubr.bf16.gmra.mrb[52].mxu0 %v2296_v22 }
  0x9c   : > { %1225 = vmatmul.mubr.bf16.gmra.mrb[52].mxu1 %v2297_v23  ;;  %1071 = vmatprep.mubr.bf16.mxu0 %v2298_v24 }
  0x9d   : > { %1232 = vmatprep.mubr.bf16.mxu1 %v2300_v25 }
  0xa3   : > { %1072 = vmatmul.mubr.bf16.gmra.mrb[56].mxu0 %v2302_v26 }
  0xa4   : > { %1233 = vmatmul.mubr.bf16.gmra.mrb[56].mxu1 %v2303_v27  ;;  %1079 = vmatprep.mubr.bf16.mxu0 %v2304_v28 }
  0xa5   : > { %1240 = vmatprep.mubr.bf16.mxu1 %v2306_v29 }
  0xab   : > { %1080 = vmatmul.mubr.bf16.gmra.mrb[60].mxu0 %v2308_v30 }
  0xac   : > { %1241 = vmatmul.mubr.bf16.gmra.mrb[60].mxu1 %v2309_v31 }
 0x106   : > { %v1950_v32 = vpop.f32.mrb[0].mxu0 }
 0x107   : > { %v2062_v33 = vpop.f32.mrb[0].mxu1  ;;  %v1951_v35 = vpop.f32.mrb[1].mxu0 }
 0x108   : > { %v1952_v36 = vadd.f32 %v1951_v35, %v1950_v32  ;;  %v2063_v37 = vpop.f32.mrb[1].mxu1  ;;  %v1953_v38 = vpop.f32.mrb[2].mxu0 }
 0x109   : > { %v2064_v39 = vadd.f32 %v2063_v37, %v2062_v33  ;;  %v2065_v40 = vpop.f32.mrb[2].mxu1  ;;  %v1954_v41 = vpop.f32.mrb[3].mxu0 }
 0x10a   : > { %v962_v42 = vadd.f32 %v1952_v36, %v2490_v34  ;;  %v1955_v43 = vadd.f32 %v1954_v41, %v1953_v38  ;;  %v2066_v44 = vpop.f32.mrb[3].mxu1 }
 0x10b   : > { %v2067_v45 = vadd.f32 %v2066_v44, %v2065_v40 }
 0x10c   : > { %v1123_v46 = vadd.f32 %v2064_v39, %v962_v42  ;;  %v965_v47 = vadd.f32 %v1955_v43, %v2490_v34 }
 0x10e   : > { %v1126_v48 = vadd.f32 %v2067_v45, %v965_v47  ;;  %v1956_v49 = vpop.f32.mrb[4].mxu0  ;;  %v1286_v50 = vmul.f32 %v1123_v46, %v1123_v46 }
 0x10f   : > { %v2068_v51 = vpop.f32.mrb[4].mxu1  ;;  %v1957_v52 = vpop.f32.mrb[5].mxu0 }
 0x110   : > { %v1249_v53 = vadd.f32 %v1126_v48, %v1123_v46  ;;  %v1287_v54 = vmul.f32 %v1126_v48, %v1126_v48  ;;  %v1842_v55 = vpack.c.bf16 %v1126_v48, %v1123_v46  ;;  %v1958_v56 = vadd.f32 %v1957_v52, %v1956_v49  ;;  %v2069_v57 = vpop.f32.mrb[5].mxu1  ;;  %v1959_v58 = vpop.f32.mrb[6].mxu0 }
 0x111   : > { %v2070_v59 = vadd.f32 %v2069_v57, %v2068_v51  ;;  %v2071_v60 = vpop.f32.mrb[6].mxu1  ;;  %v1960_v61 = vpop.f32.mrb[7].mxu0 }
 0x112   : > { %v1318_v62 = vadd.f32 %v1287_v54, %v1286_v50  ;;  %1843 = vst [vmem:[%s2498_s6] sm:$0xff] %v1842_v55   ;;  %v970_v63 = vadd.f32 %v1958_v56, %v2490_v34  ;;  %v1961_v0 = vadd.f32 %v1960_v61, %v1959_v58  ;;  %v2072_v1 = vpop.f32.mrb[7].mxu1 }
 0x113   : > { %v2073_v2 = vadd.f32 %v2072_v1, %v2071_v60 }
 0x114   : > { %v1131_v3 = vadd.f32 %v2070_v59, %v970_v63  ;;  %v973_v4 = vadd.f32 %v1961_v0, %v2490_v34 }
 0x116   : > { %v1250_v5 = vadd.f32 %v1249_v53, %v1131_v3  ;;  %v1288_v6 = vmul.f32 %v1131_v3, %v1131_v3  ;;  %v1134_v7 = vadd.f32 %v2073_v2, %v973_v4  ;;  %v1962_v8 = vpop.f32.mrb[8].mxu0 }
 0x117   : > { %v2074_v9 = vpop.f32.mrb[8].mxu1  ;;  %v1963_v10 = vpop.f32.mrb[9].mxu0 }
 0x118   : > { %v1319_v11 = vadd.f32 %v1318_v62, %v1288_v6  ;;  %v1251_v12 = vadd.f32 %v1250_v5, %v1134_v7  ;;  %v1289_v13 = vmul.f32 %v1134_v7, %v1134_v7  ;;  %v1847_v14 = vpack.c.bf16 %v1134_v7, %v1131_v3  ;;  %v2075_v15 = vpop.f32.mrb[9].mxu1  ;;  %v1965_v16 = vpop.f32.mrb[10].mxu0 }
 0x119   : > { %v1964_v17 = vadd.f32 %v1963_v10, %v1962_v8  ;;  %v2076_v18 = vadd.f32 %v2075_v15, %v2074_v9  ;;  %v2077_v19 = vpop.f32.mrb[10].mxu1  ;;  %v1966_v20 = vpop.f32.mrb[11].mxu0 }
 0x11a   : > { %v1320_v21 = vadd.f32 %v1319_v11, %v1289_v13  ;;  %1919 = vst [vmem:[%s2498_s6 + $0x8] sm:$0xff] %v1847_v14   ;;  %v1967_v22 = vadd.f32 %v1966_v20, %v1965_v16  ;;  %v2078_v23 = vpop.f32.mrb[11].mxu1 }
 0x11b   : > { %v978_v24 = vadd.f32 %v1964_v17, %v2490_v34  ;;  %v2079_v25 = vadd.f32 %v2078_v23, %v2077_v19 }
 0x11c   : > { %v981_v26 = vadd.f32 %v1967_v22, %v2490_v34 }
 0x11d   : > { %v1139_v27 = vadd.f32 %v2076_v18, %v978_v24 }
 0x11e   : > { %v1142_v28 = vadd.f32 %v2079_v25, %v981_v26  ;;  %v1968_v29 = vpop.f32.mrb[12].mxu0 }
 0x11f   : > { %v1252_v30 = vadd.f32 %v1251_v12, %v1139_v27  ;;  %v1290_v31 = vmul.f32 %v1139_v27, %v1139_v27  ;;  %v2080_v32 = vpop.f32.mrb[12].mxu1  ;;  %v1969_v33 = vpop.f32.mrb[13].mxu0 }
 0x120   : > { %v1291_v35 = vmul.f32 %v1142_v28, %v1142_v28  ;;  %v1852_v36 = vpack.c.bf16 %v1142_v28, %v1139_v27  ;;  %v1970_v37 = vadd.f32 %v1969_v33, %v1968_v29  ;;  %v2081_v38 = vpop.f32.mrb[13].mxu1  ;;  %v1971_v39 = vpop.f32.mrb[14].mxu0 }
 0x121   : > { %v1321_v40 = vadd.f32 %v1320_v21, %v1290_v31  ;;  %v1253_v41 = vadd.f32 %v1252_v30, %v1142_v28  ;;  %v2082_v42 = vadd.f32 %v2081_v38, %v2080_v32  ;;  %v2083_v43 = vpop.f32.mrb[14].mxu1  ;;  %v1972_v44 = vpop.f32.mrb[15].mxu0 }
 0x122   : > { %1920 = vst [vmem:[%s2498_s6 + $0x10] sm:$0xff] %v1852_v36   ;;  %v986_v45 = vadd.f32 %v1970_v37, %v2490_v34  ;;  %v1973_v46 = vadd.f32 %v1972_v44, %v1971_v39  ;;  %v2084_v47 = vpop.f32.mrb[15].mxu1 }
 0x123   : > { %v1322_v48 = vadd.f32 %v1321_v40, %v1291_v35  ;;  %v2085_v49 = vadd.f32 %v2084_v47, %v2083_v43 }
 0x124   : > { %v1147_v50 = vadd.f32 %v2082_v42, %v986_v45  ;;  %v989_v51 = vadd.f32 %v1973_v46, %v2490_v34 }
 0x126   : > { %v1254_v52 = vadd.f32 %v1253_v41, %v1147_v50  ;;  %v1292_v53 = vmul.f32 %v1147_v50, %v1147_v50  ;;  %v1150_v54 = vadd.f32 %v2085_v49, %v989_v51  ;;  %v1974_v55 = vpop.f32.mrb[16].mxu0 }
 0x127   : > { %v2086_v56 = vpop.f32.mrb[16].mxu1  ;;  %v1975_v57 = vpop.f32.mrb[17].mxu0 }
 0x128   : > { %v1323_v58 = vadd.f32 %v1322_v48, %v1292_v53  ;;  %v1255_v59 = vadd.f32 %v1254_v52, %v1150_v54  ;;  %v1293_v60 = vmul.f32 %v1150_v54, %v1150_v54  ;;  %v1857_v61 = vpack.c.bf16 %v1150_v54, %v1147_v50  ;;  %v2087_v62 = vpop.f32.mrb[17].mxu1  ;;  %v1977_v63 = vpop.f32.mrb[18].mxu0 }
 0x129   : > { %v1976_v0 = vadd.f32 %v1975_v57, %v1974_v55  ;;  %v2088_v1 = vadd.f32 %v2087_v62, %v2086_v56  ;;  %v2089_v2 = vpop.f32.mrb[18].mxu1  ;;  %v1978_v3 = vpop.f32.mrb[19].mxu0 }
 0x12a   : > { %v1324_v4 = vadd.f32 %v1323_v58, %v1293_v60  ;;  %1921 = vst [vmem:[%s2498_s6 + $0x18] sm:$0xff] %v1857_v61   ;;  %v1979_v5 = vadd.f32 %v1978_v3, %v1977_v63  ;;  %v2090_v6 = vpop.f32.mrb[19].mxu1 }
 0x12b   : > { %v994_v7 = vadd.f32 %v1976_v0, %v2490_v34  ;;  %v2091_v8 = vadd.f32 %v2090_v6, %v2089_v2 }
 0x12c   : > { %v997_v9 = vadd.f32 %v1979_v5, %v2490_v34 }
 0x12d   : > { %v1155_v10 = vadd.f32 %v2088_v1, %v994_v7 }
 0x12e   : > { %v1158_v11 = vadd.f32 %v2091_v8, %v997_v9  ;;  %v1980_v12 = vpop.f32.mrb[20].mxu0 }
 0x12f   : > { %v1256_v13 = vadd.f32 %v1255_v59, %v1155_v10  ;;  %v1294_v14 = vmul.f32 %v1155_v10, %v1155_v10  ;;  %v2092_v15 = vpop.f32.mrb[20].mxu1  ;;  %v1981_v16 = vpop.f32.mrb[21].mxu0 }
 0x130   : > { %v1295_v17 = vmul.f32 %v1158_v11, %v1158_v11  ;;  %v1862_v18 = vpack.c.bf16 %v1158_v11, %v1155_v10  ;;  %v1982_v19 = vadd.f32 %v1981_v16, %v1980_v12  ;;  %v2093_v20 = vpop.f32.mrb[21].mxu1  ;;  %v1983_v21 = vpop.f32.mrb[22].mxu0 }
 0x131   : > { %v1325_v22 = vadd.f32 %v1324_v4, %v1294_v14  ;;  %v1257_v23 = vadd.f32 %v1256_v13, %v1158_v11  ;;  %v2094_v24 = vadd.f32 %v2093_v20, %v2092_v15  ;;  %v2095_v25 = vpop.f32.mrb[22].mxu1  ;;  %v1984_v26 = vpop.f32.mrb[23].mxu0 }
 0x132   : > { %1922 = vst [vmem:[%s2498_s6 + $0x20] sm:$0xff] %v1862_v18   ;;  %v1002_v27 = vadd.f32 %v1982_v19, %v2490_v34  ;;  %v1985_v28 = vadd.f32 %v1984_v26, %v1983_v21  ;;  %v2096_v29 = vpop.f32.mrb[23].mxu1 }
 0x133   : > { %v1326_v30 = vadd.f32 %v1325_v22, %v1295_v17  ;;  %v2097_v31 = vadd.f32 %v2096_v29, %v2095_v25 }
 0x134   : > { %v1163_v32 = vadd.f32 %v2094_v24, %v1002_v27  ;;  %v1005_v33 = vadd.f32 %v1985_v28, %v2490_v34 }
 0x136   : > { %v1258_v35 = vadd.f32 %v1257_v23, %v1163_v32  ;;  %v1296_v36 = vmul.f32 %v1163_v32, %v1163_v32  ;;  %v1166_v37 = vadd.f32 %v2097_v31, %v1005_v33  ;;  %v1986_v38 = vpop.f32.mrb[24].mxu0 }
 0x137   : > { %v2098_v39 = vpop.f32.mrb[24].mxu1  ;;  %v1987_v40 = vpop.f32.mrb[25].mxu0 }
 0x138   : > { %v1327_v41 = vadd.f32 %v1326_v30, %v1296_v36  ;;  %v1259_v42 = vadd.f32 %v1258_v35, %v1166_v37  ;;  %v1297_v43 = vmul.f32 %v1166_v37, %v1166_v37  ;;  %v1867_v44 = vpack.c.bf16 %v1166_v37, %v1163_v32  ;;  %v2099_v45 = vpop.f32.mrb[25].mxu1  ;;  %v1989_v46 = vpop.f32.mrb[26].mxu0 }
 0x139   : > { %v1988_v47 = vadd.f32 %v1987_v40, %v1986_v38  ;;  %v2100_v48 = vadd.f32 %v2099_v45, %v2098_v39  ;;  %v2101_v49 = vpop.f32.mrb[26].mxu1  ;;  %v1990_v50 = vpop.f32.mrb[27].mxu0 }
 0x13a   : > { %v1328_v51 = vadd.f32 %v1327_v41, %v1297_v43  ;;  %1923 = vst [vmem:[%s2498_s6 + $0x28] sm:$0xff] %v1867_v44   ;;  %v1991_v52 = vadd.f32 %v1990_v50, %v1989_v46  ;;  %v2102_v53 = vpop.f32.mrb[27].mxu1 }
 0x13b   : > { %v1010_v54 = vadd.f32 %v1988_v47, %v2490_v34  ;;  %v2103_v55 = vadd.f32 %v2102_v53, %v2101_v49 }
 0x13c   : > { %v1013_v56 = vadd.f32 %v1991_v52, %v2490_v34 }
 0x13d   : > { %v1171_v57 = vadd.f32 %v2100_v48, %v1010_v54 }
 0x13e   : > { %v1174_v58 = vadd.f32 %v2103_v55, %v1013_v56  ;;  %v1992_v59 = vpop.f32.mrb[28].mxu0 }
 0x13f   : > { %v1260_v60 = vadd.f32 %v1259_v42, %v1171_v57  ;;  %v1298_v61 = vmul.f32 %v1171_v57, %v1171_v57  ;;  %v2104_v62 = vpop.f32.mrb[28].mxu1  ;;  %v1993_v63 = vpop.f32.mrb[29].mxu0 }
 0x140   : > { %v1299_v0 = vmul.f32 %v1174_v58, %v1174_v58  ;;  %v1872_v1 = vpack.c.bf16 %v1174_v58, %v1171_v57  ;;  %v1994_v2 = vadd.f32 %v1993_v63, %v1992_v59  ;;  %v2105_v3 = vpop.f32.mrb[29].mxu1  ;;  %v1995_v4 = vpop.f32.mrb[30].mxu0 }
 0x141   : > { %v1329_v5 = vadd.f32 %v1328_v51, %v1298_v61  ;;  %v1261_v6 = vadd.f32 %v1260_v60, %v1174_v58  ;;  %v2106_v7 = vadd.f32 %v2105_v3, %v2104_v62  ;;  %v2107_v8 = vpop.f32.mrb[30].mxu1  ;;  %v1996_v9 = vpop.f32.mrb[31].mxu0 }
 0x142   : > { %1924 = vst [vmem:[%s2498_s6 + $0x30] sm:$0xff] %v1872_v1   ;;  %v1018_v10 = vadd.f32 %v1994_v2, %v2490_v34  ;;  %v1997_v11 = vadd.f32 %v1996_v9, %v1995_v4  ;;  %v2108_v12 = vpop.f32.mrb[31].mxu1 }
 0x143   : > { %v1330_v13 = vadd.f32 %v1329_v5, %v1299_v0  ;;  %v2109_v14 = vadd.f32 %v2108_v12, %v2107_v8 }
 0x144   : > { %v1179_v15 = vadd.f32 %v2106_v7, %v1018_v10  ;;  %v1021_v16 = vadd.f32 %v1997_v11, %v2490_v34 }
 0x146   : > { %v1262_v17 = vadd.f32 %v1261_v6, %v1179_v15  ;;  %v1300_v18 = vmul.f32 %v1179_v15, %v1179_v15  ;;  %v1182_v19 = vadd.f32 %v2109_v14, %v1021_v16  ;;  %v1998_v20 = vpop.f32.mrb[32].mxu0 }
 0x147   : > { %v2110_v21 = vpop.f32.mrb[32].mxu1  ;;  %v1999_v22 = vpop.f32.mrb[33].mxu0 }
 0x148   : > { %v1331_v23 = vadd.f32 %v1330_v13, %v1300_v18  ;;  %v1263_v24 = vadd.f32 %v1262_v17, %v1182_v19  ;;  %v1301_v25 = vmul.f32 %v1182_v19, %v1182_v19  ;;  %v1877_v26 = vpack.c.bf16 %v1182_v19, %v1179_v15  ;;  %v2111_v27 = vpop.f32.mrb[33].mxu1  ;;  %v2001_v28 = vpop.f32.mrb[34].mxu0 }
 0x149   : > { %v2000_v29 = vadd.f32 %v1999_v22, %v1998_v20  ;;  %v2112_v30 = vadd.f32 %v2111_v27, %v2110_v21  ;;  %v2113_v31 = vpop.f32.mrb[34].mxu1  ;;  %v2002_v32 = vpop.f32.mrb[35].mxu0 }
 0x14a   : > { %v1332_v33 = vadd.f32 %v1331_v23, %v1301_v25  ;;  %1925 = vst [vmem:[%s2498_s6 + $0x38] sm:$0xff] %v1877_v26   ;;  %v2003_v35 = vadd.f32 %v2002_v32, %v2001_v28  ;;  %v2114_v36 = vpop.f32.mrb[35].mxu1 }
 0x14b   : > { %v1026_v37 = vadd.f32 %v2000_v29, %v2490_v34  ;;  %v2115_v38 = vadd.f32 %v2114_v36, %v2113_v31 }
 0x14c   : > { %v1029_v39 = vadd.f32 %v2003_v35, %v2490_v34 }
 0x14d   : > { %v1187_v40 = vadd.f32 %v2112_v30, %v1026_v37 }
 0x14e   : > { %v1190_v41 = vadd.f32 %v2115_v38, %v1029_v39  ;;  %v2004_v42 = vpop.f32.mrb[36].mxu0 }
 0x14f   : > { %v1264_v43 = vadd.f32 %v1263_v24, %v1187_v40  ;;  %v1302_v44 = vmul.f32 %v1187_v40, %v1187_v40  ;;  %v2116_v45 = vpop.f32.mrb[36].mxu1  ;;  %v2005_v46 = vpop.f32.mrb[37].mxu0 }
 0x150   : > { %v1303_v47 = vmul.f32 %v1190_v41, %v1190_v41  ;;  %v1882_v48 = vpack.c.bf16 %v1190_v41, %v1187_v40  ;;  %v2006_v49 = vadd.f32 %v2005_v46, %v2004_v42  ;;  %v2117_v50 = vpop.f32.mrb[37].mxu1  ;;  %v2007_v51 = vpop.f32.mrb[38].mxu0 }
 0x151   : > { %v1333_v52 = vadd.f32 %v1332_v33, %v1302_v44  ;;  %v1265_v53 = vadd.f32 %v1264_v43, %v1190_v41  ;;  %v2118_v54 = vadd.f32 %v2117_v50, %v2116_v45  ;;  %v2119_v55 = vpop.f32.mrb[38].mxu1  ;;  %v2008_v56 = vpop.f32.mrb[39].mxu0 }
 0x152   : > { %1926 = vst [vmem:[%s2498_s6 + $0x40] sm:$0xff] %v1882_v48   ;;  %v1034_v57 = vadd.f32 %v2006_v49, %v2490_v34  ;;  %v2009_v58 = vadd.f32 %v2008_v56, %v2007_v51  ;;  %v2120_v59 = vpop.f32.mrb[39].mxu1 }
 0x153   : > { %v1334_v60 = vadd.f32 %v1333_v52, %v1303_v47  ;;  %v2121_v61 = vadd.f32 %v2120_v59, %v2119_v55 }
 0x154   : > { %v1195_v62 = vadd.f32 %v2118_v54, %v1034_v57  ;;  %v1037_v63 = vadd.f32 %v2009_v58, %v2490_v34 }
 0x156   : > { %v1266_v0 = vadd.f32 %v1265_v53, %v1195_v62  ;;  %v1304_v1 = vmul.f32 %v1195_v62, %v1195_v62  ;;  %v1198_v2 = vadd.f32 %v2121_v61, %v1037_v63  ;;  %v2010_v3 = vpop.f32.mrb[40].mxu0 }
 0x157   : > { %v2122_v4 = vpop.f32.mrb[40].mxu1  ;;  %v2011_v5 = vpop.f32.mrb[41].mxu0 }
 0x158   : > { %v1335_v6 = vadd.f32 %v1334_v60, %v1304_v1  ;;  %v1267_v7 = vadd.f32 %v1266_v0, %v1198_v2  ;;  %v1305_v8 = vmul.f32 %v1198_v2, %v1198_v2  ;;  %v1887_v9 = vpack.c.bf16 %v1198_v2, %v1195_v62  ;;  %v2123_v10 = vpop.f32.mrb[41].mxu1  ;;  %v2013_v11 = vpop.f32.mrb[42].mxu0 }
 0x159   : > { %v2012_v12 = vadd.f32 %v2011_v5, %v2010_v3  ;;  %v2124_v13 = vadd.f32 %v2123_v10, %v2122_v4  ;;  %v2125_v14 = vpop.f32.mrb[42].mxu1  ;;  %v2014_v15 = vpop.f32.mrb[43].mxu0 }
 0x15a   : > { %v1336_v16 = vadd.f32 %v1335_v6, %v1305_v8  ;;  %1927 = vst [vmem:[%s2498_s6 + $0x48] sm:$0xff] %v1887_v9   ;;  %v2015_v17 = vadd.f32 %v2014_v15, %v2013_v11  ;;  %v2126_v18 = vpop.f32.mrb[43].mxu1 }
 0x15b   : > { %v1042_v19 = vadd.f32 %v2012_v12, %v2490_v34  ;;  %v2127_v20 = vadd.f32 %v2126_v18, %v2125_v14 }
 0x15c   : > { %v1045_v21 = vadd.f32 %v2015_v17, %v2490_v34 }
 0x15d   : > { %v1203_v22 = vadd.f32 %v2124_v13, %v1042_v19 }
 0x15e   : > { %v1206_v23 = vadd.f32 %v2127_v20, %v1045_v21  ;;  %v2016_v24 = vpop.f32.mrb[44].mxu0 }
 0x15f   : > { %v1268_v25 = vadd.f32 %v1267_v7, %v1203_v22  ;;  %v1306_v26 = vmul.f32 %v1203_v22, %v1203_v22  ;;  %v2128_v27 = vpop.f32.mrb[44].mxu1  ;;  %v2017_v28 = vpop.f32.mrb[45].mxu0 }
 0x160   : > { %v1307_v29 = vmul.f32 %v1206_v23, %v1206_v23  ;;  %v1892_v30 = vpack.c.bf16 %v1206_v23, %v1203_v22  ;;  %v2018_v31 = vadd.f32 %v2017_v28, %v2016_v24  ;;  %v2129_v32 = vpop.f32.mrb[45].mxu1  ;;  %v2019_v33 = vpop.f32.mrb[46].mxu0 }
 0x161   : > { %v1337_v35 = vadd.f32 %v1336_v16, %v1306_v26  ;;  %v1269_v36 = vadd.f32 %v1268_v25, %v1206_v23  ;;  %v2130_v37 = vadd.f32 %v2129_v32, %v2128_v27  ;;  %v2131_v38 = vpop.f32.mrb[46].mxu1  ;;  %v2020_v39 = vpop.f32.mrb[47].mxu0 }
 0x162   : > { %1928 = vst [vmem:[%s2498_s6 + $0x50] sm:$0xff] %v1892_v30   ;;  %v1050_v40 = vadd.f32 %v2018_v31, %v2490_v34  ;;  %v2021_v41 = vadd.f32 %v2020_v39, %v2019_v33  ;;  %v2132_v42 = vpop.f32.mrb[47].mxu1 }
 0x163   : > { %v1338_v43 = vadd.f32 %v1337_v35, %v1307_v29  ;;  %v2133_v44 = vadd.f32 %v2132_v42, %v2131_v38 }
 0x164   : > { %v1211_v45 = vadd.f32 %v2130_v37, %v1050_v40  ;;  %v1053_v46 = vadd.f32 %v2021_v41, %v2490_v34 }
 0x166   : > { %v1270_v47 = vadd.f32 %v1269_v36, %v1211_v45  ;;  %v1308_v48 = vmul.f32 %v1211_v45, %v1211_v45  ;;  %v1214_v49 = vadd.f32 %v2133_v44, %v1053_v46  ;;  %v2022_v50 = vpop.f32.mrb[48].mxu0 }
 0x167   : > { %v2134_v51 = vpop.f32.mrb[48].mxu1  ;;  %v2023_v52 = vpop.f32.mrb[49].mxu0 }
 0x168   : > { %v1339_v53 = vadd.f32 %v1338_v43, %v1308_v48  ;;  %v1271_v54 = vadd.f32 %v1270_v47, %v1214_v49  ;;  %v1309_v55 = vmul.f32 %v1214_v49, %v1214_v49  ;;  %v1897_v56 = vpack.c.bf16 %v1214_v49, %v1211_v45  ;;  %v2135_v57 = vpop.f32.mrb[49].mxu1  ;;  %v2025_v58 = vpop.f32.mrb[50].mxu0 }
 0x169   : > { %v2024_v59 = vadd.f32 %v2023_v52, %v2022_v50  ;;  %v2136_v60 = vadd.f32 %v2135_v57, %v2134_v51  ;;  %v2137_v61 = vpop.f32.mrb[50].mxu1  ;;  %v2026_v62 = vpop.f32.mrb[51].mxu0 }
 0x16a   : > { %v1340_v63 = vadd.f32 %v1339_v53, %v1309_v55  ;;  %1929 = vst [vmem:[%s2498_s6 + $0x58] sm:$0xff] %v1897_v56   ;;  %v2027_v0 = vadd.f32 %v2026_v62, %v2025_v58  ;;  %v2138_v1 = vpop.f32.mrb[51].mxu1 }
 0x16b   : > { %v1058_v2 = vadd.f32 %v2024_v59, %v2490_v34  ;;  %v2139_v3 = vadd.f32 %v2138_v1, %v2137_v61 }
 0x16c   : > { %v1061_v4 = vadd.f32 %v2027_v0, %v2490_v34 }
 0x16d   : > { %v1219_v5 = vadd.f32 %v2136_v60, %v1058_v2 }
 0x16e   : > { %v1222_v6 = vadd.f32 %v2139_v3, %v1061_v4  ;;  %v2028_v7 = vpop.f32.mrb[52].mxu0 }
 0x16f   : > { %v1272_v8 = vadd.f32 %v1271_v54, %v1219_v5  ;;  %v1310_v9 = vmul.f32 %v1219_v5, %v1219_v5  ;;  %v2140_v10 = vpop.f32.mrb[52].mxu1  ;;  %v2029_v11 = vpop.f32.mrb[53].mxu0 }
 0x170   : > { %v1311_v12 = vmul.f32 %v1222_v6, %v1222_v6  ;;  %v1902_v13 = vpack.c.bf16 %v1222_v6, %v1219_v5  ;;  %v2030_v14 = vadd.f32 %v2029_v11, %v2028_v7  ;;  %v2141_v15 = vpop.f32.mrb[53].mxu1  ;;  %v2031_v16 = vpop.f32.mrb[54].mxu0 }
 0x171   : > { %v1341_v17 = vadd.f32 %v1340_v63, %v1310_v9  ;;  %v1273_v18 = vadd.f32 %v1272_v8, %v1222_v6  ;;  %v2142_v19 = vadd.f32 %v2141_v15, %v2140_v10  ;;  %v2143_v20 = vpop.f32.mrb[54].mxu1  ;;  %v2032_v21 = vpop.f32.mrb[55].mxu0 }
 0x172   : > { %1930 = vst [vmem:[%s2498_s6 + $0x60] sm:$0xff] %v1902_v13   ;;  %v1066_v22 = vadd.f32 %v2030_v14, %v2490_v34  ;;  %v2033_v23 = vadd.f32 %v2032_v21, %v2031_v16  ;;  %v2144_v24 = vpop.f32.mrb[55].mxu1 }
 0x173   : > { %v1342_v25 = vadd.f32 %v1341_v17, %v1311_v12  ;;  %v2145_v26 = vadd.f32 %v2144_v24, %v2143_v20 }
 0x174   : > { %v1227_v27 = vadd.f32 %v2142_v19, %v1066_v22  ;;  %v1069_v28 = vadd.f32 %v2033_v23, %v2490_v34 }
 0x176   : > { %v1274_v29 = vadd.f32 %v1273_v18, %v1227_v27  ;;  %v1312_v30 = vmul.f32 %v1227_v27, %v1227_v27  ;;  %v1230_v31 = vadd.f32 %v2145_v26, %v1069_v28  ;;  %v2034_v32 = vpop.f32.mrb[56].mxu0 }
 0x177   : > { %v2146_v33 = vpop.f32.mrb[56].mxu1  ;;  %v2035_v35 = vpop.f32.mrb[57].mxu0 }
 0x178   : > { %v1343_v36 = vadd.f32 %v1342_v25, %v1312_v30  ;;  %v1275_v37 = vadd.f32 %v1274_v29, %v1230_v31  ;;  %v1313_v38 = vmul.f32 %v1230_v31, %v1230_v31  ;;  %v1907_v39 = vpack.c.bf16 %v1230_v31, %v1227_v27  ;;  %v2147_v40 = vpop.f32.mrb[57].mxu1  ;;  %v2037_v41 = vpop.f32.mrb[58].mxu0 }
 0x179   : > { %v2036_v42 = vadd.f32 %v2035_v35, %v2034_v32  ;;  %v2148_v43 = vadd.f32 %v2147_v40, %v2146_v33  ;;  %v2149_v44 = vpop.f32.mrb[58].mxu1  ;;  %v2038_v45 = vpop.f32.mrb[59].mxu0 }
 0x17a   : > { %v1344_v46 = vadd.f32 %v1343_v36, %v1313_v38  ;;  %1931 = vst [vmem:[%s2498_s6 + $0x68] sm:$0xff] %v1907_v39   ;;  %v2039_v47 = vadd.f32 %v2038_v45, %v2037_v41  ;;  %v2150_v48 = vpop.f32.mrb[59].mxu1 }
 0x17b   : > { %v1074_v49 = vadd.f32 %v2036_v42, %v2490_v34  ;;  %v2151_v50 = vadd.f32 %v2150_v48, %v2149_v44 }
 0x17c   : > { %v1077_v51 = vadd.f32 %v2039_v47, %v2490_v34 }
 0x17d   : > { %v1235_v52 = vadd.f32 %v2148_v43, %v1074_v49 }
 0x17e   : > { %v1238_v53 = vadd.f32 %v2151_v50, %v1077_v51  ;;  %v2040_v54 = vpop.f32.mrb[60].mxu0 }
 0x17f   : > { %v1276_v55 = vadd.f32 %v1275_v37, %v1235_v52  ;;  %v1314_v56 = vmul.f32 %v1235_v52, %v1235_v52  ;;  %v2152_v57 = vpop.f32.mrb[60].mxu1  ;;  %v2041_v58 = vpop.f32.mrb[61].mxu0 }
 0x180   : > { %v1315_v59 = vmul.f32 %v1238_v53, %v1238_v53  ;;  %v1912_v60 = vpack.c.bf16 %v1238_v53, %v1235_v52  ;;  %v2042_v61 = vadd.f32 %v2041_v58, %v2040_v54  ;;  %v2153_v62 = vpop.f32.mrb[61].mxu1  ;;  %v2043_v63 = vpop.f32.mrb[62].mxu0 }
 0x181   : > { %v1345_v0 = vadd.f32 %v1344_v46, %v1314_v56  ;;  %v1277_v1 = vadd.f32 %v1276_v55, %v1238_v53  ;;  %v2154_v2 = vadd.f32 %v2153_v62, %v2152_v57  ;;  %v2155_v3 = vpop.f32.mrb[62].mxu1  ;;  %v2044_v4 = vpop.f32.mrb[63].mxu0 }
 0x182   : > { %1932 = vst [vmem:[%s2498_s6 + $0x70] sm:$0xff] %v1912_v60   ;;  %v1082_v5 = vadd.f32 %v2042_v61, %v2490_v34  ;;  %v2045_v6 = vadd.f32 %v2044_v4, %v2043_v63  ;;  %v2156_v7 = vpop.f32.mrb[63].mxu1 }
 0x183   : > { %v1346_v8 = vadd.f32 %v1345_v0, %v1315_v59  ;;  %v2157_v9 = vadd.f32 %v2156_v7, %v2155_v3 }
 0x184   : > { %v1243_v10 = vadd.f32 %v2154_v2, %v1082_v5  ;;  %v1085_v11 = vadd.f32 %v2045_v6, %v2490_v34 }
 0x186   : > { %v1278_v12 = vadd.f32 %v1277_v1, %v1243_v10  ;;  %v1316_v13 = vmul.f32 %v1243_v10, %v1243_v10  ;;  %v1246_v14 = vadd.f32 %v2157_v9, %v1085_v11 }
 0x188   : > { %v1347_v15 = vadd.f32 %v1346_v8, %v1316_v13  ;;  %v1279_v16 = vadd.f32 %v1278_v12, %v1246_v14  ;;  %v1317_v17 = vmul.f32 %v1246_v14, %v1246_v14  ;;  %v1917_v18 = vpack.c.bf16 %v1246_v14, %v1243_v10 }
 0x18a   : > { %v1280_v19 = vrot.slane %v1279_v16, 4  ;;  %v1348_v20 = vadd.f32 %v1347_v15, %v1317_v17  ;;  %1933 = vst [vmem:[%s2498_s6 + $0x78] sm:$0xff] %v1917_v18  }
 0x18c   : > { %v1281_v21 = vadd.f32 %v1280_v19, %v1279_v16  ;;  %v1349_v22 = vrot.slane %v1348_v20, 4 }
 0x18e   : > { %v1282_v23 = vrot.slane %v1281_v21, 2  ;;  %v1350_v24 = vadd.f32 %v1349_v22, %v1348_v20 }
 0x190   : > { %v1283_v25 = vadd.f32 %v1282_v23, %v1281_v21  ;;  %v1351_v26 = vrot.slane %v1350_v24, 2 }
 0x192   : > { %v1284_v27 = vrot.slane %v1283_v25, 1  ;;  %v1352_v28 = vadd.f32 %v1351_v26, %v1350_v24 }
 0x194   : > { %v1353_v34 = vrot.slane %v1352_v28, 1  ;;  %v1285_v29 = vadd.f32 %v1284_v27, %v1283_v25 }
 0x196   : > { %v1354_v30 = vadd.f32 %v1353_v34, %v1352_v28 }
 0x198   : > { %v1356_v31 = vsel %vm1355_vm0, %v1285_v29, %v1354_v30 }
 0x199   : > { %1357 = vst [vmem:[%s278_s10] sm:$0x3] %v1356_v31 }
 0x19a PF: > { %s15_s17 = sadd.s32 1, %s2332_s17   ;;  %s2564_s15 = smov %s2328_s16 }
 0x19b   : > { %p12_p5 = scmp.ge.s32.totalorder %s15_s17, 6   ;;  %s2565_s16 = smov %s2567_s18 }
 0x19d   :  { %14 = sbr.rel (!%p12_p5) target bundleno = 2 (0x2), region = 77 }

// kernel: decoder_forward.12
= control target key start
LH: loop header
LB: loop body
LE: loop exit
PB: predicated region body
PF: predicated region fallthrough
CT: control target
= control target key end

     0   :  { %s4025_s15 = smov 0   ;;  %s4027_s16 = smov 0   ;;  %s4838_s0 = inlined_call_operand.vmem [shape: bf16[4,1024,256], index: 0, kind: input, shape index: {}]   ;;  %s4839_s1 = inlined_call_operand.vmem [shape: bf16[4,256,128], index: 1, kind: input, shape index: {}]   ;;  %s4840_s2 = inlined_call_operand.vmem [shape: f32[1,128], index: 2, kind: input, shape index: {}]   ;;  %s4841_s3 = inlined_call_operand.vmem [shape: bf16[4,1024,128], index: 3, kind: output, shape index: {0}]   ;;  %s4842_s4 = inlined_call_operand.vmem [shape: f32[4,1,2,128], index: 4, kind: output, shape index: {1}]  }
   0x1   :  { %s4029_s17 = smov 0  }
   0x2 LB: > { %s27_s18 = sadd.s32 1, %s3993_s16  ;;  %p2912_p0 = scmp.ge.s32.totalorder %s3997_s17, 1  ;;  %s3997_s17 = sphi %s4029_s17, %s15_s17   ;;  %s3993_s16 = sphi %s4027_s16, %s4916_s16   ;;  %s3989_s15 = sphi %s4025_s15, %s4915_s15  }
   0x3   : > { %p29_p1 = scmp.ge.s32.totalorder %s27_s18, 4  ;;  %p199_p2 = scmp.lt.s32.totalorder %s3997_s17, 5 }
   0x5   : > { %s4918_s18 = smov (%p29_p1, %s27_s18), 0  ;;  %p200_p3 = pnand %p2912_p0, %p199_p2 }
   0x7   : > { %203 = sbr.rel (%p200_p3) target bundleno = 693 (0x2b5), region = 32 }
   0xe   : > { %p247_p4 = scmp.lt.s32.totalorder %s3989_s15, 3  ;;  %v3999_v0 = vmov 0   ;;  %vm2122_vm0 = vcmask 1040384  }
   0xf   : > { %1183 = vmatprep.subr.bf16.mxu0 %v3999_v0  ;;  %3709 = vmatprep.subr.bf16.mxu1 %v3999_v0 }
  0x10   : > { %s4920_s15 = smov (!%p247_p4, %s3989_s15), 3 }
  0x11   : > { %s3196_s19 = sshll.u32 %s4920_s15, 7  ;;  %s3195_s23 = sshll.u32 %s4920_s15, 10 }
  0x12   : > { %s4051_s22 = scalar_lea.vmem %s4839_s1, %s3196_s19  ;;  %s4068_s26 = scalar_lea.vmem %s4838_s0, %s3195_s23 }
  0x13   : > { %v3766_v1 = vld [vmem:[%s4051_s22] sm:$0xff]   ;;  %v3767_v2 = vld [vmem:[%s4051_s22 + $0x8] sm:$0xff]   ;;  %v3768_v3 = vld [vmem:[%s4051_s22 + $0x10] sm:$0xff]   ;;  %s3197_s29 = sshll.u32 %s4920_s15, 9  ;;  %s2919_s9 = sshll.u32 %s4920_s15, 1 }
  0x14   : > { %1184 = vmatpush1.bf16.msra.mxu0 %v3766_v1  ;;  %3725 = vmatpush1.bf16.msra.mxu1 %v3766_v1  ;;  %v3769_v4 = vld [vmem:[%s4051_s22 + $0x18] sm:$0xff]   ;;  %v3770_v5 = vld [vmem:[%s4051_s22 + $0x20] sm:$0xff]   ;;  %v3771_v7 = vld [vmem:[%s4051_s22 + $0x28] sm:$0xff]   ;;  %s4235_s6 = scalar_lea.vmem %s4841_s3, %s3197_s29  ;;  %s278_s12 = scalar_lea.vmem %s4842_s4, %s2919_s9 }
  0x15   : > { %1185 = vmatprep.subr.bf16.mxu0 %v3999_v0  ;;  %3710 = vmatprep.subr.bf16.mxu1 %v3999_v0  ;;  %v3784_v6 = vld [vmem:[%s4068_s26 + $0x4] ss:$8 sps:$4 sm:$0xff]   ;;  %v3772_v8 = vld [vmem:[%s4051_s22 + $0x30] sm:$0xff]   ;;  %v3773_v9 = vld [vmem:[%s4051_s22 + $0x38] sm:$0xff]  }
  0x16   : > { %1215 = vmatprep.mubr.bf16.mxu0 %v3784_v6  ;;  %v3774_v10 = vld [vmem:[%s4051_s22 + $0x40] sm:$0xff]   ;;  %v3775_v11 = vld [vmem:[%s4051_s22 + $0x48] sm:$0xff]   ;;  %v3776_v12 = vld [vmem:[%s4051_s22 + $0x50] sm:$0xff]  }
  0x17   : > { %v3777_v13 = vld [vmem:[%s4051_s22 + $0x58] sm:$0xff]   ;;  %v3778_v14 = vld [vmem:[%s4051_s22 + $0x60] sm:$0xff]   ;;  %v3779_v15 = vld [vmem:[%s4051_s22 + $0x68] sm:$0xff]  }
  0x18   : > { %1186 = vmatpush1.bf16.msra.mxu0 %v3767_v2  ;;  %3726 = vmatpush1.bf16.msra.mxu1 %v3767_v2  ;;  %v3780_v16 = vld [vmem:[%s4051_s22 + $0x70] sm:$0xff]   ;;  %v3832_v17 = vld [vmem:[%s4068_s26 + $0x204] ss:$8 sps:$4 sm:$0xff]   ;;  %v3781_v18 = vld [vmem:[%s4051_s22 + $0x78] sm:$0xff]  }
  0x19   : > { %1187 = vmatprep.subr.bf16.mxu0 %v3999_v0  ;;  %3711 = vmatprep.subr.bf16.mxu1 %v3999_v0  ;;  %v3782_v19 = vld [vmem:[%s4068_s26] ss:$8 sps:$4 sm:$0xff]   ;;  %v3785_v21 = vld [vmem:[%s4068_s26 + $0x14] ss:$8 sps:$4 sm:$0xff]   ;;  %v3787_v23 = vld [vmem:[%s4068_s26 + $0x10] ss:$8 sps:$4 sm:$0xff]  }
  0x1a   : > { %v3830_v20 = vld [vmem:[%s4068_s26 + $0x200] ss:$8 sps:$4 sm:$0xff]   ;;  %1471 = vmatprep.mubr.bf16.mxu1 %v3832_v17  ;;  %v3836_v22 = vld [vmem:[%s4068_s26 + $0x214] ss:$8 sps:$4 sm:$0xff]   ;;  %v3838_v24 = vld [vmem:[%s4068_s26 + $0x210] ss:$8 sps:$4 sm:$0xff]  }
  0x1b   : > { %v3788_v25 = vld [vmem:[%s4068_s26 + $0x24] ss:$8 sps:$4 sm:$0xff]   ;;  %v3790_v27 = vld [vmem:[%s4068_s26 + $0x20] ss:$8 sps:$4 sm:$0xff]   ;;  %v3791_v29 = vld [vmem:[%s4068_s26 + $0x34] ss:$8 sps:$4 sm:$0xff]  }
  0x1c   : > { %1188 = vmatpush1.bf16.msra.mxu0 %v3768_v3  ;;  %3727 = vmatpush1.bf16.msra.mxu1 %v3768_v3  ;;  %v3842_v26 = vld [vmem:[%s4068_s26 + $0x224] ss:$8 sps:$4 sm:$0xff]   ;;  %v3844_v28 = vld [vmem:[%s4068_s26 + $0x220] ss:$8 sps:$4 sm:$0xff]   ;;  %v3848_v30 = vld [vmem:[%s4068_s26 + $0x234] ss:$8 sps:$4 sm:$0xff]  }
  0x1d   : > { %1189 = vmatprep.subr.bf16.mxu0 %v3999_v0  ;;  %3712 = vmatprep.subr.bf16.mxu1 %v3999_v0  ;;  %v3793_v31 = vld [vmem:[%s4068_s26 + $0x30] ss:$8 sps:$4 sm:$0xff]   ;;  %v3794_v33 = vld [vmem:[%s4068_s26 + $0x44] ss:$8 sps:$4 sm:$0xff]   ;;  %v3796_v35 = vld [vmem:[%s4068_s26 + $0x40] ss:$8 sps:$4 sm:$0xff]  }
  0x1e   : > { %v3850_v32 = vld [vmem:[%s4068_s26 + $0x230] ss:$8 sps:$4 sm:$0xff]   ;;  %v3854_v34 = vld [vmem:[%s4068_s26 + $0x244] ss:$8 sps:$4 sm:$0xff]   ;;  %v3856_v36 = vld [vmem:[%s4068_s26 + $0x240] ss:$8 sps:$4 sm:$0xff]  }
  0x1f   : > { %v3797_v37 = vld [vmem:[%s4068_s26 + $0x54] ss:$8 sps:$4 sm:$0xff]   ;;  %v3799_v39 = vld [vmem:[%s4068_s26 + $0x50] ss:$8 sps:$4 sm:$0xff]   ;;  %v3800_v41 = vld [vmem:[%s4068_s26 + $0x64] ss:$8 sps:$4 sm:$0xff]  }
  0x20   : > { %1190 = vmatpush1.bf16.msra.mxu0 %v3769_v4  ;;  %3728 = vmatpush1.bf16.msra.mxu1 %v3769_v4  ;;  %v3860_v38 = vld [vmem:[%s4068_s26 + $0x254] ss:$8 sps:$4 sm:$0xff]   ;;  %v3862_v40 = vld [vmem:[%s4068_s26 + $0x250] ss:$8 sps:$4 sm:$0xff]   ;;  %v3866_v42 = vld [vmem:[%s4068_s26 + $0x264] ss:$8 sps:$4 sm:$0xff]  }
  0x21   : > { %1191 = vmatprep.subr.bf16.mxu0 %v3999_v0  ;;  %3713 = vmatprep.subr.bf16.mxu1 %v3999_v0  ;;  %v3802_v43 = vld [vmem:[%s4068_s26 + $0x60] ss:$8 sps:$4 sm:$0xff]   ;;  %v3803_v45 = vld [vmem:[%s4068_s26 + $0x74] ss:$8 sps:$4 sm:$0xff]   ;;  %v3805_v47 = vld [vmem:[%s4068_s26 + $0x70] ss:$8 sps:$4 sm:$0xff]  }
  0x22   : > { %v3868_v44 = vld [vmem:[%s4068_s26 + $0x260] ss:$8 sps:$4 sm:$0xff]   ;;  %v3872_v46 = vld [vmem:[%s4068_s26 + $0x274] ss:$8 sps:$4 sm:$0xff]   ;;  %v3874_v48 = vld [vmem:[%s4068_s26 + $0x270] ss:$8 sps:$4 sm:$0xff]  }
  0x23   : > { %v3806_v49 = vld [vmem:[%s4068_s26 + $0x84] ss:$8 sps:$4 sm:$0xff]   ;;  %v3808_v51 = vld [vmem:[%s4068_s26 + $0x80] ss:$8 sps:$4 sm:$0xff]   ;;  %v3809_v53 = vld [vmem:[%s4068_s26 + $0x94] ss:$8 sps:$4 sm:$0xff]  }
  0x24   : > { %1192 = vmatpush1.bf16.msra.mxu0 %v3770_v5  ;;  %3729 = vmatpush1.bf16.msra.mxu1 %v3770_v5  ;;  %v3878_v50 = vld [vmem:[%s4068_s26 + $0x284] ss:$8 sps:$4 sm:$0xff]   ;;  %v3880_v52 = vld [vmem:[%s4068_s26 + $0x280] ss:$8 sps:$4 sm:$0xff]   ;;  %v3884_v54 = vld [vmem:[%s4068_s26 + $0x294] ss:$8 sps:$4 sm:$0xff]  }
  0x25   : > { %1193 = vmatprep.subr.bf16.mxu0 %v3999_v0  ;;  %3714 = vmatprep.subr.bf16.mxu1 %v3999_v0  ;;  %v3811_v55 = vld [vmem:[%s4068_s26 + $0x90] ss:$8 sps:$4 sm:$0xff]   ;;  %v3812_v57 = vld [vmem:[%s4068_s26 + $0xa4] ss:$8 sps:$4 sm:$0xff]   ;;  %v3814_v59 = vld [vmem:[%s4068_s26 + $0xa0] ss:$8 sps:$4 sm:$0xff]  }
  0x26   : > { %v3886_v56 = vld [vmem:[%s4068_s26 + $0x290] ss:$8 sps:$4 sm:$0xff]   ;;  %v3890_v58 = vld [vmem:[%s4068_s26 + $0x2a4] ss:$8 sps:$4 sm:$0xff]   ;;  %v3892_v60 = vld [vmem:[%s4068_s26 + $0x2a0] ss:$8 sps:$4 sm:$0xff]  }
  0x27   : > { %v3815_v61 = vld [vmem:[%s4068_s26 + $0xb4] ss:$8 sps:$4 sm:$0xff]   ;;  %v3817_v63 = vld [vmem:[%s4068_s26 + $0xb0] ss:$8 sps:$4 sm:$0xff]   ;;  %v3818_v1 = vld [vmem:[%s4068_s26 + $0xc4] ss:$8 sps:$4 sm:$0xff]  }
  0x28   : > { %1194 = vmatpush1.bf16.msra.mxu0 %v3771_v7  ;;  %3730 = vmatpush1.bf16.msra.mxu1 %v3771_v7  ;;  %v3896_v62 = vld [vmem:[%s4068_s26 + $0x2b4] ss:$8 sps:$4 sm:$0xff]   ;;  %v3902_v2 = vld [vmem:[%s4068_s26 + $0x2c4] ss:$8 sps:$4 sm:$0xff]   ;;  %v3820_v3 = vld [vmem:[%s4068_s26 + $0xc0] ss:$8 sps:$4 sm:$0xff]  }
  0x29   : > { %1195 = vmatprep.subr.bf16.mxu0 %v3999_v0  ;;  %3715 = vmatprep.subr.bf16.mxu1 %v3999_v0  ;;  %v3904_v4 = vld [vmem:[%s4068_s26 + $0x2c0] ss:$8 sps:$4 sm:$0xff]   ;;  %v3821_v5 = vld [vmem:[%s4068_s26 + $0xd4] ss:$8 sps:$4 sm:$0xff]   ;;  %v3823_v7 = vld [vmem:[%s4068_s26 + $0xd0] ss:$8 sps:$4 sm:$0xff]  }
  0x2a   : > { %v3908_v6 = vld [vmem:[%s4068_s26 + $0x2d4] ss:$8 sps:$4 sm:$0xff]   ;;  %v3833_v17 = vld [vmem:[%s4068_s26 + $0x104] ss:$8 sps:$4 sm:$0xff]  }
  0x2c   : > { %1196 = vmatpush1.bf16.msra.mxu0 %v3772_v8  ;;  %3731 = vmatpush1.bf16.msra.mxu1 %v3772_v8  ;;  %v3910_v8 = vld [vmem:[%s4068_s26 + $0x2d0] ss:$8 sps:$4 sm:$0xff]  }
  0x2d   : > { %1197 = vmatprep.subr.bf16.mxu0 %v3999_v0  ;;  %3716 = vmatprep.subr.bf16.mxu1 %v3999_v0 }
  0x30   : > { %1198 = vmatpush1.bf16.msra.mxu0 %v3773_v9  ;;  %3732 = vmatpush1.bf16.msra.mxu1 %v3773_v9  ;;  %v3824_v9 = vld [vmem:[%s4068_s26 + $0xe4] ss:$8 sps:$4 sm:$0xff]  }
  0x31   : > { %1199 = vmatprep.subr.bf16.mxu0 %v3999_v0  ;;  %3717 = vmatprep.subr.bf16.mxu1 %v3999_v0 }
  0x34   : > { %1200 = vmatpush1.bf16.msra.mxu0 %v3774_v10  ;;  %3733 = vmatpush1.bf16.msra.mxu1 %v3774_v10  ;;  %v3914_v10 = vld [vmem:[%s4068_s26 + $0x2e4] ss:$8 sps:$4 sm:$0xff]  }
  0x35   : > { %1201 = vmatprep.subr.bf16.mxu0 %v3999_v0  ;;  %3718 = vmatprep.subr.bf16.mxu1 %v3999_v0 }
  0x38   : > { %1202 = vmatpush1.bf16.msra.mxu0 %v3775_v11  ;;  %3734 = vmatpush1.bf16.msra.mxu1 %v3775_v11  ;;  %v3826_v11 = vld [vmem:[%s4068_s26 + $0xe0] ss:$8 sps:$4 sm:$0xff]  }
  0x39   : > { %1203 = vmatprep.subr.bf16.mxu0 %v3999_v0  ;;  %3719 = vmatprep.subr.bf16.mxu1 %v3999_v0 }
  0x3c   : > { %1204 = vmatpush1.bf16.msra.mxu0 %v3776_v12  ;;  %3735 = vmatpush1.bf16.msra.mxu1 %v3776_v12  ;;  %v3916_v12 = vld [vmem:[%s4068_s26 + $0x2e0] ss:$8 sps:$4 sm:$0xff]  }
  0x3d   : > { %1205 = vmatprep.subr.bf16.mxu0 %v3999_v0  ;;  %3720 = vmatprep.subr.bf16.mxu1 %v3999_v0 }
  0x40   : > { %1206 = vmatpush1.bf16.msra.mxu0 %v3777_v13  ;;  %3736 = vmatpush1.bf16.msra.mxu1 %v3777_v13  ;;  %v3827_v13 = vld [vmem:[%s4068_s26 + $0xf4] ss:$8 sps:$4 sm:$0xff]  }
  0x41   : > { %1207 = vmatprep.subr.bf16.mxu0 %v3999_v0  ;;  %3721 = vmatprep.subr.bf16.mxu1 %v3999_v0 }
  0x44   : > { %1208 = vmatpush1.bf16.msra.mxu0 %v3778_v14  ;;  %3737 = vmatpush1.bf16.msra.mxu1 %v3778_v14  ;;  %v3920_v14 = vld [vmem:[%s4068_s26 + $0x2f4] ss:$8 sps:$4 sm:$0xff]  }
  0x45   : > { %1209 = vmatprep.subr.bf16.mxu0 %v3999_v0  ;;  %3722 = vmatprep.subr.bf16.mxu1 %v3999_v0 }
  0x48   : > { %1210 = vmatpush1.bf16.msra.mxu0 %v3779_v15  ;;  %3738 = vmatpush1.bf16.msra.mxu1 %v3779_v15  ;;  %v3829_v15 = vld [vmem:[%s4068_s26 + $0xf0] ss:$8 sps:$4 sm:$0xff]  }
  0x49   : > { %1211 = vmatprep.subr.bf16.mxu0 %v3999_v0  ;;  %3723 = vmatprep.subr.bf16.mxu1 %v3999_v0 }
  0x4c   : > { %1212 = vmatpush1.bf16.msra.mxu0 %v3780_v16  ;;  %3739 = vmatpush1.bf16.msra.mxu1 %v3780_v16  ;;  %v3922_v16 = vld [vmem:[%s4068_s26 + $0x2f0] ss:$8 sps:$4 sm:$0xff]  }
  0x4d   : > { %1213 = vmatprep.subr.bf16.mxu0 %v3999_v0  ;;  %3724 = vmatprep.subr.bf16.mxu1 %v3999_v0  ;;  %v3898_v0 = vld [vmem:[%s4068_s26 + $0x2b0] ss:$8 sps:$4 sm:$0xff]  }
  0x50   : > { %1214 = vmatpush1.bf16.msra.mxu0 %v3781_v18  ;;  %3740 = vmatpush1.bf16.msra.mxu1 %v3781_v18  ;;  %v3926_v18 = vld [vmem:[%s4068_s26 + $0x304] ss:$8 sps:$4 sm:$0xff]  }
  0x53   : > { %1216 = vmatmul.mubr.bf16.vlgmr.msra.gmra.mrb[0].mxu0 %v3782_v19  ;;  %1472 = vmatmul.mubr.bf16.vlgmr.msra.gmra.mrb[0].mxu1 %v3830_v20  ;;  %v3835_v19 = vld [vmem:[%s4068_s26 + $0x100] ss:$8 sps:$4 sm:$0xff]  }
  0x54   : > { %1223 = vmatprep.mubr.bf16.mxu0 %v3785_v21  ;;  %1479 = vmatprep.mubr.bf16.mxu1 %v3836_v22  ;;  %v3928_v20 = vld [vmem:[%s4068_s26 + $0x300] ss:$8 sps:$4 sm:$0xff]   ;;  %v3839_v21 = vld [vmem:[%s4068_s26 + $0x114] ss:$8 sps:$4 sm:$0xff]  }
  0x55   : > { %v3929_v22 = vld [vmem:[%s4068_s26 + $0x314] ss:$8 sps:$4 sm:$0xff]  }
  0x5b   : > { %1224 = vmatmul.mubr.bf16.gmra.mrb[4].mxu0 %v3787_v23  ;;  %1480 = vmatmul.mubr.bf16.gmra.mrb[4].mxu1 %v3838_v24  ;;  %v3841_v23 = vld [vmem:[%s4068_s26 + $0x110] ss:$8 sps:$4 sm:$0xff]  }
  0x5c   : > { %1231 = vmatprep.mubr.bf16.mxu0 %v3788_v25  ;;  %1487 = vmatprep.mubr.bf16.mxu1 %v3842_v26  ;;  %v3931_v24 = vld [vmem:[%s4068_s26 + $0x310] ss:$8 sps:$4 sm:$0xff]   ;;  %v3845_v25 = vld [vmem:[%s4068_s26 + $0x124] ss:$8 sps:$4 sm:$0xff]  }
  0x5d   : > { %v3932_v26 = vld [vmem:[%s4068_s26 + $0x324] ss:$8 sps:$4 sm:$0xff]  }
  0x63   : > { %1232 = vmatmul.mubr.bf16.gmra.mrb[8].mxu0 %v3790_v27  ;;  %1488 = vmatmul.mubr.bf16.gmra.mrb[8].mxu1 %v3844_v28  ;;  %v3847_v27 = vld [vmem:[%s4068_s26 + $0x120] ss:$8 sps:$4 sm:$0xff]  }
  0x64   : > { %1239 = vmatprep.mubr.bf16.mxu0 %v3791_v29  ;;  %1495 = vmatprep.mubr.bf16.mxu1 %v3848_v30  ;;  %v3934_v28 = vld [vmem:[%s4068_s26 + $0x320] ss:$8 sps:$4 sm:$0xff]   ;;  %v3851_v29 = vld [vmem:[%s4068_s26 + $0x134] ss:$8 sps:$4 sm:$0xff]  }
  0x65   : > { %v3935_v30 = vld [vmem:[%s4068_s26 + $0x334] ss:$8 sps:$4 sm:$0xff]  }
  0x6b   : > { %1240 = vmatmul.mubr.bf16.gmra.mrb[12].mxu0 %v3793_v31  ;;  %1496 = vmatmul.mubr.bf16.gmra.mrb[12].mxu1 %v3850_v32  ;;  %v3853_v31 = vld [vmem:[%s4068_s26 + $0x130] ss:$8 sps:$4 sm:$0xff]  }
  0x6c   : > { %1247 = vmatprep.mubr.bf16.mxu0 %v3794_v33  ;;  %1503 = vmatprep.mubr.bf16.mxu1 %v3854_v34  ;;  %v3937_v32 = vld [vmem:[%s4068_s26 + $0x330] ss:$8 sps:$4 sm:$0xff]   ;;  %v3857_v33 = vld [vmem:[%s4068_s26 + $0x144] ss:$8 sps:$4 sm:$0xff]  }
  0x6d   : > { %v3938_v34 = vld [vmem:[%s4068_s26 + $0x344] ss:$8 sps:$4 sm:$0xff]  }
  0x73   : > { %1248 = vmatmul.mubr.bf16.gmra.mrb[16].mxu0 %v3796_v35  ;;  %1504 = vmatmul.mubr.bf16.gmra.mrb[16].mxu1 %v3856_v36  ;;  %v3859_v35 = vld [vmem:[%s4068_s26 + $0x140] ss:$8 sps:$4 sm:$0xff]  }
  0x74   : > { %1255 = vmatprep.mubr.bf16.mxu0 %v3797_v37  ;;  %1511 = vmatprep.mubr.bf16.mxu1 %v3860_v38  ;;  %v3940_v36 = vld [vmem:[%s4068_s26 + $0x340] ss:$8 sps:$4 sm:$0xff]   ;;  %v3863_v37 = vld [vmem:[%s4068_s26 + $0x154] ss:$8 sps:$4 sm:$0xff]  }
  0x75   : > { %v3941_v38 = vld [vmem:[%s4068_s26 + $0x354] ss:$8 sps:$4 sm:$0xff]  }
  0x7b   : > { %1256 = vmatmul.mubr.bf16.gmra.mrb[20].mxu0 %v3799_v39  ;;  %1512 = vmatmul.mubr.bf16.gmra.mrb[20].mxu1 %v3862_v40  ;;  %v3865_v39 = vld [vmem:[%s4068_s26 + $0x150] ss:$8 sps:$4 sm:$0xff]  }
  0x7c   : > { %1263 = vmatprep.mubr.bf16.mxu0 %v3800_v41  ;;  %1519 = vmatprep.mubr.bf16.mxu1 %v3866_v42  ;;  %v3943_v40 = vld [vmem:[%s4068_s26 + $0x350] ss:$8 sps:$4 sm:$0xff]   ;;  %v3869_v41 = vld [vmem:[%s4068_s26 + $0x164] ss:$8 sps:$4 sm:$0xff]  }
  0x7d   : > { %v3944_v42 = vld [vmem:[%s4068_s26 + $0x364] ss:$8 sps:$4 sm:$0xff]  }
  0x83   : > { %1264 = vmatmul.mubr.bf16.gmra.mrb[24].mxu0 %v3802_v43  ;;  %1520 = vmatmul.mubr.bf16.gmra.mrb[24].mxu1 %v3868_v44  ;;  %v3871_v43 = vld [vmem:[%s4068_s26 + $0x160] ss:$8 sps:$4 sm:$0xff]  }
  0x84   : > { %1271 = vmatprep.mubr.bf16.mxu0 %v3803_v45  ;;  %1527 = vmatprep.mubr.bf16.mxu1 %v3872_v46  ;;  %v3946_v44 = vld [vmem:[%s4068_s26 + $0x360] ss:$8 sps:$4 sm:$0xff]   ;;  %v3875_v45 = vld [vmem:[%s4068_s26 + $0x174] ss:$8 sps:$4 sm:$0xff]  }
  0x85   : > { %v3947_v46 = vld [vmem:[%s4068_s26 + $0x374] ss:$8 sps:$4 sm:$0xff]  }
  0x8b   : > { %1272 = vmatmul.mubr.bf16.gmra.mrb[28].mxu0 %v3805_v47  ;;  %1528 = vmatmul.mubr.bf16.gmra.mrb[28].mxu1 %v3874_v48  ;;  %v3877_v47 = vld [vmem:[%s4068_s26 + $0x170] ss:$8 sps:$4 sm:$0xff]  }
  0x8c   : > { %1279 = vmatprep.mubr.bf16.mxu0 %v3806_v49  ;;  %1535 = vmatprep.mubr.bf16.mxu1 %v3878_v50  ;;  %v3949_v48 = vld [vmem:[%s4068_s26 + $0x370] ss:$8 sps:$4 sm:$0xff]   ;;  %v3881_v49 = vld [vmem:[%s4068_s26 + $0x184] ss:$8 sps:$4 sm:$0xff]  }
  0x8d   : > { %v3950_v50 = vld [vmem:[%s4068_s26 + $0x384] ss:$8 sps:$4 sm:$0xff]  }
  0x93   : > { %1280 = vmatmul.mubr.bf16.gmra.mrb[32].mxu0 %v3808_v51  ;;  %1536 = vmatmul.mubr.bf16.gmra.mrb[32].mxu1 %v3880_v52  ;;  %v3883_v51 = vld [vmem:[%s4068_s26 + $0x180] ss:$8 sps:$4 sm:$0xff]  }
  0x94   : > { %1287 = vmatprep.mubr.bf16.mxu0 %v3809_v53  ;;  %1543 = vmatprep.mubr.bf16.mxu1 %v3884_v54  ;;  %v3952_v52 = vld [vmem:[%s4068_s26 + $0x380] ss:$8 sps:$4 sm:$0xff]   ;;  %v3887_v53 = vld [vmem:[%s4068_s26 + $0x194] ss:$8 sps:$4 sm:$0xff]  }
  0x95   : > { %v3953_v54 = vld [vmem:[%s4068_s26 + $0x394] ss:$8 sps:$4 sm:$0xff]  }
  0x9b   : > { %1288 = vmatmul.mubr.bf16.gmra.mrb[36].mxu0 %v3811_v55  ;;  %1544 = vmatmul.mubr.bf16.gmra.mrb[36].mxu1 %v3886_v56  ;;  %v3889_v55 = vld [vmem:[%s4068_s26 + $0x190] ss:$8 sps:$4 sm:$0xff]  }
  0x9c   : > { %1295 = vmatprep.mubr.bf16.mxu0 %v3812_v57  ;;  %1551 = vmatprep.mubr.bf16.mxu1 %v3890_v58  ;;  %v3955_v56 = vld [vmem:[%s4068_s26 + $0x390] ss:$8 sps:$4 sm:$0xff]   ;;  %v3893_v57 = vld [vmem:[%s4068_s26 + $0x1a4] ss:$8 sps:$4 sm:$0xff]  }
  0x9d   : > { %v3956_v58 = vld [vmem:[%s4068_s26 + $0x3a4] ss:$8 sps:$4 sm:$0xff]  }
  0xa3   : > { %1296 = vmatmul.mubr.bf16.gmra.mrb[40].mxu0 %v3814_v59  ;;  %1552 = vmatmul.mubr.bf16.gmra.mrb[40].mxu1 %v3892_v60  ;;  %v3895_v59 = vld [vmem:[%s4068_s26 + $0x1a0] ss:$8 sps:$4 sm:$0xff]  }
  0xa4   : > { %1303 = vmatprep.mubr.bf16.mxu0 %v3815_v61  ;;  %1559 = vmatprep.mubr.bf16.mxu1 %v3896_v62  ;;  %v3958_v60 = vld [vmem:[%s4068_s26 + $0x3a0] ss:$8 sps:$4 sm:$0xff]   ;;  %v3899_v61 = vld [vmem:[%s4068_s26 + $0x1b4] ss:$8 sps:$4 sm:$0xff]  }
  0xa5   : > { %v4217_v62 = vld [vmem:[%s4840_s2] ss:$0 sm:$0xff] }
  0xab   : > { %1304 = vmatmul.mubr.bf16.gmra.mrb[44].mxu0 %v3817_v63  ;;  %1560 = vmatmul.mubr.bf16.gmra.mrb[44].mxu1 %v3898_v0  ;;  %v3959_v63 = vld [vmem:[%s4068_s26 + $0x3b4] ss:$8 sps:$4 sm:$0xff]  }
  0xac   : > { %1311 = vmatprep.mubr.bf16.mxu0 %v3818_v1  ;;  %1567 = vmatprep.mubr.bf16.mxu1 %v3902_v2 }
  0xb3   : > { %1312 = vmatmul.mubr.bf16.gmra.mrb[48].mxu0 %v3820_v3  ;;  %1568 = vmatmul.mubr.bf16.gmra.mrb[48].mxu1 %v3904_v4  ;;  %v3901_v4 = vld [vmem:[%s4068_s26 + $0x1b0] ss:$8 sps:$4 sm:$0xff]  }
  0xb4   : > { %1319 = vmatprep.mubr.bf16.mxu0 %v3821_v5  ;;  %1575 = vmatprep.mubr.bf16.mxu1 %v3908_v6 }
  0xbb   : > { %1320 = vmatmul.mubr.bf16.gmra.mrb[52].mxu0 %v3823_v7  ;;  %1576 = vmatmul.mubr.bf16.gmra.mrb[52].mxu1 %v3910_v8  ;;  %v3905_v7 = vld [vmem:[%s4068_s26 + $0x1c4] ss:$8 sps:$4 sm:$0xff]  }
  0xbc   : > { %1327 = vmatprep.mubr.bf16.mxu0 %v3824_v9  ;;  %1583 = vmatprep.mubr.bf16.mxu1 %v3914_v10  ;;  %v3961_v10 = vld [vmem:[%s4068_s26 + $0x3b0] ss:$8 sps:$4 sm:$0xff]  }
  0xc3   : > { %1328 = vmatmul.mubr.bf16.gmra.mrb[56].mxu0 %v3826_v11  ;;  %1584 = vmatmul.mubr.bf16.gmra.mrb[56].mxu1 %v3916_v12 }
  0xc4   : > { %1335 = vmatprep.mubr.bf16.mxu0 %v3827_v13  ;;  %1591 = vmatprep.mubr.bf16.mxu1 %v3920_v14 }
  0xcb   : > { %1336 = vmatmul.mubr.bf16.gmra.mrb[60].mxu0 %v3829_v15  ;;  %1592 = vmatmul.mubr.bf16.gmra.mrb[60].mxu1 %v3922_v16 }
  0xcc   : > { %1343 = vmatprep.mubr.bf16.mxu0 %v3833_v17  ;;  %1599 = vmatprep.mubr.bf16.mxu1 %v3926_v18 }
  0xd3   : > { %1344 = vmatmul.mubr.bf16.gmra.mrb[64].mxu0 %v3835_v19  ;;  %1600 = vmatmul.mubr.bf16.gmra.mrb[64].mxu1 %v3928_v20 }
  0xd4   : > { %1351 = vmatprep.mubr.bf16.mxu0 %v3839_v21  ;;  %1607 = vmatprep.mubr.bf16.mxu1 %v3929_v22  ;;  %v3962_v21 = vld [vmem:[%s4068_s26 + $0x3c4] ss:$8 sps:$4 sm:$0xff]  }
  0xdb   : > { %1352 = vmatmul.mubr.bf16.gmra.mrb[68].mxu0 %v3841_v23  ;;  %1608 = vmatmul.mubr.bf16.gmra.mrb[68].mxu1 %v3931_v24 }
  0xdc   : > { %1359 = vmatprep.mubr.bf16.mxu0 %v3845_v25  ;;  %1615 = vmatprep.mubr.bf16.mxu1 %v3932_v26  ;;  %v3907_v26 = vld [vmem:[%s4068_s26 + $0x1c0] ss:$8 sps:$4 sm:$0xff]  }
  0xe3   : > { %1360 = vmatmul.mubr.bf16.gmra.mrb[72].mxu0 %v3847_v27  ;;  %1616 = vmatmul.mubr.bf16.gmra.mrb[72].mxu1 %v3934_v28 }
  0xe4   : > { %1367 = vmatprep.mubr.bf16.mxu0 %v3851_v29  ;;  %1623 = vmatprep.mubr.bf16.mxu1 %v3935_v30  ;;  %v3911_v29 = vld [vmem:[%s4068_s26 + $0x1d4] ss:$8 sps:$4 sm:$0xff]  }
  0xeb   : > { %1368 = vmatmul.mubr.bf16.gmra.mrb[76].mxu0 %v3853_v31  ;;  %1624 = vmatmul.mubr.bf16.gmra.mrb[76].mxu1 %v3937_v32  ;;  %v3964_v32 = vld [vmem:[%s4068_s26 + $0x3c0] ss:$8 sps:$4 sm:$0xff]  }
  0xec   : > { %1375 = vmatprep.mubr.bf16.mxu0 %v3857_v33  ;;  %1631 = vmatprep.mubr.bf16.mxu1 %v3938_v34 }
  0xf3   : > { %1376 = vmatmul.mubr.bf16.gmra.mrb[80].mxu0 %v3859_v35  ;;  %1632 = vmatmul.mubr.bf16.gmra.mrb[80].mxu1 %v3940_v36 }
  0xf4   : > { %1383 = vmatprep.mubr.bf16.mxu0 %v3863_v37  ;;  %1639 = vmatprep.mubr.bf16.mxu1 %v3941_v38 }
  0xfb   : > { %1384 = vmatmul.mubr.bf16.gmra.mrb[84].mxu0 %v3865_v39  ;;  %1640 = vmatmul.mubr.bf16.gmra.mrb[84].mxu1 %v3943_v40 }
  0xfc   : > { %1391 = vmatprep.mubr.bf16.mxu0 %v3869_v41  ;;  %1647 = vmatprep.mubr.bf16.mxu1 %v3944_v42 }
 0x103   : > { %1392 = vmatmul.mubr.bf16.gmra.mrb[88].mxu0 %v3871_v43  ;;  %1648 = vmatmul.mubr.bf16.gmra.mrb[88].mxu1 %v3946_v44 }
 0x104   : > { %1399 = vmatprep.mubr.bf16.mxu0 %v3875_v45  ;;  %1655 = vmatprep.mubr.bf16.mxu1 %v3947_v46  ;;  %v3965_v45 = vld [vmem:[%s4068_s26 + $0x3d4] ss:$8 sps:$4 sm:$0xff]  }
 0x10b   : > { %1400 = vmatmul.mubr.bf16.gmra.mrb[92].mxu0 %v3877_v47  ;;  %1656 = vmatmul.mubr.bf16.gmra.mrb[92].mxu1 %v3949_v48 }
 0x10c   : > { %1407 = vmatprep.mubr.bf16.mxu0 %v3881_v49  ;;  %1663 = vmatprep.mubr.bf16.mxu1 %v3950_v50  ;;  %v3913_v50 = vld [vmem:[%s4068_s26 + $0x1d0] ss:$8 sps:$4 sm:$0xff]  }
 0x113   : > { %1408 = vmatmul.mubr.bf16.gmra.mrb[96].mxu0 %v3883_v51  ;;  %1664 = vmatmul.mubr.bf16.gmra.mrb[96].mxu1 %v3952_v52 }
 0x114   : > { %1415 = vmatprep.mubr.bf16.mxu0 %v3887_v53  ;;  %1671 = vmatprep.mubr.bf16.mxu1 %v3953_v54  ;;  %v3917_v53 = vld [vmem:[%s4068_s26 + $0x1e4] ss:$8 sps:$4 sm:$0xff]  }
 0x11b   : > { %1416 = vmatmul.mubr.bf16.gmra.mrb[100].mxu0 %v3889_v55  ;;  %1672 = vmatmul.mubr.bf16.gmra.mrb[100].mxu1 %v3955_v56  ;;  %v3967_v56 = vld [vmem:[%s4068_s26 + $0x3d0] ss:$8 sps:$4 sm:$0xff]  }
 0x11c   : > { %1423 = vmatprep.mubr.bf16.mxu0 %v3893_v57  ;;  %1679 = vmatprep.mubr.bf16.mxu1 %v3956_v58 }
 0x123   : > { %1424 = vmatmul.mubr.bf16.gmra.mrb[104].mxu0 %v3895_v59  ;;  %1680 = vmatmul.mubr.bf16.gmra.mrb[104].mxu1 %v3958_v60 }
 0x124   : > { %1431 = vmatprep.mubr.bf16.mxu0 %v3899_v61  ;;  %1687 = vmatprep.mubr.bf16.mxu1 %v3959_v63 }
 0x126   : > { %v1217_v0 = vpop.f32.mrb[0].mxu0  ;;  %v1473_v1 = vpop.f32.mrb[0].mxu1 }
 0x127   : > { %v1218_v2 = vadd.f32 %v4217_v62, %v1217_v0  ;;  %v1219_v3 = vpop.f32.mrb[1].mxu0  ;;  %v1475_v5 = vpop.f32.mrb[1].mxu1  ;;  %v4225_v8 = vadd.f32 %v4217_v62, %v1473_v1 }
 0x128   : > { %v1220_v6 = vpop.f32.mrb[2].mxu0  ;;  %v1476_v9 = vpop.f32.mrb[2].mxu1 }
 0x129   : > { %v1221_v11 = vadd.f32 %v4217_v62, %v1220_v6  ;;  %v1222_v12 = vpop.f32.mrb[3].mxu0  ;;  %v4230_v13 = vadd.f32 %v4217_v62, %v1476_v9  ;;  %v1478_v14 = vpop.f32.mrb[3].mxu1  ;;  %v1861_v15 = vmul.f32 %v1218_v2, %v1218_v2  ;;  %v3968_v6 = vld [vmem:[%s4068_s26 + $0x3e4] ss:$8 sps:$4 sm:$0xff]  }
 0x12a   : > { %v3919_v12 = vld [vmem:[%s4068_s26 + $0x1e0] ss:$8 sps:$4 sm:$0xff]  }
 0x12b   : > { %v1728_v16 = vadd.f32 %v1221_v11, %v1218_v2  ;;  %v1862_v17 = vmul.f32 %v1221_v11, %v1221_v11  ;;  %v3329_v18 = vpack.c.bf16 %v1221_v11, %v1218_v2  ;;  %1432 = vmatmul.mubr.bf16.gmra.mrb[108].mxu0 %v3901_v4  ;;  %v3489_v19 = vpack.c.bf16 %v4230_v13, %v4225_v8 }
 0x12c   : > { %1439 = vmatprep.mubr.bf16.mxu0 %v3905_v7  ;;  %1688 = vmatmul.mubr.bf16.gmra.mrb[108].mxu1 %v3961_v10 }
 0x12d   : > { %v1989_v20 = vadd.f32 %v1862_v17, %v1861_v15  ;;  %3330 = vst [vmem:[%s4235_s6] sm:$0xff] %v3329_v18   ;;  %3677 = vst [vmem:[%s4235_s6 + $0x100] sm:$0xff] %v3489_v19   ;;  %1695 = vmatprep.mubr.bf16.mxu1 %v3962_v21  ;;  %v3970_v19 = vld [vmem:[%s4068_s26 + $0x3e0] ss:$8 sps:$4 sm:$0xff]  }
 0x12e   : > { %v1225_v22 = vpop.f32.mrb[4].mxu0  ;;  %v1481_v23 = vpop.f32.mrb[4].mxu1 }
 0x12f   : > { %v1226_v24 = vadd.f32 %v4217_v62, %v1225_v22  ;;  %v1227_v25 = vpop.f32.mrb[5].mxu0  ;;  %v1483_v27 = vpop.f32.mrb[5].mxu1  ;;  %v4246_v30 = vadd.f32 %v4217_v62, %v1481_v23 }
 0x130   : > { %v1228_v28 = vpop.f32.mrb[6].mxu0  ;;  %v1484_v31 = vpop.f32.mrb[6].mxu1 }
 0x131   : > { %v1729_v33 = vadd.f32 %v1728_v16, %v1226_v24  ;;  %v1863_v34 = vmul.f32 %v1226_v24, %v1226_v24  ;;  %v1229_v35 = vadd.f32 %v4217_v62, %v1228_v28  ;;  %v1230_v36 = vpop.f32.mrb[7].mxu0  ;;  %v1486_v37 = vpop.f32.mrb[7].mxu1  ;;  %v4251_v38 = vadd.f32 %v4217_v62, %v1484_v31  ;;  %v3923_v16 = vld [vmem:[%s4068_s26 + $0x1f4] ss:$8 sps:$4 sm:$0xff]  }
 0x133   : > { %v1990_v39 = vadd.f32 %v1989_v20, %v1863_v34  ;;  %v1730_v40 = vadd.f32 %v1729_v33, %v1229_v35  ;;  %v1864_v41 = vmul.f32 %v1229_v35, %v1229_v35  ;;  %v3334_v42 = vpack.c.bf16 %v1229_v35, %v1226_v24  ;;  %1440 = vmatmul.mubr.bf16.gmra.mrb[112].mxu0 %v3907_v26  ;;  %v3971_v33 = vld [vmem:[%s4068_s26 + $0x3f4] ss:$8 sps:$4 sm:$0xff]  }
 0x134   : > { %1447 = vmatprep.mubr.bf16.mxu0 %v3911_v29  ;;  %v3494_v43 = vpack.c.bf16 %v4251_v38, %v4246_v30  ;;  %1696 = vmatmul.mubr.bf16.gmra.mrb[112].mxu1 %v3964_v32 }
 0x135   : > { %v1991_v44 = vadd.f32 %v1990_v39, %v1864_v41  ;;  %3646 = vst [vmem:[%s4235_s6 + $0x8] sm:$0xff] %v3334_v42   ;;  %1703 = vmatprep.mubr.bf16.mxu1 %v3965_v45  ;;  %v3925_v39 = vld [vmem:[%s4068_s26 + $0x1f0] ss:$8 sps:$4 sm:$0xff]  }
 0x136   : > { %v1233_v46 = vpop.f32.mrb[8].mxu0  ;;  %3678 = vst [vmem:[%s4235_s6 + $0x108] sm:$0xff] %v3494_v43   ;;  %v1489_v47 = vpop.f32.mrb[8].mxu1 }
 0x137   : > { %v1234_v48 = vadd.f32 %v4217_v62, %v1233_v46  ;;  %v1235_v49 = vpop.f32.mrb[9].mxu0  ;;  %v1491_v51 = vpop.f32.mrb[9].mxu1  ;;  %v4262_v54 = vadd.f32 %v4217_v62, %v1489_v47 }
 0x138   : > { %v1236_v52 = vpop.f32.mrb[10].mxu0  ;;  %v1492_v55 = vpop.f32.mrb[10].mxu1 }
 0x139   : > { %v1731_v57 = vadd.f32 %v1730_v40, %v1234_v48  ;;  %v1865_v58 = vmul.f32 %v1234_v48, %v1234_v48  ;;  %v1237_v59 = vadd.f32 %v4217_v62, %v1236_v52  ;;  %v1238_v60 = vpop.f32.mrb[11].mxu0  ;;  %v1494_v61 = vpop.f32.mrb[11].mxu1  ;;  %v4267_v63 = vadd.f32 %v4217_v62, %v1492_v55 }
 0x13b   : > { %v1992_v0 = vadd.f32 %v1991_v44, %v1865_v58  ;;  %v1732_v1 = vadd.f32 %v1731_v57, %v1237_v59  ;;  %v1866_v2 = vmul.f32 %v1237_v59, %v1237_v59  ;;  %v3339_v3 = vpack.c.bf16 %v1237_v59, %v1234_v48  ;;  %1448 = vmatmul.mubr.bf16.gmra.mrb[116].mxu0 %v3913_v50  ;;  %v3973_v44 = vld [vmem:[%s4068_s26 + $0x3f0] ss:$8 sps:$4 sm:$0xff]  }
 0x13c   : > { %1455 = vmatprep.mubr.bf16.mxu0 %v3917_v53  ;;  %v3499_v4 = vpack.c.bf16 %v4267_v63, %v4262_v54  ;;  %1704 = vmatmul.mubr.bf16.gmra.mrb[116].mxu1 %v3967_v56 }
 0x13d   : > { %v1993_v5 = vadd.f32 %v1992_v0, %v1866_v2  ;;  %3647 = vst [vmem:[%s4235_s6 + $0x10] sm:$0xff] %v3339_v3   ;;  %1711 = vmatprep.mubr.bf16.mxu1 %v3968_v6 }
 0x13e   : > { %v1241_v7 = vpop.f32.mrb[12].mxu0  ;;  %3679 = vst [vmem:[%s4235_s6 + $0x110] sm:$0xff] %v3499_v4   ;;  %v1497_v9 = vpop.f32.mrb[12].mxu1 }
 0x13f   : > { %v1242_v10 = vadd.f32 %v4217_v62, %v1241_v7  ;;  %v1243_v11 = vpop.f32.mrb[13].mxu0  ;;  %v1499_v14 = vpop.f32.mrb[13].mxu1  ;;  %v4278_v17 = vadd.f32 %v4217_v62, %v1497_v9 }
 0x140   : > { %v1244_v15 = vpop.f32.mrb[14].mxu0  ;;  %v1500_v18 = vpop.f32.mrb[14].mxu1 }
 0x141   : > { %v1733_v20 = vadd.f32 %v1732_v1, %v1242_v10  ;;  %v1867_v21 = vmul.f32 %v1242_v10, %v1242_v10  ;;  %v1245_v22 = vadd.f32 %v4217_v62, %v1244_v15  ;;  %v1246_v23 = vpop.f32.mrb[15].mxu0  ;;  %v1502_v24 = vpop.f32.mrb[15].mxu1  ;;  %v4283_v25 = vadd.f32 %v4217_v62, %v1500_v18 }
 0x143   : > { %v1994_v26 = vadd.f32 %v1993_v5, %v1867_v21  ;;  %v1734_v27 = vadd.f32 %v1733_v20, %v1245_v22  ;;  %v1868_v28 = vmul.f32 %v1245_v22, %v1245_v22  ;;  %v3344_v29 = vpack.c.bf16 %v1245_v22, %v1242_v10  ;;  %1456 = vmatmul.mubr.bf16.gmra.mrb[120].mxu0 %v3919_v12 }
 0x144   : > { %1463 = vmatprep.mubr.bf16.mxu0 %v3923_v16  ;;  %v3504_v31 = vpack.c.bf16 %v4283_v25, %v4278_v17  ;;  %1712 = vmatmul.mubr.bf16.gmra.mrb[120].mxu1 %v3970_v19 }
 0x145   : > { %v1995_v32 = vadd.f32 %v1994_v26, %v1868_v28  ;;  %3648 = vst [vmem:[%s4235_s6 + $0x18] sm:$0xff] %v3344_v29   ;;  %1719 = vmatprep.mubr.bf16.mxu1 %v3971_v33 }
 0x146   : > { %v1249_v34 = vpop.f32.mrb[16].mxu0  ;;  %3680 = vst [vmem:[%s4235_s6 + $0x118] sm:$0xff] %v3504_v31   ;;  %v1505_v35 = vpop.f32.mrb[16].mxu1 }
 0x147   : > { %v1250_v36 = vadd.f32 %v4217_v62, %v1249_v34  ;;  %v1251_v37 = vpop.f32.mrb[17].mxu0  ;;  %v1507_v40 = vpop.f32.mrb[17].mxu1  ;;  %v4293_v42 = vadd.f32 %v4217_v62, %v1505_v35 }
 0x148   : > { %v1252_v41 = vpop.f32.mrb[18].mxu0  ;;  %v1508_v43 = vpop.f32.mrb[18].mxu1 }
 0x149   : > { %v1735_v45 = vadd.f32 %v1734_v27, %v1250_v36  ;;  %v1869_v46 = vmul.f32 %v1250_v36, %v1250_v36  ;;  %v1253_v47 = vadd.f32 %v4217_v62, %v1252_v41  ;;  %v1254_v48 = vpop.f32.mrb[19].mxu0  ;;  %v1510_v49 = vpop.f32.mrb[19].mxu1  ;;  %v4298_v50 = vadd.f32 %v4217_v62, %v1508_v43 }
 0x14b   : > { %v1996_v51 = vadd.f32 %v1995_v32, %v1869_v46  ;;  %v1736_v52 = vadd.f32 %v1735_v45, %v1253_v47  ;;  %v1870_v53 = vmul.f32 %v1253_v47, %v1253_v47  ;;  %v3349_v55 = vpack.c.bf16 %v1253_v47, %v1250_v36  ;;  %1464 = vmatmul.mubr.bf16.gmra.mrb[124].mxu0 %v3925_v39 }
 0x14c   : > { %v3509_v56 = vpack.c.bf16 %v4298_v50, %v4293_v42  ;;  %1720 = vmatmul.mubr.bf16.gmra.mrb[124].mxu1 %v3973_v44 }
 0x14d   : > { %v1997_v57 = vadd.f32 %v1996_v51, %v1870_v53  ;;  %3649 = vst [vmem:[%s4235_s6 + $0x20] sm:$0xff] %v3349_v55  }
 0x14e   : > { %v1257_v58 = vpop.f32.mrb[20].mxu0  ;;  %3681 = vst [vmem:[%s4235_s6 + $0x120] sm:$0xff] %v3509_v56   ;;  %v1513_v59 = vpop.f32.mrb[20].mxu1 }
 0x14f   : > { %v1258_v60 = vadd.f32 %v4217_v62, %v1257_v58  ;;  %v1259_v61 = vpop.f32.mrb[21].mxu0  ;;  %v1515_v0 = vpop.f32.mrb[21].mxu1  ;;  %v4306_v2 = vadd.f32 %v4217_v62, %v1513_v59 }
 0x150   : > { %v1260_v1 = vpop.f32.mrb[22].mxu0  ;;  %v1516_v3 = vpop.f32.mrb[22].mxu1 }
 0x151   : > { %v1737_v4 = vadd.f32 %v1736_v52, %v1258_v60  ;;  %v1871_v5 = vmul.f32 %v1258_v60, %v1258_v60  ;;  %v1261_v6 = vadd.f32 %v4217_v62, %v1260_v1  ;;  %v1262_v7 = vpop.f32.mrb[23].mxu0  ;;  %v1518_v9 = vpop.f32.mrb[23].mxu1  ;;  %v4310_v10 = vadd.f32 %v4217_v62, %v1516_v3 }
 0x153   : > { %v1998_v11 = vadd.f32 %v1997_v57, %v1871_v5  ;;  %v1738_v12 = vadd.f32 %v1737_v4, %v1261_v6  ;;  %v1872_v14 = vmul.f32 %v1261_v6, %v1261_v6  ;;  %v3354_v15 = vpack.c.bf16 %v1261_v6, %v1258_v60 }
 0x154   : > { %v3514_v16 = vpack.c.bf16 %v4310_v10, %v4306_v2 }
 0x155   : > { %v1999_v18 = vadd.f32 %v1998_v11, %v1872_v14  ;;  %3650 = vst [vmem:[%s4235_s6 + $0x28] sm:$0xff] %v3354_v15  }
 0x156   : > { %v1265_v19 = vpop.f32.mrb[24].mxu0  ;;  %3682 = vst [vmem:[%s4235_s6 + $0x128] sm:$0xff] %v3514_v16   ;;  %v1521_v20 = vpop.f32.mrb[24].mxu1 }
 0x157   : > { %v1266_v21 = vadd.f32 %v4217_v62, %v1265_v19  ;;  %v1267_v22 = vpop.f32.mrb[25].mxu0  ;;  %v1523_v23 = vpop.f32.mrb[25].mxu1  ;;  %v4318_v26 = vadd.f32 %v4217_v62, %v1521_v20 }
 0x158   : > { %v1268_v24 = vpop.f32.mrb[26].mxu0  ;;  %v1524_v27 = vpop.f32.mrb[26].mxu1 }
 0x159   : > { %v1739_v28 = vadd.f32 %v1738_v12, %v1266_v21  ;;  %v1873_v29 = vmul.f32 %v1266_v21, %v1266_v21  ;;  %v1269_v31 = vadd.f32 %v4217_v62, %v1268_v24  ;;  %v1270_v32 = vpop.f32.mrb[27].mxu0  ;;  %v1526_v33 = vpop.f32.mrb[27].mxu1  ;;  %v4322_v34 = vadd.f32 %v4217_v62, %v1524_v27 }
 0x15b   : > { %v2000_v35 = vadd.f32 %v1999_v18, %v1873_v29  ;;  %v1740_v36 = vadd.f32 %v1739_v28, %v1269_v31  ;;  %v1874_v37 = vmul.f32 %v1269_v31, %v1269_v31  ;;  %v3359_v39 = vpack.c.bf16 %v1269_v31, %v1266_v21 }
 0x15c   : > { %v3519_v40 = vpack.c.bf16 %v4322_v34, %v4318_v26 }
 0x15d   : > { %v2001_v41 = vadd.f32 %v2000_v35, %v1874_v37  ;;  %3651 = vst [vmem:[%s4235_s6 + $0x30] sm:$0xff] %v3359_v39  }
 0x15e   : > { %v1273_v43 = vpop.f32.mrb[28].mxu0  ;;  %3683 = vst [vmem:[%s4235_s6 + $0x130] sm:$0xff] %v3519_v40   ;;  %v1529_v44 = vpop.f32.mrb[28].mxu1 }
 0x15f   : > { %v1274_v45 = vadd.f32 %v4217_v62, %v1273_v43  ;;  %v1275_v46 = vpop.f32.mrb[29].mxu0  ;;  %v1531_v47 = vpop.f32.mrb[29].mxu1  ;;  %v4330_v49 = vadd.f32 %v4217_v62, %v1529_v44 }
 0x160   : > { %v1276_v48 = vpop.f32.mrb[30].mxu0  ;;  %v1532_v51 = vpop.f32.mrb[30].mxu1 }
 0x161   : > { %v1741_v52 = vadd.f32 %v1740_v36, %v1274_v45  ;;  %v1875_v53 = vmul.f32 %v1274_v45, %v1274_v45  ;;  %v1277_v55 = vadd.f32 %v4217_v62, %v1276_v48  ;;  %v1278_v56 = vpop.f32.mrb[31].mxu0  ;;  %v1534_v57 = vpop.f32.mrb[31].mxu1  ;;  %v4334_v58 = vadd.f32 %v4217_v62, %v1532_v51 }
 0x163   : > { %v2002_v59 = vadd.f32 %v2001_v41, %v1875_v53  ;;  %v1742_v60 = vadd.f32 %v1741_v52, %v1277_v55  ;;  %v1876_v61 = vmul.f32 %v1277_v55, %v1277_v55  ;;  %v3364_v0 = vpack.c.bf16 %v1277_v55, %v1274_v45 }
 0x164   : > { %v3524_v1 = vpack.c.bf16 %v4334_v58, %v4330_v49 }
 0x165   : > { %v2003_v3 = vadd.f32 %v2002_v59, %v1876_v61  ;;  %3652 = vst [vmem:[%s4235_s6 + $0x38] sm:$0xff] %v3364_v0  }
 0x166   : > { %v1281_v4 = vpop.f32.mrb[32].mxu0  ;;  %3684 = vst [vmem:[%s4235_s6 + $0x138] sm:$0xff] %v3524_v1   ;;  %v1537_v5 = vpop.f32.mrb[32].mxu1 }
 0x167   : > { %v1282_v6 = vadd.f32 %v4217_v62, %v1281_v4  ;;  %v1283_v7 = vpop.f32.mrb[33].mxu0  ;;  %v1539_v9 = vpop.f32.mrb[33].mxu1  ;;  %v4342_v12 = vadd.f32 %v4217_v62, %v1537_v5 }
 0x168   : > { %v1284_v11 = vpop.f32.mrb[34].mxu0  ;;  %v1540_v14 = vpop.f32.mrb[34].mxu1 }
 0x169   : > { %v1743_v15 = vadd.f32 %v1742_v60, %v1282_v6  ;;  %v1877_v16 = vmul.f32 %v1282_v6, %v1282_v6  ;;  %v1285_v18 = vadd.f32 %v4217_v62, %v1284_v11  ;;  %v1286_v19 = vpop.f32.mrb[35].mxu0  ;;  %v1542_v20 = vpop.f32.mrb[35].mxu1  ;;  %v4346_v21 = vadd.f32 %v4217_v62, %v1540_v14 }
 0x16b   : > { %v2004_v22 = vadd.f32 %v2003_v3, %v1877_v16  ;;  %v1744_v23 = vadd.f32 %v1743_v15, %v1285_v18  ;;  %v1878_v24 = vmul.f32 %v1285_v18, %v1285_v18  ;;  %v3369_v27 = vpack.c.bf16 %v1285_v18, %v1282_v6 }
 0x16c   : > { %v3529_v28 = vpack.c.bf16 %v4346_v21, %v4342_v12 }
 0x16d   : > { %v2005_v29 = vadd.f32 %v2004_v22, %v1878_v24  ;;  %3653 = vst [vmem:[%s4235_s6 + $0x40] sm:$0xff] %v3369_v27  }
 0x16e   : > { %v1289_v31 = vpop.f32.mrb[36].mxu0  ;;  %3685 = vst [vmem:[%s4235_s6 + $0x140] sm:$0xff] %v3529_v28   ;;  %v1545_v32 = vpop.f32.mrb[36].mxu1 }
 0x16f   : > { %v1290_v33 = vadd.f32 %v4217_v62, %v1289_v31  ;;  %v1291_v35 = vpop.f32.mrb[37].mxu0  ;;  %v1547_v36 = vpop.f32.mrb[37].mxu1  ;;  %v4354_v39 = vadd.f32 %v4217_v62, %v1545_v32 }
 0x170   : > { %v1292_v37 = vpop.f32.mrb[38].mxu0  ;;  %v1548_v40 = vpop.f32.mrb[38].mxu1 }
 0x171   : > { %v1745_v41 = vadd.f32 %v1744_v23, %v1290_v33  ;;  %v1879_v43 = vmul.f32 %v1290_v33, %v1290_v33  ;;  %v1293_v44 = vadd.f32 %v4217_v62, %v1292_v37  ;;  %v1294_v45 = vpop.f32.mrb[39].mxu0  ;;  %v1550_v46 = vpop.f32.mrb[39].mxu1  ;;  %v4358_v47 = vadd.f32 %v4217_v62, %v1548_v40 }
 0x173   : > { %v2006_v48 = vadd.f32 %v2005_v29, %v1879_v43  ;;  %v1746_v51 = vadd.f32 %v1745_v41, %v1293_v44  ;;  %v1880_v52 = vmul.f32 %v1293_v44, %v1293_v44  ;;  %v3374_v53 = vpack.c.bf16 %v1293_v44, %v1290_v33 }
 0x174   : > { %v3534_v55 = vpack.c.bf16 %v4358_v47, %v4354_v39 }
 0x175   : > { %v2007_v56 = vadd.f32 %v2006_v48, %v1880_v52  ;;  %3654 = vst [vmem:[%s4235_s6 + $0x48] sm:$0xff] %v3374_v53  }
 0x176   : > { %v1297_v57 = vpop.f32.mrb[40].mxu0  ;;  %3686 = vst [vmem:[%s4235_s6 + $0x148] sm:$0xff] %v3534_v55   ;;  %v1553_v59 = vpop.f32.mrb[40].mxu1 }
 0x177   : > { %v1298_v60 = vadd.f32 %v4217_v62, %v1297_v57  ;;  %v1299_v61 = vpop.f32.mrb[41].mxu0  ;;  %v1555_v0 = vpop.f32.mrb[41].mxu1  ;;  %v4366_v3 = vadd.f32 %v4217_v62, %v1553_v59 }
 0x178   : > { %v1300_v1 = vpop.f32.mrb[42].mxu0  ;;  %v1556_v4 = vpop.f32.mrb[42].mxu1 }
 0x179   : > { %v1747_v5 = vadd.f32 %v1746_v51, %v1298_v60  ;;  %v1881_v6 = vmul.f32 %v1298_v60, %v1298_v60  ;;  %v1301_v7 = vadd.f32 %v4217_v62, %v1300_v1  ;;  %v1302_v9 = vpop.f32.mrb[43].mxu0  ;;  %v1558_v11 = vpop.f32.mrb[43].mxu1  ;;  %v4370_v14 = vadd.f32 %v4217_v62, %v1556_v4 }
 0x17b   : > { %v2008_v15 = vadd.f32 %v2007_v56, %v1881_v6  ;;  %v1748_v16 = vadd.f32 %v1747_v5, %v1301_v7  ;;  %v1882_v18 = vmul.f32 %v1301_v7, %v1301_v7  ;;  %v3379_v19 = vpack.c.bf16 %v1301_v7, %v1298_v60 }
 0x17c   : > { %v3539_v20 = vpack.c.bf16 %v4370_v14, %v4366_v3 }
 0x17d   : > { %v2009_v22 = vadd.f32 %v2008_v15, %v1882_v18  ;;  %3655 = vst [vmem:[%s4235_s6 + $0x50] sm:$0xff] %v3379_v19  }
 0x17e   : > { %v1305_v23 = vpop.f32.mrb[44].mxu0  ;;  %3687 = vst [vmem:[%s4235_s6 + $0x150] sm:$0xff] %v3539_v20   ;;  %v1561_v24 = vpop.f32.mrb[44].mxu1 }
 0x17f   : > { %v1306_v27 = vadd.f32 %v4217_v62, %v1305_v23  ;;  %v1307_v28 = vpop.f32.mrb[45].mxu0  ;;  %v1563_v29 = vpop.f32.mrb[45].mxu1  ;;  %v4378_v32 = vadd.f32 %v4217_v62, %v1561_v24 }
 0x180   : > { %v1308_v31 = vpop.f32.mrb[46].mxu0  ;;  %v1564_v33 = vpop.f32.mrb[46].mxu1 }
 0x181   : > { %v1749_v35 = vadd.f32 %v1748_v16, %v1306_v27  ;;  %v1883_v36 = vmul.f32 %v1306_v27, %v1306_v27  ;;  %v1309_v37 = vadd.f32 %v4217_v62, %v1308_v31  ;;  %v1310_v40 = vpop.f32.mrb[47].mxu0  ;;  %v1566_v41 = vpop.f32.mrb[47].mxu1  ;;  %v4382_v43 = vadd.f32 %v4217_v62, %v1564_v33 }
 0x183   : > { %v2010_v44 = vadd.f32 %v2009_v22, %v1883_v36  ;;  %v1750_v45 = vadd.f32 %v1749_v35, %v1309_v37  ;;  %v1884_v46 = vmul.f32 %v1309_v37, %v1309_v37  ;;  %v3384_v48 = vpack.c.bf16 %v1309_v37, %v1306_v27 }
 0x184   : > { %v3544_v51 = vpack.c.bf16 %v4382_v43, %v4378_v32 }
 0x185   : > { %v2011_v52 = vadd.f32 %v2010_v44, %v1884_v46  ;;  %3656 = vst [vmem:[%s4235_s6 + $0x58] sm:$0xff] %v3384_v48  }
 0x186   : > { %v1313_v53 = vpop.f32.mrb[48].mxu0  ;;  %3688 = vst [vmem:[%s4235_s6 + $0x158] sm:$0xff] %v3544_v51   ;;  %v1569_v55 = vpop.f32.mrb[48].mxu1 }
 0x187   : > { %v1314_v56 = vadd.f32 %v4217_v62, %v1313_v53  ;;  %v1315_v57 = vpop.f32.mrb[49].mxu0  ;;  %v1571_v59 = vpop.f32.mrb[49].mxu1  ;;  %v4390_v61 = vadd.f32 %v4217_v62, %v1569_v55 }
 0x188   : > { %v1316_v60 = vpop.f32.mrb[50].mxu0  ;;  %v1572_v0 = vpop.f32.mrb[50].mxu1 }
 0x189   : > { %v1751_v1 = vadd.f32 %v1750_v45, %v1314_v56  ;;  %v1885_v4 = vmul.f32 %v1314_v56, %v1314_v56  ;;  %v1317_v5 = vadd.f32 %v4217_v62, %v1316_v60  ;;  %v1318_v6 = vpop.f32.mrb[51].mxu0  ;;  %v1574_v7 = vpop.f32.mrb[51].mxu1  ;;  %v4394_v9 = vadd.f32 %v4217_v62, %v1572_v0 }
 0x18b   : > { %v2012_v11 = vadd.f32 %v2011_v52, %v1885_v4  ;;  %v1752_v15 = vadd.f32 %v1751_v1, %v1317_v5  ;;  %v1886_v16 = vmul.f32 %v1317_v5, %v1317_v5  ;;  %v3389_v18 = vpack.c.bf16 %v1317_v5, %v1314_v56 }
 0x18c   : > { %v3549_v19 = vpack.c.bf16 %v4394_v9, %v4390_v61 }
 0x18d   : > { %v2013_v20 = vadd.f32 %v2012_v11, %v1886_v16  ;;  %3657 = vst [vmem:[%s4235_s6 + $0x60] sm:$0xff] %v3389_v18  }
 0x18e   : > { %v1321_v22 = vpop.f32.mrb[52].mxu0  ;;  %3689 = vst [vmem:[%s4235_s6 + $0x160] sm:$0xff] %v3549_v19   ;;  %v1577_v23 = vpop.f32.mrb[52].mxu1 }
 0x18f   : > { %v1322_v24 = vadd.f32 %v4217_v62, %v1321_v22  ;;  %v1323_v27 = vpop.f32.mrb[53].mxu0  ;;  %v1579_v28 = vpop.f32.mrb[53].mxu1  ;;  %v4402_v31 = vadd.f32 %v4217_v62, %v1577_v23 }
 0x190   : > { %v1324_v29 = vpop.f32.mrb[54].mxu0  ;;  %v1580_v33 = vpop.f32.mrb[54].mxu1 }
 0x191   : > { %v1753_v35 = vadd.f32 %v1752_v15, %v1322_v24  ;;  %v1887_v36 = vmul.f32 %v1322_v24, %v1322_v24  ;;  %v1325_v37 = vadd.f32 %v4217_v62, %v1324_v29  ;;  %v1326_v40 = vpop.f32.mrb[55].mxu0  ;;  %v1582_v41 = vpop.f32.mrb[55].mxu1  ;;  %v4406_v44 = vadd.f32 %v4217_v62, %v1580_v33 }
 0x193   : > { %v2014_v45 = vadd.f32 %v2013_v20, %v1887_v36  ;;  %v1754_v46 = vadd.f32 %v1753_v35, %v1325_v37  ;;  %v1888_v48 = vmul.f32 %v1325_v37, %v1325_v37  ;;  %v3394_v51 = vpack.c.bf16 %v1325_v37, %v1322_v24 }
 0x194   : > { %v3554_v52 = vpack.c.bf16 %v4406_v44, %v4402_v31 }
 0x195   : > { %v2015_v53 = vadd.f32 %v2014_v45, %v1888_v48  ;;  %3658 = vst [vmem:[%s4235_s6 + $0x68] sm:$0xff] %v3394_v51  }
 0x196   : > { %v1329_v55 = vpop.f32.mrb[56].mxu0  ;;  %3690 = vst [vmem:[%s4235_s6 + $0x168] sm:$0xff] %v3554_v52   ;;  %v1585_v56 = vpop.f32.mrb[56].mxu1 }
 0x197   : > { %v1330_v57 = vadd.f32 %v4217_v62, %v1329_v55  ;;  %v1331_v59 = vpop.f32.mrb[57].mxu0  ;;  %v1587_v60 = vpop.f32.mrb[57].mxu1  ;;  %v4414_v1 = vadd.f32 %v4217_v62, %v1585_v56 }
 0x198   : > { %v1332_v0 = vpop.f32.mrb[58].mxu0  ;;  %v1588_v4 = vpop.f32.mrb[58].mxu1 }
 0x199   : > { %v1755_v5 = vadd.f32 %v1754_v46, %v1330_v57  ;;  %v1889_v6 = vmul.f32 %v1330_v57, %v1330_v57  ;;  %v1333_v7 = vadd.f32 %v4217_v62, %v1332_v0  ;;  %v1334_v11 = vpop.f32.mrb[59].mxu0  ;;  %v1590_v15 = vpop.f32.mrb[59].mxu1  ;;  %v4418_v16 = vadd.f32 %v4217_v62, %v1588_v4 }
 0x19b   : > { %v2016_v18 = vadd.f32 %v2015_v53, %v1889_v6  ;;  %v1756_v19 = vadd.f32 %v1755_v5, %v1333_v7  ;;  %v1890_v20 = vmul.f32 %v1333_v7, %v1333_v7  ;;  %v3399_v22 = vpack.c.bf16 %v1333_v7, %v1330_v57 }
 0x19c   : > { %v3559_v23 = vpack.c.bf16 %v4418_v16, %v4414_v1 }
 0x19d   : > { %v2017_v24 = vadd.f32 %v2016_v18, %v1890_v20  ;;  %3659 = vst [vmem:[%s4235_s6 + $0x70] sm:$0xff] %v3399_v22  }
 0x19e   : > { %v1337_v27 = vpop.f32.mrb[60].mxu0  ;;  %3691 = vst [vmem:[%s4235_s6 + $0x170] sm:$0xff] %v3559_v23   ;;  %v1593_v28 = vpop.f32.mrb[60].mxu1 }
 0x19f   : > { %v1338_v29 = vadd.f32 %v4217_v62, %v1337_v27  ;;  %v1339_v33 = vpop.f32.mrb[61].mxu0  ;;  %v1595_v35 = vpop.f32.mrb[61].mxu1  ;;  %v4426_v37 = vadd.f32 %v4217_v62, %v1593_v28 }
 0x1a0   : > { %v1340_v36 = vpop.f32.mrb[62].mxu0  ;;  %v1596_v40 = vpop.f32.mrb[62].mxu1 }
 0x1a1   : > { %v1757_v41 = vadd.f32 %v1756_v19, %v1338_v29  ;;  %v1891_v45 = vmul.f32 %v1338_v29, %v1338_v29  ;;  %v1341_v46 = vadd.f32 %v4217_v62, %v1340_v36  ;;  %v1342_v48 = vpop.f32.mrb[63].mxu0  ;;  %v1598_v51 = vpop.f32.mrb[63].mxu1  ;;  %v4430_v52 = vadd.f32 %v4217_v62, %v1596_v40 }
 0x1a3   : > { %v2018_v53 = vadd.f32 %v2017_v24, %v1891_v45  ;;  %v1758_v55 = vadd.f32 %v1757_v41, %v1341_v46  ;;  %v1892_v56 = vmul.f32 %v1341_v46, %v1341_v46  ;;  %v3404_v57 = vpack.c.bf16 %v1341_v46, %v1338_v29 }
 0x1a4   : > { %v3564_v59 = vpack.c.bf16 %v4430_v52, %v4426_v37 }
 0x1a5   : > { %v2019_v60 = vadd.f32 %v2018_v53, %v1892_v56  ;;  %3660 = vst [vmem:[%s4235_s6 + $0x78] sm:$0xff] %v3404_v57  }
 0x1a6   : > { %v1345_v0 = vpop.f32.mrb[64].mxu0  ;;  %3692 = vst [vmem:[%s4235_s6 + $0x178] sm:$0xff] %v3564_v59   ;;  %v1601_v4 = vpop.f32.mrb[64].mxu1 }
 0x1a7   : > { %v1346_v5 = vadd.f32 %v4217_v62, %v1345_v0  ;;  %v1347_v6 = vpop.f32.mrb[65].mxu0  ;;  %v1603_v7 = vpop.f32.mrb[65].mxu1  ;;  %v4438_v15 = vadd.f32 %v4217_v62, %v1601_v4 }
 0x1a8   : > { %v1348_v11 = vpop.f32.mrb[66].mxu0  ;;  %v1604_v18 = vpop.f32.mrb[66].mxu1 }
 0x1a9   : > { %v1759_v19 = vadd.f32 %v1758_v55, %v1346_v5  ;;  %v1893_v20 = vmul.f32 %v1346_v5, %v1346_v5  ;;  %v1349_v22 = vadd.f32 %v4217_v62, %v1348_v11  ;;  %v1350_v23 = vpop.f32.mrb[67].mxu0  ;;  %v1606_v24 = vpop.f32.mrb[67].mxu1  ;;  %v4442_v27 = vadd.f32 %v4217_v62, %v1604_v18 }
 0x1ab   : > { %v2020_v28 = vadd.f32 %v2019_v60, %v1893_v20  ;;  %v1760_v29 = vadd.f32 %v1759_v19, %v1349_v22  ;;  %v1894_v33 = vmul.f32 %v1349_v22, %v1349_v22  ;;  %v3409_v35 = vpack.c.bf16 %v1349_v22, %v1346_v5 }
 0x1ac   : > { %v3569_v36 = vpack.c.bf16 %v4442_v27, %v4438_v15 }
 0x1ad   : > { %v2021_v40 = vadd.f32 %v2020_v28, %v1894_v33  ;;  %3661 = vst [vmem:[%s4235_s6 + $0x80] sm:$0xff] %v3409_v35  }
 0x1ae   : > { %v1353_v41 = vpop.f32.mrb[68].mxu0  ;;  %3693 = vst [vmem:[%s4235_s6 + $0x180] sm:$0xff] %v3569_v36   ;;  %v1609_v45 = vpop.f32.mrb[68].mxu1 }
 0x1af   : > { %v1354_v46 = vadd.f32 %v4217_v62, %v1353_v41  ;;  %v1355_v48 = vpop.f32.mrb[69].mxu0  ;;  %v1611_v51 = vpop.f32.mrb[69].mxu1  ;;  %v4450_v55 = vadd.f32 %v4217_v62, %v1609_v45 }
 0x1b0   : > { %v1356_v53 = vpop.f32.mrb[70].mxu0  ;;  %v1612_v56 = vpop.f32.mrb[70].mxu1 }
 0x1b1   : > { %v1761_v57 = vadd.f32 %v1760_v29, %v1354_v46  ;;  %v1895_v59 = vmul.f32 %v1354_v46, %v1354_v46  ;;  %v1357_v60 = vadd.f32 %v4217_v62, %v1356_v53  ;;  %v1358_v0 = vpop.f32.mrb[71].mxu0  ;;  %v1614_v4 = vpop.f32.mrb[71].mxu1  ;;  %v4454_v5 = vadd.f32 %v4217_v62, %v1612_v56 }
 0x1b3   : > { %v2022_v6 = vadd.f32 %v2021_v40, %v1895_v59  ;;  %v1762_v7 = vadd.f32 %v1761_v57, %v1357_v60  ;;  %v1896_v11 = vmul.f32 %v1357_v60, %v1357_v60  ;;  %v3414_v18 = vpack.c.bf16 %v1357_v60, %v1354_v46 }
 0x1b4   : > { %v3574_v19 = vpack.c.bf16 %v4454_v5, %v4450_v55 }
 0x1b5   : > { %v2023_v20 = vadd.f32 %v2022_v6, %v1896_v11  ;;  %3662 = vst [vmem:[%s4235_s6 + $0x88] sm:$0xff] %v3414_v18  }
 0x1b6   : > { %v1361_v22 = vpop.f32.mrb[72].mxu0  ;;  %3694 = vst [vmem:[%s4235_s6 + $0x188] sm:$0xff] %v3574_v19   ;;  %v1617_v23 = vpop.f32.mrb[72].mxu1 }
 0x1b7   : > { %v1362_v24 = vadd.f32 %v4217_v62, %v1361_v22  ;;  %v1363_v28 = vpop.f32.mrb[73].mxu0  ;;  %v1619_v29 = vpop.f32.mrb[73].mxu1  ;;  %v4462_v35 = vadd.f32 %v4217_v62, %v1617_v23 }
 0x1b8   : > { %v1364_v33 = vpop.f32.mrb[74].mxu0  ;;  %v1620_v36 = vpop.f32.mrb[74].mxu1 }
 0x1b9   : > { %v1763_v40 = vadd.f32 %v1762_v7, %v1362_v24  ;;  %v1897_v41 = vmul.f32 %v1362_v24, %v1362_v24  ;;  %v1365_v45 = vadd.f32 %v4217_v62, %v1364_v33  ;;  %v1366_v46 = vpop.f32.mrb[75].mxu0  ;;  %v1622_v48 = vpop.f32.mrb[75].mxu1  ;;  %v4466_v51 = vadd.f32 %v4217_v62, %v1620_v36 }
 0x1bb   : > { %v2024_v53 = vadd.f32 %v2023_v20, %v1897_v41  ;;  %v1764_v56 = vadd.f32 %v1763_v40, %v1365_v45  ;;  %v1898_v57 = vmul.f32 %v1365_v45, %v1365_v45  ;;  %v3419_v59 = vpack.c.bf16 %v1365_v45, %v1362_v24 }
 0x1bc   : > { %v3579_v60 = vpack.c.bf16 %v4466_v51, %v4462_v35 }
 0x1bd   : > { %v2025_v0 = vadd.f32 %v2024_v53, %v1898_v57  ;;  %3663 = vst [vmem:[%s4235_s6 + $0x90] sm:$0xff] %v3419_v59  }
 0x1be   : > { %v1369_v4 = vpop.f32.mrb[76].mxu0  ;;  %3695 = vst [vmem:[%s4235_s6 + $0x190] sm:$0xff] %v3579_v60   ;;  %v1625_v6 = vpop.f32.mrb[76].mxu1 }
 0x1bf   : > { %v1370_v7 = vadd.f32 %v4217_v62, %v1369_v4  ;;  %v1371_v11 = vpop.f32.mrb[77].mxu0  ;;  %v1627_v18 = vpop.f32.mrb[77].mxu1  ;;  %v4474_v22 = vadd.f32 %v4217_v62, %v1625_v6 }
 0x1c0   : > { %v1372_v19 = vpop.f32.mrb[78].mxu0  ;;  %v1628_v20 = vpop.f32.mrb[78].mxu1 }
 0x1c1   : > { %v1765_v23 = vadd.f32 %v1764_v56, %v1370_v7  ;;  %v1899_v24 = vmul.f32 %v1370_v7, %v1370_v7  ;;  %v1373_v28 = vadd.f32 %v4217_v62, %v1372_v19  ;;  %v1374_v29 = vpop.f32.mrb[79].mxu0  ;;  %v1630_v33 = vpop.f32.mrb[79].mxu1  ;;  %v4478_v36 = vadd.f32 %v4217_v62, %v1628_v20 }
 0x1c3   : > { %v2026_v40 = vadd.f32 %v2025_v0, %v1899_v24  ;;  %v1766_v41 = vadd.f32 %v1765_v23, %v1373_v28  ;;  %v1900_v45 = vmul.f32 %v1373_v28, %v1373_v28  ;;  %v3424_v46 = vpack.c.bf16 %v1373_v28, %v1370_v7 }
 0x1c4   : > { %v3584_v48 = vpack.c.bf16 %v4478_v36, %v4474_v22 }
 0x1c5   : > { %v2027_v53 = vadd.f32 %v2026_v40, %v1900_v45  ;;  %3664 = vst [vmem:[%s4235_s6 + $0x98] sm:$0xff] %v3424_v46  }
 0x1c6   : > { %v1377_v57 = vpop.f32.mrb[80].mxu0  ;;  %3696 = vst [vmem:[%s4235_s6 + $0x198] sm:$0xff] %v3584_v48   ;;  %v1633_v56 = vpop.f32.mrb[80].mxu1 }
 0x1c7   : > { %v1378_v59 = vadd.f32 %v4217_v62, %v1377_v57  ;;  %v1379_v60 = vpop.f32.mrb[81].mxu0  ;;  %v1635_v4 = vpop.f32.mrb[81].mxu1  ;;  %v4486_v11 = vadd.f32 %v4217_v62, %v1633_v56 }
 0x1c8   : > { %v1380_v6 = vpop.f32.mrb[82].mxu0  ;;  %v1636_v0 = vpop.f32.mrb[82].mxu1 }
 0x1c9   : > { %v1767_v7 = vadd.f32 %v1766_v41, %v1378_v59  ;;  %v1901_v18 = vmul.f32 %v1378_v59, %v1378_v59  ;;  %v1381_v19 = vadd.f32 %v4217_v62, %v1380_v6  ;;  %v1382_v20 = vpop.f32.mrb[83].mxu0  ;;  %v1638_v23 = vpop.f32.mrb[83].mxu1  ;;  %v4490_v24 = vadd.f32 %v4217_v62, %v1636_v0 }
 0x1cb   : > { %v2028_v28 = vadd.f32 %v2027_v53, %v1901_v18  ;;  %v1768_v29 = vadd.f32 %v1767_v7, %v1381_v19  ;;  %v1902_v33 = vmul.f32 %v1381_v19, %v1381_v19  ;;  %v3429_v40 = vpack.c.bf16 %v1381_v19, %v1378_v59  ;;  %v4503_v7 = vld [vmem:[%s4840_s2] ss:$0 sm:$0xff] }
 0x1cc   : > { %v3589_v45 = vpack.c.bf16 %v4490_v24, %v4486_v11 }
 0x1cd   : > { %v2029_v46 = vadd.f32 %v2028_v28, %v1902_v33  ;;  %3665 = vst [vmem:[%s4235_s6 + $0xa0] sm:$0xff] %v3429_v40  }
 0x1ce   : > { %v1385_v48 = vpop.f32.mrb[84].mxu0  ;;  %3697 = vst [vmem:[%s4235_s6 + $0x1a0] sm:$0xff] %v3589_v45   ;;  %v1641_v41 = vpop.f32.mrb[84].mxu1 }
 0x1cf   : > { %v1386_v57 = vadd.f32 %v4217_v62, %v1385_v48  ;;  %v1387_v56 = vpop.f32.mrb[85].mxu0  ;;  %v1643_v60 = vpop.f32.mrb[85].mxu1  ;;  %v4498_v6 = vadd.f32 %v4217_v62, %v1641_v41 }
 0x1d0   : > { %v1388_v4 = vpop.f32.mrb[86].mxu0  ;;  %v1644_v53 = vpop.f32.mrb[86].mxu1 }
 0x1d1   : > { %v1769_v59 = vadd.f32 %v1768_v29, %v1386_v57  ;;  %v1903_v0 = vmul.f32 %v1386_v57, %v1386_v57  ;;  %v1389_v18 = vadd.f32 %v4503_v7, %v1388_v4  ;;  %v1390_v19 = vpop.f32.mrb[87].mxu0  ;;  %v1646_v20 = vpop.f32.mrb[87].mxu1  ;;  %v4507_v23 = vadd.f32 %v4503_v7, %v1644_v53 }
 0x1d3   : > { %4879 = vst [vmem:[#allocation2_spill] sm:$0xff] %v4507_v23  ;;  %v2030_v28 = vadd.f32 %v2029_v46, %v1903_v0  ;;  %v1770_v33 = vadd.f32 %v1769_v59, %v1389_v18  ;;  %v1904_v62 = vmul.f32 %v1389_v18, %v1389_v18  ;;  %v3434_v40 = vpack.c.bf16 %v1389_v18, %v1386_v57 }
 0x1d4   : > { %v3594_v29 = vpack.c.bf16 %v4507_v23, %v4498_v6 }
 0x1d5   : > { %v2031_v45 = vadd.f32 %v2030_v28, %v1904_v62  ;;  %3666 = vst [vmem:[%s4235_s6 + $0xa8] sm:$0xff] %v3434_v40  }
 0x1d6   : > { %v1393_v48 = vpop.f32.mrb[88].mxu0  ;;  %3698 = vst [vmem:[%s4235_s6 + $0x1a8] sm:$0xff] %v3594_v29   ;;  %v1649_v41 = vpop.f32.mrb[88].mxu1 }
 0x1d7   : > { %v1394_v56 = vadd.f32 %v4503_v7, %v1393_v48  ;;  %v1395_v60 = vpop.f32.mrb[89].mxu0  ;;  %v1651_v4 = vpop.f32.mrb[89].mxu1  ;;  %v4515_v53 = vadd.f32 %v4503_v7, %v1649_v41 }
 0x1d8   : > { %v1396_v19 = vpop.f32.mrb[90].mxu0  ;;  %v1652_v46 = vpop.f32.mrb[90].mxu1 }
 0x1d9   : > { %4880 = vst [vmem:[#allocation3_spill] sm:$0xff] %v4515_v53  ;;  %v1771_v57 = vadd.f32 %v1770_v33, %v1394_v56  ;;  %v1905_v59 = vmul.f32 %v1394_v56, %v1394_v56  ;;  %v1397_v0 = vadd.f32 %v4503_v7, %v1396_v19  ;;  %v1398_v18 = vpop.f32.mrb[91].mxu0  ;;  %v1654_v20 = vpop.f32.mrb[91].mxu1  ;;  %v4519_v28 = vadd.f32 %v4503_v7, %v1652_v46 }
 0x1db   : > { %4881 = vst [vmem:[#allocation4_spill] sm:$0xff] %v4519_v28  ;;  %v2032_v62 = vadd.f32 %v2031_v45, %v1905_v59  ;;  %v1772_v40 = vadd.f32 %v1771_v57, %v1397_v0  ;;  %v1906_v29 = vmul.f32 %v1397_v0, %v1397_v0  ;;  %v3439_v48 = vpack.c.bf16 %v1397_v0, %v1394_v56 }
 0x1dc   : > { %v3599_v60 = vpack.c.bf16 %v4519_v28, %v4515_v53 }
 0x1dd   : > { %v2033_v41 = vadd.f32 %v2032_v62, %v1906_v29  ;;  %3667 = vst [vmem:[%s4235_s6 + $0xb0] sm:$0xff] %v3439_v48  }
 0x1de   : > { %v1401_v4 = vpop.f32.mrb[92].mxu0  ;;  %3699 = vst [vmem:[%s4235_s6 + $0x1b0] sm:$0xff] %v3599_v60   ;;  %v1657_v33 = vpop.f32.mrb[92].mxu1 }
 0x1df   : > { %v1402_v23 = vadd.f32 %v4503_v7, %v1401_v4  ;;  %v1403_v19 = vpop.f32.mrb[93].mxu0  ;;  %v1659_v18 = vpop.f32.mrb[93].mxu1  ;;  %v4527_v46 = vadd.f32 %v4503_v7, %v1657_v33 }
 0x1e0   : > { %v1404_v20 = vpop.f32.mrb[94].mxu0  ;;  %v1660_v45 = vpop.f32.mrb[94].mxu1 }
 0x1e1   : > { %4882 = vst [vmem:[#allocation5_spill] sm:$0xff] %v4527_v46  ;;  %v1773_v56 = vadd.f32 %v1772_v40, %v1402_v23  ;;  %v1907_v57 = vmul.f32 %v1402_v23, %v1402_v23  ;;  %v1405_v59 = vadd.f32 %v4503_v7, %v1404_v20  ;;  %v1406_v0 = vpop.f32.mrb[95].mxu0  ;;  %v1662_v62 = vpop.f32.mrb[95].mxu1  ;;  %v4531_v29 = vadd.f32 %v4503_v7, %v1660_v45 }
 0x1e3   : > { %4883 = vst [vmem:[#allocation6_spill] sm:$0xff] %v4531_v29  ;;  %v2034_v48 = vadd.f32 %v2033_v41, %v1907_v57  ;;  %v1774_v60 = vadd.f32 %v1773_v56, %v1405_v59  ;;  %v1908_v4 = vmul.f32 %v1405_v59, %v1405_v59  ;;  %v3444_v19 = vpack.c.bf16 %v1405_v59, %v1402_v23 }
 0x1e4   : > { %v3604_v18 = vpack.c.bf16 %v4531_v29, %v4527_v46 }
 0x1e5   : > { %v2035_v33 = vadd.f32 %v2034_v48, %v1908_v4  ;;  %3668 = vst [vmem:[%s4235_s6 + $0xb8] sm:$0xff] %v3444_v19  }
 0x1e6   : > { %v1409_v28 = vpop.f32.mrb[96].mxu0  ;;  %3700 = vst [vmem:[%s4235_s6 + $0x1b8] sm:$0xff] %v3604_v18   ;;  %v1665_v40 = vpop.f32.mrb[96].mxu1 }
 0x1e7   : > { %v1410_v53 = vadd.f32 %v4503_v7, %v1409_v28  ;;  %v1411_v20 = vpop.f32.mrb[97].mxu0  ;;  %v1667_v0 = vpop.f32.mrb[97].mxu1  ;;  %v4539_v45 = vadd.f32 %v4503_v7, %v1665_v40 }
 0x1e8   : > { %v1412_v62 = vpop.f32.mrb[98].mxu0  ;;  %v1668_v41 = vpop.f32.mrb[98].mxu1 }
 0x1e9   : > { %4884 = vst [vmem:[#allocation7_spill] sm:$0xff] %v4539_v45  ;;  %v1775_v23 = vadd.f32 %v1774_v60, %v1410_v53  ;;  %v1909_v56 = vmul.f32 %v1410_v53, %v1410_v53  ;;  %v1413_v57 = vadd.f32 %v4503_v7, %v1412_v62  ;;  %v1414_v59 = vpop.f32.mrb[99].mxu0  ;;  %v1670_v48 = vpop.f32.mrb[99].mxu1  ;;  %v4543_v4 = vadd.f32 %v4503_v7, %v1668_v41 }
 0x1eb   : > { %4885 = vst [vmem:[#allocation8_spill] sm:$0xff] %v4543_v4  ;;  %v2036_v19 = vadd.f32 %v2035_v33, %v1909_v56  ;;  %v1776_v28 = vadd.f32 %v1775_v23, %v1413_v57  ;;  %v1910_v18 = vmul.f32 %v1413_v57, %v1413_v57  ;;  %v3449_v20 = vpack.c.bf16 %v1413_v57, %v1410_v53 }
 0x1ec   : > { %v3609_v0 = vpack.c.bf16 %v4543_v4, %v4539_v45 }
 0x1ed   : > { %v2037_v40 = vadd.f32 %v2036_v19, %v1910_v18  ;;  %3669 = vst [vmem:[%s4235_s6 + $0xc0] sm:$0xff] %v3449_v20  }
 0x1ee   : > { %v1417_v29 = vpop.f32.mrb[100].mxu0  ;;  %3701 = vst [vmem:[%s4235_s6 + $0x1c0] sm:$0xff] %v3609_v0   ;;  %v1673_v60 = vpop.f32.mrb[100].mxu1 }
 0x1ef   : > { %v1418_v46 = vadd.f32 %v4503_v7, %v1417_v29  ;;  %v1419_v62 = vpop.f32.mrb[101].mxu0  ;;  %v1675_v59 = vpop.f32.mrb[101].mxu1  ;;  %v4551_v41 = vadd.f32 %v4503_v7, %v1673_v60 }
 0x1f0   : > { %v1420_v48 = vpop.f32.mrb[102].mxu0  ;;  %v1676_v33 = vpop.f32.mrb[102].mxu1 }
 0x1f1   : > { %4886 = vst [vmem:[#allocation9_spill] sm:$0xff] %v4551_v41  ;;  %v1777_v53 = vadd.f32 %v1776_v28, %v1418_v46  ;;  %v1911_v23 = vmul.f32 %v1418_v46, %v1418_v46  ;;  %v1421_v56 = vadd.f32 %v4503_v7, %v1420_v48  ;;  %v1422_v57 = vpop.f32.mrb[103].mxu0  ;;  %v1678_v19 = vpop.f32.mrb[103].mxu1  ;;  %v4555_v18 = vadd.f32 %v4503_v7, %v1676_v33 }
 0x1f3   : > { %4887 = vst [vmem:[#allocation10_spill] sm:$0xff] %v4555_v18  ;;  %v2038_v20 = vadd.f32 %v2037_v40, %v1911_v23  ;;  %v1778_v29 = vadd.f32 %v1777_v53, %v1421_v56  ;;  %v1912_v0 = vmul.f32 %v1421_v56, %v1421_v56  ;;  %v3454_v62 = vpack.c.bf16 %v1421_v56, %v1418_v46 }
 0x1f4   : > { %v3614_v59 = vpack.c.bf16 %v4555_v18, %v4551_v41 }
 0x1f5   : > { %v2039_v60 = vadd.f32 %v2038_v20, %v1912_v0  ;;  %3670 = vst [vmem:[%s4235_s6 + $0xc8] sm:$0xff] %v3454_v62  }
 0x1f6   : > { %v1425_v4 = vpop.f32.mrb[104].mxu0  ;;  %3702 = vst [vmem:[%s4235_s6 + $0x1c8] sm:$0xff] %v3614_v59   ;;  %v1681_v28 = vpop.f32.mrb[104].mxu1 }
 0x1f7   : > { %v1426_v45 = vadd.f32 %v4503_v7, %v1425_v4  ;;  %v1427_v48 = vpop.f32.mrb[105].mxu0  ;;  %v1683_v57 = vpop.f32.mrb[105].mxu1  ;;  %v4563_v33 = vadd.f32 %v4503_v7, %v1681_v28 }
 0x1f8   : > { %v1428_v19 = vpop.f32.mrb[106].mxu0  ;;  %v1684_v40 = vpop.f32.mrb[106].mxu1 }
 0x1f9   : > { %4888 = vst [vmem:[#allocation11_spill] sm:$0xff] %v4563_v33  ;;  %v1779_v46 = vadd.f32 %v1778_v29, %v1426_v45  ;;  %v1913_v53 = vmul.f32 %v1426_v45, %v1426_v45  ;;  %v1429_v23 = vadd.f32 %v4503_v7, %v1428_v19  ;;  %v1430_v56 = vpop.f32.mrb[107].mxu0  ;;  %v1686_v20 = vpop.f32.mrb[107].mxu1  ;;  %v4567_v0 = vadd.f32 %v4503_v7, %v1684_v40 }
 0x1fb   : > { %4889 = vst [vmem:[#allocation12_spill] sm:$0xff] %v4567_v0  ;;  %v2040_v62 = vadd.f32 %v2039_v60, %v1913_v53  ;;  %v1780_v4 = vadd.f32 %v1779_v46, %v1429_v23  ;;  %v1914_v59 = vmul.f32 %v1429_v23, %v1429_v23  ;;  %v3459_v48 = vpack.c.bf16 %v1429_v23, %v1426_v45 }
 0x1fc   : > { %v3619_v57 = vpack.c.bf16 %v4567_v0, %v4563_v33 }
 0x1fd   : > { %v2041_v28 = vadd.f32 %v2040_v62, %v1914_v59  ;;  %3671 = vst [vmem:[%s4235_s6 + $0xd0] sm:$0xff] %v3459_v48  }
 0x1fe   : > { %v1433_v18 = vpop.f32.mrb[108].mxu0  ;;  %3703 = vst [vmem:[%s4235_s6 + $0x1d0] sm:$0xff] %v3619_v57  }
 0x1ff   : > { %v1434_v29 = vadd.f32 %v4503_v7, %v1433_v18  ;;  %v1435_v41 = vpop.f32.mrb[109].mxu0  ;;  %v1689_v19 = vpop.f32.mrb[108].mxu1 }
 0x200   : > { %v1436_v56 = vpop.f32.mrb[110].mxu0  ;;  %v4575_v40 = vadd.f32 %v4503_v7, %v1689_v19  ;;  %v1691_v60 = vpop.f32.mrb[109].mxu1 }
 0x201   : > { %v1781_v46 = vadd.f32 %v1780_v4, %v1434_v29  ;;  %v1915_v45 = vmul.f32 %v1434_v29, %v1434_v29  ;;  %v1437_v53 = vadd.f32 %v4503_v7, %v1436_v56  ;;  %v1438_v23 = vpop.f32.mrb[111].mxu0  ;;  %v1692_v20 = vpop.f32.mrb[110].mxu1 }
 0x202   : > { %4890 = vst [vmem:[#allocation13_spill] sm:$0xff] %v4575_v40  ;;  %v4579_v62 = vadd.f32 %v4503_v7, %v1692_v20  ;;  %v1694_v59 = vpop.f32.mrb[111].mxu1 }
 0x203   : > { %v2042_v18 = vadd.f32 %v2041_v28, %v1915_v45  ;;  %v1782_v41 = vadd.f32 %v1781_v46, %v1437_v53  ;;  %v1916_v48 = vmul.f32 %v1437_v53, %v1437_v53  ;;  %v3464_v57 = vpack.c.bf16 %v1437_v53, %v1434_v29 }
 0x204   : > { %4891 = vst [vmem:[#allocation14_spill] sm:$0xff] %v4579_v62  ;;  %v3624_v19 = vpack.c.bf16 %v4579_v62, %v4575_v40 }
 0x205   : > { %v2043_v0 = vadd.f32 %v2042_v18, %v1916_v48  ;;  %3672 = vst [vmem:[%s4235_s6 + $0xd8] sm:$0xff] %v3464_v57  }
 0x206   : > { %v1441_v60 = vpop.f32.mrb[112].mxu0  ;;  %3704 = vst [vmem:[%s4235_s6 + $0x1d8] sm:$0xff] %v3624_v19  }
 0x207   : > { %v1442_v4 = vadd.f32 %v4503_v7, %v1441_v60  ;;  %v1443_v56 = vpop.f32.mrb[113].mxu0  ;;  %v1697_v23 = vpop.f32.mrb[112].mxu1 }
 0x208   : > { %v1444_v33 = vpop.f32.mrb[114].mxu0  ;;  %v4587_v20 = vadd.f32 %v4503_v7, %v1697_v23  ;;  %v1699_v28 = vpop.f32.mrb[113].mxu1 }
 0x209   : > { %v1783_v46 = vadd.f32 %v1782_v41, %v1442_v4  ;;  %v1917_v29 = vmul.f32 %v1442_v4, %v1442_v4  ;;  %v1445_v45 = vadd.f32 %v4503_v7, %v1444_v33  ;;  %v1446_v53 = vpop.f32.mrb[115].mxu0  ;;  %v1700_v59 = vpop.f32.mrb[114].mxu1 }
 0x20a   : > { %4892 = vst [vmem:[#allocation15_spill] sm:$0xff] %v4587_v20  ;;  %v4591_v18 = vadd.f32 %v4503_v7, %v1700_v59  ;;  %v1702_v48 = vpop.f32.mrb[115].mxu1 }
 0x20b   : > { %v2044_v57 = vadd.f32 %v2043_v0, %v1917_v29  ;;  %v1784_v19 = vadd.f32 %v1783_v46, %v1445_v45  ;;  %v1918_v60 = vmul.f32 %v1445_v45, %v1445_v45  ;;  %v3469_v56 = vpack.c.bf16 %v1445_v45, %v1442_v4 }
 0x20c   : > { %4893 = vst [vmem:[#allocation16_spill] sm:$0xff] %v4591_v18  ;;  %v3629_v23 = vpack.c.bf16 %v4591_v18, %v4587_v20 }
 0x20d   : > { %v2045_v62 = vadd.f32 %v2044_v57, %v1918_v60  ;;  %3673 = vst [vmem:[%s4235_s6 + $0xe0] sm:$0xff] %v3469_v56  }
 0x20e   : > { %v1449_v28 = vpop.f32.mrb[116].mxu0  ;;  %3705 = vst [vmem:[%s4235_s6 + $0x1e0] sm:$0xff] %v3629_v23  }
 0x20f   : > { %v1450_v41 = vadd.f32 %v4503_v7, %v1449_v28  ;;  %v1451_v33 = vpop.f32.mrb[117].mxu0  ;;  %v1705_v53 = vpop.f32.mrb[116].mxu1 }
 0x210   : > { %v1452_v40 = vpop.f32.mrb[118].mxu0  ;;  %v4599_v59 = vadd.f32 %v4503_v7, %v1705_v53  ;;  %v1707_v0 = vpop.f32.mrb[117].mxu1 }
 0x211   : > { %v1785_v46 = vadd.f32 %v1784_v19, %v1450_v41  ;;  %v1919_v4 = vmul.f32 %v1450_v41, %v1450_v41  ;;  %v1453_v29 = vadd.f32 %v4503_v7, %v1452_v40  ;;  %v1454_v45 = vpop.f32.mrb[119].mxu0  ;;  %v1708_v48 = vpop.f32.mrb[118].mxu1 }
 0x212   : > { %4894 = vst [vmem:[#allocation17_spill] sm:$0xff] %v4599_v59  ;;  %v4603_v57 = vadd.f32 %v4503_v7, %v1708_v48  ;;  %v1710_v60 = vpop.f32.mrb[119].mxu1 }
 0x213   : > { %v2046_v56 = vadd.f32 %v2045_v62, %v1919_v4  ;;  %v1786_v23 = vadd.f32 %v1785_v46, %v1453_v29  ;;  %v1920_v28 = vmul.f32 %v1453_v29, %v1453_v29  ;;  %v3474_v33 = vpack.c.bf16 %v1453_v29, %v1450_v41 }
 0x214   : > { %4895 = vst [vmem:[#allocation18_spill] sm:$0xff] %v4603_v57  ;;  %v3634_v53 = vpack.c.bf16 %v4603_v57, %v4599_v59 }
 0x215   : > { %v2047_v18 = vadd.f32 %v2046_v56, %v1920_v28  ;;  %3674 = vst [vmem:[%s4235_s6 + $0xe8] sm:$0xff] %v3474_v33  }
 0x216   : > { %v1457_v0 = vpop.f32.mrb[120].mxu0  ;;  %3706 = vst [vmem:[%s4235_s6 + $0x1e8] sm:$0xff] %v3634_v53  }
 0x217   : > { %v1458_v19 = vadd.f32 %v4503_v7, %v1457_v0  ;;  %v1459_v40 = vpop.f32.mrb[121].mxu0  ;;  %v1713_v45 = vpop.f32.mrb[120].mxu1 }
 0x218   : > { %v1460_v20 = vpop.f32.mrb[122].mxu0  ;;  %v4611_v48 = vadd.f32 %v4503_v7, %v1713_v45  ;;  %v1715_v62 = vpop.f32.mrb[121].mxu1 }
 0x219   : > { %v1787_v46 = vadd.f32 %v1786_v23, %v1458_v19  ;;  %v1921_v41 = vmul.f32 %v1458_v19, %v1458_v19  ;;  %v1461_v4 = vadd.f32 %v4503_v7, %v1460_v20  ;;  %v1462_v29 = vpop.f32.mrb[123].mxu0  ;;  %v1716_v60 = vpop.f32.mrb[122].mxu1 }
 0x21a   : > { %v4615_v56 = vadd.f32 %v4503_v7, %v1716_v60  ;;  %v1718_v28 = vpop.f32.mrb[123].mxu1 }
 0x21b   : > { %v2048_v33 = vadd.f32 %v2047_v18, %v1921_v41  ;;  %v1788_v53 = vadd.f32 %v1787_v46, %v1461_v4  ;;  %v1922_v0 = vmul.f32 %v1461_v4, %v1461_v4  ;;  %v3479_v40 = vpack.c.bf16 %v1461_v4, %v1458_v19 }
 0x21c   : > { %4896 = vst [vmem:[#allocation19_spill] sm:$0xff] %v4615_v56  ;;  %v3639_v45 = vpack.c.bf16 %v4615_v56, %v4611_v48 }
 0x21d   : > { %v2049_v57 = vadd.f32 %v2048_v33, %v1922_v0  ;;  %3675 = vst [vmem:[%s4235_s6 + $0xf0] sm:$0xff] %v3479_v40  }
 0x21e   : > { %v1465_v62 = vpop.f32.mrb[124].mxu0  ;;  %3707 = vst [vmem:[%s4235_s6 + $0x1f0] sm:$0xff] %v3639_v45  }
 0x21f   : > { %v1466_v23 = vadd.f32 %v4503_v7, %v1465_v62  ;;  %v1467_v20 = vpop.f32.mrb[125].mxu0  ;;  %v1721_v29 = vpop.f32.mrb[124].mxu1 }
 0x220   : > { %v1468_v59 = vpop.f32.mrb[126].mxu0  ;;  %v4623_v60 = vadd.f32 %v4503_v7, %v1721_v29  ;;  %v1723_v28 = vpop.f32.mrb[125].mxu1 }
 0x221   : > { %v1789_v18 = vadd.f32 %v1788_v53, %v1466_v23  ;;  %v1923_v19 = vmul.f32 %v1466_v23, %v1466_v23  ;;  %v1469_v46 = vadd.f32 %v4503_v7, %v1468_v59  ;;  %v1470_v41 = vpop.f32.mrb[127].mxu0  ;;  %v1724_v4 = vpop.f32.mrb[126].mxu1  ;;  %v1925_v53 = vmul.f32 %v4225_v8, %v4225_v8 }
 0x222   : > { %v4627_v33 = vadd.f32 %v4503_v7, %v1724_v4  ;;  %v1726_v0 = vpop.f32.mrb[127].mxu1  ;;  %v1926_v7 = vmul.f32 %v4230_v13, %v4230_v13  ;;  %v1929_v4 = vmul.f32 %v4262_v54, %v4262_v54 }
 0x223   : > { %v2050_v40 = vadd.f32 %v2049_v57, %v1923_v19  ;;  %v1790_v45 = vadd.f32 %v1789_v18, %v1469_v46  ;;  %v1924_v62 = vmul.f32 %v1469_v46, %v1469_v46  ;;  %v3484_v20 = vpack.c.bf16 %v1469_v46, %v1466_v23 }
 0x224   : > { %v3644_v29 = vpack.c.bf16 %v4627_v33, %v4623_v60  ;;  %v1927_v23 = vmul.f32 %v4246_v30, %v4246_v30  ;;  %v1928_v46 = vmul.f32 %v4251_v38, %v4251_v38 }
 0x225   : > { %v1791_v28 = vadd.f32 %v1790_v45, %v4225_v8  ;;  %v2051_v56 = vadd.f32 %v2050_v40, %v1924_v62  ;;  %3676 = vst [vmem:[%s4235_s6 + $0xf8] sm:$0xff] %v3484_v20  }
 0x226   : > { %3708 = vst [vmem:[%s4235_s6 + $0x1f8] sm:$0xff] %v3644_v29  }
 0x227   : > { %v1792_v59 = vadd.f32 %v1791_v28, %v4230_v13  ;;  %v2052_v57 = vadd.f32 %v2051_v56, %v1925_v53  ;;  %v1930_v13 = vmul.f32 %v4267_v63, %v4267_v63 }
 0x229   : > { %v1793_v18 = vadd.f32 %v1792_v59, %v4246_v30  ;;  %v2053_v19 = vadd.f32 %v2052_v57, %v1926_v7  ;;  %v1931_v30 = vmul.f32 %v4278_v17, %v4278_v17 }
 0x22b   : > { %v1794_v8 = vadd.f32 %v1793_v18, %v4251_v38  ;;  %v2054_v41 = vadd.f32 %v2053_v19, %v1927_v23  ;;  %v1932_v38 = vmul.f32 %v4283_v25, %v4283_v25 }
 0x22d   : > { %v1795_v0 = vadd.f32 %v1794_v8, %v4262_v54  ;;  %v2055_v40 = vadd.f32 %v2054_v41, %v1928_v46  ;;  %v1933_v54 = vmul.f32 %v4293_v42, %v4293_v42 }
 0x22f   : > { %v1796_v56 = vadd.f32 %v1795_v0, %v4267_v63  ;;  %v2056_v45 = vadd.f32 %v2055_v40, %v1929_v4  ;;  %v1934_v63 = vmul.f32 %v4298_v50, %v4298_v50 }
 0x231   : > { %v1797_v62 = vadd.f32 %v1796_v56, %v4278_v17  ;;  %v2057_v20 = vadd.f32 %v2056_v45, %v1930_v13  ;;  %v1935_v17 = vmul.f32 %v4306_v2, %v4306_v2 }
 0x233   : > { %v1798_v29 = vadd.f32 %v1797_v62, %v4283_v25  ;;  %v2058_v53 = vadd.f32 %v2057_v20, %v1931_v30  ;;  %v1936_v25 = vmul.f32 %v4310_v10, %v4310_v10 }
 0x235   : > { %v1799_v28 = vadd.f32 %v1798_v29, %v4293_v42  ;;  %v2059_v7 = vadd.f32 %v2058_v53, %v1932_v38  ;;  %v1937_v42 = vmul.f32 %v4318_v26, %v4318_v26 }
 0x237   : > { %v1800_v59 = vadd.f32 %v1799_v28, %v4298_v50  ;;  %v2060_v57 = vadd.f32 %v2059_v7, %v1933_v54  ;;  %v1938_v50 = vmul.f32 %v4322_v34, %v4322_v34 }
 0x239   : > { %v1801_v23 = vadd.f32 %v1800_v59, %v4306_v2  ;;  %v2061_v18 = vadd.f32 %v2060_v57, %v1934_v63  ;;  %v1939_v2 = vmul.f32 %v4330_v49, %v4330_v49 }
 0x23b   : > { %v1802_v19 = vadd.f32 %v1801_v23, %v4310_v10  ;;  %v2062_v46 = vadd.f32 %v2061_v18, %v1935_v17  ;;  %v1940_v10 = vmul.f32 %v4334_v58, %v4334_v58 }
 0x23d   : > { %v1803_v8 = vadd.f32 %v1802_v19, %v4318_v26  ;;  %v2063_v41 = vadd.f32 %v2062_v46, %v1936_v25  ;;  %v1941_v26 = vmul.f32 %v4342_v12, %v4342_v12 }
 0x23f   : > { %v1804_v4 = vadd.f32 %v1803_v8, %v4322_v34  ;;  %v2064_v0 = vadd.f32 %v2063_v41, %v1937_v42  ;;  %v1942_v34 = vmul.f32 %v4346_v21, %v4346_v21 }
 0x241   : > { %v1805_v40 = vadd.f32 %v1804_v4, %v4330_v49  ;;  %v2065_v13 = vadd.f32 %v2064_v0, %v1938_v50  ;;  %v1943_v49 = vmul.f32 %v4354_v39, %v4354_v39 }
 0x243   : > { %v1806_v56 = vadd.f32 %v1805_v40, %v4334_v58  ;;  %v2066_v45 = vadd.f32 %v2065_v13, %v1939_v2  ;;  %v1944_v58 = vmul.f32 %v4358_v47, %v4358_v47 }
 0x245   : > { %v1807_v30 = vadd.f32 %v1806_v56, %v4342_v12  ;;  %v2067_v62 = vadd.f32 %v2066_v45, %v1940_v10  ;;  %v1945_v12 = vmul.f32 %v4366_v3, %v4366_v3 }
 0x247   : > { %v2068_v20 = vadd.f32 %v2067_v62, %v1941_v26  ;;  %v1808_v38 = vadd.f32 %v1807_v30, %v4346_v21  ;;  %v1946_v21 = vmul.f32 %v4370_v14, %v4370_v14  ;;  %v1957_v62 = vmul.f32 %v4438_v15, %v4438_v15 }
 0x249   : > { %v1809_v29 = vadd.f32 %v1808_v38, %v4354_v39  ;;  %v2069_v53 = vadd.f32 %v2068_v20, %v1942_v34  ;;  %v1947_v39 = vmul.f32 %v4378_v32, %v4378_v32  ;;  %v1958_v38 = vmul.f32 %v4442_v27, %v4442_v27 }
 0x24b   : > { %v1810_v54 = vadd.f32 %v1809_v29, %v4358_v47  ;;  %v2070_v28 = vadd.f32 %v2069_v53, %v1943_v49  ;;  %v1948_v47 = vmul.f32 %v4382_v43, %v4382_v43  ;;  %v1959_v29 = vmul.f32 %v4450_v55, %v4450_v55 }
 0x24d   : > { %v1811_v7 = vadd.f32 %v1810_v54, %v4366_v3  ;;  %v2071_v63 = vadd.f32 %v2070_v28, %v1944_v58  ;;  %v1949_v3 = vmul.f32 %v4390_v61, %v4390_v61  ;;  %v1960_v58 = vmul.f32 %v4454_v5, %v4454_v5 }
 0x24e   : > { %v1961_v28 = vmul.f32 %v4462_v35, %v4462_v35 }
 0x24f   : > { %v1812_v59 = vadd.f32 %v1811_v7, %v4370_v14  ;;  %v2072_v57 = vadd.f32 %v2071_v63, %v1945_v12  ;;  %v1950_v14 = vmul.f32 %v4394_v9, %v4394_v9  ;;  %v1962_v7 = vmul.f32 %v4466_v51, %v4466_v51 }
 0x251   : > { %v1813_v17 = vadd.f32 %v1812_v59, %v4378_v32  ;;  %v2073_v23 = vadd.f32 %v2072_v57, %v1946_v21  ;;  %v1951_v32 = vmul.f32 %v4402_v31, %v4402_v31  ;;  %v1963_v21 = vmul.f32 %v4474_v22, %v4474_v22 }
 0x252   : > { %v1964_v57 = vmul.f32 %v4478_v36, %v4478_v36 }
 0x253   : > { %v1814_v18 = vadd.f32 %v1813_v17, %v4382_v43  ;;  %v2074_v25 = vadd.f32 %v2073_v23, %v1947_v39  ;;  %v1952_v43 = vmul.f32 %v4406_v44, %v4406_v44  ;;  %v1965_v17 = vmul.f32 %v4486_v11, %v4486_v11 }
 0x255   : > { %v1815_v19 = vadd.f32 %v1814_v18, %v4390_v61  ;;  %v2075_v46 = vadd.f32 %v2074_v25, %v1948_v47  ;;  %v1953_v61 = vmul.f32 %v4414_v1, %v4414_v1  ;;  %v1966_v47 = vmul.f32 %v4490_v24, %v4490_v24 }
 0x256   : > { %v1967_v25 = vmul.f32 %v4498_v6, %v4498_v6 }
 0x257   : > { %v1816_v42 = vadd.f32 %v1815_v19, %v4394_v9  ;;  %v2076_v8 = vadd.f32 %v2075_v46, %v1949_v3  ;;  %v1954_v9 = vmul.f32 %v4418_v16, %v4418_v16 }
 0x259   : > { %v1817_v41 = vadd.f32 %v1816_v42, %v4402_v31  ;;  %v2077_v50 = vadd.f32 %v2076_v8, %v1950_v14  ;;  %v1955_v31 = vmul.f32 %v4426_v37, %v4426_v37 }
 0x25b   : > { %v1818_v4 = vadd.f32 %v1817_v41, %v4406_v44  ;;  %v2078_v0 = vadd.f32 %v2077_v50, %v1951_v32  ;;  %v1956_v44 = vmul.f32 %v4430_v52, %v4430_v52 }
 0x25d   : > { %v1819_v2 = vadd.f32 %v1818_v4, %v4414_v1  ;;  %v2079_v40 = vadd.f32 %v2078_v0, %v1952_v43 }
 0x25f   : > { %v1820_v13 = vadd.f32 %v1819_v2, %v4418_v16  ;;  %v2080_v10 = vadd.f32 %v2079_v40, %v1953_v61  ;;  %v4901_v2 = vld [vmem:[#allocation6_spill] sm:$0xff] }
 0x261   : > { %v1821_v56 = vadd.f32 %v1820_v13, %v4426_v37  ;;  %v2081_v45 = vadd.f32 %v2080_v10, %v1954_v9  ;;  %v1972_v9 = vmul.f32 %v4901_v2, %v4901_v2  ;;  %v4902_v10 = vld [vmem:[#allocation7_spill] sm:$0xff] }
 0x263   : > { %v1822_v26 = vadd.f32 %v1821_v56, %v4430_v52  ;;  %v2082_v30 = vadd.f32 %v2081_v45, %v1955_v31  ;;  %v1973_v56 = vmul.f32 %v4902_v10, %v4902_v10 }
 0x265   : > { %v1823_v1 = vadd.f32 %v1822_v26, %v4438_v15  ;;  %v2083_v34 = vadd.f32 %v2082_v30, %v1956_v44  ;;  %v4903_v44 = vld [vmem:[#allocation8_spill] sm:$0xff] }
 0x266   : > { %v1974_v30 = vmul.f32 %v4903_v44, %v4903_v44 }
 0x267   : > { %v2084_v16 = vadd.f32 %v2083_v34, %v1957_v62  ;;  %v1824_v20 = vadd.f32 %v1823_v1, %v4442_v27  ;;  %v4904_v62 = vld [vmem:[#allocation9_spill] sm:$0xff] }
 0x269   : > { %v2085_v37 = vadd.f32 %v2084_v16, %v1958_v38  ;;  %v1825_v49 = vadd.f32 %v1824_v20, %v4450_v55  ;;  %v1975_v16 = vmul.f32 %v4904_v62, %v4904_v62  ;;  %v4905_v38 = vld [vmem:[#allocation10_spill] sm:$0xff] }
 0x26b   : > { %v2086_v52 = vadd.f32 %v2085_v37, %v1959_v29  ;;  %v1826_v53 = vadd.f32 %v1825_v49, %v4454_v5  ;;  %v1976_v49 = vmul.f32 %v4905_v38, %v4905_v38 }
 0x26d   : > { %v2087_v15 = vadd.f32 %v2086_v52, %v1960_v58  ;;  %v1827_v54 = vadd.f32 %v1826_v53, %v4462_v35  ;;  %v4906_v52 = vld [vmem:[#allocation11_spill] sm:$0xff] }
 0x26e   : > { %v1977_v58 = vmul.f32 %v4906_v52, %v4906_v52 }
 0x26f   : > { %v2088_v12 = vadd.f32 %v2087_v15, %v1961_v28  ;;  %v1828_v27 = vadd.f32 %v1827_v54, %v4466_v51  ;;  %v4907_v54 = vld [vmem:[#allocation12_spill] sm:$0xff] }
 0x271   : > { %v2089_v63 = vadd.f32 %v2088_v12, %v1962_v7  ;;  %v1829_v55 = vadd.f32 %v1828_v27, %v4474_v22  ;;  %v1978_v12 = vmul.f32 %v4907_v54, %v4907_v54  ;;  %v4908_v7 = vld [vmem:[#allocation13_spill] sm:$0xff] }
 0x273   : > { %v2090_v59 = vadd.f32 %v2089_v63, %v1963_v21  ;;  %v1830_v5 = vadd.f32 %v1829_v55, %v4478_v36  ;;  %v4897_v36 = vld [vmem:[#allocation2_spill] sm:$0xff]  ;;  %v1979_v55 = vmul.f32 %v4908_v7, %v4908_v7 }
 0x274   : > { %v1968_v46 = vmul.f32 %v4897_v36, %v4897_v36 }
 0x275   : > { %v2091_v39 = vadd.f32 %v2090_v59, %v1964_v57  ;;  %v1831_v35 = vadd.f32 %v1830_v5, %v4486_v11  ;;  %v4898_v11 = vld [vmem:[#allocation3_spill] sm:$0xff]  ;;  %v4909_v59 = vld [vmem:[#allocation14_spill] sm:$0xff] }
 0x276   : > { %v1969_v8 = vmul.f32 %v4898_v11, %v4898_v11  ;;  %v1980_v57 = vmul.f32 %v4909_v59, %v4909_v59 }
 0x277   : > { %v2092_v23 = vadd.f32 %v2091_v39, %v1965_v17  ;;  %v1832_v51 = vadd.f32 %v1831_v35, %v4490_v24  ;;  %v4899_v24 = vld [vmem:[#allocation4_spill] sm:$0xff]  ;;  %v4910_v35 = vld [vmem:[#allocation15_spill] sm:$0xff] }
 0x278   : > { %v1970_v50 = vmul.f32 %v4899_v24, %v4899_v24 }
 0x279   : > { %v2093_v18 = vadd.f32 %v2092_v23, %v1966_v47  ;;  %v1833_v22 = vadd.f32 %v1832_v51, %v4498_v6  ;;  %v4900_v6 = vld [vmem:[#allocation5_spill] sm:$0xff]  ;;  %v1981_v23 = vmul.f32 %v4910_v35, %v4910_v35  ;;  %v4911_v47 = vld [vmem:[#allocation16_spill] sm:$0xff] }
 0x27a   : > { %v1971_v0 = vmul.f32 %v4900_v6, %v4900_v6 }
 0x27b   : > { %v2094_v3 = vadd.f32 %v2093_v18, %v1967_v25  ;;  %v1834_v19 = vadd.f32 %v1833_v22, %v4897_v36  ;;  %v1982_v22 = vmul.f32 %v4911_v47, %v4911_v47 }
 0x27d   : > { %v2095_v14 = vadd.f32 %v2094_v3, %v1968_v46  ;;  %v1835_v42 = vadd.f32 %v1834_v19, %v4898_v11  ;;  %v4912_v3 = vld [vmem:[#allocation17_spill] sm:$0xff] }
 0x27e   : > { %v1983_v19 = vmul.f32 %v4912_v3, %v4912_v3 }
 0x27f   : > { %v2096_v32 = vadd.f32 %v2095_v14, %v1969_v8  ;;  %v1836_v41 = vadd.f32 %v1835_v42, %v4899_v24  ;;  %v4913_v14 = vld [vmem:[#allocation18_spill] sm:$0xff]  ;;  %v1985_v24 = vmul.f32 %v4611_v48, %v4611_v48 }
 0x280   : > { %v1984_v42 = vmul.f32 %v4913_v14, %v4913_v14 }
 0x281   : > { %v2097_v43 = vadd.f32 %v2096_v32, %v1970_v50  ;;  %v1837_v4 = vadd.f32 %v1836_v41, %v4900_v6  ;;  %v4914_v50 = vld [vmem:[#allocation19_spill] sm:$0xff] }
 0x282   : > { %v1986_v6 = vmul.f32 %v4914_v50, %v4914_v50 }
 0x283   : > { %v2098_v61 = vadd.f32 %v2097_v43, %v1971_v0  ;;  %v1838_v40 = vadd.f32 %v1837_v4, %v4901_v2  ;;  %v1987_v4 = vmul.f32 %v4623_v60, %v4623_v60 }
 0x285   : > { %v2099_v13 = vadd.f32 %v2098_v61, %v1972_v9  ;;  %v1839_v31 = vadd.f32 %v1838_v40, %v4902_v10  ;;  %v1988_v9 = vmul.f32 %v4627_v33, %v4627_v33 }
 0x287   : > { %v2100_v45 = vadd.f32 %v2099_v13, %v1973_v56  ;;  %v1840_v26 = vadd.f32 %v1839_v31, %v4903_v44 }
 0x289   : > { %v2101_v1 = vadd.f32 %v2100_v45, %v1974_v30  ;;  %v1841_v34 = vadd.f32 %v1840_v26, %v4904_v62 }
 0x28b   : > { %v2102_v20 = vadd.f32 %v2101_v1, %v1975_v16  ;;  %v1842_v37 = vadd.f32 %v1841_v34, %v4905_v38 }
 0x28d   : > { %v2103_v29 = vadd.f32 %v2102_v20, %v1976_v49  ;;  %v1843_v53 = vadd.f32 %v1842_v37, %v4906_v52 }
 0x28f   : > { %v2104_v15 = vadd.f32 %v2103_v29, %v1977_v58  ;;  %v1844_v28 = vadd.f32 %v1843_v53, %v4907_v54 }
 0x291   : > { %v2105_v27 = vadd.f32 %v2104_v15, %v1978_v12  ;;  %v1845_v63 = vadd.f32 %v1844_v28, %v4908_v7 }
 0x293   : > { %v2106_v21 = vadd.f32 %v2105_v27, %v1979_v55  ;;  %v1846_v5 = vadd.f32 %v1845_v63, %v4909_v59 }
 0x295   : > { %v2107_v39 = vadd.f32 %v2106_v21, %v1980_v57  ;;  %v1847_v17 = vadd.f32 %v1846_v5, %v4910_v35 }
 0x297   : > { %v2108_v51 = vadd.f32 %v2107_v39, %v1981_v23  ;;  %v1848_v18 = vadd.f32 %v1847_v17, %v4911_v47 }
 0x299   : > { %v2109_v25 = vadd.f32 %v2108_v51, %v1982_v22  ;;  %v1849_v36 = vadd.f32 %v1848_v18, %v4912_v3 }
 0x29b   : > { %v2110_v46 = vadd.f32 %v2109_v25, %v1983_v19  ;;  %v1850_v11 = vadd.f32 %v1849_v36, %v4913_v14 }
 0x29d   : > { %v2111_v8 = vadd.f32 %v2110_v46, %v1984_v42  ;;  %v1851_v32 = vadd.f32 %v1850_v11, %v4611_v48 }
 0x29f   : > { %v2112_v41 = vadd.f32 %v2111_v8, %v1985_v24  ;;  %v1852_v43 = vadd.f32 %v1851_v32, %v4914_v50 }
 0x2a1   : > { %v2113_v0 = vadd.f32 %v2112_v41, %v1986_v6  ;;  %v1853_v61 = vadd.f32 %v1852_v43, %v4623_v60 }
 0x2a3   : > { %v2114_v2 = vadd.f32 %v2113_v0, %v1987_v4  ;;  %v1854_v40 = vadd.f32 %v1853_v61, %v4627_v33 }
 0x2a5   : > { %v1855_v48 = vrot.slane %v1854_v40, 4  ;;  %v2115_v13 = vadd.f32 %v2114_v2, %v1988_v9 }
 0x2a7   : > { %v1856_v10 = vadd.f32 %v1855_v48, %v1854_v40  ;;  %v2116_v31 = vrot.slane %v2115_v13, 4 }
 0x2a9   : > { %v1857_v56 = vrot.slane %v1856_v10, 2  ;;  %v2117_v45 = vadd.f32 %v2116_v31, %v2115_v13 }
 0x2ab   : > { %v1858_v44 = vadd.f32 %v1857_v56, %v1856_v10  ;;  %v2118_v26 = vrot.slane %v2117_v45, 2 }
 0x2ad   : > { %v1859_v30 = vrot.slane %v1858_v44, 1  ;;  %v2119_v1 = vadd.f32 %v2118_v26, %v2117_v45 }
 0x2af   : > { %v2120_v62 = vrot.slane %v2119_v1, 1  ;;  %v1860_v60 = vadd.f32 %v1859_v30, %v1858_v44 }
 0x2b1   : > { %v2121_v34 = vadd.f32 %v2120_v62, %v2119_v1 }
 0x2b3   : > { %v2123_v33 = vsel %vm2122_vm0, %v1860_v60, %v2121_v34 }
 0x2b4   : > { %2124 = vst [vmem:[%s278_s12] sm:$0x3] %v2123_v33 }
 0x2b5 PF: > { %s15_s17 = sadd.s32 1, %s3997_s17   ;;  %s4915_s15 = smov %s3993_s16 }
 0x2b6   : > { %p12_p5 = scmp.ge.s32.totalorder %s15_s17, 6   ;;  %s4916_s16 = smov %s4918_s18 }
 0x2b8   :  { %14 = sbr.rel (!%p12_p5) target bundleno = 2 (0x2), region = 77 }

// kernel: decoder_forward.13
= control target key start
LH: loop header
LB: loop body
LE: loop exit
PB: predicated region body
PF: predicated region fallthrough
CT: control target
= control target key end

     0   :  { %s3492_s12 = smov 0   ;;  %s3494_s13 = smov 0   ;;  %s4201_s0 = inlined_call_operand.vmem [shape: bf16[4,4096,128], index: 0, kind: input, shape index: {}]   ;;  %s4202_s1 = inlined_call_operand.vmem [shape: bf16[4,128,128], index: 1, kind: input, shape index: {}]   ;;  %s4203_s2 = inlined_call_operand.vmem [shape: f32[1,128], index: 2, kind: input, shape index: {}]   ;;  %s4204_s3 = inlined_call_operand.vmem [shape: f32[4,4096,128], index: 3, kind: output, shape index: {}]  }
   0x1   :  { %s3496_s14 = smov 0   ;;  %s3498_s15 = smov 0  }
   0x2   :  { %s3500_s16 = smov 0  }
   0x3 LB: > { %s22_s17 = sadd.s32 1, %s3462_s14  ;;  %s25_s18 = sadd.s32 1, %s3466_s15  ;;  %s3470_s16 = sphi %s3500_s16, %s13_s16   ;;  %s3466_s15 = sphi %s3498_s15, %s4238_s15   ;;  %s3462_s14 = sphi %s3496_s14, %s4237_s14   ;;  %s3458_s13 = sphi %s3494_s13, %s4236_s13   ;;  %s3454_s12 = sphi %s3492_s12, %s4235_s12  }
   0x4   : > { %p23_p0 = scmp.ge.s32.totalorder %s22_s17, 4  ;;  %p2361_p1 = scmp.ge.s32.totalorder %s3470_s16, 1 }
   0x5   : > { %p168_p2 = scmp.lt.s32.totalorder %s3470_s16, 17 }
   0x6   : > { %s4240_s17 = smov (%p23_p0, %s22_s17), 0  ;;  %s4242_s18 = smov (!%p23_p0, %s25_s18), %s3466_s15 }
   0x7   : > { %p169_p3 = pnand %p2361_p1, %p168_p2  ;;  %p27_p4 = scmp.ge.s32.totalorder %s4242_s18, 4 }
   0x9   : > { %s4244_s18 = smov (%p27_p4, %s4242_s18), 0  ;;  %172 = sbr.rel (%p169_p3) target bundleno = 544 (0x220), region = 32 }
  0x10   : > { %s2362_s19 = sshll.u32 %s3454_s12, 7  ;;  %p206_p5 = scmp.lt.s32.totalorder %s3458_s13, 3 }
  0x11   : > { %p208_p6 = scmp.lt.s32.totalorder %s2362_s19, 511 }
  0x12   : > { %s4246_s13 = smov (!%p206_p5, %s3458_s13), 3 }
  0x13   : > { %s4248_s19 = smov (!%p208_p6, %s2362_s19), 511  ;;  %s2363_s20 = sshll.u32 %s4246_s13, 9 }
  0x14   : > { %s2573_s21 = sshll.u32 %s4246_s13, 6  ;;  %s3527_s25 = sadd.s32 %s2363_s20, %s4248_s19 }
  0x15   : > { %s3525_s24 = scalar_lea.vmem %s4202_s1, %s2573_s21  ;;  %s2364_s26 = sshll.u32 %s3527_s25, 2 }
  0x16   : > { %v2846_v0 = vld [vmem:[%s3525_s24] sm:$0xff]   ;;  %v2847_v1 = vld [vmem:[%s3525_s24 + $0x8] sm:$0xff]   ;;  %v2848_v2 = vld [vmem:[%s3525_s24 + $0x10] sm:$0xff]   ;;  %s3536_s29 = scalar_lea.vmem %s4201_s0, %s2364_s26  ;;  %s2369_s5 = sshll.u32 %s3527_s25, 3 }
  0x17   : > { %2646 = vmatprep.subr.bf16.mxu0 %v2846_v0  ;;  %2790 = vmatprep.subr.bf16.mxu1 %v2846_v0  ;;  %v2849_v3 = vld [vmem:[%s3525_s24 + $0x18] sm:$0xff]   ;;  %v2854_v4 = vld [vmem:[%s3536_s29] sm:$0xff]   ;;  %v2851_v7 = vld [vmem:[%s3525_s24 + $0x28] sm:$0xff]   ;;  %s3640_s8 = scalar_lea.vmem %s4204_s3, %s2369_s5 }
  0x18   : > { %2647 = vmatpush3.bf16.msra.mxu0 %v2846_v0  ;;  %2798 = vmatpush3.bf16.msra.mxu1 %v2846_v0  ;;  %v2855_v5 = vld [vmem:[%s3536_s29 + $0x100] sm:$0xff]   ;;  %v2852_v8 = vld [vmem:[%s3525_s24 + $0x30] sm:$0xff]   ;;  %v2853_v9 = vld [vmem:[%s3525_s24 + $0x38] sm:$0xff]  }
  0x19   : > { %2648 = vmatprep.subr.bf16.mxu0 %v2847_v1  ;;  %2791 = vmatprep.subr.bf16.mxu1 %v2847_v1  ;;  %v2850_v6 = vld [vmem:[%s3525_s24 + $0x20] sm:$0xff]   ;;  %v2856_v10 = vld [vmem:[%s3536_s29 + $0x8] sm:$0xff]   ;;  %v2858_v12 = vld [vmem:[%s3536_s29 + $0x10] sm:$0xff]  }
  0x1a   : > { %2662 = vmatprep.mubr.bf16.mxu0 %v2854_v4  ;;  %2726 = vmatprep.mubr.bf16.mxu1 %v2855_v5  ;;  %v2857_v11 = vld [vmem:[%s3536_s29 + $0x108] sm:$0xff]   ;;  %v2859_v13 = vld [vmem:[%s3536_s29 + $0x110] sm:$0xff]   ;;  %v2860_v14 = vld [vmem:[%s3536_s29 + $0x18] sm:$0xff]  }
  0x1b   : > { %v2861_v15 = vld [vmem:[%s3536_s29 + $0x118] sm:$0xff]   ;;  %v2862_v16 = vld [vmem:[%s3536_s29 + $0x20] sm:$0xff]   ;;  %v2864_v18 = vld [vmem:[%s3536_s29 + $0x28] sm:$0xff]  }
  0x1c   : > { %2649 = vmatpush3.bf16.msra.mxu0 %v2847_v1  ;;  %2799 = vmatpush3.bf16.msra.mxu1 %v2847_v1  ;;  %v2863_v17 = vld [vmem:[%s3536_s29 + $0x120] sm:$0xff]   ;;  %v2865_v19 = vld [vmem:[%s3536_s29 + $0x128] sm:$0xff]   ;;  %v2866_v20 = vld [vmem:[%s3536_s29 + $0x30] sm:$0xff]  }
  0x1d   : > { %2650 = vmatprep.subr.bf16.mxu0 %v2848_v2  ;;  %2792 = vmatprep.subr.bf16.mxu1 %v2848_v2  ;;  %v2867_v21 = vld [vmem:[%s3536_s29 + $0x130] sm:$0xff]   ;;  %v2868_v22 = vld [vmem:[%s3536_s29 + $0x38] sm:$0xff]   ;;  %v2870_v24 = vld [vmem:[%s3536_s29 + $0x40] sm:$0xff]  }
  0x1e   : > { %v2869_v23 = vld [vmem:[%s3536_s29 + $0x138] sm:$0xff]   ;;  %v2871_v25 = vld [vmem:[%s3536_s29 + $0x140] sm:$0xff]   ;;  %v2872_v26 = vld [vmem:[%s3536_s29 + $0x48] sm:$0xff]  }
  0x1f   : > { %v2873_v27 = vld [vmem:[%s3536_s29 + $0x148] sm:$0xff]   ;;  %v2874_v28 = vld [vmem:[%s3536_s29 + $0x50] sm:$0xff]   ;;  %v2876_v30 = vld [vmem:[%s3536_s29 + $0x58] sm:$0xff]  }
  0x20   : > { %2651 = vmatpush3.bf16.msra.mxu0 %v2848_v2  ;;  %2800 = vmatpush3.bf16.msra.mxu1 %v2848_v2  ;;  %v2875_v29 = vld [vmem:[%s3536_s29 + $0x150] sm:$0xff]   ;;  %v2877_v31 = vld [vmem:[%s3536_s29 + $0x158] sm:$0xff]   ;;  %v2878_v32 = vld [vmem:[%s3536_s29 + $0x60] sm:$0xff]  }
  0x21   : > { %2652 = vmatprep.subr.bf16.mxu0 %v2849_v3  ;;  %2793 = vmatprep.subr.bf16.mxu1 %v2849_v3  ;;  %v2879_v33 = vld [vmem:[%s3536_s29 + $0x160] sm:$0xff]   ;;  %v2880_v34 = vld [vmem:[%s3536_s29 + $0x68] sm:$0xff]   ;;  %v2882_v36 = vld [vmem:[%s3536_s29 + $0x70] sm:$0xff]  }
  0x22   : > { %v2881_v35 = vld [vmem:[%s3536_s29 + $0x168] sm:$0xff]   ;;  %v2883_v37 = vld [vmem:[%s3536_s29 + $0x170] sm:$0xff]   ;;  %v2884_v38 = vld [vmem:[%s3536_s29 + $0x78] sm:$0xff]  }
  0x23   : > { %v2885_v39 = vld [vmem:[%s3536_s29 + $0x178] sm:$0xff]   ;;  %v2886_v40 = vld [vmem:[%s3536_s29 + $0x80] sm:$0xff]   ;;  %v2888_v42 = vld [vmem:[%s3536_s29 + $0x88] sm:$0xff]  }
  0x24   : > { %2653 = vmatpush3.bf16.msra.mxu0 %v2849_v3  ;;  %2801 = vmatpush3.bf16.msra.mxu1 %v2849_v3  ;;  %v2887_v41 = vld [vmem:[%s3536_s29 + $0x180] sm:$0xff]   ;;  %v2889_v43 = vld [vmem:[%s3536_s29 + $0x188] sm:$0xff]   ;;  %v2890_v44 = vld [vmem:[%s3536_s29 + $0x90] sm:$0xff]  }
  0x25   : > { %2654 = vmatprep.subr.bf16.mxu0 %v2850_v6  ;;  %2794 = vmatprep.subr.bf16.mxu1 %v2850_v6  ;;  %v2891_v45 = vld [vmem:[%s3536_s29 + $0x190] sm:$0xff]   ;;  %v2892_v46 = vld [vmem:[%s3536_s29 + $0x98] sm:$0xff]   ;;  %v2894_v48 = vld [vmem:[%s3536_s29 + $0xa0] sm:$0xff]  }
  0x26   : > { %v2893_v47 = vld [vmem:[%s3536_s29 + $0x198] sm:$0xff]   ;;  %v2895_v49 = vld [vmem:[%s3536_s29 + $0x1a0] sm:$0xff]   ;;  %v2896_v50 = vld [vmem:[%s3536_s29 + $0xa8] sm:$0xff]  }
  0x27   : > { %v2897_v51 = vld [vmem:[%s3536_s29 + $0x1a8] sm:$0xff]   ;;  %v2898_v52 = vld [vmem:[%s3536_s29 + $0xb0] sm:$0xff]   ;;  %v2900_v54 = vld [vmem:[%s3536_s29 + $0xb8] sm:$0xff]  }
  0x28   : > { %2655 = vmatpush3.bf16.msra.mxu0 %v2850_v6  ;;  %2802 = vmatpush3.bf16.msra.mxu1 %v2850_v6  ;;  %v2899_v53 = vld [vmem:[%s3536_s29 + $0x1b0] sm:$0xff]   ;;  %v2901_v55 = vld [vmem:[%s3536_s29 + $0x1b8] sm:$0xff]   ;;  %v2902_v56 = vld [vmem:[%s3536_s29 + $0xc0] sm:$0xff]  }
  0x29   : > { %2656 = vmatprep.subr.bf16.mxu0 %v2851_v7  ;;  %2795 = vmatprep.subr.bf16.mxu1 %v2851_v7  ;;  %v2903_v57 = vld [vmem:[%s3536_s29 + $0x1c0] sm:$0xff]   ;;  %v2904_v58 = vld [vmem:[%s3536_s29 + $0xc8] sm:$0xff]   ;;  %v2906_v60 = vld [vmem:[%s3536_s29 + $0xd0] sm:$0xff]  }
  0x2a   : > { %v2905_v59 = vld [vmem:[%s3536_s29 + $0x1c8] sm:$0xff]   ;;  %v2907_v61 = vld [vmem:[%s3536_s29 + $0x1d0] sm:$0xff]   ;;  %v2908_v62 = vld [vmem:[%s3536_s29 + $0xd8] sm:$0xff]  }
  0x2b   : > { %v2909_v63 = vld [vmem:[%s3536_s29 + $0x1d8] sm:$0xff]   ;;  %v2910_v0 = vld [vmem:[%s3536_s29 + $0xe0] sm:$0xff]   ;;  %v2912_v2 = vld [vmem:[%s3536_s29 + $0xe8] sm:$0xff]  }
  0x2c   : > { %2657 = vmatpush3.bf16.msra.mxu0 %v2851_v7  ;;  %2803 = vmatpush3.bf16.msra.mxu1 %v2851_v7  ;;  %v2911_v1 = vld [vmem:[%s3536_s29 + $0x1e0] sm:$0xff]   ;;  %v2913_v3 = vld [vmem:[%s3536_s29 + $0x1e8] sm:$0xff]   ;;  %v2914_v4 = vld [vmem:[%s3536_s29 + $0xf0] sm:$0xff]  }
  0x2d   : > { %2658 = vmatprep.subr.bf16.mxu0 %v2852_v8  ;;  %2796 = vmatprep.subr.bf16.mxu1 %v2852_v8  ;;  %v2915_v5 = vld [vmem:[%s3536_s29 + $0x1f0] sm:$0xff]   ;;  %v2916_v6 = vld [vmem:[%s3536_s29 + $0xf8] sm:$0xff]  }
  0x2e   : > { %v2917_v7 = vld [vmem:[%s3536_s29 + $0x1f8] sm:$0xff]  }
  0x30   : > { %2659 = vmatpush3.bf16.msra.mxu0 %v2852_v8  ;;  %2804 = vmatpush3.bf16.msra.mxu1 %v2852_v8  ;;  %v3610_v8 = vld [vmem:[%s4203_s2] ss:$0 sm:$0xff] }
  0x31   : > { %2660 = vmatprep.subr.bf16.mxu0 %v2853_v9  ;;  %2797 = vmatprep.subr.bf16.mxu1 %v2853_v9 }
  0x34   : > { %2661 = vmatpush3.bf16.msra.mxu0 %v2853_v9  ;;  %2805 = vmatpush3.bf16.msra.mxu1 %v2853_v9 }
  0x37   : > { %2663 = vmatmul.mubr.bf16.vlgmr.msra.gmra.mrb[0].mxu0 %v2856_v10  ;;  %2727 = vmatmul.mubr.bf16.vlgmr.msra.gmra.mrb[0].mxu1 %v2857_v11 }
  0x38   : > { %2666 = vmatprep.mubr.bf16.mxu0 %v2858_v12  ;;  %2730 = vmatprep.mubr.bf16.mxu1 %v2859_v13 }
  0x3f   : > { %2667 = vmatmul.mubr.bf16.gmra.mrb[4].mxu0 %v2860_v14  ;;  %2731 = vmatmul.mubr.bf16.gmra.mrb[4].mxu1 %v2861_v15 }
  0x40   : > { %2670 = vmatprep.mubr.bf16.mxu0 %v2862_v16  ;;  %2734 = vmatprep.mubr.bf16.mxu1 %v2863_v17 }
  0x47   : > { %2671 = vmatmul.mubr.bf16.gmra.mrb[8].mxu0 %v2864_v18  ;;  %2735 = vmatmul.mubr.bf16.gmra.mrb[8].mxu1 %v2865_v19 }
  0x48   : > { %2674 = vmatprep.mubr.bf16.mxu0 %v2866_v20  ;;  %2738 = vmatprep.mubr.bf16.mxu1 %v2867_v21 }
  0x4f   : > { %2675 = vmatmul.mubr.bf16.gmra.mrb[12].mxu0 %v2868_v22  ;;  %2739 = vmatmul.mubr.bf16.gmra.mrb[12].mxu1 %v2869_v23 }
  0x50   : > { %2678 = vmatprep.mubr.bf16.mxu0 %v2870_v24  ;;  %2742 = vmatprep.mubr.bf16.mxu1 %v2871_v25 }
  0x57   : > { %2679 = vmatmul.mubr.bf16.gmra.mrb[16].mxu0 %v2872_v26  ;;  %2743 = vmatmul.mubr.bf16.gmra.mrb[16].mxu1 %v2873_v27 }
  0x58   : > { %2682 = vmatprep.mubr.bf16.mxu0 %v2874_v28  ;;  %2746 = vmatprep.mubr.bf16.mxu1 %v2875_v29 }
  0x5f   : > { %2683 = vmatmul.mubr.bf16.gmra.mrb[20].mxu0 %v2876_v30  ;;  %2747 = vmatmul.mubr.bf16.gmra.mrb[20].mxu1 %v2877_v31 }
  0x60   : > { %2686 = vmatprep.mubr.bf16.mxu0 %v2878_v32  ;;  %2750 = vmatprep.mubr.bf16.mxu1 %v2879_v33 }
  0x67   : > { %2687 = vmatmul.mubr.bf16.gmra.mrb[24].mxu0 %v2880_v34  ;;  %2751 = vmatmul.mubr.bf16.gmra.mrb[24].mxu1 %v2881_v35 }
  0x68   : > { %2690 = vmatprep.mubr.bf16.mxu0 %v2882_v36  ;;  %2754 = vmatprep.mubr.bf16.mxu1 %v2883_v37 }
  0x6f   : > { %2691 = vmatmul.mubr.bf16.gmra.mrb[28].mxu0 %v2884_v38  ;;  %2755 = vmatmul.mubr.bf16.gmra.mrb[28].mxu1 %v2885_v39 }
  0x70   : > { %2694 = vmatprep.mubr.bf16.mxu0 %v2886_v40  ;;  %2758 = vmatprep.mubr.bf16.mxu1 %v2887_v41 }
  0x77   : > { %2695 = vmatmul.mubr.bf16.gmra.mrb[32].mxu0 %v2888_v42  ;;  %2759 = vmatmul.mubr.bf16.gmra.mrb[32].mxu1 %v2889_v43 }
  0x78   : > { %2698 = vmatprep.mubr.bf16.mxu0 %v2890_v44  ;;  %2762 = vmatprep.mubr.bf16.mxu1 %v2891_v45 }
  0x7f   : > { %2699 = vmatmul.mubr.bf16.gmra.mrb[36].mxu0 %v2892_v46  ;;  %2763 = vmatmul.mubr.bf16.gmra.mrb[36].mxu1 %v2893_v47 }
  0x80   : > { %2702 = vmatprep.mubr.bf16.mxu0 %v2894_v48  ;;  %2766 = vmatprep.mubr.bf16.mxu1 %v2895_v49 }
  0x87   : > { %2703 = vmatmul.mubr.bf16.gmra.mrb[40].mxu0 %v2896_v50  ;;  %2767 = vmatmul.mubr.bf16.gmra.mrb[40].mxu1 %v2897_v51 }
  0x88   : > { %2706 = vmatprep.mubr.bf16.mxu0 %v2898_v52  ;;  %2770 = vmatprep.mubr.bf16.mxu1 %v2899_v53 }
  0x8f   : > { %2707 = vmatmul.mubr.bf16.gmra.mrb[44].mxu0 %v2900_v54  ;;  %2771 = vmatmul.mubr.bf16.gmra.mrb[44].mxu1 %v2901_v55 }
  0x90   : > { %2710 = vmatprep.mubr.bf16.mxu0 %v2902_v56  ;;  %2774 = vmatprep.mubr.bf16.mxu1 %v2903_v57 }
  0x97   : > { %2711 = vmatmul.mubr.bf16.gmra.mrb[48].mxu0 %v2904_v58  ;;  %2775 = vmatmul.mubr.bf16.gmra.mrb[48].mxu1 %v2905_v59 }
  0x98   : > { %2714 = vmatprep.mubr.bf16.mxu0 %v2906_v60  ;;  %2778 = vmatprep.mubr.bf16.mxu1 %v2907_v61 }
  0x9f   : > { %2715 = vmatmul.mubr.bf16.gmra.mrb[52].mxu0 %v2908_v62  ;;  %2779 = vmatmul.mubr.bf16.gmra.mrb[52].mxu1 %v2909_v63 }
  0xa0   : > { %2718 = vmatprep.mubr.bf16.mxu0 %v2910_v0  ;;  %2782 = vmatprep.mubr.bf16.mxu1 %v2911_v1 }
  0xa7   : > { %2719 = vmatmul.mubr.bf16.gmra.mrb[56].mxu0 %v2912_v2  ;;  %2783 = vmatmul.mubr.bf16.gmra.mrb[56].mxu1 %v2913_v3 }
  0xa8   : > { %2722 = vmatprep.mubr.bf16.mxu0 %v2914_v4  ;;  %2786 = vmatprep.mubr.bf16.mxu1 %v2915_v5 }
  0xaf   : > { %2723 = vmatmul.mubr.bf16.gmra.mrb[60].mxu0 %v2916_v6  ;;  %2787 = vmatmul.mubr.bf16.gmra.mrb[60].mxu1 %v2917_v7 }
 0x10a   : > { %v2664_v9 = vpop.f32.mrb[0].mxu0  ;;  %v2728_v10 = vpop.f32.mrb[0].mxu1 }
 0x10b   : > { %v857_v11 = vadd.f32 %v2664_v9, %v3610_v8  ;;  %v1113_v12 = vadd.f32 %v2728_v10, %v3610_v8  ;;  %v848_v13 = vpop.f32.mrb[1].mxu0  ;;  %v1104_v14 = vpop.f32.mrb[1].mxu1 }
 0x10c   : > { %v849_v15 = vadd.f32 %v3610_v8, %v848_v13  ;;  %v1105_v16 = vadd.f32 %v3610_v8, %v1104_v14  ;;  %v2665_v17 = vpop.f32.mrb[2].mxu0  ;;  %v2729_v18 = vpop.f32.mrb[2].mxu1 }
 0x10d   : > { %v2445_v19 = vmul.f32 -1.442695, %v857_v11  ;;  %v2509_v20 = vmul.f32 -1.442695, %v1113_v12  ;;  %v860_v21 = vadd.f32 %v2665_v17, %v3610_v8  ;;  %v1116_v22 = vadd.f32 %v2729_v18, %v3610_v8  ;;  %v851_v23 = vpop.f32.mrb[3].mxu0  ;;  %v1107_v24 = vpop.f32.mrb[3].mxu1 }
 0x10e   : > { %v2443_v25 = vmul.f32 -1.442695, %v849_v15  ;;  %v2507_v26 = vmul.f32 -1.442695, %v1105_v16  ;;  %v852_v27 = vadd.f32 %v3610_v8, %v851_v23  ;;  %v1108_v28 = vadd.f32 %v3610_v8, %v1107_v24 }
 0x10f   : > { %2918 = vpow2.f32 %v2445_v19  ;;  %v2446_v29 = vmul.f32 -1.442695, %v860_v21  ;;  %v2510_v30 = vmul.f32 -1.442695, %v1116_v22 }
 0x110   : > { %2920 = vpow2.f32 %v2509_v20  ;;  %v2444_v31 = vmul.f32 -1.442695, %v852_v27  ;;  %v2508_v32 = vmul.f32 -1.442695, %v1108_v28 }
 0x111   : > { %2922 = vpow2.f32 %v2443_v25 }
 0x112   : > { %2924 = vpow2.f32 %v2507_v26  ;;  %v2668_v33 = vpop.f32.mrb[4].mxu0  ;;  %v2732_v34 = vpop.f32.mrb[4].mxu1 }
 0x113   : > { %2926 = vpow2.f32 %v2446_v29  ;;  %v873_v35 = vadd.f32 %v2668_v33, %v3610_v8  ;;  %v1129_v36 = vadd.f32 %v2732_v34, %v3610_v8  ;;  %v864_v37 = vpop.f32.mrb[5].mxu0  ;;  %v1120_v38 = vpop.f32.mrb[5].mxu1 }
 0x114   : > { %2928 = vpow2.f32 %v2510_v30  ;;  %v865_v39 = vadd.f32 %v3610_v8, %v864_v37  ;;  %v1121_v40 = vadd.f32 %v3610_v8, %v1120_v38  ;;  %v2669_v41 = vpop.f32.mrb[6].mxu0  ;;  %v2733_v42 = vpop.f32.mrb[6].mxu1 }
 0x115   : > { %2930 = vpow2.f32 %v2444_v31  ;;  %v2449_v43 = vmul.f32 -1.442695, %v873_v35  ;;  %v2513_v44 = vmul.f32 -1.442695, %v1129_v36  ;;  %v876_v45 = vadd.f32 %v2669_v41, %v3610_v8  ;;  %v867_v46 = vpop.f32.mrb[7].mxu0  ;;  %v1123_v47 = vpop.f32.mrb[7].mxu1 }
 0x116   : > { %2932 = vpow2.f32 %v2508_v32  ;;  %v2447_v48 = vmul.f32 -1.442695, %v865_v39  ;;  %v2511_v49 = vmul.f32 -1.442695, %v1121_v40  ;;  %v1132_v13 = vadd.f32 %v2733_v42, %v3610_v8 }
 0x117   : > { %2934 = vpow2.f32 %v2449_v43  ;;  %v2450_v50 = vmul.f32 -1.442695, %v876_v45  ;;  %v868_v16 = vadd.f32 %v3610_v8, %v867_v46  ;;  %v1124_v20 = vadd.f32 %v3610_v8, %v1123_v47 }
 0x118   : > { %2936 = vpow2.f32 %v2513_v44  ;;  %v2514_v30 = vmul.f32 -1.442695, %v1132_v13 }
 0x119   : > { %v2919_v51 = vpop.eup %2918  ;;  %2938 = vpow2.f32 %v2447_v48  ;;  %v2448_v36 = vmul.f32 -1.442695, %v868_v16  ;;  %v2512_v40 = vmul.f32 -1.442695, %v1124_v20 }
 0x11a   : > { %v2921_v52 = vpop.eup %2920  ;;  %v1745_v53 = vadd.f32 1.0, %v2919_v51  ;;  %2940 = vpow2.f32 %v2511_v49  ;;  %v2672_v54 = vpop.f32.mrb[8].mxu0 }
 0x11b   : > { %v2736_v55 = vpop.f32.mrb[8].mxu1  ;;  %v2923_v56 = vpop.eup %2922  ;;  %v1809_v57 = vadd.f32 1.0, %v2921_v52  ;;  %2942 = vpow2.f32 %v2450_v50  ;;  %v889_v25 = vadd.f32 %v2672_v54, %v3610_v8 }
 0x11c   : > { %v880_v58 = vpop.f32.mrb[9].mxu0  ;;  %v1136_v59 = vpop.f32.mrb[9].mxu1  ;;  %2944 = vrcp.f32 %v1745_v53  ;;  %v1743_v61 = vadd.f32 1.0, %v2923_v56  ;;  %v1145_v31 = vadd.f32 %v2736_v55, %v3610_v8 }
 0x11d   : > { %v2925_v60 = vpop.eup %2924  ;;  %v2673_v62 = vpop.f32.mrb[10].mxu0  ;;  %2946 = vrcp.f32 %v1809_v57  ;;  %v881_v37 = vadd.f32 %v3610_v8, %v880_v58  ;;  %v1137_v41 = vadd.f32 %v3610_v8, %v1136_v59  ;;  %v2453_v43 = vmul.f32 -1.442695, %v889_v25 }
 0x11e   : > { %v3625_v63 = vpop.f32.mrb[10].mxu1  ;;  %v2927_v0 = vpop.eup %2926  ;;  %v1807_v1 = vadd.f32 1.0, %v2925_v60  ;;  %2948 = vrcp.f32 %v1743_v61  ;;  %v892_v44 = vadd.f32 %v2673_v62, %v3610_v8  ;;  %v2517_v46 = vmul.f32 -1.442695, %v1145_v31 }
 0x11f   : > { %v3627_v2 = vpop.f32.mrb[11].mxu0  ;;  %v2929_v3 = vpop.eup %2928  ;;  %v1746_v4 = vadd.f32 1.0, %v2927_v0  ;;  %v1148_v47 = vadd.f32 %v3625_v63, %v3610_v8  ;;  %v2451_v49 = vmul.f32 -1.442695, %v881_v37  ;;  %v2515_v54 = vmul.f32 -1.442695, %v1137_v41 }
 0x120   : > { %v3629_v5 = vpop.f32.mrb[11].mxu1  ;;  %v2931_v6 = vpop.eup %2930  ;;  %2950 = vrcp.f32 %v1807_v1  ;;  %v1810_v7 = vadd.f32 1.0, %v2929_v3  ;;  %v884_v50 = vadd.f32 %v3610_v8, %v3627_v2  ;;  %v2454_v59 = vmul.f32 -1.442695, %v892_v44 }
 0x121   : > { %v2933_v9 = vpop.eup %2932  ;;  %2952 = vrcp.f32 %v1746_v4  ;;  %v1744_v10 = vadd.f32 1.0, %v2931_v6  ;;  %v1140_v55 = vadd.f32 %v3610_v8, %v3629_v5  ;;  %v2518_v0 = vmul.f32 -1.442695, %v1148_v47 }
 0x122   : > { %v2935_v11 = vpop.eup %2934  ;;  %2954 = vrcp.f32 %v1810_v7  ;;  %v1808_v12 = vadd.f32 1.0, %v2933_v9  ;;  %v2676_v17 = vpop.f32.mrb[12].mxu0  ;;  %v2452_v5 = vmul.f32 -1.442695, %v884_v50 }
 0x123   : > { %v2937_v14 = vpop.eup %2936  ;;  %2956 = vrcp.f32 %v1744_v10  ;;  %v1749_v15 = vadd.f32 1.0, %v2935_v11  ;;  %v2740_v21 = vpop.f32.mrb[12].mxu1  ;;  %v905_v60 = vadd.f32 %v2676_v17, %v3610_v8  ;;  %v2516_v7 = vmul.f32 -1.442695, %v1140_v55 }
 0x124   : > { %v2939_v18 = vpop.eup %2938  ;;  %2958 = vrcp.f32 %v1808_v12  ;;  %v1813_v19 = vadd.f32 1.0, %v2937_v14  ;;  %v3635_v22 = vpop.f32.mrb[13].mxu0  ;;  %v1161_v1 = vadd.f32 %v2740_v21, %v3610_v8 }
 0x125   : > { %v2941_v23 = vpop.eup %2940  ;;  %2960 = vrcp.f32 %v1749_v15  ;;  %v1747_v24 = vadd.f32 1.0, %v2939_v18  ;;  %v3643_v26 = vpop.f32.mrb[13].mxu1  ;;  %v2457_v10 = vmul.f32 -1.442695, %v905_v60 }
 0x126   : > { %v3645_v27 = vpop.f32.mrb[14].mxu0  ;;  %v2943_v28 = vpop.eup %2942  ;;  %2962 = vrcp.f32 %v1813_v19  ;;  %v1811_v29 = vadd.f32 1.0, %v2941_v23  ;;  %v2521_v12 = vmul.f32 -1.442695, %v1161_v1 }
 0x127   : > { %v3648_v32 = vpop.f32.mrb[14].mxu1  ;;  %v3650_v33 = vpop.f32.mrb[15].mxu0  ;;  %2964 = vrcp.f32 %v1747_v24  ;;  %v1750_v35 = vadd.f32 1.0, %v2943_v28 }
 0x128   : > { %v2945_v34 = vpop.eup %2944  ;;  %v3653_v38 = vpop.f32.mrb[15].mxu1  ;;  %2966 = vrcp.f32 %v1811_v29 }
 0x129   : > { %v2947_v39 = vpop.eup %2946  ;;  %2129 = vst [vmem:[%s3640_s8 + $0x10] sm:$0xff] %v2945_v34  ;;  %2968 = vrcp.f32 %v1750_v35 }
 0x12a   : > { %v2949_v42 = vpop.eup %2948  ;;  %2193 = vst [vmem:[%s3640_s8 + $0x210] sm:$0xff] %v2947_v39  ;;  %2970 = vpow2.f32 %v2514_v30  ;;  %v3665_v51 = vpop.f32.mrb[16].mxu0 }
 0x12b   : > { %v2951_v45 = vpop.eup %2950  ;;  %2127 = vst [vmem:[%s3640_s8] sm:$0xff] %v2949_v42  ;;  %2972 = vpow2.f32 %v2448_v36  ;;  %v3667_v52 = vpop.f32.mrb[16].mxu1 }
 0x12c   : > { %v2953_v48 = vpop.eup %2952  ;;  %2191 = vst [vmem:[%s3640_s8 + $0x200] sm:$0xff] %v2951_v45  ;;  %2974 = vpow2.f32 %v2512_v40  ;;  %v3672_v56 = vpop.f32.mrb[17].mxu0 }
 0x12d   : > { %v2955_v53 = vpop.eup %2954  ;;  %2130 = vst [vmem:[%s3640_s8 + $0x18] sm:$0xff] %v2953_v48  ;;  %v3674_v57 = vpop.f32.mrb[17].mxu1  ;;  %2976 = vpow2.f32 %v2453_v43 }
 0x12e   : > { %v2957_v58 = vpop.eup %2956  ;;  %2194 = vst [vmem:[%s3640_s8 + $0x218] sm:$0xff] %v2955_v53  ;;  %v3678_v61 = vpop.f32.mrb[18].mxu0  ;;  %2978 = vpow2.f32 %v2517_v46  ;;  %v897_v46 = vadd.f32 %v3610_v8, %v3635_v22  ;;  %v1153_v53 = vadd.f32 %v3610_v8, %v3643_v26  ;;  %v908_v22 = vadd.f32 %v3645_v27, %v3610_v8 }
 0x12f   : > { %v3680_v62 = vpop.f32.mrb[18].mxu1  ;;  %v2959_v63 = vpop.eup %2958  ;;  %2128 = vst [vmem:[%s3640_s8 + $0x8] sm:$0xff] %v2957_v58  ;;  %2980 = vpow2.f32 %v2451_v49  ;;  %v1164_v26 = vadd.f32 %v3648_v32, %v3610_v8  ;;  %v900_v27 = vadd.f32 %v3610_v8, %v3650_v33 }
 0x130   : > { %v3684_v2 = vpop.f32.mrb[19].mxu0  ;;  %v3686_v3 = vpop.f32.mrb[19].mxu1  ;;  %2192 = vst [vmem:[%s3640_s8 + $0x208] sm:$0xff] %v2959_v63  ;;  %2982 = vpow2.f32 %v2515_v54  ;;  %v2458_v32 = vmul.f32 -1.442695, %v908_v22 }
 0x131   : > { %v2961_v4 = vpop.eup %2960  ;;  %2984 = vpow2.f32 %v2454_v59  ;;  %v2522_v33 = vmul.f32 -1.442695, %v1164_v26 }
 0x132   : > { %v2963_v6 = vpop.eup %2962  ;;  %2133 = vst [vmem:[%s3640_s8 + $0x30] sm:$0xff] %v2961_v4  ;;  %2986 = vpow2.f32 %v2518_v0  ;;  %v3693_v14 = vpop.f32.mrb[20].mxu0 }
 0x133   : > { %v2965_v9 = vpop.eup %2964  ;;  %2197 = vst [vmem:[%s3640_s8 + $0x230] sm:$0xff] %v2963_v6  ;;  %2988 = vpow2.f32 %v2452_v5  ;;  %v3695_v15 = vpop.f32.mrb[20].mxu1 }
 0x134   : > { %v2967_v11 = vpop.eup %2966  ;;  %2131 = vst [vmem:[%s3640_s8 + $0x20] sm:$0xff] %v2965_v9  ;;  %2990 = vpow2.f32 %v2516_v7  ;;  %v3698_v17 = vpop.f32.mrb[21].mxu0  ;;  %v2455_v7 = vmul.f32 -1.442695, %v897_v46  ;;  %v1180_v46 = vadd.f32 %v3680_v62, %v3610_v8 }
 0x135   : > { %v2969_v13 = vpop.eup %2968  ;;  %2195 = vst [vmem:[%s3640_s8 + $0x220] sm:$0xff] %v2967_v11  ;;  %v3700_v18 = vpop.f32.mrb[21].mxu1  ;;  %2992 = vpow2.f32 %v2457_v10  ;;  %v2519_v11 = vmul.f32 -1.442695, %v1153_v53 }
 0x136   : > { %v2971_v16 = vpop.eup %2970  ;;  %2134 = vst [vmem:[%s3640_s8 + $0x38] sm:$0xff] %v2969_v13  ;;  %v3702_v21 = vpop.f32.mrb[22].mxu0  ;;  %2994 = vpow2.f32 %v2521_v12  ;;  %v1156_v12 = vadd.f32 %v3610_v8, %v3653_v38  ;;  %v2526_v62 = vmul.f32 -1.442695, %v1180_v46 }
 0x137   : > { %v2973_v19 = vpop.eup %2972  ;;  %v1814_v20 = vadd.f32 1.0, %v2971_v16  ;;  %v3704_v23 = vpop.f32.mrb[22].mxu1  ;;  %v921_v16 = vadd.f32 %v3665_v51, %v3610_v8  ;;  %v913_v51 = vadd.f32 %v3610_v8, %v3672_v56 }
 0x138   : > { %v2975_v24 = vpop.eup %2974  ;;  %v1748_v25 = vadd.f32 1.0, %v2973_v19  ;;  %v3706_v28 = vpop.f32.mrb[23].mxu0 }
 0x139   : > { %v2977_v29 = vpop.eup %2976  ;;  %2996 = vrcp.f32 %v1814_v20  ;;  %v1812_v30 = vadd.f32 1.0, %v2975_v24  ;;  %v3708_v31 = vpop.f32.mrb[23].mxu1  ;;  %v1177_v20 = vadd.f32 %v3667_v52, %v3610_v8  ;;  %v2520_v52 = vmul.f32 -1.442695, %v1156_v12 }
 0x13a   : > { %v2979_v34 = vpop.eup %2978  ;;  %2998 = vrcp.f32 %v1748_v25  ;;  %v1753_v35 = vadd.f32 1.0, %v2977_v29  ;;  %v3710_v43 = vpop.f32.mrb[24].mxu0  ;;  %v2456_v29 = vmul.f32 -1.442695, %v900_v27  ;;  %v2461_v56 = vmul.f32 -1.442695, %v921_v16 }
 0x13b   : > { %v2981_v36 = vpop.eup %2980  ;;  %3000 = vrcp.f32 %v1812_v30  ;;  %v1817_v37 = vadd.f32 1.0, %v2979_v34  ;;  %v3714_v47 = vpop.f32.mrb[24].mxu1 }
 0x13c   : > { %v2983_v39 = vpop.eup %2982  ;;  %3002 = vrcp.f32 %v1753_v35  ;;  %v1751_v40 = vadd.f32 1.0, %v2981_v36  ;;  %v3716_v48 = vpop.f32.mrb[25].mxu0  ;;  %v1169_v36 = vadd.f32 %v3610_v8, %v3674_v57  ;;  %v2525_v57 = vmul.f32 -1.442695, %v1177_v20 }
 0x13d   : > { %v2985_v41 = vpop.eup %2984  ;;  %3004 = vrcp.f32 %v1817_v37  ;;  %v1815_v42 = vadd.f32 1.0, %v2983_v39  ;;  %v3720_v54 = vpop.f32.mrb[25].mxu1 }
 0x13e   : > { %v2987_v44 = vpop.eup %2986  ;;  %3006 = vrcp.f32 %v1751_v40  ;;  %v1754_v45 = vadd.f32 1.0, %v2985_v41  ;;  %v3722_v55 = vpop.f32.mrb[26].mxu0  ;;  %v924_v41 = vadd.f32 %v3678_v61, %v3610_v8  ;;  %v916_v61 = vadd.f32 %v3610_v8, %v3684_v2 }
 0x13f   : > { %v2989_v49 = vpop.eup %2988  ;;  %3008 = vrcp.f32 %v1815_v42  ;;  %v1818_v50 = vadd.f32 1.0, %v2987_v44  ;;  %v3726_v60 = vpop.f32.mrb[26].mxu1 }
 0x140   : > { %v2991_v58 = vpop.eup %2990  ;;  %3010 = vrcp.f32 %v1754_v45  ;;  %v1752_v59 = vadd.f32 1.0, %v2989_v49  ;;  %v3728_v63 = vpop.f32.mrb[27].mxu0  ;;  %v2462_v22 = vmul.f32 -1.442695, %v924_v41 }
 0x141   : > { %v2993_v0 = vpop.eup %2992  ;;  %3012 = vrcp.f32 %v1818_v50  ;;  %v1816_v1 = vadd.f32 1.0, %v2991_v58  ;;  %v3732_v4 = vpop.f32.mrb[27].mxu1  ;;  %v2459_v50 = vmul.f32 -1.442695, %v913_v51  ;;  %v2523_v58 = vmul.f32 -1.442695, %v1169_v36 }
 0x142   : > { %v2995_v5 = vpop.eup %2994  ;;  %3014 = vrcp.f32 %v1752_v59  ;;  %v1757_v6 = vadd.f32 1.0, %v2993_v0  ;;  %v3744_v24 = vpop.f32.mrb[28].mxu0 }
 0x143   : > { %v2997_v9 = vpop.eup %2996  ;;  %3016 = vrcp.f32 %v1816_v1  ;;  %v1821_v10 = vadd.f32 1.0, %v2995_v5  ;;  %v3746_v25 = vpop.f32.mrb[28].mxu1  ;;  %v2460_v5 = vmul.f32 -1.442695, %v916_v61 }
 0x144   : > { %v2999_v13 = vpop.eup %2998  ;;  %2198 = vst [vmem:[%s3640_s8 + $0x238] sm:$0xff] %v2997_v9  ;;  %3018 = vrcp.f32 %v1757_v6  ;;  %v3751_v30 = vpop.f32.mrb[29].mxu0 }
 0x145   : > { %v3001_v19 = vpop.eup %3000  ;;  %2132 = vst [vmem:[%s3640_s8 + $0x28] sm:$0xff] %v2999_v13  ;;  %3020 = vrcp.f32 %v1821_v10  ;;  %v3753_v34 = vpop.f32.mrb[29].mxu1 }
 0x146   : > { %v3003_v38 = vpop.eup %3002  ;;  %2196 = vst [vmem:[%s3640_s8 + $0x228] sm:$0xff] %v3001_v19  ;;  %3022 = vpow2.f32 %v2455_v7  ;;  %v3758_v37 = vpop.f32.mrb[30].mxu0 }
 0x147   : > { %v3005_v35 = vpop.eup %3004  ;;  %2137 = vst [vmem:[%s3640_s8 + $0x50] sm:$0xff] %v3003_v38  ;;  %3024 = vpow2.f32 %v2519_v11  ;;  %v3760_v39 = vpop.f32.mrb[30].mxu1 }
 0x148   : > { %v3007_v40 = vpop.eup %3006  ;;  %2201 = vst [vmem:[%s3640_s8 + $0x250] sm:$0xff] %v3005_v35  ;;  %3026 = vpow2.f32 %v2458_v32  ;;  %v3765_v42 = vpop.f32.mrb[31].mxu0 }
 0x149   : > { %v3767_v44 = vpop.f32.mrb[31].mxu1  ;;  %v3009_v45 = vpop.eup %3008  ;;  %2135 = vst [vmem:[%s3640_s8 + $0x40] sm:$0xff] %v3007_v40  ;;  %3028 = vpow2.f32 %v2522_v33 }
 0x14a   : > { %v3011_v49 = vpop.eup %3010  ;;  %2199 = vst [vmem:[%s3640_s8 + $0x240] sm:$0xff] %v3009_v45  ;;  %3030 = vpow2.f32 %v2456_v29  ;;  %v3778_v1 = vpop.f32.mrb[32].mxu0 }
 0x14b   : > { %v3013_v53 = vpop.eup %3012  ;;  %2138 = vst [vmem:[%s3640_s8 + $0x58] sm:$0xff] %v3011_v49  ;;  %3032 = vpow2.f32 %v2520_v52  ;;  %v3780_v26 = vpop.f32.mrb[32].mxu1 }
 0x14c   : > { %v3015_v59 = vpop.eup %3014  ;;  %2202 = vst [vmem:[%s3640_s8 + $0x258] sm:$0xff] %v3013_v53  ;;  %3034 = vpow2.f32 %v2461_v56  ;;  %v3783_v6 = vpop.f32.mrb[33].mxu0 }
 0x14d   : > { %v3017_v0 = vpop.eup %3016  ;;  %2136 = vst [vmem:[%s3640_s8 + $0x48] sm:$0xff] %v3015_v59  ;;  %3036 = vpow2.f32 %v2525_v57  ;;  %v3785_v7 = vpop.f32.mrb[33].mxu1 }
 0x14e   : > { %v3019_v2 = vpop.eup %3018  ;;  %2200 = vst [vmem:[%s3640_s8 + $0x248] sm:$0xff] %v3017_v0  ;;  %3038 = vpow2.f32 %v2459_v50  ;;  %v3788_v9 = vpop.f32.mrb[34].mxu0 }
 0x14f   : > { %v3021_v27 = vpop.eup %3020  ;;  %2141 = vst [vmem:[%s3640_s8 + $0x70] sm:$0xff] %v3019_v2  ;;  %3040 = vpow2.f32 %v2523_v58  ;;  %v3790_v10 = vpop.f32.mrb[34].mxu1  ;;  %v1172_v58 = vadd.f32 %v3610_v8, %v3686_v3  ;;  %v937_v2 = vadd.f32 %v3693_v14, %v3610_v8  ;;  %v1185_v14 = vadd.f32 %v3610_v8, %v3700_v18 }
 0x150   : > { %v3023_v11 = vpop.eup %3022  ;;  %2205 = vst [vmem:[%s3640_s8 + $0x270] sm:$0xff] %v3021_v27  ;;  %3042 = vpow2.f32 %v2462_v22  ;;  %v3793_v12 = vpop.f32.mrb[35].mxu0 }
 0x151   : > { %v3795_v13 = vpop.f32.mrb[35].mxu1  ;;  %v3025_v32 = vpop.eup %3024  ;;  %v1755_v16 = vadd.f32 1.0, %v3023_v11  ;;  %3044 = vpow2.f32 %v2526_v62 }
 0x152   : > { %v3027_v19 = vpop.eup %3026  ;;  %v1819_v33 = vadd.f32 1.0, %v3025_v32  ;;  %3046 = vpow2.f32 %v2460_v5  ;;  %v3797_v36 = vpop.f32.mrb[36].mxu0  ;;  %v1193_v32 = vadd.f32 %v3695_v15, %v3610_v8  ;;  %v940_v15 = vadd.f32 %v3702_v21, %v3610_v8 }
 0x153   : > { %v3029_v20 = vpop.eup %3028  ;;  %3048 = vrcp.f32 %v1755_v16  ;;  %v1758_v38 = vadd.f32 1.0, %v3027_v19  ;;  %v3799_v41 = vpop.f32.mrb[36].mxu1  ;;  %v929_v19 = vadd.f32 %v3610_v8, %v3698_v17  ;;  %v932_v21 = vadd.f32 %v3610_v8, %v3706_v28 }
 0x154   : > { %v3031_v29 = vpop.eup %3030  ;;  %3050 = vrcp.f32 %v1819_v33  ;;  %v1822_v51 = vadd.f32 1.0, %v3029_v20  ;;  %v3801_v45 = vpop.f32.mrb[37].mxu0  ;;  %v2529_v17 = vmul.f32 -1.442695, %v1193_v32  ;;  %v2466_v28 = vmul.f32 -1.442695, %v940_v15 }
 0x155   : > { %v3033_v35 = vpop.eup %3032  ;;  %3052 = vrcp.f32 %v1758_v38  ;;  %v1756_v52 = vadd.f32 1.0, %v3031_v29  ;;  %v3803_v49 = vpop.f32.mrb[37].mxu1  ;;  %v2524_v38 = vmul.f32 -1.442695, %v1172_v58  ;;  %v953_v32 = vadd.f32 %v3710_v43, %v3610_v8 }
 0x156   : > { %v3035_v40 = vpop.eup %3034  ;;  %3054 = vrcp.f32 %v1822_v51  ;;  %v1820_v56 = vadd.f32 1.0, %v3033_v35  ;;  %v3805_v50 = vpop.f32.mrb[38].mxu0  ;;  %v2465_v35 = vmul.f32 -1.442695, %v937_v2 }
 0x157   : > { %v3037_v57 = vpop.eup %3036  ;;  %3056 = vrcp.f32 %v1756_v52  ;;  %v1761_v46 = vadd.f32 1.0, %v3035_v40  ;;  %v3809_v59 = vpop.f32.mrb[38].mxu1 }
 0x158   : > { %v3039_v61 = vpop.eup %3038  ;;  %3058 = vrcp.f32 %v1820_v56  ;;  %v1825_v53 = vadd.f32 1.0, %v3037_v57  ;;  %v3811_v22 = vpop.f32.mrb[39].mxu0  ;;  %v1196_v56 = vadd.f32 %v3704_v23, %v3610_v8  ;;  %v2527_v23 = vmul.f32 -1.442695, %v1185_v14 }
 0x159   : > { %v3041_v0 = vpop.eup %3040  ;;  %3060 = vrcp.f32 %v1761_v46  ;;  %v1759_v62 = vadd.f32 1.0, %v3039_v61  ;;  %v3815_v5 = vpop.f32.mrb[39].mxu1  ;;  %v2463_v61 = vmul.f32 -1.442695, %v929_v19 }
 0x15a   : > { %v3043_v27 = vpop.eup %3042  ;;  %3062 = vrcp.f32 %v1825_v53  ;;  %v1823_v11 = vadd.f32 1.0, %v3041_v0  ;;  %v3825_v52 = vpop.f32.mrb[40].mxu0  ;;  %v2530_v19 = vmul.f32 -1.442695, %v1196_v56 }
 0x15b   : > { %v3045_v16 = vpop.eup %3044  ;;  %3064 = vrcp.f32 %v1759_v62  ;;  %v1762_v3 = vadd.f32 1.0, %v3043_v27  ;;  %v3830_v57 = vpop.f32.mrb[40].mxu1  ;;  %v1188_v62 = vadd.f32 %v3610_v8, %v3708_v31  ;;  %v1209_v31 = vadd.f32 %v3714_v47, %v3610_v8 }
 0x15c   : > { %v3047_v33 = vpop.eup %3046  ;;  %3066 = vrcp.f32 %v1823_v11  ;;  %v1826_v20 = vadd.f32 1.0, %v3045_v16  ;;  %v3832_v18 = vpop.f32.mrb[41].mxu0  ;;  %v2469_v47 = vmul.f32 -1.442695, %v953_v32 }
 0x15d   : > { %v3049_v29 = vpop.eup %3048  ;;  %3068 = vrcp.f32 %v1762_v3  ;;  %v1760_v51 = vadd.f32 1.0, %v3047_v33  ;;  %v3837_v53 = vpop.f32.mrb[41].mxu1  ;;  %v2528_v43 = vmul.f32 -1.442695, %v1188_v62 }
 0x15e   : > { %v3051_v40 = vpop.eup %3050  ;;  %2139 = vst [vmem:[%s3640_s8 + $0x60] sm:$0xff] %v3049_v29  ;;  %3070 = vrcp.f32 %v1826_v20  ;;  %v3839_v58 = vpop.f32.mrb[42].mxu0  ;;  %v2464_v20 = vmul.f32 -1.442695, %v932_v21  ;;  %v1201_v29 = vadd.f32 %v3610_v8, %v3720_v54 }
 0x15f   : > { %v3053_v46 = vpop.eup %3052  ;;  %2203 = vst [vmem:[%s3640_s8 + $0x260] sm:$0xff] %v3051_v40  ;;  %3072 = vrcp.f32 %v1760_v51  ;;  %v3844_v2 = vpop.f32.mrb[42].mxu1 }
 0x160   : > { %v3055_v0 = vpop.eup %3054  ;;  %2142 = vst [vmem:[%s3640_s8 + $0x78] sm:$0xff] %v3053_v46  ;;  %3074 = vpow2.f32 %v2524_v38  ;;  %v3846_v27 = vpop.f32.mrb[43].mxu0  ;;  %v945_v38 = vadd.f32 %v3610_v8, %v3716_v48  ;;  %v2533_v48 = vmul.f32 -1.442695, %v1209_v31 }
 0x161   : > { %v3057_v11 = vpop.eup %3056  ;;  %2206 = vst [vmem:[%s3640_s8 + $0x278] sm:$0xff] %v3055_v0  ;;  %3076 = vpow2.f32 %v2465_v35  ;;  %v3851_v16 = vpop.f32.mrb[43].mxu1 }
 0x162   : > { %v3059_v3 = vpop.eup %3058  ;;  %2140 = vst [vmem:[%s3640_s8 + $0x68] sm:$0xff] %v3057_v11  ;;  %3078 = vpow2.f32 %v2529_v17  ;;  %v3863_v35 = vpop.f32.mrb[44].mxu0  ;;  %v2467_v54 = vmul.f32 -1.442695, %v945_v38 }
 0x163   : > { %v3061_v33 = vpop.eup %3060  ;;  %2204 = vst [vmem:[%s3640_s8 + $0x268] sm:$0xff] %v3059_v3  ;;  %3080 = vpow2.f32 %v2463_v61  ;;  %v3865_v15 = vpop.f32.mrb[44].mxu1 }
 0x164   : > { %v3063_v14 = vpop.eup %3062  ;;  %2145 = vst [vmem:[%s3640_s8 + $0x90] sm:$0xff] %v3061_v33  ;;  %3082 = vpow2.f32 %v2527_v23  ;;  %v3868_v17 = vpop.f32.mrb[45].mxu0  ;;  %v2531_v23 = vmul.f32 -1.442695, %v1201_v29 }
 0x165   : > { %v3065_v51 = vpop.eup %3064  ;;  %2209 = vst [vmem:[%s3640_s8 + $0x290] sm:$0xff] %v3063_v14  ;;  %3084 = vpow2.f32 %v2466_v28  ;;  %v3870_v56 = vpop.f32.mrb[45].mxu1 }
 0x166   : > { %v3067_v40 = vpop.eup %3066  ;;  %2143 = vst [vmem:[%s3640_s8 + $0x80] sm:$0xff] %v3065_v51  ;;  %3086 = vpow2.f32 %v2530_v19  ;;  %v3873_v61 = vpop.f32.mrb[46].mxu0 }
 0x167   : > { %v3069_v46 = vpop.eup %3068  ;;  %2207 = vst [vmem:[%s3640_s8 + $0x280] sm:$0xff] %v3067_v40  ;;  %3088 = vpow2.f32 %v2464_v20  ;;  %v3875_v21 = vpop.f32.mrb[46].mxu1 }
 0x168   : > { %v3071_v0 = vpop.eup %3070  ;;  %2146 = vst [vmem:[%s3640_s8 + $0x98] sm:$0xff] %v3069_v46  ;;  %3090 = vpow2.f32 %v2528_v43  ;;  %v3878_v62 = vpop.f32.mrb[47].mxu0 }
 0x169   : > { %v3880_v11 = vpop.f32.mrb[47].mxu1  ;;  %v3073_v28 = vpop.eup %3072  ;;  %2210 = vst [vmem:[%s3640_s8 + $0x298] sm:$0xff] %v3071_v0  ;;  %3092 = vpow2.f32 %v2469_v47 }
 0x16a   : > { %v3075_v32 = vpop.eup %3074  ;;  %2144 = vst [vmem:[%s3640_s8 + $0x88] sm:$0xff] %v3073_v28  ;;  %3094 = vpow2.f32 %v2533_v48  ;;  %v3884_v14 = vpop.f32.mrb[48].mxu0 }
 0x16b   : > { %v3077_v3 = vpop.eup %3076  ;;  %v1824_v19 = vadd.f32 1.0, %v3075_v32  ;;  %3096 = vpow2.f32 %v2467_v54  ;;  %v3886_v43 = vpop.f32.mrb[48].mxu1 }
 0x16c   : > { %v3079_v31 = vpop.eup %3078  ;;  %v1765_v33 = vadd.f32 1.0, %v3077_v3  ;;  %3098 = vpow2.f32 %v2531_v23  ;;  %v3888_v47 = vpop.f32.mrb[49].mxu0 }
 0x16d   : > { %v3081_v20 = vpop.eup %3080  ;;  %3100 = vrcp.f32 %v1824_v19  ;;  %v1829_v38 = vadd.f32 1.0, %v3079_v31  ;;  %v3890_v40 = vpop.f32.mrb[49].mxu1 }
 0x16e   : > { %v3083_v29 = vpop.eup %3082  ;;  %3102 = vrcp.f32 %v1765_v33  ;;  %v1763_v51 = vadd.f32 1.0, %v3081_v20  ;;  %v3892_v54 = vpop.f32.mrb[50].mxu0 }
 0x16f   : > { %v3085_v48 = vpop.eup %3084  ;;  %3104 = vrcp.f32 %v1829_v38  ;;  %v1827_v46 = vadd.f32 1.0, %v3083_v29  ;;  %4205 = vst [vmem:[#allocation2_spill] sm:$0xff] %v3892_v54  ;;  %v3894_v0 = vpop.f32.mrb[50].mxu1  ;;  %v956_v38 = vadd.f32 %v3722_v55, %v3610_v8 }
 0x170   : > { %v3087_v23 = vpop.eup %3086  ;;  %3106 = vrcp.f32 %v1763_v51  ;;  %v1766_v28 = vadd.f32 1.0, %v3085_v48  ;;  %v3896_v32 = vpop.f32.mrb[51].mxu0  ;;  %v1212_v51 = vadd.f32 %v3726_v60, %v3610_v8  ;;  %v969_v60 = vadd.f32 %v3744_v24, %v3610_v8 }
 0x171   : > { %4206 = vst [vmem:[#allocation3_spill] sm:$0xff] %v3896_v32  ;;  %v3089_v3 = vpop.eup %3088  ;;  %3108 = vrcp.f32 %v1827_v46  ;;  %v1830_v19 = vadd.f32 1.0, %v3087_v23  ;;  %v3898_v31 = vpop.f32.mrb[51].mxu1  ;;  %v948_v46 = vadd.f32 %v3610_v8, %v3728_v63 }
 0x172   : > { %4207 = vst [vmem:[#allocation4_spill] sm:$0xff] %v3898_v31  ;;  %v3091_v33 = vpop.eup %3090  ;;  %3110 = vrcp.f32 %v1766_v28  ;;  %v1764_v20 = vadd.f32 1.0, %v3089_v3  ;;  %v1204_v28 = vadd.f32 %v3610_v8, %v3732_v4  ;;  %v3908_v3 = vpop.f32.mrb[52].mxu0  ;;  %v1225_v4 = vadd.f32 %v3746_v25, %v3610_v8 }
 0x173   : > { %v3093_v29 = vpop.eup %3092  ;;  %3112 = vrcp.f32 %v1830_v19  ;;  %v1828_v54 = vadd.f32 1.0, %v3091_v33  ;;  %4208 = vst [vmem:[#allocation5_spill] sm:$0xff] %v3908_v3  ;;  %v2470_v33 = vmul.f32 -1.442695, %v956_v38  ;;  %v2468_v24 = vmul.f32 -1.442695, %v948_v46 }
 0x174   : > { %v3095_v48 = vpop.eup %3094  ;;  %3114 = vrcp.f32 %v1764_v20  ;;  %v1769_v32 = vadd.f32 1.0, %v3093_v29  ;;  %v3912_v20 = vpop.f32.mrb[52].mxu1 }
 0x175   : > { %v3097_v23 = vpop.eup %3096  ;;  %3116 = vrcp.f32 %v1828_v54  ;;  %v1833_v31 = vadd.f32 1.0, %v3095_v48  ;;  %v3914_v29 = vpop.f32.mrb[53].mxu0  ;;  %v2534_v48 = vmul.f32 -1.442695, %v1212_v51 }
 0x176   : > { %v3099_v55 = vpop.eup %3098  ;;  %3118 = vrcp.f32 %v1769_v32  ;;  %v1767_v19 = vadd.f32 1.0, %v3097_v23  ;;  %v3918_v3 = vpop.f32.mrb[53].mxu1  ;;  %v3926_v23 = vld [vmem:[%s4203_s2] ss:$0 sm:$0xff] }
 0x177   : > { %v3101_v63 = vpop.eup %3100  ;;  %3120 = vrcp.f32 %v1833_v31  ;;  %v1831_v54 = vadd.f32 1.0, %v3099_v55  ;;  %v3920_v32 = vpop.f32.mrb[54].mxu0  ;;  %v961_v31 = vadd.f32 %v3926_v23, %v3751_v30  ;;  %v2532_v55 = vmul.f32 -1.442695, %v1204_v28 }
 0x178   : > { %4209 = vst [vmem:[#allocation6_spill] sm:$0xff] %v3920_v32  ;;  %v3103_v38 = vpop.eup %3102  ;;  %2208 = vst [vmem:[%s3640_s8 + $0x288] sm:$0xff] %v3101_v63  ;;  %3122 = vrcp.f32 %v1767_v19  ;;  %v3930_v51 = vpop.f32.mrb[54].mxu1  ;;  %v1217_v46 = vadd.f32 %v3926_v23, %v3753_v34  ;;  %v2473_v32 = vmul.f32 -1.442695, %v969_v60  ;;  %v972_v30 = vadd.f32 %v3926_v23, %v3758_v37 }
 0x179   : > { %4210 = vst [vmem:[#allocation7_spill] sm:$0xff] %v3930_v51  ;;  %v3932_v8 = vpop.f32.mrb[55].mxu0  ;;  %v3105_v25 = vpop.eup %3104  ;;  %2149 = vst [vmem:[%s3640_s8 + $0xb0] sm:$0xff] %v3103_v38  ;;  %3124 = vrcp.f32 %v1831_v54  ;;  %v2537_v38 = vmul.f32 -1.442695, %v1225_v4  ;;  %v1228_v28 = vadd.f32 %v3926_v23, %v3760_v39  ;;  %v1220_v60 = vadd.f32 %v3926_v23, %v3767_v44 }
 0x17a   : > { %v3937_v19 = vpop.f32.mrb[55].mxu1  ;;  %v3107_v63 = vpop.eup %3106  ;;  %2213 = vst [vmem:[%s3640_s8 + $0x2b0] sm:$0xff] %v3105_v25  ;;  %3126 = vpow2.f32 %v2470_v33  ;;  %v2471_v34 = vmul.f32 -1.442695, %v961_v31  ;;  %v964_v25 = vadd.f32 %v3926_v23, %v3765_v42  ;;  %v2535_v37 = vmul.f32 -1.442695, %v1217_v46 }
 0x17b   : > { %v3109_v51 = vpop.eup %3108  ;;  %2147 = vst [vmem:[%s3640_s8 + $0xa0] sm:$0xff] %v3107_v63  ;;  %3128 = vpow2.f32 %v2534_v48  ;;  %v3951_v48 = vpop.f32.mrb[56].mxu0  ;;  %v985_v42 = vadd.f32 %v3926_v23, %v3778_v1  ;;  %v2538_v44 = vmul.f32 -1.442695, %v1228_v28 }
 0x17c   : > { %v3111_v54 = vpop.eup %3110  ;;  %2211 = vst [vmem:[%s3640_s8 + $0x2a0] sm:$0xff] %v3109_v51  ;;  %3130 = vpow2.f32 %v2468_v24  ;;  %v3953_v4 = vpop.f32.mrb[56].mxu1  ;;  %v2474_v24 = vmul.f32 -1.442695, %v972_v30  ;;  %v2472_v1 = vmul.f32 -1.442695, %v964_v25 }
 0x17d   : > { %v3113_v33 = vpop.eup %3112  ;;  %2150 = vst [vmem:[%s3640_s8 + $0xb8] sm:$0xff] %v3111_v54  ;;  %3132 = vpow2.f32 %v2532_v55  ;;  %v3958_v31 = vpop.f32.mrb[57].mxu0  ;;  %v2477_v28 = vmul.f32 -1.442695, %v985_v42 }
 0x17e   : > { %v3115_v39 = vpop.eup %3114  ;;  %2214 = vst [vmem:[%s3640_s8 + $0x2b8] sm:$0xff] %v3113_v33  ;;  %3134 = vpow2.f32 %v2473_v32  ;;  %v3960_v51 = vpop.f32.mrb[57].mxu1 }
 0x17f   : > { %v3117_v55 = vpop.eup %3116  ;;  %2148 = vst [vmem:[%s3640_s8 + $0xa8] sm:$0xff] %v3115_v39  ;;  %3136 = vpow2.f32 %v2537_v38  ;;  %v3963_v46 = vpop.f32.mrb[58].mxu0  ;;  %v2536_v39 = vmul.f32 -1.442695, %v1220_v60 }
 0x180   : > { %4211 = vst [vmem:[#allocation8_spill] sm:$0xff] %v3963_v46  ;;  %v3965_v63 = vpop.f32.mrb[58].mxu1  ;;  %v3119_v32 = vpop.eup %3118  ;;  %2212 = vst [vmem:[%s3640_s8 + $0x2a8] sm:$0xff] %v3117_v55  ;;  %3138 = vpow2.f32 %v2471_v34 }
 0x181   : > { %4212 = vst [vmem:[#allocation9_spill] sm:$0xff] %v3965_v63  ;;  %v3968_v30 = vpop.f32.mrb[59].mxu0  ;;  %v3970_v54 = vpop.f32.mrb[59].mxu1  ;;  %2153 = vst [vmem:[%s3640_s8 + $0xd0] sm:$0xff] %v3119_v32  ;;  %3140 = vpow2.f32 %v2535_v37 }
 0x182   : > { %4213 = vst [vmem:[#allocation10_spill] sm:$0xff] %v3970_v54  ;;  %v3121_v33 = vpop.eup %3120  ;;  %3142 = vpow2.f32 %v2474_v24  ;;  %v3976_v55 = vpop.f32.mrb[60].mxu0 }
 0x183   : > { %v3123_v38 = vpop.eup %3122  ;;  %2217 = vst [vmem:[%s3640_s8 + $0x2d0] sm:$0xff] %v3121_v33  ;;  %3144 = vpow2.f32 %v2538_v44  ;;  %v3978_v54 = vpop.f32.mrb[60].mxu1 }
 0x184   : > { %v3125_v46 = vpop.eup %3124  ;;  %2151 = vst [vmem:[%s3640_s8 + $0xc0] sm:$0xff] %v3123_v38  ;;  %3146 = vpow2.f32 %v2472_v1  ;;  %4214 = vst [vmem:[#allocation11_spill] sm:$0xff] %v3978_v54  ;;  %v3980_v60 = vpop.f32.mrb[61].mxu0 }
 0x185   : > { %v3127_v63 = vpop.eup %3126  ;;  %2215 = vst [vmem:[%s3640_s8 + $0x2c0] sm:$0xff] %v3125_v46  ;;  %3148 = vpow2.f32 %v2536_v39  ;;  %4215 = vst [vmem:[#allocation12_spill] sm:$0xff] %v3980_v60  ;;  %v3982_v24 = vpop.f32.mrb[61].mxu1 }
 0x186   : > { %v3129_v34 = vpop.eup %3128  ;;  %v1770_v25 = vadd.f32 1.0, %v3127_v63  ;;  %3150 = vpow2.f32 %v2477_v28  ;;  %4216 = vst [vmem:[#allocation13_spill] sm:$0xff] %v3982_v24  ;;  %v3984_v33 = vpop.f32.mrb[62].mxu0 }
 0x187   : > { %v3131_v32 = vpop.eup %3130  ;;  %v1834_v37 = vadd.f32 1.0, %v3129_v34  ;;  %4217 = vst [vmem:[#allocation14_spill] sm:$0xff] %v3984_v33  ;;  %v3986_v46 = vpop.f32.mrb[62].mxu1 }
 0x188   : > { %v3133_v42 = vpop.eup %3132  ;;  %3152 = vrcp.f32 %v1770_v25  ;;  %v1768_v44 = vadd.f32 1.0, %v3131_v32  ;;  %v3988_v39 = vpop.f32.mrb[63].mxu0 }
 0x189   : > { %v3135_v63 = vpop.eup %3134  ;;  %3154 = vrcp.f32 %v1834_v37  ;;  %v1832_v1 = vadd.f32 1.0, %v3133_v42  ;;  %4218 = vst [vmem:[#allocation15_spill] sm:$0xff] %v3988_v39  ;;  %v3990_v28 = vpop.f32.mrb[63].mxu1  ;;  %v1241_v37 = vadd.f32 %v3926_v23, %v3780_v26 }
 0x18a   : > { %v3137_v38 = vpop.eup %3136  ;;  %3156 = vrcp.f32 %v1768_v44  ;;  %v1773_v34 = vadd.f32 1.0, %v3135_v63  ;;  %4219 = vst [vmem:[#allocation16_spill] sm:$0xff] %v3990_v28  ;;  %v977_v44 = vadd.f32 %v3926_v23, %v3783_v6  ;;  %v1244_v6 = vadd.f32 %v3926_v23, %v3790_v10 }
 0x18b   : > { %v3139_v60 = vpop.eup %3138  ;;  %3158 = vrcp.f32 %v1832_v1  ;;  %v1837_v24 = vadd.f32 1.0, %v3137_v38  ;;  %v1233_v1 = vadd.f32 %v3926_v23, %v3785_v7 }
 0x18c   : > { %v3141_v54 = vpop.eup %3140  ;;  %3160 = vrcp.f32 %v1773_v34  ;;  %v1771_v25 = vadd.f32 1.0, %v3139_v60  ;;  %v2541_v34 = vmul.f32 -1.442695, %v1241_v37  ;;  %v2475_v7 = vmul.f32 -1.442695, %v977_v44 }
 0x18d   : > { %v3143_v32 = vpop.eup %3142  ;;  %3162 = vrcp.f32 %v1837_v24  ;;  %v1835_v33 = vadd.f32 1.0, %v3141_v54  ;;  %v988_v54 = vadd.f32 %v3926_v23, %v3788_v9  ;;  %v2539_v9 = vmul.f32 -1.442695, %v1233_v1 }
 0x18e   : > { %v3145_v42 = vpop.eup %3144  ;;  %3164 = vrcp.f32 %v1771_v25  ;;  %v1774_v39 = vadd.f32 1.0, %v3143_v32 }
 0x18f   : > { %v3147_v63 = vpop.eup %3146  ;;  %3166 = vrcp.f32 %v1835_v33  ;;  %v1838_v28 = vadd.f32 1.0, %v3145_v42  ;;  %v2478_v10 = vmul.f32 -1.442695, %v988_v54  ;;  %v1001_v42 = vadd.f32 %v3926_v23, %v3797_v36 }
 0x190   : > { %v3149_v60 = vpop.eup %3148  ;;  %3168 = vrcp.f32 %v1774_v39  ;;  %v1772_v24 = vadd.f32 1.0, %v3147_v63  ;;  %v980_v39 = vadd.f32 %v3926_v23, %v3793_v12  ;;  %v2542_v12 = vmul.f32 -1.442695, %v1244_v6 }
 0x191   : > { %v3151_v26 = vpop.eup %3150  ;;  %3170 = vrcp.f32 %v1838_v28  ;;  %v1836_v38 = vadd.f32 1.0, %v3149_v60  ;;  %v1236_v28 = vadd.f32 %v3926_v23, %v3795_v13  ;;  %v1257_v63 = vadd.f32 %v3926_v23, %v3799_v41 }
 0x192   : > { %v3153_v33 = vpop.eup %3152  ;;  %3172 = vrcp.f32 %v1772_v24  ;;  %v1777_v25 = vadd.f32 1.0, %v3151_v26  ;;  %v2476_v13 = vmul.f32 -1.442695, %v980_v39  ;;  %v993_v60 = vadd.f32 %v3926_v23, %v3801_v45 }
 0x193   : > { %v3155_v32 = vpop.eup %3154  ;;  %2154 = vst [vmem:[%s3640_s8 + $0xd8] sm:$0xff] %v3153_v33  ;;  %3174 = vrcp.f32 %v1836_v38  ;;  %v2540_v36 = vmul.f32 -1.442695, %v1236_v28  ;;  %v1249_v54 = vadd.f32 %v3926_v23, %v3803_v49  ;;  %v2481_v41 = vmul.f32 -1.442695, %v1001_v42 }
 0x194   : > { %v3157_v37 = vpop.eup %3156  ;;  %2218 = vst [vmem:[%s3640_s8 + $0x2d8] sm:$0xff] %v3155_v32  ;;  %3176 = vrcp.f32 %v1777_v25  ;;  %v1004_v38 = vadd.f32 %v3926_v23, %v3805_v50  ;;  %v2545_v45 = vmul.f32 -1.442695, %v1257_v63  ;;  %v1260_v6 = vadd.f32 %v3926_v23, %v3809_v59 }
 0x195   : > { %v3159_v44 = vpop.eup %3158  ;;  %2152 = vst [vmem:[%s3640_s8 + $0xc8] sm:$0xff] %v3157_v37  ;;  %3178 = vpow2.f32 %v2541_v34  ;;  %v2479_v49 = vmul.f32 -1.442695, %v993_v60 }
 0x196   : > { %v3161_v1 = vpop.eup %3160  ;;  %2216 = vst [vmem:[%s3640_s8 + $0x2c8] sm:$0xff] %v3159_v44  ;;  %3180 = vpow2.f32 %v2475_v7  ;;  %v2543_v7 = vmul.f32 -1.442695, %v1249_v54  ;;  %v2482_v50 = vmul.f32 -1.442695, %v1004_v38 }
 0x197   : > { %v3163_v24 = vpop.eup %3162  ;;  %2157 = vst [vmem:[%s3640_s8 + $0xf0] sm:$0xff] %v3161_v1  ;;  %3182 = vpow2.f32 %v2539_v9  ;;  %v2546_v9 = vmul.f32 -1.442695, %v1260_v6 }
 0x198   : > { %v3165_v26 = vpop.eup %3164  ;;  %2221 = vst [vmem:[%s3640_s8 + $0x2f0] sm:$0xff] %v3163_v24  ;;  %3184 = vpow2.f32 %v2478_v10 }
 0x199   : > { %v3167_v34 = vpop.eup %3166  ;;  %2155 = vst [vmem:[%s3640_s8 + $0xe0] sm:$0xff] %v3165_v26  ;;  %3186 = vpow2.f32 %v2542_v12 }
 0x19a   : > { %v3169_v33 = vpop.eup %3168  ;;  %2219 = vst [vmem:[%s3640_s8 + $0x2e0] sm:$0xff] %v3167_v34  ;;  %3188 = vpow2.f32 %v2476_v13 }
 0x19b   : > { %v3171_v25 = vpop.eup %3170  ;;  %2158 = vst [vmem:[%s3640_s8 + $0xf8] sm:$0xff] %v3169_v33  ;;  %3190 = vpow2.f32 %v2540_v36 }
 0x19c   : > { %v3173_v39 = vpop.eup %3172  ;;  %2222 = vst [vmem:[%s3640_s8 + $0x2f8] sm:$0xff] %v3171_v25  ;;  %3192 = vpow2.f32 %v2481_v41 }
 0x19d   : > { %v3175_v32 = vpop.eup %3174  ;;  %2156 = vst [vmem:[%s3640_s8 + $0xe8] sm:$0xff] %v3173_v39  ;;  %3194 = vpow2.f32 %v2545_v45  ;;  %v996_v45 = vadd.f32 %v3926_v23, %v3811_v22  ;;  %v1017_v39 = vadd.f32 %v3926_v23, %v3825_v52 }
 0x19e   : > { %v3177_v28 = vpop.eup %3176  ;;  %2220 = vst [vmem:[%s3640_s8 + $0x2e8] sm:$0xff] %v3175_v32  ;;  %3196 = vpow2.f32 %v2479_v49  ;;  %v1252_v49 = vadd.f32 %v3926_v23, %v3815_v5  ;;  %v1009_v5 = vadd.f32 %v3926_v23, %v3832_v18 }
 0x19f   : > { %v3179_v59 = vpop.eup %3178  ;;  %2161 = vst [vmem:[%s3640_s8 + $0x110] sm:$0xff] %v3177_v28  ;;  %3198 = vpow2.f32 %v2543_v7 }
 0x1a0   : > { %v3181_v37 = vpop.eup %3180  ;;  %v1841_v10 = vadd.f32 1.0, %v3179_v59  ;;  %3200 = vpow2.f32 %v2482_v50  ;;  %v2480_v59 = vmul.f32 -1.442695, %v996_v45  ;;  %v2544_v52 = vmul.f32 -1.442695, %v1252_v49 }
 0x1a1   : > { %v3183_v42 = vpop.eup %3182  ;;  %v1775_v44 = vadd.f32 1.0, %v3181_v37  ;;  %3202 = vpow2.f32 %v2546_v9  ;;  %v1273_v9 = vadd.f32 %v3926_v23, %v3830_v57  ;;  %v2485_v57 = vmul.f32 -1.442695, %v1017_v39 }
 0x1a2   : > { %v3185_v12 = vpop.eup %3184  ;;  %3204 = vrcp.f32 %v1841_v10  ;;  %v1839_v63 = vadd.f32 1.0, %v3183_v42  ;;  %v1265_v42 = vadd.f32 %v3926_v23, %v3837_v53  ;;  %v2483_v53 = vmul.f32 -1.442695, %v1009_v5 }
 0x1a3   : > { %v3187_v1 = vpop.eup %3186  ;;  %3206 = vrcp.f32 %v1775_v44  ;;  %v1778_v13 = vadd.f32 1.0, %v3185_v12  ;;  %v1020_v12 = vadd.f32 %v3926_v23, %v3839_v58  ;;  %v2549_v18 = vmul.f32 -1.442695, %v1273_v9 }
 0x1a4   : > { %v3189_v60 = vpop.eup %3188  ;;  %3208 = vrcp.f32 %v1839_v63  ;;  %v1842_v24 = vadd.f32 1.0, %v3187_v1  ;;  %v1276_v1 = vadd.f32 %v3926_v23, %v3844_v2  ;;  %v2547_v58 = vmul.f32 -1.442695, %v1265_v42 }
 0x1a5   : > { %v3191_v36 = vpop.eup %3190  ;;  %3210 = vrcp.f32 %v1778_v13  ;;  %v1776_v54 = vadd.f32 1.0, %v3189_v60  ;;  %v1012_v60 = vadd.f32 %v3926_v23, %v3846_v27  ;;  %v2486_v2 = vmul.f32 -1.442695, %v1020_v12 }
 0x1a6   : > { %v3193_v26 = vpop.eup %3192  ;;  %3212 = vrcp.f32 %v1842_v24  ;;  %v1840_v41 = vadd.f32 1.0, %v3191_v36  ;;  %v1268_v36 = vadd.f32 %v3926_v23, %v3851_v16  ;;  %v2550_v27 = vmul.f32 -1.442695, %v1276_v1 }
 0x1a7   : > { %v3195_v38 = vpop.eup %3194  ;;  %3214 = vrcp.f32 %v1776_v54  ;;  %v1781_v34 = vadd.f32 1.0, %v3193_v26  ;;  %v1033_v26 = vadd.f32 %v3926_v23, %v3863_v35  ;;  %v2484_v16 = vmul.f32 -1.442695, %v1012_v60 }
 0x1a8   : > { %v3197_v6 = vpop.eup %3196  ;;  %3216 = vrcp.f32 %v1840_v41  ;;  %v1845_v33 = vadd.f32 1.0, %v3195_v38  ;;  %v1289_v38 = vadd.f32 %v3926_v23, %v3865_v15  ;;  %v1025_v45 = vadd.f32 %v3926_v23, %v3868_v17 }
 0x1a9   : > { %v3199_v25 = vpop.eup %3198  ;;  %3218 = vrcp.f32 %v1781_v34  ;;  %v1779_v7 = vadd.f32 1.0, %v3197_v6  ;;  %v2548_v35 = vmul.f32 -1.442695, %v1268_v36  ;;  %v2489_v49 = vmul.f32 -1.442695, %v1033_v26 }
 0x1aa   : > { %v3201_v50 = vpop.eup %3200  ;;  %3220 = vrcp.f32 %v1845_v33  ;;  %v1843_v32 = vadd.f32 1.0, %v3199_v25  ;;  %v2553_v15 = vmul.f32 -1.442695, %v1289_v38  ;;  %v2487_v39 = vmul.f32 -1.442695, %v1025_v45 }
 0x1ab   : > { %v3203_v22 = vpop.eup %3202  ;;  %3222 = vrcp.f32 %v1779_v7  ;;  %v1782_v28 = vadd.f32 1.0, %v3201_v50  ;;  %v1049_v45 = vadd.f32 %v3926_v23, %v3884_v14 }
 0x1ac   : > { %v3205_v37 = vpop.eup %3204  ;;  %3224 = vrcp.f32 %v1843_v32  ;;  %v1846_v10 = vadd.f32 1.0, %v3203_v22 }
 0x1ad   : > { %v3207_v44 = vpop.eup %3206  ;;  %2225 = vst [vmem:[%s3640_s8 + $0x310] sm:$0xff] %v3205_v37  ;;  %3226 = vrcp.f32 %v1782_v28 }
 0x1ae   : > { %v3209_v63 = vpop.eup %3208  ;;  %2159 = vst [vmem:[%s3640_s8 + $0x100] sm:$0xff] %v3207_v44  ;;  %3228 = vrcp.f32 %v1846_v10 }
 0x1af   : > { %v3211_v13 = vpop.eup %3210  ;;  %2223 = vst [vmem:[%s3640_s8 + $0x300] sm:$0xff] %v3209_v63  ;;  %3230 = vpow2.f32 %v2480_v59 }
 0x1b0   : > { %v3213_v24 = vpop.eup %3212  ;;  %2162 = vst [vmem:[%s3640_s8 + $0x118] sm:$0xff] %v3211_v13  ;;  %3232 = vpow2.f32 %v2544_v52  ;;  %v1281_v13 = vadd.f32 %v3926_v23, %v3870_v56 }
 0x1b1   : > { %v3215_v54 = vpop.eup %3214  ;;  %2226 = vst [vmem:[%s3640_s8 + $0x318] sm:$0xff] %v3213_v24  ;;  %3234 = vpow2.f32 %v2485_v57  ;;  %v1036_v24 = vadd.f32 %v3926_v23, %v3873_v61  ;;  %v1284_v61 = vadd.f32 %v3926_v23, %v3880_v11 }
 0x1b2   : > { %v3217_v41 = vpop.eup %3216  ;;  %2160 = vst [vmem:[%s3640_s8 + $0x108] sm:$0xff] %v3215_v54  ;;  %3236 = vpow2.f32 %v2549_v18  ;;  %v1292_v54 = vadd.f32 %v3926_v23, %v3875_v21  ;;  %v2551_v38 = vmul.f32 -1.442695, %v1281_v13 }
 0x1b3   : > { %v3219_v34 = vpop.eup %3218  ;;  %2224 = vst [vmem:[%s3640_s8 + $0x308] sm:$0xff] %v3217_v41  ;;  %3238 = vpow2.f32 %v2483_v53  ;;  %v1028_v41 = vadd.f32 %v3926_v23, %v3878_v62  ;;  %v2490_v21 = vmul.f32 -1.442695, %v1036_v24  ;;  %v2552_v14 = vmul.f32 -1.442695, %v1284_v61 }
 0x1b4   : > { %v3221_v6 = vpop.eup %3220  ;;  %2165 = vst [vmem:[%s3640_s8 + $0x130] sm:$0xff] %v3219_v34  ;;  %3240 = vpow2.f32 %v2547_v58  ;;  %v2554_v62 = vmul.f32 -1.442695, %v1292_v54 }
 0x1b5   : > { %v3223_v33 = vpop.eup %3222  ;;  %2229 = vst [vmem:[%s3640_s8 + $0x330] sm:$0xff] %v3221_v6  ;;  %3242 = vpow2.f32 %v2486_v2  ;;  %v2488_v11 = vmul.f32 -1.442695, %v1028_v41 }
 0x1b6   : > { %v3225_v25 = vpop.eup %3224  ;;  %2163 = vst [vmem:[%s3640_s8 + $0x120] sm:$0xff] %v3223_v33  ;;  %3244 = vpow2.f32 %v2550_v27 }
 0x1b7   : > { %v3227_v7 = vpop.eup %3226  ;;  %2227 = vst [vmem:[%s3640_s8 + $0x320] sm:$0xff] %v3225_v25  ;;  %3246 = vpow2.f32 %v2484_v16 }
 0x1b8   : > { %v3229_v50 = vpop.eup %3228  ;;  %2166 = vst [vmem:[%s3640_s8 + $0x138] sm:$0xff] %v3227_v7  ;;  %3248 = vpow2.f32 %v2548_v35  ;;  %v1305_v35 = vadd.f32 %v3926_v23, %v3886_v43  ;;  %v2493_v43 = vmul.f32 -1.442695, %v1049_v45  ;;  %v4223_v45 = vld [vmem:[#allocation5_spill] sm:$0xff] }
 0x1b9   : > { %v3231_v17 = vpop.eup %3230  ;;  %2230 = vst [vmem:[%s3640_s8 + $0x338] sm:$0xff] %v3229_v50  ;;  %3250 = vpow2.f32 %v2489_v49  ;;  %v1041_v49 = vadd.f32 %v3926_v23, %v3888_v47 }
 0x1ba   : > { %v3233_v32 = vpop.eup %3232  ;;  %v1780_v9 = vadd.f32 1.0, %v3231_v17  ;;  %3252 = vpow2.f32 %v2553_v15  ;;  %v1297_v15 = vadd.f32 %v3926_v23, %v3890_v40  ;;  %v2557_v47 = vmul.f32 -1.442695, %v1305_v35 }
 0x1bb   : > { %v3235_v22 = vpop.eup %3234  ;;  %v1844_v28 = vadd.f32 1.0, %v3233_v32  ;;  %3254 = vpow2.f32 %v2487_v39  ;;  %v4220_v39 = vld [vmem:[#allocation2_spill] sm:$0xff]  ;;  %v1308_v32 = vadd.f32 %v3926_v23, %v3894_v0  ;;  %v2491_v40 = vmul.f32 -1.442695, %v1041_v49 }
 0x1bc   : > { %v3237_v59 = vpop.eup %3236  ;;  %3256 = vrcp.f32 %v1780_v9  ;;  %v1785_v5 = vadd.f32 1.0, %v3235_v22  ;;  %v1052_v50 = vadd.f32 %v3926_v23, %v4220_v39  ;;  %v4221_v22 = vld [vmem:[#allocation3_spill] sm:$0xff] }
 0x1bd   : > { %v3239_v37 = vpop.eup %3238  ;;  %3258 = vrcp.f32 %v1844_v28  ;;  %v1849_v10 = vadd.f32 1.0, %v3237_v59  ;;  %v1044_v28 = vadd.f32 %v3926_v23, %v4221_v22 }
 0x1be   : > { %v3241_v52 = vpop.eup %3240  ;;  %3260 = vrcp.f32 %v1785_v5  ;;  %v1783_v42 = vadd.f32 1.0, %v3239_v37  ;;  %v2555_v5 = vmul.f32 -1.442695, %v1297_v15  ;;  %v4222_v37 = vld [vmem:[#allocation4_spill] sm:$0xff]  ;;  %v2494_v0 = vmul.f32 -1.442695, %v1052_v50 }
 0x1bf   : > { %v3243_v44 = vpop.eup %3242  ;;  %3262 = vrcp.f32 %v1849_v10  ;;  %v1847_v57 = vadd.f32 1.0, %v3241_v52  ;;  %v1300_v10 = vadd.f32 %v3926_v23, %v4222_v37  ;;  %v1316_v37 = vadd.f32 %v3926_v23, %v3937_v19 }
 0x1c0   : > { %v3245_v12 = vpop.eup %3244  ;;  %3264 = vrcp.f32 %v1783_v42  ;;  %v1786_v63 = vadd.f32 1.0, %v3243_v44  ;;  %v2558_v44 = vmul.f32 -1.442695, %v1308_v32 }
 0x1c1   : > { %v3247_v18 = vpop.eup %3246  ;;  %3266 = vrcp.f32 %v1847_v57  ;;  %v1850_v1 = vadd.f32 1.0, %v3245_v12  ;;  %v2492_v12 = vmul.f32 -1.442695, %v1044_v28  ;;  %v1060_v28 = vadd.f32 %v3926_v23, %v3932_v8 }
 0x1c2   : > { %v3249_v53 = vpop.eup %3248  ;;  %3268 = vrcp.f32 %v1786_v63  ;;  %v1784_v60 = vadd.f32 1.0, %v3247_v18  ;;  %v2556_v18 = vmul.f32 -1.442695, %v1300_v10 }
 0x1c3   : > { %v3251_v58 = vpop.eup %3250  ;;  %3270 = vrcp.f32 %v1850_v1  ;;  %v1848_v36 = vadd.f32 1.0, %v3249_v53  ;;  %v2496_v19 = vmul.f32 -1.442695, %v1060_v28 }
 0x1c4   : > { %v3253_v2 = vpop.eup %3252  ;;  %3272 = vrcp.f32 %v1784_v60  ;;  %v1789_v26 = vadd.f32 1.0, %v3251_v58 }
 0x1c5   : > { %v3255_v56 = vpop.eup %3254  ;;  %3274 = vrcp.f32 %v1848_v36  ;;  %v1853_v27 = vadd.f32 1.0, %v3253_v2 }
 0x1c6   : > { %v3257_v34 = vpop.eup %3256  ;;  %3276 = vrcp.f32 %v1789_v26  ;;  %v1787_v16 = vadd.f32 1.0, %v3255_v56 }
 0x1c7   : > { %v3259_v6 = vpop.eup %3258  ;;  %2164 = vst [vmem:[%s3640_s8 + $0x128] sm:$0xff] %v3257_v34  ;;  %3278 = vrcp.f32 %v1853_v27 }
 0x1c8   : > { %v3261_v33 = vpop.eup %3260  ;;  %2228 = vst [vmem:[%s3640_s8 + $0x328] sm:$0xff] %v3259_v6  ;;  %3280 = vrcp.f32 %v1787_v16  ;;  %v1065_v6 = vadd.f32 %v3926_v23, %v4223_v45 }
 0x1c9   : > { %v3263_v25 = vpop.eup %3262  ;;  %2169 = vst [vmem:[%s3640_s8 + $0x150] sm:$0xff] %v3261_v33  ;;  %3282 = vpow2.f32 %v2551_v38  ;;  %v1321_v33 = vadd.f32 %v3926_v23, %v3912_v20 }
 0x1ca   : > { %v3265_v7 = vpop.eup %3264  ;;  %2233 = vst [vmem:[%s3640_s8 + $0x350] sm:$0xff] %v3263_v25  ;;  %3284 = vpow2.f32 %v2490_v21  ;;  %v1057_v25 = vadd.f32 %v3926_v23, %v3914_v29  ;;  %v2497_v50 = vmul.f32 -1.442695, %v1065_v6 }
 0x1cb   : > { %v3267_v17 = vpop.eup %3266  ;;  %2167 = vst [vmem:[%s3640_s8 + $0x140] sm:$0xff] %v3265_v7  ;;  %3286 = vpow2.f32 %v2554_v62  ;;  %v1313_v7 = vadd.f32 %v3926_v23, %v3918_v3  ;;  %v2561_v29 = vmul.f32 -1.442695, %v1321_v33 }
 0x1cc   : > { %v3269_v9 = vpop.eup %3268  ;;  %2231 = vst [vmem:[%s3640_s8 + $0x340] sm:$0xff] %v3267_v17  ;;  %3288 = vpow2.f32 %v2488_v11  ;;  %v4224_v17 = vld [vmem:[#allocation6_spill] sm:$0xff]  ;;  %v2495_v3 = vmul.f32 -1.442695, %v1057_v25 }
 0x1cd   : > { %v3271_v59 = vpop.eup %3270  ;;  %2170 = vst [vmem:[%s3640_s8 + $0x158] sm:$0xff] %v3269_v9  ;;  %3290 = vpow2.f32 %v2552_v14  ;;  %v1068_v20 = vadd.f32 %v3926_v23, %v4224_v17  ;;  %v4225_v9 = vld [vmem:[#allocation7_spill] sm:$0xff] }
 0x1ce   : > { %v3273_v52 = vpop.eup %3272  ;;  %2234 = vst [vmem:[%s3640_s8 + $0x358] sm:$0xff] %v3271_v59  ;;  %3292 = vpow2.f32 %v2493_v43 }
 0x1cf   : > { %v3275_v42 = vpop.eup %3274  ;;  %2168 = vst [vmem:[%s3640_s8 + $0x148] sm:$0xff] %v3273_v52  ;;  %3294 = vpow2.f32 %v2557_v47  ;;  %v2498_v52 = vmul.f32 -1.442695, %v1068_v20 }
 0x1d0   : > { %v3277_v57 = vpop.eup %3276  ;;  %2232 = vst [vmem:[%s3640_s8 + $0x348] sm:$0xff] %v3275_v42  ;;  %3296 = vpow2.f32 %v2491_v40  ;;  %v1324_v40 = vadd.f32 %v3926_v23, %v4225_v9 }
 0x1d1   : > { %v3279_v63 = vpop.eup %3278  ;;  %2173 = vst [vmem:[%s3640_s8 + $0x170] sm:$0xff] %v3277_v57  ;;  %3298 = vpow2.f32 %v2555_v5  ;;  %v2559_v5 = vmul.f32 -1.442695, %v1313_v7 }
 0x1d2   : > { %v3281_v1 = vpop.eup %3280  ;;  %2237 = vst [vmem:[%s3640_s8 + $0x370] sm:$0xff] %v3279_v63  ;;  %3300 = vpow2.f32 %v2494_v0  ;;  %v1081_v0 = vadd.f32 %v3926_v23, %v3951_v48  ;;  %v2562_v8 = vmul.f32 -1.442695, %v1324_v40  ;;  %v2560_v48 = vmul.f32 -1.442695, %v1316_v37 }
 0x1d3   : > { %v3283_v13 = vpop.eup %3282  ;;  %2171 = vst [vmem:[%s3640_s8 + $0x160] sm:$0xff] %v3281_v1  ;;  %3302 = vpow2.f32 %v2558_v44  ;;  %v1337_v44 = vadd.f32 %v3926_v23, %v3953_v4 }
 0x1d4   : > { %v3285_v53 = vpop.eup %3284  ;;  %v1851_v60 = vadd.f32 1.0, %v3283_v13  ;;  %3304 = vpow2.f32 %v2492_v12  ;;  %v1073_v12 = vadd.f32 %v3926_v23, %v3958_v31  ;;  %v2501_v4 = vmul.f32 -1.442695, %v1081_v0  ;;  %v4226_v13 = vld [vmem:[#allocation8_spill] sm:$0xff] }
 0x1d5   : > { %v3287_v24 = vpop.eup %3286  ;;  %v1790_v58 = vadd.f32 1.0, %v3285_v53  ;;  %3306 = vpow2.f32 %v2556_v18  ;;  %v1329_v18 = vadd.f32 %v3926_v23, %v3960_v51  ;;  %v1084_v53 = vadd.f32 %v3926_v23, %v4226_v13 }
 0x1d6   : > { %v3289_v36 = vpop.eup %3288  ;;  %3308 = vrcp.f32 %v1851_v60  ;;  %v1854_v54 = vadd.f32 1.0, %v3287_v24  ;;  %v2565_v31 = vmul.f32 -1.442695, %v1337_v44 }
 0x1d7   : > { %v3291_v2 = vpop.eup %3290  ;;  %3310 = vrcp.f32 %v1790_v58  ;;  %v1788_v26 = vadd.f32 1.0, %v3289_v36  ;;  %v2499_v58 = vmul.f32 -1.442695, %v1073_v12  ;;  %v2563_v51 = vmul.f32 -1.442695, %v1329_v18  ;;  %v4232_v12 = vld [vmem:[#allocation14_spill] sm:$0xff] }
 0x1d8   : > { %v3293_v41 = vpop.eup %3292  ;;  %3312 = vrcp.f32 %v1854_v54  ;;  %v1852_v56 = vadd.f32 1.0, %v3291_v2  ;;  %v2502_v2 = vmul.f32 -1.442695, %v1084_v53  ;;  %v4233_v53 = vld [vmem:[#allocation15_spill] sm:$0xff] }
 0x1d9   : > { %v3295_v27 = vpop.eup %3294  ;;  %3314 = vrcp.f32 %v1788_v26  ;;  %v1793_v38 = vadd.f32 1.0, %v3293_v41 }
 0x1da   : > { %v3297_v61 = vpop.eup %3296  ;;  %3316 = vrcp.f32 %v1852_v56  ;;  %v1857_v34 = vadd.f32 1.0, %v3295_v27 }
 0x1db   : > { %v3299_v16 = vpop.eup %3298  ;;  %3318 = vrcp.f32 %v1793_v38  ;;  %v1791_v21 = vadd.f32 1.0, %v3297_v61 }
 0x1dc   : > { %v3301_v62 = vpop.eup %3300  ;;  %3320 = vrcp.f32 %v1857_v34  ;;  %v1855_v35 = vadd.f32 1.0, %v3299_v16 }
 0x1dd   : > { %v3303_v11 = vpop.eup %3302  ;;  %3322 = vrcp.f32 %v1791_v21  ;;  %v1794_v49 = vadd.f32 1.0, %v3301_v62 }
 0x1de   : > { %v3305_v14 = vpop.eup %3304  ;;  %3324 = vrcp.f32 %v1855_v35  ;;  %v1858_v15 = vadd.f32 1.0, %v3303_v11 }
 0x1df   : > { %v3307_v43 = vpop.eup %3306  ;;  %3326 = vrcp.f32 %v1794_v49  ;;  %v1792_v39 = vadd.f32 1.0, %v3305_v14  ;;  %v3431_v14 = vld [vmem:[%s4203_s2] ss:$0 sm:$0xff] }
 0x1e0   : > { %v3309_v47 = vpop.eup %3308  ;;  %3328 = vrcp.f32 %v1858_v15  ;;  %v1856_v32 = vadd.f32 1.0, %v3307_v43  ;;  %v4227_v15 = vld [vmem:[#allocation9_spill] sm:$0xff]  ;;  %v1097_v40 = vadd.f32 %v3431_v14, %v3976_v55 }
 0x1e1   : > { %v3311_v22 = vpop.eup %3310  ;;  %2235 = vst [vmem:[%s3640_s8 + $0x360] sm:$0xff] %v3309_v47  ;;  %3330 = vrcp.f32 %v1792_v39  ;;  %v1340_v7 = vadd.f32 %v3431_v14, %v4227_v15  ;;  %v4228_v47 = vld [vmem:[#allocation10_spill] sm:$0xff]  ;;  %v4231_v55 = vld [vmem:[#allocation13_spill] sm:$0xff] }
 0x1e2   : > { %v3313_v59 = vpop.eup %3312  ;;  %2174 = vst [vmem:[%s3640_s8 + $0x178] sm:$0xff] %v3311_v22  ;;  %3332 = vrcp.f32 %v1856_v32  ;;  %v1332_v32 = vadd.f32 %v3431_v14, %v4228_v47  ;;  %v1345_v44 = vadd.f32 %v3431_v14, %v4231_v55 }
 0x1e3   : > { %v3315_v10 = vpop.eup %3314  ;;  %2238 = vst [vmem:[%s3640_s8 + $0x378] sm:$0xff] %v3313_v59  ;;  %3334 = vpow2.f32 %v2497_v50  ;;  %v1076_v50 = vadd.f32 %v3431_v14, %v3968_v30  ;;  %v2566_v28 = vmul.f32 -1.442695, %v1340_v7  ;;  %v4229_v59 = vld [vmem:[#allocation11_spill] sm:$0xff] }
 0x1e4   : > { %v3317_v42 = vpop.eup %3316  ;;  %2172 = vst [vmem:[%s3640_s8 + $0x168] sm:$0xff] %v3315_v10  ;;  %3336 = vpow2.f32 %v2561_v29 }
 0x1e5   : > { %v3319_v57 = vpop.eup %3318  ;;  %2236 = vst [vmem:[%s3640_s8 + $0x368] sm:$0xff] %v3317_v42  ;;  %3338 = vpow2.f32 %v2495_v3  ;;  %v2500_v10 = vmul.f32 -1.442695, %v1076_v50 }
 0x1e6   : > { %v3321_v63 = vpop.eup %3320  ;;  %2177 = vst [vmem:[%s3640_s8 + $0x190] sm:$0xff] %v3319_v57  ;;  %3340 = vpow2.f32 %v2559_v5  ;;  %v1353_v5 = vadd.f32 %v3431_v14, %v4229_v59 }
 0x1e7   : > { %v3323_v1 = vpop.eup %3322  ;;  %2241 = vst [vmem:[%s3640_s8 + $0x390] sm:$0xff] %v3321_v63  ;;  %3342 = vpow2.f32 %v2498_v52  ;;  %v4230_v52 = vld [vmem:[#allocation12_spill] sm:$0xff]  ;;  %v1100_v63 = vadd.f32 %v3431_v14, %v4232_v12 }
 0x1e8   : > { %v3325_v60 = vpop.eup %3324  ;;  %2175 = vst [vmem:[%s3640_s8 + $0x180] sm:$0xff] %v3323_v1  ;;  %3344 = vpow2.f32 %v2562_v8  ;;  %v1089_v0 = vadd.f32 %v3431_v14, %v4230_v52  ;;  %v2564_v8 = vmul.f32 -1.442695, %v1332_v32  ;;  %v2569_v18 = vmul.f32 -1.442695, %v1353_v5 }
 0x1e9   : > { %v3327_v24 = vpop.eup %3326  ;;  %2239 = vst [vmem:[%s3640_s8 + $0x380] sm:$0xff] %v3325_v60  ;;  %3346 = vpow2.f32 %v2496_v19  ;;  %v2505_v19 = vmul.f32 -1.442695, %v1097_v40  ;;  %v1356_v1 = vadd.f32 %v3431_v14, %v3986_v46  ;;  %v1092_v60 = vadd.f32 %v3431_v14, %v4233_v53 }
 0x1ea   : > { %v3329_v36 = vpop.eup %3328  ;;  %2178 = vst [vmem:[%s3640_s8 + $0x198] sm:$0xff] %v3327_v24  ;;  %3348 = vpow2.f32 %v2560_v48  ;;  %v2503_v13 = vmul.f32 -1.442695, %v1089_v0  ;;  %v2567_v24 = vmul.f32 -1.442695, %v1345_v44 }
 0x1eb   : > { %v3331_v54 = vpop.eup %3330  ;;  %2242 = vst [vmem:[%s3640_s8 + $0x398] sm:$0xff] %v3329_v36  ;;  %3350 = vpow2.f32 %v2501_v4  ;;  %v2506_v46 = vmul.f32 -1.442695, %v1100_v63 }
 0x1ec   : > { %v3333_v26 = vpop.eup %3332  ;;  %2176 = vst [vmem:[%s3640_s8 + $0x188] sm:$0xff] %v3331_v54  ;;  %3352 = vpow2.f32 %v2565_v31 }
 0x1ed   : > { %v3335_v23 = vpop.eup %3334  ;;  %2240 = vst [vmem:[%s3640_s8 + $0x388] sm:$0xff] %v3333_v26  ;;  %3354 = vpow2.f32 %v2499_v58  ;;  %v4234_v58 = vld [vmem:[#allocation16_spill] sm:$0xff] }
 0x1ee   : > { %v3337_v41 = vpop.eup %3336  ;;  %v1797_v56 = vadd.f32 1.0, %v3335_v23  ;;  %3356 = vpow2.f32 %v2563_v51  ;;  %v1348_v36 = vadd.f32 %v3431_v14, %v4234_v58  ;;  %v2504_v23 = vmul.f32 -1.442695, %v1092_v60 }
 0x1ef   : > { %v3339_v27 = vpop.eup %3338  ;;  %v1861_v38 = vadd.f32 1.0, %v3337_v41  ;;  %3358 = vpow2.f32 %v2502_v2  ;;  %v2570_v2 = vmul.f32 -1.442695, %v1356_v1 }
 0x1f0   : > { %v3341_v61 = vpop.eup %3340  ;;  %3360 = vrcp.f32 %v1797_v56  ;;  %v1795_v34 = vadd.f32 1.0, %v3339_v27  ;;  %v2568_v56 = vmul.f32 -1.442695, %v1348_v36 }
 0x1f1   : > { %v3343_v16 = vpop.eup %3342  ;;  %3362 = vrcp.f32 %v1861_v38  ;;  %v1859_v21 = vadd.f32 1.0, %v3341_v61 }
 0x1f2   : > { %v3345_v45 = vpop.eup %3344  ;;  %3364 = vrcp.f32 %v1795_v34  ;;  %v1798_v6 = vadd.f32 1.0, %v3343_v16 }
 0x1f3   : > { %v3347_v62 = vpop.eup %3346  ;;  %3366 = vrcp.f32 %v1859_v21  ;;  %v1862_v35 = vadd.f32 1.0, %v3345_v45 }
 0x1f4   : > { %v3349_v33 = vpop.eup %3348  ;;  %3368 = vrcp.f32 %v1798_v6  ;;  %v1796_v11 = vadd.f32 1.0, %v3347_v62 }
 0x1f5   : > { %v3351_v49 = vpop.eup %3350  ;;  %3370 = vrcp.f32 %v1862_v35  ;;  %v1860_v25 = vadd.f32 1.0, %v3349_v33 }
 0x1f6   : > { %v3353_v43 = vpop.eup %3352  ;;  %3372 = vrcp.f32 %v1796_v11  ;;  %v1801_v39 = vadd.f32 1.0, %v3351_v49 }
 0x1f7   : > { %v3355_v17 = vpop.eup %3354  ;;  %3374 = vrcp.f32 %v1860_v25  ;;  %v1865_v20 = vadd.f32 1.0, %v3353_v43 }
 0x1f8   : > { %v3357_v29 = vpop.eup %3356  ;;  %3376 = vrcp.f32 %v1801_v39  ;;  %v1799_v9 = vadd.f32 1.0, %v3355_v17 }
 0x1f9   : > { %v3359_v22 = vpop.eup %3358  ;;  %3378 = vrcp.f32 %v1865_v20  ;;  %v1863_v3 = vadd.f32 1.0, %v3357_v29 }
 0x1fa   : > { %v3361_v37 = vpop.eup %3360  ;;  %3380 = vrcp.f32 %v1799_v9  ;;  %v1802_v30 = vadd.f32 1.0, %v3359_v22 }
 0x1fb   : > { %v3363_v42 = vpop.eup %3362  ;;  %2181 = vst [vmem:[%s3640_s8 + $0x1b0] sm:$0xff] %v3361_v37  ;;  %3382 = vrcp.f32 %v1863_v3 }
 0x1fc   : > { %v3365_v57 = vpop.eup %3364  ;;  %2245 = vst [vmem:[%s3640_s8 + $0x3b0] sm:$0xff] %v3363_v42  ;;  %3384 = vrcp.f32 %v1802_v30 }
 0x1fd   : > { %v3367_v48 = vpop.eup %3366  ;;  %2179 = vst [vmem:[%s3640_s8 + $0x1a0] sm:$0xff] %v3365_v57  ;;  %3386 = vpow2.f32 %v2566_v28 }
 0x1fe   : > { %v3369_v4 = vpop.eup %3368  ;;  %2243 = vst [vmem:[%s3640_s8 + $0x3a0] sm:$0xff] %v3367_v48  ;;  %3388 = vpow2.f32 %v2500_v10 }
 0x1ff   : > { %v3371_v31 = vpop.eup %3370  ;;  %2182 = vst [vmem:[%s3640_s8 + $0x1b8] sm:$0xff] %v3369_v4  ;;  %3390 = vpow2.f32 %v2564_v8 }
 0x200   : > { %v3373_v51 = vpop.eup %3372  ;;  %2246 = vst [vmem:[%s3640_s8 + $0x3b8] sm:$0xff] %v3371_v31  ;;  %3392 = vpow2.f32 %v2505_v19 }
 0x201   : > { %v3375_v54 = vpop.eup %3374  ;;  %2180 = vst [vmem:[%s3640_s8 + $0x1a8] sm:$0xff] %v3373_v51  ;;  %3394 = vpow2.f32 %v2569_v18 }
 0x202   : > { %v3377_v26 = vpop.eup %3376  ;;  %2244 = vst [vmem:[%s3640_s8 + $0x3a8] sm:$0xff] %v3375_v54  ;;  %3396 = vpow2.f32 %v2503_v13 }
 0x203   : > { %v3379_v41 = vpop.eup %3378  ;;  %2185 = vst [vmem:[%s3640_s8 + $0x1d0] sm:$0xff] %v3377_v26  ;;  %3398 = vpow2.f32 %v2567_v24 }
 0x204   : > { %v3381_v27 = vpop.eup %3380  ;;  %2249 = vst [vmem:[%s3640_s8 + $0x3d0] sm:$0xff] %v3379_v41  ;;  %3400 = vpow2.f32 %v2506_v46 }
 0x205   : > { %v3383_v38 = vpop.eup %3382  ;;  %2183 = vst [vmem:[%s3640_s8 + $0x1c0] sm:$0xff] %v3381_v27  ;;  %3402 = vpow2.f32 %v2570_v2 }
 0x206   : > { %v3385_v61 = vpop.eup %3384  ;;  %2247 = vst [vmem:[%s3640_s8 + $0x3c0] sm:$0xff] %v3383_v38  ;;  %3404 = vpow2.f32 %v2504_v23 }
 0x207   : > { %v3387_v34 = vpop.eup %3386  ;;  %2186 = vst [vmem:[%s3640_s8 + $0x1d8] sm:$0xff] %v3385_v61  ;;  %3406 = vpow2.f32 %v2568_v56 }
 0x208   : > { %v3389_v16 = vpop.eup %3388  ;;  %v1866_v21 = vadd.f32 1.0, %v3387_v34 }
 0x209   : > { %v3391_v45 = vpop.eup %3390  ;;  %v1800_v6 = vadd.f32 1.0, %v3389_v16 }
 0x20a   : > { %v3393_v62 = vpop.eup %3392  ;;  %3408 = vrcp.f32 %v1866_v21  ;;  %v1864_v35 = vadd.f32 1.0, %v3391_v45 }
 0x20b   : > { %v3395_v33 = vpop.eup %3394  ;;  %3410 = vrcp.f32 %v1800_v6  ;;  %v1805_v11 = vadd.f32 1.0, %v3393_v62 }
 0x20c   : > { %v3397_v49 = vpop.eup %3396  ;;  %3412 = vrcp.f32 %v1864_v35  ;;  %v1869_v25 = vadd.f32 1.0, %v3395_v33 }
 0x20d   : > { %v3399_v14 = vpop.eup %3398  ;;  %3414 = vrcp.f32 %v1805_v11  ;;  %v1803_v15 = vadd.f32 1.0, %v3397_v49 }
 0x20e   : > { %v3401_v7 = vpop.eup %3400  ;;  %3416 = vrcp.f32 %v1869_v25  ;;  %v1867_v43 = vadd.f32 1.0, %v3399_v14 }
 0x20f   : > { %v3403_v39 = vpop.eup %3402  ;;  %3418 = vrcp.f32 %v1803_v15  ;;  %v1806_v50 = vadd.f32 1.0, %v3401_v7 }
 0x210   : > { %v3405_v17 = vpop.eup %3404  ;;  %3420 = vrcp.f32 %v1867_v43  ;;  %v1870_v20 = vadd.f32 1.0, %v3403_v39 }
 0x211   : > { %v3407_v47 = vpop.eup %3406  ;;  %3422 = vrcp.f32 %v1806_v50  ;;  %v1804_v32 = vadd.f32 1.0, %v3405_v17 }
 0x212   : > { %3424 = vrcp.f32 %v1870_v20  ;;  %v1868_v29 = vadd.f32 1.0, %v3407_v47 }
 0x213   : > { %3426 = vrcp.f32 %v1804_v32 }
 0x214   : > { %v3409_v9 = vpop.eup %3408  ;;  %3428 = vrcp.f32 %v1868_v29 }
 0x215   : > { %v3411_v40 = vpop.eup %3410  ;;  %2250 = vst [vmem:[%s3640_s8 + $0x3d8] sm:$0xff] %v3409_v9 }
 0x216   : > { %v3413_v22 = vpop.eup %3412  ;;  %2184 = vst [vmem:[%s3640_s8 + $0x1c8] sm:$0xff] %v3411_v40 }
 0x217   : > { %v3415_v3 = vpop.eup %3414  ;;  %2248 = vst [vmem:[%s3640_s8 + $0x3c8] sm:$0xff] %v3413_v22 }
 0x218   : > { %v3417_v28 = vpop.eup %3416  ;;  %2189 = vst [vmem:[%s3640_s8 + $0x1f0] sm:$0xff] %v3415_v3 }
 0x219   : > { %v3419_v59 = vpop.eup %3418  ;;  %2253 = vst [vmem:[%s3640_s8 + $0x3f0] sm:$0xff] %v3417_v28 }
 0x21a   : > { %v3421_v5 = vpop.eup %3420  ;;  %2187 = vst [vmem:[%s3640_s8 + $0x1e0] sm:$0xff] %v3419_v59 }
 0x21b   : > { %v3423_v37 = vpop.eup %3422  ;;  %2251 = vst [vmem:[%s3640_s8 + $0x3e0] sm:$0xff] %v3421_v5 }
 0x21c   : > { %v3425_v30 = vpop.eup %3424  ;;  %2190 = vst [vmem:[%s3640_s8 + $0x1f8] sm:$0xff] %v3423_v37 }
 0x21d   : > { %v3427_v10 = vpop.eup %3426  ;;  %2254 = vst [vmem:[%s3640_s8 + $0x3f8] sm:$0xff] %v3425_v30 }
 0x21e   : > { %v3429_v52 = vpop.eup %3428  ;;  %2188 = vst [vmem:[%s3640_s8 + $0x1e8] sm:$0xff] %v3427_v10 }
 0x21f   : > { %2252 = vst [vmem:[%s3640_s8 + $0x3e8] sm:$0xff] %v3429_v52 }
 0x220 PF: > { %s13_s16 = sadd.s32 1, %s3470_s16   ;;  %s4235_s12 = smov %s3462_s14 }
 0x221   : > { %p10_p7 = scmp.ge.s32.totalorder %s13_s16, 18   ;;  %s4236_s13 = smov %s3466_s15 }
 0x222   : > { %s4237_s14 = smov %s4240_s17  ;;  %s4238_s15 = smov %s4244_s18 }
 0x223   :  { %12 = sbr.rel (!%p10_p7) target bundleno = 3 (0x3), region = 65 }

</bundles_post_ra>
